<compile_context>
chip_gen: v6e
topology: v6e:2x2x1
jax: 0.10.0
libtpu: 0.0.40
codegen_flags: <defaults>
</compile_context>

<pallas_src>
import jax
import jax.numpy as jnp
import numpy as np
from jax import lax
from jax.experimental import pallas as pl
from jax.experimental.pallas import tpu as pltpu


# -----------------------------------------------------------------------------
# Padding / hardware-query helpers.
# -----------------------------------------------------------------------------
def _round_up(x, m):
    return ((x + m - 1) // m) * m


def _pad_gate_cols(w, H, Hp):
    """(..., 4H) -> (..., 4Hp): zero-pad each of the 4 gate blocks to Hp cols."""
    if Hp == H:
        return w
    parts = jnp.split(w, 4, axis=-1)
    pad = [(0, 0)] * (w.ndim - 1) + [(0, Hp - H)]
    return jnp.concatenate([jnp.pad(p, pad) for p in parts], axis=-1)


def _pad_rows(w, D, Dp):
    if Dp == D:
        return w
    return jnp.pad(w, [(0, Dp - D)] + [(0, 0)] * (w.ndim - 1))


def _tensorcores_per_chip():
    """Best-effort TensorCore count (v5e/v6e: 1, v7x: 2). Conservative default 1."""
    try:
        info = pltpu.get_tpu_info()
        for name in ("num_cores", "num_tensorcores", "tensorcores_per_chip",
                     "core_count"):
            v = getattr(info, name, None)
            if v:
                return int(v)
    except Exception:
        pass
    try:
        d = jax.devices()[0]
        for name in ("num_cores", "core_count"):
            v = getattr(d, name, None)
            if v:
                return int(v)
    except Exception:
        pass
    return 1


def _vmem_capacity_bytes():
    try:
        info = pltpu.get_tpu_info()
        v = getattr(info, "vmem_capacity_bytes", None)
        if v:
            return int(v)
    except Exception:
        pass
    return 64 << 20          # conservative default (v7x per-core VMEM)


# -----------------------------------------------------------------------------
# Pallas kernel: fused multi-layer LSTM recurrence.
# Grid = (batch_blocks, layers [carries VMEM scratch]).
# Gate order follows PyTorch: i, f, g, o.  Bias is pre-folded into gates_x.
# -----------------------------------------------------------------------------
def _decoder_lstm_kernel(gx0_ref, wih_ref, whh_ref, b_ref, h0_ref, c0_ref,
                         y_ref, hT_ref, cT_ref,
                         gates_scr, x_scr):
    l = pl.program_id(1)
    is_last = l == pl.num_programs(1) - 1
    T, Bb, Hp = x_scr.shape

    whh = whh_ref[0]                               # (Hp, 4Hp) bf16, VMEM-resident
    h0 = h0_ref[0].astype(jnp.float32)             # (Bb, Hp)
    c0 = c0_ref[0].astype(jnp.float32)

    def run_layer(read_gates):
        """Time recurrence; gates_x (bias already folded) comes from read_gates(t)."""
        def step(t, carry):
            h, c = carry
            # Only the small recurrent matmul lives on the serial path.
            # TODO(synk): v6e experiment -- hold W_hh in MXU staging regs via
            # pltpu.matmul_push_rhs/acc_lhs/pop (push once per layer) if the
            # bundle dump shows MXU-feed is the binding slot.
            gates = read_gates(t) + jnp.dot(
                h.astype(whh.dtype), whh, preferred_element_type=jnp.float32)
            i_g = jax.nn.sigmoid(gates[:, 0 * Hp:1 * Hp])
            f_g = jax.nn.sigmoid(gates[:, 1 * Hp:2 * Hp])
            g_g = jnp.tanh(gates[:, 2 * Hp:3 * Hp])
            o_g = jax.nn.sigmoid(gates[:, 3 * Hp:4 * Hp])
            c_new = f_g * c + i_g * g_g
            h_new = o_g * jnp.tanh(c_new)

            # Last layer streams straight into the output block (no epilogue
            # x_scr -> y copy); other layers feed the next layer via VMEM.
            @pl.when(is_last)
            def _():
                y_ref[t] = h_new.astype(y_ref.dtype)

            @pl.when(jnp.logical_not(is_last))
            def _():
                x_scr[t] = h_new.astype(x_scr.dtype)

            return h_new, c_new

        # Partial unroll: scheduler visibility without blowing the 64-entry
        # vreg file (each unrolled iter holds ~(Bb,4Hp) f32 of gates).
        hT, cT = lax.fori_loop(0, T, step, (h0, c0), unroll=min(T, 8))
        hT_ref[0] = hT.astype(hT_ref.dtype)
        cT_ref[0] = cT.astype(cT_ref.dtype)

    # Layer 0: gates_x precomputed in XLA (one big matmul, bias folded); read
    # directly from the bf16 input block -- no VMEM->VMEM staging copy.
    @pl.when(l == 0)
    def _():
        run_layer(lambda t: gx0_ref[t].astype(jnp.float32))

    # Layers > 0: one big input projection for the whole sequence (+ bias),
    # off the recurrent path, into bf16 VMEM scratch.
    @pl.when(l > 0)
    def _():
        # Merge-of-leading-dims reshape is done on the f32 copy (reshape of a
        # packed bf16 value is not guaranteed to lower); one-time per layer.
        x2d = x_scr[...].astype(jnp.float32).reshape(T * Bb, Hp)
        g2d = jnp.dot(x2d.astype(wih_ref.dtype), wih_ref[0],
                      preferred_element_type=jnp.float32) + b_ref[0]
        gates_scr[...] = g2d.reshape(T, Bb, 4 * Hp).astype(gates_scr.dtype)
        run_layer(lambda t: gates_scr[t].astype(jnp.float32))


def decoder_lstm_pallas(gates_x0, w_ih_rest, w_hh, bias, h0, c0, *,
                        single_buffer=True):
    """Fused L-layer LSTM over a full sequence.

    gates_x0 : (T, Bp, 4Hp) bf16  precomputed layer-0 input gates (bias folded)
    w_ih_rest: (max(L-1,1), Hp, 4Hp) bf16   input weights for layers 1..L-1
    w_hh     : (L, Hp, 4Hp) bf16
    bias     : (L, 1, 4Hp)  f32   (b_ih + b_hh, gate-padded; used for l > 0)
    h0, c0   : (L, Bp, Hp)  f32
    returns  y (T, Bp, Hp), hT (L, Bp, Hp), cT (L, Bp, Hp)   (f32)
    """
    T, Bp, G = gates_x0.shape
    L, Hp, _ = w_hh.shape
    assert G == 4 * Hp and Bp % 8 == 0 and Hp % 128 == 0

    # Split batch across blocks ONLY when a 2nd TensorCore exists (v7x); on
    # 1-TC v5e/v6e a split just serializes, re-DMAs weights and starves the MXU.
    n_cores = _tensorcores_per_chip()
    n_b = n_cores if (n_cores > 1 and Bp % (8 * n_cores) == 0) else 1
    Bb = Bp // n_b

    buf1 = pl.Buffered(1) if single_buffer else None

    def spec(shape, index_map, single=False):
        if single and buf1 is not None:
            return pl.BlockSpec(shape, index_map, pipeline_mode=buf1)
        return pl.BlockSpec(shape, index_map)

    grid_spec = pltpu.PrefetchScalarGridSpec(
        num_scalar_prefetch=0,
        grid=(n_b, L),
        in_specs=[
            # gates_x0: fetched once per batch block -> single-buffer.
            spec((T, Bb, G), lambda nb, l: (0, nb, 0), single=True),
            # Per-layer weights: index clamped so layer 0 (which does not use
            # w_ih_rest) reuses block 0; default double-buffering overlaps the
            # next layer's weight DMA with this layer's recurrence.
            spec((1, Hp, G), lambda nb, l: (jnp.maximum(l - 1, 0), 0, 0)),
            spec((1, Hp, G), lambda nb, l: (l, 0, 0)),      # w_hh
            spec((1, 1, G), lambda nb, l: (l, 0, 0)),       # bias
            spec((1, Bb, Hp), lambda nb, l: (l, nb, 0)),    # h0
            spec((1, Bb, Hp), lambda nb, l: (l, nb, 0)),    # c0
        ],
        out_specs=[
            # y: written once per batch block (last layer only) -> single-buffer.
            spec((T, Bb, Hp), lambda nb, l: (0, nb, 0), single=True),
            spec((1, Bb, Hp), lambda nb, l: (l, nb, 0)),    # hT
            spec((1, Bb, Hp), lambda nb, l: (l, nb, 0)),    # cT
        ],
        scratch_shapes=[
            pltpu.VMEM((T, Bb, G), jnp.bfloat16),    # current layer input gates
            pltpu.VMEM((T, Bb, Hp), jnp.bfloat16),   # inter-layer activations
        ],
    )

    # Explicit scoped-VMEM budget: real block/scratch footprint with margin,
    # capped at ~3/4 of physical VMEM (v5e/v6e 128 MiB -> ~96; v7x 64 -> 48).
    nbuf = 1 if single_buffer else 2
    needed = (
        nbuf * T * Bb * G * 2            # gates_x0 blocks (bf16)
        + 2 * Hp * G * 2                 # w_ih_rest block (bf16, double-buffered)
        + 2 * Hp * G * 2                 # w_hh block (bf16, double-buffered)
        + 2 * G * 4                      # bias block
        + 2 * 2 * Bb * Hp * 4            # h0 + c0 blocks
        + nbuf * T * Bb * Hp * 4         # y blocks (f32)
        + 2 * 2 * Bb * Hp * 4            # hT + cT blocks
        + T * Bb * G * 2                 # gates scratch (bf16)
        + T * Bb * Hp * 2)               # inter-layer scratch (bf16)
    cap = max(int(_vmem_capacity_bytes() * 3 / 4), 48 << 20)
    vmem_limit = int(min(max(2 * needed + (8 << 20), 32 << 20), cap))

    if n_b > 1:
        # Only CORE_PARALLEL semantics actually shard a grid axis across
        # TensorCores (plain "parallel" has near-zero codegen effect).
        lead = getattr(pltpu, "CORE_PARALLEL", pltpu.PARALLEL)
        dim_sem = (lead, pltpu.ARBITRARY)
    else:
        dim_sem = (pltpu.ARBITRARY, pltpu.ARBITRARY)

    return pl.pallas_call(
        _decoder_lstm_kernel,
        grid_spec=grid_spec,
        out_shape=(
            jax.ShapeDtypeStruct((T, Bp, Hp), jnp.float32),
            jax.ShapeDtypeStruct((L, Bp, Hp), jnp.float32),
            jax.ShapeDtypeStruct((L, Bp, Hp), jnp.float32),
        ),
        compiler_params=pltpu.CompilerParams(
            dimension_semantics=dim_sem,
            vmem_limit_bytes=vmem_limit,
        ),
    )(gates_x0, w_ih_rest, w_hh, bias, h0, c0)


# -----------------------------------------------------------------------------
# One-time parameter preparation: split/transpose/pad/cast.
# -----------------------------------------------------------------------------
def prepare_decoder_params(params):
    L = params["num_layers"]
    emb_table = params["embedding"]                     # (V, E) f32
    E = emb_table.shape[1]
    H = params["w_hh"][0].shape[0]
    Hp = _round_up(H, 128)

    w_ih0 = params["w_ih"][0]                           # (E + H, 4H)
    w_emb0 = _pad_gate_cols(w_ih0[:E], H, Hp).astype(jnp.bfloat16)   # (E, 4Hp)
    w_feed0 = _pad_gate_cols(w_ih0[E:], H, Hp).astype(jnp.bfloat16)  # (H, 4Hp)

    def pad_square(w):                                  # (H, 4H) -> (Hp, 4Hp)
        return _pad_rows(_pad_gate_cols(w, H, Hp), H, Hp)

    w_hh = jnp.stack([pad_square(params["w_hh"][l])
                      for l in range(L)]).astype(jnp.bfloat16)
    if L > 1:
        w_ih_rest = jnp.stack([pad_square(params["w_ih"][l])
                               for l in range(1, L)]).astype(jnp.bfloat16)
    else:
        w_ih_rest = jnp.zeros((1, Hp, 4 * Hp), jnp.bfloat16)
    bias = jnp.stack([_pad_gate_cols(params["bias"][l], H, Hp)
                      for l in range(L)])               # (L, 1, 4Hp) f32

    return {"num_layers": L, "E": E, "H": H, "Hp": Hp,
            "embedding": emb_table, "w_emb0": w_emb0, "w_feed0": w_feed0,
            "w_ih_rest": w_ih_rest, "w_hh": w_hh, "bias": bias}


# -----------------------------------------------------------------------------
# RNNDecoder forward (glue in XLA, fused LSTM hot path in Pallas).
# -----------------------------------------------------------------------------
def rnn_decoder_forward(tokens, context, hidden, prep):
    """
    tokens : (T, B) int32          -- input token ids (nfeats squeezed)
    context: (S, B, H) float32     -- encoder context (batch check only)
    hidden : (h, c) each (L, B, H) float32
    returns outputs (T, B, H), new hidden (h, c), input_feed (1, B, H)
    """
    h_state, c_state = hidden
    T, B = tokens.shape
    assert context.shape[1] == B, "aeq(input_batch, contxt_batch)"
    H, Hp = prep["H"], prep["Hp"]
    Bp = _round_up(max(B, 8), 8 * max(1, _tensorcores_per_chip()))

    # emb = self.embeddings(input); worddropout/dropout are identity in eval.
    emb = jnp.take(prep["embedding"], tokens, axis=0)            # (T, B, E)

    # Hoisted layer-0 input projection as ONE big matmul, with the constant
    # h0-feed term and the layer-0 bias folded in (the (T,B,E+H) concat never
    # materializes, and no bias add remains on the recurrent path).
    gx = jnp.dot(emb.reshape(T * B, -1).astype(jnp.bfloat16), prep["w_emb0"],
                 preferred_element_type=jnp.float32).reshape(T, B, 4 * Hp)
    gx = gx + jnp.dot(h_state[0].astype(jnp.bfloat16), prep["w_feed0"],
                      preferred_element_type=jnp.float32)[None]
    gx = gx + prep["bias"][0]
    # bf16 gate buffer: halves the dominant HBM->VMEM DMA and VMEM residency.
    gates_x0 = jnp.pad(gx, ((0, 0), (0, Bp - B), (0, 0))).astype(jnp.bfloat16)

    h0p = jnp.pad(h_state, ((0, 0), (0, Bp - B), (0, Hp - H)))
    c0p = jnp.pad(c_state, ((0, 0), (0, Bp - B), (0, Hp - H)))

    try:
        y, hT, cT = decoder_lstm_pallas(
            gates_x0, prep["w_ih_rest"], prep["w_hh"], prep["bias"],
            h0p, c0p, single_buffer=True)
    except Exception:
        # pl.Buffered / pipeline_mode is a newer API; fall back to default
        # double-buffering if this JAX build rejects it.
        y, hT, cT = decoder_lstm_pallas(
            gates_x0, prep["w_ih_rest"], prep["w_hh"], prep["bias"],
            h0p, c0p, single_buffer=False)

    outputs = y[:, :B, :H]                                       # (T, B, H)
    new_hidden = (hT[:, :B, :H], cT[:, :B, :H])                  # (L, B, H)
    input_feed = outputs[-1][None]                               # (1, B, H)
    return outputs, new_hidden, input_feed


# -----------------------------------------------------------------------------
# Pure-JAX f32 reference (lax.scan LSTM) for a correctness check.
# -----------------------------------------------------------------------------
def _reference_forward(tokens, context, hidden, params):
    h_state, c_state = hidden
    T, B = tokens.shape
    H = h_state.shape[-1]
    emb = jnp.take(params["embedding"], tokens, axis=0)
    x = jnp.concatenate(
        [emb, jnp.broadcast_to(h_state[0][None], (T, B, H))], axis=-1)

    def cell(w_ih, w_hh, b):
        def step(carry, x_t):
            h, c = carry
            gates = x_t @ w_ih + h @ w_hh + b
            i, f, g, o = jnp.split(gates, 4, axis=-1)
            c_new = jax.nn.sigmoid(f) * c + jax.nn.sigmoid(i) * jnp.tanh(g)
            h_new = jax.nn.sigmoid(o) * jnp.tanh(c_new)
            return (h_new, c_new), h_new
        return step

    hs, cs = [], []
    for l in range(params["num_layers"]):
        (hT, cT), x = lax.scan(
            cell(params["w_ih"][l], params["w_hh"][l], params["bias"][l]),
            (h_state[l], c_state[l]), x)
        hs.append(hT)
        cs.append(cT)
    return x, (jnp.stack(hs), jnp.stack(cs)), x[-1][None]


# -----------------------------------------------------------------------------
# Main: deterministic small example.
# -----------------------------------------------------------------------------
if __name__ == "__main__":
    T, B, S = 8, 4, 10                 # decode len, batch, src len
    VOCAB, E, H, L = 50, 32, 32, 2     # vocab, emb size, hidden size, layers
    D0 = E + H                         # layer-0 input size (emb + h0 concat)

    key = jax.random.PRNGKey(0)
    ks = jax.random.split(key, 12)

    params = {
        "num_layers": L,
        "embedding": jax.random.normal(ks[0], (VOCAB, E), jnp.float32) * 0.1,
        "w_ih": [
            jax.random.normal(ks[1], (D0, 4 * H), jnp.float32) * 0.1,
            jax.random.normal(ks[2], (H, 4 * H), jnp.float32) * 0.1,
        ],
        "w_hh": [
            jax.random.normal(ks[3], (H, 4 * H), jnp.float32) * 0.1,
            jax.random.normal(ks[4], (H, 4 * H), jnp.float32) * 0.1,
        ],
        "bias": [
            jax.random.normal(ks[5], (1, 4 * H), jnp.float32) * 0.1,
            jax.random.normal(ks[6], (1, 4 * H), jnp.float32) * 0.1,
        ],
    }

    tokens = jax.random.randint(ks[7], (T, B), 0, VOCAB, jnp.int32)
    context = jax.random.normal(ks[8], (S, B, H), jnp.float32)
    h0 = jax.random.normal(ks[9], (L, B, H), jnp.float32) * 0.5
    c0 = jax.random.normal(ks[10], (L, B, H), jnp.float32) * 0.5

    prep = prepare_decoder_params(params)

    outputs, (hT, cT), input_feed = rnn_decoder_forward(
        tokens, context, (h0, c0), prep)
    jax.block_until_ready(outputs)
    jax.block_until_ready(hT)
    jax.block_until_ready(cT)

    ref_out, (ref_h, ref_c), ref_feed = _reference_forward(
        tokens, context, (h0, c0), params)

    # bf16 weights/gates on the MXU path -> compare against the f32 reference
    # with a correspondingly loose (but still tight in absolute terms) tol.
    # TODO(synk): re-validate tolerance at production T/H; keep h@W_hh in f32
    # if the recurrent bf16 rounding compounds too much at long T.
    np.testing.assert_allclose(np.asarray(outputs), np.asarray(ref_out),
                               rtol=2e-2, atol=2e-2)
    np.testing.assert_allclose(np.asarray(hT), np.asarray(ref_h),
                               rtol=2e-2, atol=2e-2)
    np.testing.assert_allclose(np.asarray(cT), np.asarray(ref_c),
                               rtol=2e-2, atol=2e-2)
    np.testing.assert_allclose(np.asarray(input_feed), np.asarray(ref_feed),
                               rtol=2e-2, atol=2e-2)

    # TODO(synk): dropout / worddropout are identity in eval mode; training-mode
    # stochastic dropout would need pltpu.prng_* inside the kernel.
    print("KERNEL_OK")
</pallas_src>

<mosaic_0001>
module attributes {stable_mosaic.version = 11 : i64} {
  func.func @_decoder_lstm_kernel(%arg0: i32, %arg1: i32, %arg2: memref<8x8x512xbf16, #tpu.memory_space<vmem>>, %arg3: memref<1x128x512xbf16, #tpu.memory_space<vmem>>, %arg4: memref<1x128x512xbf16, #tpu.memory_space<vmem>>, %arg5: memref<1x1x512xf32, #tpu.memory_space<vmem>>, %arg6: memref<1x8x128xf32, #tpu.memory_space<vmem>>, %arg7: memref<1x8x128xf32, #tpu.memory_space<vmem>>, %arg8: memref<8x8x128xf32, #tpu.memory_space<vmem>>, %arg9: memref<1x8x128xf32, #tpu.memory_space<vmem>>, %arg10: memref<1x8x128xf32, #tpu.memory_space<vmem>>, %arg11: memref<8x8x512xbf16, #tpu.memory_space<vmem>>, %arg12: memref<8x8x128xbf16, #tpu.memory_space<vmem>>) attributes {dimension_semantics = [#tpu.dimension_semantics<arbitrary>, #tpu.dimension_semantics<arbitrary>], iteration_bounds = array<i64: 1, 2>, scalar_prefetch = 0 : i64, scratch_operands = 2 : i64, tpu.core_type = #tpu.core_type<tc>, window_params = [{pipeline_mode = #tpu.pipeline_mode<synchronous>, transform_indices = @transform_0, window_bounds = array<i64: 8, 8, 512>}, {transform_indices = @transform_1, window_bounds = array<i64: 1, 128, 512>}, {transform_indices = @transform_2, window_bounds = array<i64: 1, 128, 512>}, {transform_indices = @transform_3, window_bounds = array<i64: 1, 1, 512>}, {transform_indices = @transform_4, window_bounds = array<i64: 1, 8, 128>}, {transform_indices = @transform_5, window_bounds = array<i64: 1, 8, 128>}, {pipeline_mode = #tpu.pipeline_mode<synchronous>, transform_indices = @transform_6, window_bounds = array<i64: 8, 8, 128>}, {transform_indices = @transform_7, window_bounds = array<i64: 1, 8, 128>}, {transform_indices = @transform_8, window_bounds = array<i64: 1, 8, 128>}]} {
    %c1_i32 = arith.constant 1 : i32
    %0 = arith.cmpi eq, %arg1, %c1_i32 : i32
    %c0 = arith.constant 0 : index
    %c0_0 = arith.constant 0 : index
    %c0_1 = arith.constant 0 : index
    %1 = vector.load %arg4[%c0, %c0_0, %c0_1] : memref<1x128x512xbf16, #tpu.memory_space<vmem>>, vector<1x128x512xbf16>
    %2 = vector.shape_cast %1 : vector<1x128x512xbf16> to vector<128x512xbf16>
    %c0_2 = arith.constant 0 : index
    %c0_3 = arith.constant 0 : index
    %c0_4 = arith.constant 0 : index
    %3 = vector.load %arg6[%c0_2, %c0_3, %c0_4] : memref<1x8x128xf32, #tpu.memory_space<vmem>>, vector<1x8x128xf32>
    %4 = vector.shape_cast %3 : vector<1x8x128xf32> to vector<8x128xf32>
    %c0_5 = arith.constant 0 : index
    %c0_6 = arith.constant 0 : index
    %c0_7 = arith.constant 0 : index
    %5 = vector.load %arg7[%c0_5, %c0_6, %c0_7] : memref<1x8x128xf32, #tpu.memory_space<vmem>>, vector<1x8x128xf32>
    %6 = vector.shape_cast %5 : vector<1x8x128xf32> to vector<8x128xf32>
    %c0_i32 = arith.constant 0 : i32
    %7 = arith.cmpi eq, %arg1, %c0_i32 : i32
    %8 = arith.extui %7 : i1 to i32
    %c0_i32_8 = arith.constant 0 : i32
    %9 = arith.cmpi ne, %8, %c0_i32_8 : i32
    scf.if %9 {
      %c0_i32_11 = arith.constant 0 : i32
      %13 = arith.index_cast %c0_i32_11 : i32 to index
      %c0_12 = arith.constant 0 : index
      %c0_13 = arith.constant 0 : index
      %14 = vector.load %arg2[%13, %c0_12, %c0_13] : memref<8x8x512xbf16, #tpu.memory_space<vmem>>, vector<1x8x512xbf16>
      %15 = vector.shape_cast %14 : vector<1x8x512xbf16> to vector<8x512xbf16>
      %16 = arith.extf %15 : vector<8x512xbf16> to vector<8x512xf32>
      %17 = arith.truncf %4 : vector<8x128xf32> to vector<8x128xbf16>
      %cst = arith.constant dense<0.000000e+00> : vector<8x512xf32>
      %18 = tpu.matmul %17, %2, %cst {dimension_numbers = #tpu.dot_dimension_numbers<[1], [0], [0], [1], [0, 0, 1, 1], [], []>} : vector<8x128xbf16>, vector<128x512xbf16>, vector<8x512xf32> -> vector<8x512xf32>
      %19 = arith.addf %16, %18 : vector<8x512xf32>
      %20 = vector.extract_strided_slice %19 {offsets = [0, 0], sizes = [8, 128], strides = [1, 1]} : vector<8x512xf32> to vector<8x128xf32>
      %21 = arith.negf %20 : vector<8x128xf32>
      %22 = math.exp %21 : vector<8x128xf32>
      %cst_14 = arith.constant 1.000000e+00 : f32
      %23 = vector.broadcast %cst_14 : f32 to vector<8x128xf32>
      %24 = arith.addf %23, %22 : vector<8x128xf32>
      %25 = arith.divf %23, %24 : vector<8x128xf32>
      %26 = vector.extract_strided_slice %19 {offsets = [0, 128], sizes = [8, 128], strides = [1, 1]} : vector<8x512xf32> to vector<8x128xf32>
      %27 = arith.negf %26 : vector<8x128xf32>
      %28 = math.exp %27 : vector<8x128xf32>
      %cst_15 = arith.constant 1.000000e+00 : f32
      %29 = vector.broadcast %cst_15 : f32 to vector<8x128xf32>
      %30 = arith.addf %29, %28 : vector<8x128xf32>
      %31 = arith.divf %29, %30 : vector<8x128xf32>
      %32 = vector.extract_strided_slice %19 {offsets = [0, 256], sizes = [8, 128], strides = [1, 1]} : vector<8x512xf32> to vector<8x128xf32>
      %33 = math.tanh %32 : vector<8x128xf32>
      %34 = vector.extract_strided_slice %19 {offsets = [0, 384], sizes = [8, 128], strides = [1, 1]} : vector<8x512xf32> to vector<8x128xf32>
      %35 = arith.negf %34 : vector<8x128xf32>
      %36 = math.exp %35 : vector<8x128xf32>
      %cst_16 = arith.constant 1.000000e+00 : f32
      %37 = vector.broadcast %cst_16 : f32 to vector<8x128xf32>
      %38 = arith.addf %37, %36 : vector<8x128xf32>
      %39 = arith.divf %37, %38 : vector<8x128xf32>
      %40 = arith.mulf %31, %6 : vector<8x128xf32>
      %41 = arith.mulf %25, %33 : vector<8x128xf32>
      %42 = arith.addf %40, %41 : vector<8x128xf32>
      %43 = math.tanh %42 : vector<8x128xf32>
      %44 = arith.mulf %39, %43 : vector<8x128xf32>
      %45 = arith.extui %0 : i1 to i32
      %c0_i32_17 = arith.constant 0 : i32
      %46 = arith.cmpi ne, %45, %c0_i32_17 : i32
      scf.if %46 {
        %315 = arith.index_cast %c0_i32_11 : i32 to index
        %c0_89 = arith.constant 0 : index
        %c0_90 = arith.constant 0 : index
        %316 = vector.load %arg8[%315, %c0_89, %c0_90] : memref<8x8x128xf32, #tpu.memory_space<vmem>>, vector<1x8x128xf32>
        %317 = vector.shape_cast %316 : vector<1x8x128xf32> to vector<8x128xf32>
        %318 = vector.shape_cast %44 : vector<8x128xf32> to vector<1x8x128xf32>
        tpu.vector_store %arg8[%315, %c0_89, %c0_90], %318 {strides = array<i32>} : memref<8x8x128xf32, #tpu.memory_space<vmem>>, vector<1x8x128xf32>,
      } else {
      }
      %true = arith.constant true
      %47 = arith.xori %0, %true : i1
      %48 = arith.extui %47 : i1 to i32
      %c0_i32_18 = arith.constant 0 : i32
      %49 = arith.cmpi ne, %48, %c0_i32_18 : i32
      scf.if %49 {
        %315 = arith.truncf %44 : vector<8x128xf32> to vector<8x128xbf16>
        %316 = arith.index_cast %c0_i32_11 : i32 to index
        %c0_89 = arith.constant 0 : index
        %c0_90 = arith.constant 0 : index
        %317 = vector.load %arg12[%316, %c0_89, %c0_90] : memref<8x8x128xbf16, #tpu.memory_space<vmem>>, vector<1x8x128xbf16>
        %318 = vector.shape_cast %317 : vector<1x8x128xbf16> to vector<8x128xbf16>
        %319 = vector.shape_cast %315 : vector<8x128xbf16> to vector<1x8x128xbf16>
        tpu.vector_store %arg12[%316, %c0_89, %c0_90], %319 {strides = array<i32>} : memref<8x8x128xbf16, #tpu.memory_space<vmem>>, vector<1x8x128xbf16>,
      } else {
      }
      %c1_i32_19 = arith.constant 1 : i32
      %50 = arith.index_cast %c1_i32_19 : i32 to index
      %c0_20 = arith.constant 0 : index
      %c0_21 = arith.constant 0 : index
      %51 = vector.load %arg2[%50, %c0_20, %c0_21] : memref<8x8x512xbf16, #tpu.memory_space<vmem>>, vector<1x8x512xbf16>
      %52 = vector.shape_cast %51 : vector<1x8x512xbf16> to vector<8x512xbf16>
      %53 = arith.extf %52 : vector<8x512xbf16> to vector<8x512xf32>
      %54 = arith.truncf %44 : vector<8x128xf32> to vector<8x128xbf16>
      %cst_22 = arith.constant dense<0.000000e+00> : vector<8x512xf32>
      %55 = tpu.matmul %54, %2, %cst_22 {dimension_numbers = #tpu.dot_dimension_numbers<[1], [0], [0], [1], [0, 0, 1, 1], [], []>} : vector<8x128xbf16>, vector<128x512xbf16>, vector<8x512xf32> -> vector<8x512xf32>
      %56 = arith.addf %53, %55 : vector<8x512xf32>
      %57 = vector.extract_strided_slice %56 {offsets = [0, 0], sizes = [8, 128], strides = [1, 1]} : vector<8x512xf32> to vector<8x128xf32>
      %58 = arith.negf %57 : vector<8x128xf32>
      %59 = math.exp %58 : vector<8x128xf32>
      %cst_23 = arith.constant 1.000000e+00 : f32
      %60 = vector.broadcast %cst_23 : f32 to vector<8x128xf32>
      %61 = arith.addf %60, %59 : vector<8x128xf32>
      %62 = arith.divf %60, %61 : vector<8x128xf32>
      %63 = vector.extract_strided_slice %56 {offsets = [0, 128], sizes = [8, 128], strides = [1, 1]} : vector<8x512xf32> to vector<8x128xf32>
      %64 = arith.negf %63 : vector<8x128xf32>
      %65 = math.exp %64 : vector<8x128xf32>
      %cst_24 = arith.constant 1.000000e+00 : f32
      %66 = vector.broadcast %cst_24 : f32 to vector<8x128xf32>
      %67 = arith.addf %66, %65 : vector<8x128xf32>
      %68 = arith.divf %66, %67 : vector<8x128xf32>
      %69 = vector.extract_strided_slice %56 {offsets = [0, 256], sizes = [8, 128], strides = [1, 1]} : vector<8x512xf32> to vector<8x128xf32>
      %70 = math.tanh %69 : vector<8x128xf32>
      %71 = vector.extract_strided_slice %56 {offsets = [0, 384], sizes = [8, 128], strides = [1, 1]} : vector<8x512xf32> to vector<8x128xf32>
      %72 = arith.negf %71 : vector<8x128xf32>
      %73 = math.exp %72 : vector<8x128xf32>
      %cst_25 = arith.constant 1.000000e+00 : f32
      %74 = vector.broadcast %cst_25 : f32 to vector<8x128xf32>
      %75 = arith.addf %74, %73 : vector<8x128xf32>
      %76 = arith.divf %74, %75 : vector<8x128xf32>
      %77 = arith.mulf %68, %42 : vector<8x128xf32>
      %78 = arith.mulf %62, %70 : vector<8x128xf32>
      %79 = arith.addf %77, %78 : vector<8x128xf32>
      %80 = math.tanh %79 : vector<8x128xf32>
      %81 = arith.mulf %76, %80 : vector<8x128xf32>
      %82 = arith.extui %0 : i1 to i32
      %c0_i32_26 = arith.constant 0 : i32
      %83 = arith.cmpi ne, %82, %c0_i32_26 : i32
      scf.if %83 {
        %315 = arith.index_cast %c1_i32_19 : i32 to index
        %c0_89 = arith.constant 0 : index
        %c0_90 = arith.constant 0 : index
        %316 = vector.load %arg8[%315, %c0_89, %c0_90] : memref<8x8x128xf32, #tpu.memory_space<vmem>>, vector<1x8x128xf32>
        %317 = vector.shape_cast %316 : vector<1x8x128xf32> to vector<8x128xf32>
        %318 = vector.shape_cast %81 : vector<8x128xf32> to vector<1x8x128xf32>
        tpu.vector_store %arg8[%315, %c0_89, %c0_90], %318 {strides = array<i32>} : memref<8x8x128xf32, #tpu.memory_space<vmem>>, vector<1x8x128xf32>,
      } else {
      }
      %true_27 = arith.constant true
      %84 = arith.xori %0, %true_27 : i1
      %85 = arith.extui %84 : i1 to i32
      %c0_i32_28 = arith.constant 0 : i32
      %86 = arith.cmpi ne, %85, %c0_i32_28 : i32
      scf.if %86 {
        %315 = arith.truncf %81 : vector<8x128xf32> to vector<8x128xbf16>
        %316 = arith.index_cast %c1_i32_19 : i32 to index
        %c0_89 = arith.constant 0 : index
        %c0_90 = arith.constant 0 : index
        %317 = vector.load %arg12[%316, %c0_89, %c0_90] : memref<8x8x128xbf16, #tpu.memory_space<vmem>>, vector<1x8x128xbf16>
        %318 = vector.shape_cast %317 : vector<1x8x128xbf16> to vector<8x128xbf16>
        %319 = vector.shape_cast %315 : vector<8x128xbf16> to vector<1x8x128xbf16>
        tpu.vector_store %arg12[%316, %c0_89, %c0_90], %319 {strides = array<i32>} : memref<8x8x128xbf16, #tpu.memory_space<vmem>>, vector<1x8x128xbf16>,
      } else {
      }
      %c2_i32 = arith.constant 2 : i32
      %87 = arith.index_cast %c2_i32 : i32 to index
      %c0_29 = arith.constant 0 : index
      %c0_30 = arith.constant 0 : index
      %88 = vector.load %arg2[%87, %c0_29, %c0_30] : memref<8x8x512xbf16, #tpu.memory_space<vmem>>, vector<1x8x512xbf16>
      %89 = vector.shape_cast %88 : vector<1x8x512xbf16> to vector<8x512xbf16>
      %90 = arith.extf %89 : vector<8x512xbf16> to vector<8x512xf32>
      %91 = arith.truncf %81 : vector<8x128xf32> to vector<8x128xbf16>
      %cst_31 = arith.constant dense<0.000000e+00> : vector<8x512xf32>
      %92 = tpu.matmul %91, %2, %cst_31 {dimension_numbers = #tpu.dot_dimension_numbers<[1], [0], [0], [1], [0, 0, 1, 1], [], []>} : vector<8x128xbf16>, vector<128x512xbf16>, vector<8x512xf32> -> vector<8x512xf32>
      %93 = arith.addf %90, %92 : vector<8x512xf32>
      %94 = vector.extract_strided_slice %93 {offsets = [0, 0], sizes = [8, 128], strides = [1, 1]} : vector<8x512xf32> to vector<8x128xf32>
      %95 = arith.negf %94 : vector<8x128xf32>
      %96 = math.exp %95 : vector<8x128xf32>
      %cst_32 = arith.constant 1.000000e+00 : f32
      %97 = vector.broadcast %cst_32 : f32 to vector<8x128xf32>
      %98 = arith.addf %97, %96 : vector<8x128xf32>
      %99 = arith.divf %97, %98 : vector<8x128xf32>
      %100 = vector.extract_strided_slice %93 {offsets = [0, 128], sizes = [8, 128], strides = [1, 1]} : vector<8x512xf32> to vector<8x128xf32>
      %101 = arith.negf %100 : vector<8x128xf32>
      %102 = math.exp %101 : vector<8x128xf32>
      %cst_33 = arith.constant 1.000000e+00 : f32
      %103 = vector.broadcast %cst_33 : f32 to vector<8x128xf32>
      %104 = arith.addf %103, %102 : vector<8x128xf32>
      %105 = arith.divf %103, %104 : vector<8x128xf32>
      %106 = vector.extract_strided_slice %93 {offsets = [0, 256], sizes = [8, 128], strides = [1, 1]} : vector<8x512xf32> to vector<8x128xf32>
      %107 = math.tanh %106 : vector<8x128xf32>
      %108 = vector.extract_strided_slice %93 {offsets = [0, 384], sizes = [8, 128], strides = [1, 1]} : vector<8x512xf32> to vector<8x128xf32>
      %109 = arith.negf %108 : vector<8x128xf32>
      %110 = math.exp %109 : vector<8x128xf32>
      %cst_34 = arith.constant 1.000000e+00 : f32
      %111 = vector.broadcast %cst_34 : f32 to vector<8x128xf32>
      %112 = arith.addf %111, %110 : vector<8x128xf32>
      %113 = arith.divf %111, %112 : vector<8x128xf32>
      %114 = arith.mulf %105, %79 : vector<8x128xf32>
      %115 = arith.mulf %99, %107 : vector<8x128xf32>
      %116 = arith.addf %114, %115 : vector<8x128xf32>
      %117 = math.tanh %116 : vector<8x128xf32>
      %118 = arith.mulf %113, %117 : vector<8x128xf32>
      %119 = arith.extui %0 : i1 to i32
      %c0_i32_35 = arith.constant 0 : i32
      %120 = arith.cmpi ne, %119, %c0_i32_35 : i32
      scf.if %120 {
        %315 = arith.index_cast %c2_i32 : i32 to index
        %c0_89 = arith.constant 0 : index
        %c0_90 = arith.constant 0 : index
        %316 = vector.load %arg8[%315, %c0_89, %c0_90] : memref<8x8x128xf32, #tpu.memory_space<vmem>>, vector<1x8x128xf32>
        %317 = vector.shape_cast %316 : vector<1x8x128xf32> to vector<8x128xf32>
        %318 = vector.shape_cast %118 : vector<8x128xf32> to vector<1x8x128xf32>
        tpu.vector_store %arg8[%315, %c0_89, %c0_90], %318 {strides = array<i32>} : memref<8x8x128xf32, #tpu.memory_space<vmem>>, vector<1x8x128xf32>,
      } else {
      }
      %true_36 = arith.constant true
      %121 = arith.xori %0, %true_36 : i1
      %122 = arith.extui %121 : i1 to i32
      %c0_i32_37 = arith.constant 0 : i32
      %123 = arith.cmpi ne, %122, %c0_i32_37 : i32
      scf.if %123 {
        %315 = arith.truncf %118 : vector<8x128xf32> to vector<8x128xbf16>
        %316 = arith.index_cast %c2_i32 : i32 to index
        %c0_89 = arith.constant 0 : index
        %c0_90 = arith.constant 0 : index
        %317 = vector.load %arg12[%316, %c0_89, %c0_90] : memref<8x8x128xbf16, #tpu.memory_space<vmem>>, vector<1x8x128xbf16>
        %318 = vector.shape_cast %317 : vector<1x8x128xbf16> to vector<8x128xbf16>
        %319 = vector.shape_cast %315 : vector<8x128xbf16> to vector<1x8x128xbf16>
        tpu.vector_store %arg12[%316, %c0_89, %c0_90], %319 {strides = array<i32>} : memref<8x8x128xbf16, #tpu.memory_space<vmem>>, vector<1x8x128xbf16>,
      } else {
      }
      %c3_i32 = arith.constant 3 : i32
      %124 = arith.index_cast %c3_i32 : i32 to index
      %c0_38 = arith.constant 0 : index
      %c0_39 = arith.constant 0 : index
      %125 = vector.load %arg2[%124, %c0_38, %c0_39] : memref<8x8x512xbf16, #tpu.memory_space<vmem>>, vector<1x8x512xbf16>
      %126 = vector.shape_cast %125 : vector<1x8x512xbf16> to vector<8x512xbf16>
      %127 = arith.extf %126 : vector<8x512xbf16> to vector<8x512xf32>
      %128 = arith.truncf %118 : vector<8x128xf32> to vector<8x128xbf16>
      %cst_40 = arith.constant dense<0.000000e+00> : vector<8x512xf32>
      %129 = tpu.matmul %128, %2, %cst_40 {dimension_numbers = #tpu.dot_dimension_numbers<[1], [0], [0], [1], [0, 0, 1, 1], [], []>} : vector<8x128xbf16>, vector<128x512xbf16>, vector<8x512xf32> -> vector<8x512xf32>
      %130 = arith.addf %127, %129 : vector<8x512xf32>
      %131 = vector.extract_strided_slice %130 {offsets = [0, 0], sizes = [8, 128], strides = [1, 1]} : vector<8x512xf32> to vector<8x128xf32>
      %132 = arith.negf %131 : vector<8x128xf32>
      %133 = math.exp %132 : vector<8x128xf32>
      %cst_41 = arith.constant 1.000000e+00 : f32
      %134 = vector.broadcast %cst_41 : f32 to vector<8x128xf32>
      %135 = arith.addf %134, %133 : vector<8x128xf32>
      %136 = arith.divf %134, %135 : vector<8x128xf32>
      %137 = vector.extract_strided_slice %130 {offsets = [0, 128], sizes = [8, 128], strides = [1, 1]} : vector<8x512xf32> to vector<8x128xf32>
      %138 = arith.negf %137 : vector<8x128xf32>
      %139 = math.exp %138 : vector<8x128xf32>
      %cst_42 = arith.constant 1.000000e+00 : f32
      %140 = vector.broadcast %cst_42 : f32 to vector<8x128xf32>
      %141 = arith.addf %140, %139 : vector<8x128xf32>
      %142 = arith.divf %140, %141 : vector<8x128xf32>
      %143 = vector.extract_strided_slice %130 {offsets = [0, 256], sizes = [8, 128], strides = [1, 1]} : vector<8x512xf32> to vector<8x128xf32>
      %144 = math.tanh %143 : vector<8x128xf32>
      %145 = vector.extract_strided_slice %130 {offsets = [0, 384], sizes = [8, 128], strides = [1, 1]} : vector<8x512xf32> to vector<8x128xf32>
      %146 = arith.negf %145 : vector<8x128xf32>
      %147 = math.exp %146 : vector<8x128xf32>
      %cst_43 = arith.constant 1.000000e+00 : f32
      %148 = vector.broadcast %cst_43 : f32 to vector<8x128xf32>
      %149 = arith.addf %148, %147 : vector<8x128xf32>
      %150 = arith.divf %148, %149 : vector<8x128xf32>
      %151 = arith.mulf %142, %116 : vector<8x128xf32>
      %152 = arith.mulf %136, %144 : vector<8x128xf32>
      %153 = arith.addf %151, %152 : vector<8x128xf32>
      %154 = math.tanh %153 : vector<8x128xf32>
      %155 = arith.mulf %150, %154 : vector<8x128xf32>
      %156 = arith.extui %0 : i1 to i32
      %c0_i32_44 = arith.constant 0 : i32
      %157 = arith.cmpi ne, %156, %c0_i32_44 : i32
      scf.if %157 {
        %315 = arith.index_cast %c3_i32 : i32 to index
        %c0_89 = arith.constant 0 : index
        %c0_90 = arith.constant 0 : index
        %316 = vector.load %arg8[%315, %c0_89, %c0_90] : memref<8x8x128xf32, #tpu.memory_space<vmem>>, vector<1x8x128xf32>
        %317 = vector.shape_cast %316 : vector<1x8x128xf32> to vector<8x128xf32>
        %318 = vector.shape_cast %155 : vector<8x128xf32> to vector<1x8x128xf32>
        tpu.vector_store %arg8[%315, %c0_89, %c0_90], %318 {strides = array<i32>} : memref<8x8x128xf32, #tpu.memory_space<vmem>>, vector<1x8x128xf32>,
      } else {
      }
      %true_45 = arith.constant true
      %158 = arith.xori %0, %true_45 : i1
      %159 = arith.extui %158 : i1 to i32
      %c0_i32_46 = arith.constant 0 : i32
      %160 = arith.cmpi ne, %159, %c0_i32_46 : i32
      scf.if %160 {
        %315 = arith.truncf %155 : vector<8x128xf32> to vector<8x128xbf16>
        %316 = arith.index_cast %c3_i32 : i32 to index
        %c0_89 = arith.constant 0 : index
        %c0_90 = arith.constant 0 : index
        %317 = vector.load %arg12[%316, %c0_89, %c0_90] : memref<8x8x128xbf16, #tpu.memory_space<vmem>>, vector<1x8x128xbf16>
        %318 = vector.shape_cast %317 : vector<1x8x128xbf16> to vector<8x128xbf16>
        %319 = vector.shape_cast %315 : vector<8x128xbf16> to vector<1x8x128xbf16>
        tpu.vector_store %arg12[%316, %c0_89, %c0_90], %319 {strides = array<i32>} : memref<8x8x128xbf16, #tpu.memory_space<vmem>>, vector<1x8x128xbf16>,
      } else {
      }
      %c4_i32 = arith.constant 4 : i32
      %161 = arith.index_cast %c4_i32 : i32 to index
      %c0_47 = arith.constant 0 : index
      %c0_48 = arith.constant 0 : index
      %162 = vector.load %arg2[%161, %c0_47, %c0_48] : memref<8x8x512xbf16, #tpu.memory_space<vmem>>, vector<1x8x512xbf16>
      %163 = vector.shape_cast %162 : vector<1x8x512xbf16> to vector<8x512xbf16>
      %164 = arith.extf %163 : vector<8x512xbf16> to vector<8x512xf32>
      %165 = arith.truncf %155 : vector<8x128xf32> to vector<8x128xbf16>
      %cst_49 = arith.constant dense<0.000000e+00> : vector<8x512xf32>
      %166 = tpu.matmul %165, %2, %cst_49 {dimension_numbers = #tpu.dot_dimension_numbers<[1], [0], [0], [1], [0, 0, 1, 1], [], []>} : vector<8x128xbf16>, vector<128x512xbf16>, vector<8x512xf32> -> vector<8x512xf32>
      %167 = arith.addf %164, %166 : vector<8x512xf32>
      %168 = vector.extract_strided_slice %167 {offsets = [0, 0], sizes = [8, 128], strides = [1, 1]} : vector<8x512xf32> to vector<8x128xf32>
      %169 = arith.negf %168 : vector<8x128xf32>
      %170 = math.exp %169 : vector<8x128xf32>
      %cst_50 = arith.constant 1.000000e+00 : f32
      %171 = vector.broadcast %cst_50 : f32 to vector<8x128xf32>
      %172 = arith.addf %171, %170 : vector<8x128xf32>
      %173 = arith.divf %171, %172 : vector<8x128xf32>
      %174 = vector.extract_strided_slice %167 {offsets = [0, 128], sizes = [8, 128], strides = [1, 1]} : vector<8x512xf32> to vector<8x128xf32>
      %175 = arith.negf %174 : vector<8x128xf32>
      %176 = math.exp %175 : vector<8x128xf32>
      %cst_51 = arith.constant 1.000000e+00 : f32
      %177 = vector.broadcast %cst_51 : f32 to vector<8x128xf32>
      %178 = arith.addf %177, %176 : vector<8x128xf32>
      %179 = arith.divf %177, %178 : vector<8x128xf32>
      %180 = vector.extract_strided_slice %167 {offsets = [0, 256], sizes = [8, 128], strides = [1, 1]} : vector<8x512xf32> to vector<8x128xf32>
      %181 = math.tanh %180 : vector<8x128xf32>
      %182 = vector.extract_strided_slice %167 {offsets = [0, 384], sizes = [8, 128], strides = [1, 1]} : vector<8x512xf32> to vector<8x128xf32>
      %183 = arith.negf %182 : vector<8x128xf32>
      %184 = math.exp %183 : vector<8x128xf32>
      %cst_52 = arith.constant 1.000000e+00 : f32
      %185 = vector.broadcast %cst_52 : f32 to vector<8x128xf32>
      %186 = arith.addf %185, %184 : vector<8x128xf32>
      %187 = arith.divf %185, %186 : vector<8x128xf32>
      %188 = arith.mulf %179, %153 : vector<8x128xf32>
      %189 = arith.mulf %173, %181 : vector<8x128xf32>
      %190 = arith.addf %188, %189 : vector<8x128xf32>
      %191 = math.tanh %190 : vector<8x128xf32>
      %192 = arith.mulf %187, %191 : vector<8x128xf32>
      %193 = arith.extui %0 : i1 to i32
      %c0_i32_53 = arith.constant 0 : i32
      %194 = arith.cmpi ne, %193, %c0_i32_53 : i32
      scf.if %194 {
        %315 = arith.index_cast %c4_i32 : i32 to index
        %c0_89 = arith.constant 0 : index
        %c0_90 = arith.constant 0 : index
        %316 = vector.load %arg8[%315, %c0_89, %c0_90] : memref<8x8x128xf32, #tpu.memory_space<vmem>>, vector<1x8x128xf32>
        %317 = vector.shape_cast %316 : vector<1x8x128xf32> to vector<8x128xf32>
        %318 = vector.shape_cast %192 : vector<8x128xf32> to vector<1x8x128xf32>
        tpu.vector_store %arg8[%315, %c0_89, %c0_90], %318 {strides = array<i32>} : memref<8x8x128xf32, #tpu.memory_space<vmem>>, vector<1x8x128xf32>,
      } else {
      }
      %true_54 = arith.constant true
      %195 = arith.xori %0, %true_54 : i1
      %196 = arith.extui %195 : i1 to i32
      %c0_i32_55 = arith.constant 0 : i32
      %197 = arith.cmpi ne, %196, %c0_i32_55 : i32
      scf.if %197 {
        %315 = arith.truncf %192 : vector<8x128xf32> to vector<8x128xbf16>
        %316 = arith.index_cast %c4_i32 : i32 to index
        %c0_89 = arith.constant 0 : index
        %c0_90 = arith.constant 0 : index
        %317 = vector.load %arg12[%316, %c0_89, %c0_90] : memref<8x8x128xbf16, #tpu.memory_space<vmem>>, vector<1x8x128xbf16>
        %318 = vector.shape_cast %317 : vector<1x8x128xbf16> to vector<8x128xbf16>
        %319 = vector.shape_cast %315 : vector<8x128xbf16> to vector<1x8x128xbf16>
        tpu.vector_store %arg12[%316, %c0_89, %c0_90], %319 {strides = array<i32>} : memref<8x8x128xbf16, #tpu.memory_space<vmem>>, vector<1x8x128xbf16>,
      } else {
      }
      %c5_i32 = arith.constant 5 : i32
      %198 = arith.index_cast %c5_i32 : i32 to index
      %c0_56 = arith.constant 0 : index
      %c0_57 = arith.constant 0 : index
      %199 = vector.load %arg2[%198, %c0_56, %c0_57] : memref<8x8x512xbf16, #tpu.memory_space<vmem>>, vector<1x8x512xbf16>
      %200 = vector.shape_cast %199 : vector<1x8x512xbf16> to vector<8x512xbf16>
      %201 = arith.extf %200 : vector<8x512xbf16> to vector<8x512xf32>
      %202 = arith.truncf %192 : vector<8x128xf32> to vector<8x128xbf16>
      %cst_58 = arith.constant dense<0.000000e+00> : vector<8x512xf32>
      %203 = tpu.matmul %202, %2, %cst_58 {dimension_numbers = #tpu.dot_dimension_numbers<[1], [0], [0], [1], [0, 0, 1, 1], [], []>} : vector<8x128xbf16>, vector<128x512xbf16>, vector<8x512xf32> -> vector<8x512xf32>
      %204 = arith.addf %201, %203 : vector<8x512xf32>
      %205 = vector.extract_strided_slice %204 {offsets = [0, 0], sizes = [8, 128], strides = [1, 1]} : vector<8x512xf32> to vector<8x128xf32>
      %206 = arith.negf %205 : vector<8x128xf32>
      %207 = math.exp %206 : vector<8x128xf32>
      %cst_59 = arith.constant 1.000000e+00 : f32
      %208 = vector.broadcast %cst_59 : f32 to vector<8x128xf32>
      %209 = arith.addf %208, %207 : vector<8x128xf32>
      %210 = arith.divf %208, %209 : vector<8x128xf32>
      %211 = vector.extract_strided_slice %204 {offsets = [0, 128], sizes = [8, 128], strides = [1, 1]} : vector<8x512xf32> to vector<8x128xf32>
      %212 = arith.negf %211 : vector<8x128xf32>
      %213 = math.exp %212 : vector<8x128xf32>
      %cst_60 = arith.constant 1.000000e+00 : f32
      %214 = vector.broadcast %cst_60 : f32 to vector<8x128xf32>
      %215 = arith.addf %214, %213 : vector<8x128xf32>
      %216 = arith.divf %214, %215 : vector<8x128xf32>
      %217 = vector.extract_strided_slice %204 {offsets = [0, 256], sizes = [8, 128], strides = [1, 1]} : vector<8x512xf32> to vector<8x128xf32>
      %218 = math.tanh %217 : vector<8x128xf32>
      %219 = vector.extract_strided_slice %204 {offsets = [0, 384], sizes = [8, 128], strides = [1, 1]} : vector<8x512xf32> to vector<8x128xf32>
      %220 = arith.negf %219 : vector<8x128xf32>
      %221 = math.exp %220 : vector<8x128xf32>
      %cst_61 = arith.constant 1.000000e+00 : f32
      %222 = vector.broadcast %cst_61 : f32 to vector<8x128xf32>
      %223 = arith.addf %222, %221 : vector<8x128xf32>
      %224 = arith.divf %222, %223 : vector<8x128xf32>
      %225 = arith.mulf %216, %190 : vector<8x128xf32>
      %226 = arith.mulf %210, %218 : vector<8x128xf32>
      %227 = arith.addf %225, %226 : vector<8x128xf32>
      %228 = math.tanh %227 : vector<8x128xf32>
      %229 = arith.mulf %224, %228 : vector<8x128xf32>
      %230 = arith.extui %0 : i1 to i32
      %c0_i32_62 = arith.constant 0 : i32
      %231 = arith.cmpi ne, %230, %c0_i32_62 : i32
      scf.if %231 {
        %315 = arith.index_cast %c5_i32 : i32 to index
        %c0_89 = arith.constant 0 : index
        %c0_90 = arith.constant 0 : index
        %316 = vector.load %arg8[%315, %c0_89, %c0_90] : memref<8x8x128xf32, #tpu.memory_space<vmem>>, vector<1x8x128xf32>
        %317 = vector.shape_cast %316 : vector<1x8x128xf32> to vector<8x128xf32>
        %318 = vector.shape_cast %229 : vector<8x128xf32> to vector<1x8x128xf32>
        tpu.vector_store %arg8[%315, %c0_89, %c0_90], %318 {strides = array<i32>} : memref<8x8x128xf32, #tpu.memory_space<vmem>>, vector<1x8x128xf32>,
      } else {
      }
      %true_63 = arith.constant true
      %232 = arith.xori %0, %true_63 : i1
      %233 = arith.extui %232 : i1 to i32
      %c0_i32_64 = arith.constant 0 : i32
      %234 = arith.cmpi ne, %233, %c0_i32_64 : i32
      scf.if %234 {
        %315 = arith.truncf %229 : vector<8x128xf32> to vector<8x128xbf16>
        %316 = arith.index_cast %c5_i32 : i32 to index
        %c0_89 = arith.constant 0 : index
        %c0_90 = arith.constant 0 : index
        %317 = vector.load %arg12[%316, %c0_89, %c0_90] : memref<8x8x128xbf16, #tpu.memory_space<vmem>>, vector<1x8x128xbf16>
        %318 = vector.shape_cast %317 : vector<1x8x128xbf16> to vector<8x128xbf16>
        %319 = vector.shape_cast %315 : vector<8x128xbf16> to vector<1x8x128xbf16>
        tpu.vector_store %arg12[%316, %c0_89, %c0_90], %319 {strides = array<i32>} : memref<8x8x128xbf16, #tpu.memory_space<vmem>>, vector<1x8x128xbf16>,
      } else {
      }
      %c6_i32 = arith.constant 6 : i32
      %235 = arith.index_cast %c6_i32 : i32 to index
      %c0_65 = arith.constant 0 : index
      %c0_66 = arith.constant 0 : index
      %236 = vector.load %arg2[%235, %c0_65, %c0_66] : memref<8x8x512xbf16, #tpu.memory_space<vmem>>, vector<1x8x512xbf16>
      %237 = vector.shape_cast %236 : vector<1x8x512xbf16> to vector<8x512xbf16>
      %238 = arith.extf %237 : vector<8x512xbf16> to vector<8x512xf32>
      %239 = arith.truncf %229 : vector<8x128xf32> to vector<8x128xbf16>
      %cst_67 = arith.constant dense<0.000000e+00> : vector<8x512xf32>
      %240 = tpu.matmul %239, %2, %cst_67 {dimension_numbers = #tpu.dot_dimension_numbers<[1], [0], [0], [1], [0, 0, 1, 1], [], []>} : vector<8x128xbf16>, vector<128x512xbf16>, vector<8x512xf32> -> vector<8x512xf32>
      %241 = arith.addf %238, %240 : vector<8x512xf32>
      %242 = vector.extract_strided_slice %241 {offsets = [0, 0], sizes = [8, 128], strides = [1, 1]} : vector<8x512xf32> to vector<8x128xf32>
      %243 = arith.negf %242 : vector<8x128xf32>
      %244 = math.exp %243 : vector<8x128xf32>
      %cst_68 = arith.constant 1.000000e+00 : f32
      %245 = vector.broadcast %cst_68 : f32 to vector<8x128xf32>
      %246 = arith.addf %245, %244 : vector<8x128xf32>
      %247 = arith.divf %245, %246 : vector<8x128xf32>
      %248 = vector.extract_strided_slice %241 {offsets = [0, 128], sizes = [8, 128], strides = [1, 1]} : vector<8x512xf32> to vector<8x128xf32>
      %249 = arith.negf %248 : vector<8x128xf32>
      %250 = math.exp %249 : vector<8x128xf32>
      %cst_69 = arith.constant 1.000000e+00 : f32
      %251 = vector.broadcast %cst_69 : f32 to vector<8x128xf32>
      %252 = arith.addf %251, %250 : vector<8x128xf32>
      %253 = arith.divf %251, %252 : vector<8x128xf32>
      %254 = vector.extract_strided_slice %241 {offsets = [0, 256], sizes = [8, 128], strides = [1, 1]} : vector<8x512xf32> to vector<8x128xf32>
      %255 = math.tanh %254 : vector<8x128xf32>
      %256 = vector.extract_strided_slice %241 {offsets = [0, 384], sizes = [8, 128], strides = [1, 1]} : vector<8x512xf32> to vector<8x128xf32>
      %257 = arith.negf %256 : vector<8x128xf32>
      %258 = math.exp %257 : vector<8x128xf32>
      %cst_70 = arith.constant 1.000000e+00 : f32
      %259 = vector.broadcast %cst_70 : f32 to vector<8x128xf32>
      %260 = arith.addf %259, %258 : vector<8x128xf32>
      %261 = arith.divf %259, %260 : vector<8x128xf32>
      %262 = arith.mulf %253, %227 : vector<8x128xf32>
      %263 = arith.mulf %247, %255 : vector<8x128xf32>
      %264 = arith.addf %262, %263 : vector<8x128xf32>
      %265 = math.tanh %264 : vector<8x128xf32>
      %266 = arith.mulf %261, %265 : vector<8x128xf32>
      %267 = arith.extui %0 : i1 to i32
      %c0_i32_71 = arith.constant 0 : i32
      %268 = arith.cmpi ne, %267, %c0_i32_71 : i32
      scf.if %268 {
        %315 = arith.index_cast %c6_i32 : i32 to index
        %c0_89 = arith.constant 0 : index
        %c0_90 = arith.constant 0 : index
        %316 = vector.load %arg8[%315, %c0_89, %c0_90] : memref<8x8x128xf32, #tpu.memory_space<vmem>>, vector<1x8x128xf32>
        %317 = vector.shape_cast %316 : vector<1x8x128xf32> to vector<8x128xf32>
        %318 = vector.shape_cast %266 : vector<8x128xf32> to vector<1x8x128xf32>
        tpu.vector_store %arg8[%315, %c0_89, %c0_90], %318 {strides = array<i32>} : memref<8x8x128xf32, #tpu.memory_space<vmem>>, vector<1x8x128xf32>,
      } else {
      }
      %true_72 = arith.constant true
      %269 = arith.xori %0, %true_72 : i1
      %270 = arith.extui %269 : i1 to i32
      %c0_i32_73 = arith.constant 0 : i32
      %271 = arith.cmpi ne, %270, %c0_i32_73 : i32
      scf.if %271 {
        %315 = arith.truncf %266 : vector<8x128xf32> to vector<8x128xbf16>
        %316 = arith.index_cast %c6_i32 : i32 to index
        %c0_89 = arith.constant 0 : index
        %c0_90 = arith.constant 0 : index
        %317 = vector.load %arg12[%316, %c0_89, %c0_90] : memref<8x8x128xbf16, #tpu.memory_space<vmem>>, vector<1x8x128xbf16>
        %318 = vector.shape_cast %317 : vector<1x8x128xbf16> to vector<8x128xbf16>
        %319 = vector.shape_cast %315 : vector<8x128xbf16> to vector<1x8x128xbf16>
        tpu.vector_store %arg12[%316, %c0_89, %c0_90], %319 {strides = array<i32>} : memref<8x8x128xbf16, #tpu.memory_space<vmem>>, vector<1x8x128xbf16>,
      } else {
      }
      %c7_i32 = arith.constant 7 : i32
      %272 = arith.index_cast %c7_i32 : i32 to index
      %c0_74 = arith.constant 0 : index
      %c0_75 = arith.constant 0 : index
      %273 = vector.load %arg2[%272, %c0_74, %c0_75] : memref<8x8x512xbf16, #tpu.memory_space<vmem>>, vector<1x8x512xbf16>
      %274 = vector.shape_cast %273 : vector<1x8x512xbf16> to vector<8x512xbf16>
      %275 = arith.extf %274 : vector<8x512xbf16> to vector<8x512xf32>
      %276 = arith.truncf %266 : vector<8x128xf32> to vector<8x128xbf16>
      %cst_76 = arith.constant dense<0.000000e+00> : vector<8x512xf32>
      %277 = tpu.matmul %276, %2, %cst_76 {dimension_numbers = #tpu.dot_dimension_numbers<[1], [0], [0], [1], [0, 0, 1, 1], [], []>} : vector<8x128xbf16>, vector<128x512xbf16>, vector<8x512xf32> -> vector<8x512xf32>
      %278 = arith.addf %275, %277 : vector<8x512xf32>
      %279 = vector.extract_strided_slice %278 {offsets = [0, 0], sizes = [8, 128], strides = [1, 1]} : vector<8x512xf32> to vector<8x128xf32>
      %280 = arith.negf %279 : vector<8x128xf32>
      %281 = math.exp %280 : vector<8x128xf32>
      %cst_77 = arith.constant 1.000000e+00 : f32
      %282 = vector.broadcast %cst_77 : f32 to vector<8x128xf32>
      %283 = arith.addf %282, %281 : vector<8x128xf32>
      %284 = arith.divf %282, %283 : vector<8x128xf32>
      %285 = vector.extract_strided_slice %278 {offsets = [0, 128], sizes = [8, 128], strides = [1, 1]} : vector<8x512xf32> to vector<8x128xf32>
      %286 = arith.negf %285 : vector<8x128xf32>
      %287 = math.exp %286 : vector<8x128xf32>
      %cst_78 = arith.constant 1.000000e+00 : f32
      %288 = vector.broadcast %cst_78 : f32 to vector<8x128xf32>
      %289 = arith.addf %288, %287 : vector<8x128xf32>
      %290 = arith.divf %288, %289 : vector<8x128xf32>
      %291 = vector.extract_strided_slice %278 {offsets = [0, 256], sizes = [8, 128], strides = [1, 1]} : vector<8x512xf32> to vector<8x128xf32>
      %292 = math.tanh %291 : vector<8x128xf32>
      %293 = vector.extract_strided_slice %278 {offsets = [0, 384], sizes = [8, 128], strides = [1, 1]} : vector<8x512xf32> to vector<8x128xf32>
      %294 = arith.negf %293 : vector<8x128xf32>
      %295 = math.exp %294 : vector<8x128xf32>
      %cst_79 = arith.constant 1.000000e+00 : f32
      %296 = vector.broadcast %cst_79 : f32 to vector<8x128xf32>
      %297 = arith.addf %296, %295 : vector<8x128xf32>
      %298 = arith.divf %296, %297 : vector<8x128xf32>
      %299 = arith.mulf %290, %264 : vector<8x128xf32>
      %300 = arith.mulf %284, %292 : vector<8x128xf32>
      %301 = arith.addf %299, %300 : vector<8x128xf32>
      %302 = math.tanh %301 : vector<8x128xf32>
      %303 = arith.mulf %298, %302 : vector<8x128xf32>
      %304 = arith.extui %0 : i1 to i32
      %c0_i32_80 = arith.constant 0 : i32
      %305 = arith.cmpi ne, %304, %c0_i32_80 : i32
      scf.if %305 {
        %315 = arith.index_cast %c7_i32 : i32 to index
        %c0_89 = arith.constant 0 : index
        %c0_90 = arith.constant 0 : index
        %316 = vector.load %arg8[%315, %c0_89, %c0_90] : memref<8x8x128xf32, #tpu.memory_space<vmem>>, vector<1x8x128xf32>
        %317 = vector.shape_cast %316 : vector<1x8x128xf32> to vector<8x128xf32>
        %318 = vector.shape_cast %303 : vector<8x128xf32> to vector<1x8x128xf32>
        tpu.vector_store %arg8[%315, %c0_89, %c0_90], %318 {strides = array<i32>} : memref<8x8x128xf32, #tpu.memory_space<vmem>>, vector<1x8x128xf32>,
      } else {
      }
      %true_81 = arith.constant true
      %306 = arith.xori %0, %true_81 : i1
      %307 = arith.extui %306 : i1 to i32
      %c0_i32_82 = arith.constant 0 : i32
      %308 = arith.cmpi ne, %307, %c0_i32_82 : i32
      scf.if %308 {
        %315 = arith.truncf %303 : vector<8x128xf32> to vector<8x128xbf16>
        %316 = arith.index_cast %c7_i32 : i32 to index
        %c0_89 = arith.constant 0 : index
        %c0_90 = arith.constant 0 : index
        %317 = vector.load %arg12[%316, %c0_89, %c0_90] : memref<8x8x128xbf16, #tpu.memory_space<vmem>>, vector<1x8x128xbf16>
        %318 = vector.shape_cast %317 : vector<1x8x128xbf16> to vector<8x128xbf16>
        %319 = vector.shape_cast %315 : vector<8x128xbf16> to vector<1x8x128xbf16>
        tpu.vector_store %arg12[%316, %c0_89, %c0_90], %319 {strides = array<i32>} : memref<8x8x128xbf16, #tpu.memory_space<vmem>>, vector<1x8x128xbf16>,
      } else {
      }
      %c8_i32 = arith.constant 8 : i32
      %c0_83 = arith.constant 0 : index
      %c0_84 = arith.constant 0 : index
      %c0_85 = arith.constant 0 : index
      %309 = vector.load %arg9[%c0_83, %c0_84, %c0_85] : memref<1x8x128xf32, #tpu.memory_space<vmem>>, vector<1x8x128xf32>
      %310 = vector.shape_cast %309 : vector<1x8x128xf32> to vector<8x128xf32>
      %311 = vector.shape_cast %303 : vector<8x128xf32> to vector<1x8x128xf32>
      tpu.vector_store %arg9[%c0_83, %c0_84, %c0_85], %311 {strides = array<i32>} : memref<1x8x128xf32, #tpu.memory_space<vmem>>, vector<1x8x128xf32>,
      %c0_86 = arith.constant 0 : index
      %c0_87 = arith.constant 0 : index
      %c0_88 = arith.constant 0 : index
      %312 = vector.load %arg10[%c0_86, %c0_87, %c0_88] : memref<1x8x128xf32, #tpu.memory_space<vmem>>, vector<1x8x128xf32>
      %313 = vector.shape_cast %312 : vector<1x8x128xf32> to vector<8x128xf32>
      %314 = vector.shape_cast %301 : vector<8x128xf32> to vector<1x8x128xf32>
      tpu.vector_store %arg10[%c0_86, %c0_87, %c0_88], %314 {strides = array<i32>} : memref<1x8x128xf32, #tpu.memory_space<vmem>>, vector<1x8x128xf32>,
    } else {
    }
    %c0_i32_9 = arith.constant 0 : i32
    %10 = arith.cmpi sgt, %arg1, %c0_i32_9 : i32
    %11 = arith.extui %10 : i1 to i32
    %c0_i32_10 = arith.constant 0 : i32
    %12 = arith.cmpi ne, %11, %c0_i32_10 : i32
    scf.if %12 {
      %c0_11 = arith.constant 0 : index
      %c0_12 = arith.constant 0 : index
      %c0_13 = arith.constant 0 : index
      %13 = vector.load %arg12[%c0_11, %c0_12, %c0_13] : memref<8x8x128xbf16, #tpu.memory_space<vmem>>, vector<8x8x128xbf16>
      %14 = arith.extf %13 : vector<8x8x128xbf16> to vector<8x8x128xf32>
      %15 = vector.shape_cast %14 : vector<8x8x128xf32> to vector<64x128xf32>
      %16 = arith.truncf %15 : vector<64x128xf32> to vector<64x128xbf16>
      %c0_14 = arith.constant 0 : index
      %c0_15 = arith.constant 0 : index
      %c0_16 = arith.constant 0 : index
      %17 = vector.load %arg3[%c0_14, %c0_15, %c0_16] : memref<1x128x512xbf16, #tpu.memory_space<vmem>>, vector<1x128x512xbf16>
      %18 = vector.shape_cast %17 : vector<1x128x512xbf16> to vector<128x512xbf16>
      %cst = arith.constant dense<0.000000e+00> : vector<64x512xf32>
      %19 = tpu.matmul %16, %18, %cst {dimension_numbers = #tpu.dot_dimension_numbers<[1], [0], [0], [1], [0, 0, 1, 1], [], []>} : vector<64x128xbf16>, vector<128x512xbf16>, vector<64x512xf32> -> vector<64x512xf32>
      %c0_17 = arith.constant 0 : index
      %c0_18 = arith.constant 0 : index
      %c0_19 = arith.constant 0 : index
      %20 = vector.load %arg5[%c0_17, %c0_18, %c0_19] : memref<1x1x512xf32, #tpu.memory_space<vmem>>, vector<1x1x512xf32>
      %21 = vector.shape_cast %20 : vector<1x1x512xf32> to vector<1x512xf32>
      %22 = vector.broadcast %21 : vector<1x512xf32> to vector<64x512xf32>
      %23 = arith.addf %19, %22 : vector<64x512xf32>
      %24 = vector.shape_cast %23 : vector<64x512xf32> to vector<8x8x512xf32>
      %25 = arith.truncf %24 : vector<8x8x512xf32> to vector<8x8x512xbf16>
      %c0_20 = arith.constant 0 : index
      %c0_21 = arith.constant 0 : index
      %c0_22 = arith.constant 0 : index
      %26 = vector.load %arg11[%c0_20, %c0_21, %c0_22] : memref<8x8x512xbf16, #tpu.memory_space<vmem>>, vector<8x8x512xbf16>
      tpu.vector_store %arg11[%c0_20, %c0_21, %c0_22], %25 {strides = array<i32>} : memref<8x8x512xbf16, #tpu.memory_space<vmem>>, vector<8x8x512xbf16>,
      %c0_i32_23 = arith.constant 0 : i32
      %27 = arith.index_cast %c0_i32_23 : i32 to index
      %c0_24 = arith.constant 0 : index
      %c0_25 = arith.constant 0 : index
      %28 = vector.load %arg11[%27, %c0_24, %c0_25] : memref<8x8x512xbf16, #tpu.memory_space<vmem>>, vector<1x8x512xbf16>
      %29 = vector.shape_cast %28 : vector<1x8x512xbf16> to vector<8x512xbf16>
      %30 = arith.extf %29 : vector<8x512xbf16> to vector<8x512xf32>
      %31 = arith.truncf %4 : vector<8x128xf32> to vector<8x128xbf16>
      %cst_26 = arith.constant dense<0.000000e+00> : vector<8x512xf32>
      %32 = tpu.matmul %31, %2, %cst_26 {dimension_numbers = #tpu.dot_dimension_numbers<[1], [0], [0], [1], [0, 0, 1, 1], [], []>} : vector<8x128xbf16>, vector<128x512xbf16>, vector<8x512xf32> -> vector<8x512xf32>
      %33 = arith.addf %30, %32 : vector<8x512xf32>
      %34 = vector.extract_strided_slice %33 {offsets = [0, 0], sizes = [8, 128], strides = [1, 1]} : vector<8x512xf32> to vector<8x128xf32>
      %35 = arith.negf %34 : vector<8x128xf32>
      %36 = math.exp %35 : vector<8x128xf32>
      %cst_27 = arith.constant 1.000000e+00 : f32
      %37 = vector.broadcast %cst_27 : f32 to vector<8x128xf32>
      %38 = arith.addf %37, %36 : vector<8x128xf32>
      %39 = arith.divf %37, %38 : vector<8x128xf32>
      %40 = vector.extract_strided_slice %33 {offsets = [0, 128], sizes = [8, 128], strides = [1, 1]} : vector<8x512xf32> to vector<8x128xf32>
      %41 = arith.negf %40 : vector<8x128xf32>
      %42 = math.exp %41 : vector<8x128xf32>
      %cst_28 = arith.constant 1.000000e+00 : f32
      %43 = vector.broadcast %cst_28 : f32 to vector<8x128xf32>
      %44 = arith.addf %43, %42 : vector<8x128xf32>
      %45 = arith.divf %43, %44 : vector<8x128xf32>
      %46 = vector.extract_strided_slice %33 {offsets = [0, 256], sizes = [8, 128], strides = [1, 1]} : vector<8x512xf32> to vector<8x128xf32>
      %47 = math.tanh %46 : vector<8x128xf32>
      %48 = vector.extract_strided_slice %33 {offsets = [0, 384], sizes = [8, 128], strides = [1, 1]} : vector<8x512xf32> to vector<8x128xf32>
      %49 = arith.negf %48 : vector<8x128xf32>
      %50 = math.exp %49 : vector<8x128xf32>
      %cst_29 = arith.constant 1.000000e+00 : f32
      %51 = vector.broadcast %cst_29 : f32 to vector<8x128xf32>
      %52 = arith.addf %51, %50 : vector<8x128xf32>
      %53 = arith.divf %51, %52 : vector<8x128xf32>
      %54 = arith.mulf %45, %6 : vector<8x128xf32>
      %55 = arith.mulf %39, %47 : vector<8x128xf32>
      %56 = arith.addf %54, %55 : vector<8x128xf32>
      %57 = math.tanh %56 : vector<8x128xf32>
      %58 = arith.mulf %53, %57 : vector<8x128xf32>
      %59 = arith.extui %0 : i1 to i32
      %c0_i32_30 = arith.constant 0 : i32
      %60 = arith.cmpi ne, %59, %c0_i32_30 : i32
      scf.if %60 {
        %329 = arith.index_cast %c0_i32_23 : i32 to index
        %c0_102 = arith.constant 0 : index
        %c0_103 = arith.constant 0 : index
        %330 = vector.load %arg8[%329, %c0_102, %c0_103] : memref<8x8x128xf32, #tpu.memory_space<vmem>>, vector<1x8x128xf32>
        %331 = vector.shape_cast %330 : vector<1x8x128xf32> to vector<8x128xf32>
        %332 = vector.shape_cast %58 : vector<8x128xf32> to vector<1x8x128xf32>
        tpu.vector_store %arg8[%329, %c0_102, %c0_103], %332 {strides = array<i32>} : memref<8x8x128xf32, #tpu.memory_space<vmem>>, vector<1x8x128xf32>,
      } else {
      }
      %true = arith.constant true
      %61 = arith.xori %0, %true : i1
      %62 = arith.extui %61 : i1 to i32
      %c0_i32_31 = arith.constant 0 : i32
      %63 = arith.cmpi ne, %62, %c0_i32_31 : i32
      scf.if %63 {
        %329 = arith.truncf %58 : vector<8x128xf32> to vector<8x128xbf16>
        %330 = arith.index_cast %c0_i32_23 : i32 to index
        %c0_102 = arith.constant 0 : index
        %c0_103 = arith.constant 0 : index
        %331 = vector.load %arg12[%330, %c0_102, %c0_103] : memref<8x8x128xbf16, #tpu.memory_space<vmem>>, vector<1x8x128xbf16>
        %332 = vector.shape_cast %331 : vector<1x8x128xbf16> to vector<8x128xbf16>
        %333 = vector.shape_cast %329 : vector<8x128xbf16> to vector<1x8x128xbf16>
        tpu.vector_store %arg12[%330, %c0_102, %c0_103], %333 {strides = array<i32>} : memref<8x8x128xbf16, #tpu.memory_space<vmem>>, vector<1x8x128xbf16>,
      } else {
      }
      %c1_i32_32 = arith.constant 1 : i32
      %64 = arith.index_cast %c1_i32_32 : i32 to index
      %c0_33 = arith.constant 0 : index
      %c0_34 = arith.constant 0 : index
      %65 = vector.load %arg11[%64, %c0_33, %c0_34] : memref<8x8x512xbf16, #tpu.memory_space<vmem>>, vector<1x8x512xbf16>
      %66 = vector.shape_cast %65 : vector<1x8x512xbf16> to vector<8x512xbf16>
      %67 = arith.extf %66 : vector<8x512xbf16> to vector<8x512xf32>
      %68 = arith.truncf %58 : vector<8x128xf32> to vector<8x128xbf16>
      %cst_35 = arith.constant dense<0.000000e+00> : vector<8x512xf32>
      %69 = tpu.matmul %68, %2, %cst_35 {dimension_numbers = #tpu.dot_dimension_numbers<[1], [0], [0], [1], [0, 0, 1, 1], [], []>} : vector<8x128xbf16>, vector<128x512xbf16>, vector<8x512xf32> -> vector<8x512xf32>
      %70 = arith.addf %67, %69 : vector<8x512xf32>
      %71 = vector.extract_strided_slice %70 {offsets = [0, 0], sizes = [8, 128], strides = [1, 1]} : vector<8x512xf32> to vector<8x128xf32>
      %72 = arith.negf %71 : vector<8x128xf32>
      %73 = math.exp %72 : vector<8x128xf32>
      %cst_36 = arith.constant 1.000000e+00 : f32
      %74 = vector.broadcast %cst_36 : f32 to vector<8x128xf32>
      %75 = arith.addf %74, %73 : vector<8x128xf32>
      %76 = arith.divf %74, %75 : vector<8x128xf32>
      %77 = vector.extract_strided_slice %70 {offsets = [0, 128], sizes = [8, 128], strides = [1, 1]} : vector<8x512xf32> to vector<8x128xf32>
      %78 = arith.negf %77 : vector<8x128xf32>
      %79 = math.exp %78 : vector<8x128xf32>
      %cst_37 = arith.constant 1.000000e+00 : f32
      %80 = vector.broadcast %cst_37 : f32 to vector<8x128xf32>
      %81 = arith.addf %80, %79 : vector<8x128xf32>
      %82 = arith.divf %80, %81 : vector<8x128xf32>
      %83 = vector.extract_strided_slice %70 {offsets = [0, 256], sizes = [8, 128], strides = [1, 1]} : vector<8x512xf32> to vector<8x128xf32>
      %84 = math.tanh %83 : vector<8x128xf32>
      %85 = vector.extract_strided_slice %70 {offsets = [0, 384], sizes = [8, 128], strides = [1, 1]} : vector<8x512xf32> to vector<8x128xf32>
      %86 = arith.negf %85 : vector<8x128xf32>
      %87 = math.exp %86 : vector<8x128xf32>
      %cst_38 = arith.constant 1.000000e+00 : f32
      %88 = vector.broadcast %cst_38 : f32 to vector<8x128xf32>
      %89 = arith.addf %88, %87 : vector<8x128xf32>
      %90 = arith.divf %88, %89 : vector<8x128xf32>
      %91 = arith.mulf %82, %56 : vector<8x128xf32>
      %92 = arith.mulf %76, %84 : vector<8x128xf32>
      %93 = arith.addf %91, %92 : vector<8x128xf32>
      %94 = math.tanh %93 : vector<8x128xf32>
      %95 = arith.mulf %90, %94 : vector<8x128xf32>
      %96 = arith.extui %0 : i1 to i32
      %c0_i32_39 = arith.constant 0 : i32
      %97 = arith.cmpi ne, %96, %c0_i32_39 : i32
      scf.if %97 {
        %329 = arith.index_cast %c1_i32_32 : i32 to index
        %c0_102 = arith.constant 0 : index
        %c0_103 = arith.constant 0 : index
        %330 = vector.load %arg8[%329, %c0_102, %c0_103] : memref<8x8x128xf32, #tpu.memory_space<vmem>>, vector<1x8x128xf32>
        %331 = vector.shape_cast %330 : vector<1x8x128xf32> to vector<8x128xf32>
        %332 = vector.shape_cast %95 : vector<8x128xf32> to vector<1x8x128xf32>
        tpu.vector_store %arg8[%329, %c0_102, %c0_103], %332 {strides = array<i32>} : memref<8x8x128xf32, #tpu.memory_space<vmem>>, vector<1x8x128xf32>,
      } else {
      }
      %true_40 = arith.constant true
      %98 = arith.xori %0, %true_40 : i1
      %99 = arith.extui %98 : i1 to i32
      %c0_i32_41 = arith.constant 0 : i32
      %100 = arith.cmpi ne, %99, %c0_i32_41 : i32
      scf.if %100 {
        %329 = arith.truncf %95 : vector<8x128xf32> to vector<8x128xbf16>
        %330 = arith.index_cast %c1_i32_32 : i32 to index
        %c0_102 = arith.constant 0 : index
        %c0_103 = arith.constant 0 : index
        %331 = vector.load %arg12[%330, %c0_102, %c0_103] : memref<8x8x128xbf16, #tpu.memory_space<vmem>>, vector<1x8x128xbf16>
        %332 = vector.shape_cast %331 : vector<1x8x128xbf16> to vector<8x128xbf16>
        %333 = vector.shape_cast %329 : vector<8x128xbf16> to vector<1x8x128xbf16>
        tpu.vector_store %arg12[%330, %c0_102, %c0_103], %333 {strides = array<i32>} : memref<8x8x128xbf16, #tpu.memory_space<vmem>>, vector<1x8x128xbf16>,
      } else {
      }
      %c2_i32 = arith.constant 2 : i32
      %101 = arith.index_cast %c2_i32 : i32 to index
      %c0_42 = arith.constant 0 : index
      %c0_43 = arith.constant 0 : index
      %102 = vector.load %arg11[%101, %c0_42, %c0_43] : memref<8x8x512xbf16, #tpu.memory_space<vmem>>, vector<1x8x512xbf16>
      %103 = vector.shape_cast %102 : vector<1x8x512xbf16> to vector<8x512xbf16>
      %104 = arith.extf %103 : vector<8x512xbf16> to vector<8x512xf32>
      %105 = arith.truncf %95 : vector<8x128xf32> to vector<8x128xbf16>
      %cst_44 = arith.constant dense<0.000000e+00> : vector<8x512xf32>
      %106 = tpu.matmul %105, %2, %cst_44 {dimension_numbers = #tpu.dot_dimension_numbers<[1], [0], [0], [1], [0, 0, 1, 1], [], []>} : vector<8x128xbf16>, vector<128x512xbf16>, vector<8x512xf32> -> vector<8x512xf32>
      %107 = arith.addf %104, %106 : vector<8x512xf32>
      %108 = vector.extract_strided_slice %107 {offsets = [0, 0], sizes = [8, 128], strides = [1, 1]} : vector<8x512xf32> to vector<8x128xf32>
      %109 = arith.negf %108 : vector<8x128xf32>
      %110 = math.exp %109 : vector<8x128xf32>
      %cst_45 = arith.constant 1.000000e+00 : f32
      %111 = vector.broadcast %cst_45 : f32 to vector<8x128xf32>
      %112 = arith.addf %111, %110 : vector<8x128xf32>
      %113 = arith.divf %111, %112 : vector<8x128xf32>
      %114 = vector.extract_strided_slice %107 {offsets = [0, 128], sizes = [8, 128], strides = [1, 1]} : vector<8x512xf32> to vector<8x128xf32>
      %115 = arith.negf %114 : vector<8x128xf32>
      %116 = math.exp %115 : vector<8x128xf32>
      %cst_46 = arith.constant 1.000000e+00 : f32
      %117 = vector.broadcast %cst_46 : f32 to vector<8x128xf32>
      %118 = arith.addf %117, %116 : vector<8x128xf32>
      %119 = arith.divf %117, %118 : vector<8x128xf32>
      %120 = vector.extract_strided_slice %107 {offsets = [0, 256], sizes = [8, 128], strides = [1, 1]} : vector<8x512xf32> to vector<8x128xf32>
      %121 = math.tanh %120 : vector<8x128xf32>
      %122 = vector.extract_strided_slice %107 {offsets = [0, 384], sizes = [8, 128], strides = [1, 1]} : vector<8x512xf32> to vector<8x128xf32>
      %123 = arith.negf %122 : vector<8x128xf32>
      %124 = math.exp %123 : vector<8x128xf32>
      %cst_47 = arith.constant 1.000000e+00 : f32
      %125 = vector.broadcast %cst_47 : f32 to vector<8x128xf32>
      %126 = arith.addf %125, %124 : vector<8x128xf32>
      %127 = arith.divf %125, %126 : vector<8x128xf32>
      %128 = arith.mulf %119, %93 : vector<8x128xf32>
      %129 = arith.mulf %113, %121 : vector<8x128xf32>
      %130 = arith.addf %128, %129 : vector<8x128xf32>
      %131 = math.tanh %130 : vector<8x128xf32>
      %132 = arith.mulf %127, %131 : vector<8x128xf32>
      %133 = arith.extui %0 : i1 to i32
      %c0_i32_48 = arith.constant 0 : i32
      %134 = arith.cmpi ne, %133, %c0_i32_48 : i32
      scf.if %134 {
        %329 = arith.index_cast %c2_i32 : i32 to index
        %c0_102 = arith.constant 0 : index
        %c0_103 = arith.constant 0 : index
        %330 = vector.load %arg8[%329, %c0_102, %c0_103] : memref<8x8x128xf32, #tpu.memory_space<vmem>>, vector<1x8x128xf32>
        %331 = vector.shape_cast %330 : vector<1x8x128xf32> to vector<8x128xf32>
        %332 = vector.shape_cast %132 : vector<8x128xf32> to vector<1x8x128xf32>
        tpu.vector_store %arg8[%329, %c0_102, %c0_103], %332 {strides = array<i32>} : memref<8x8x128xf32, #tpu.memory_space<vmem>>, vector<1x8x128xf32>,
      } else {
      }
      %true_49 = arith.constant true
      %135 = arith.xori %0, %true_49 : i1
      %136 = arith.extui %135 : i1 to i32
      %c0_i32_50 = arith.constant 0 : i32
      %137 = arith.cmpi ne, %136, %c0_i32_50 : i32
      scf.if %137 {
        %329 = arith.truncf %132 : vector<8x128xf32> to vector<8x128xbf16>
        %330 = arith.index_cast %c2_i32 : i32 to index
        %c0_102 = arith.constant 0 : index
        %c0_103 = arith.constant 0 : index
        %331 = vector.load %arg12[%330, %c0_102, %c0_103] : memref<8x8x128xbf16, #tpu.memory_space<vmem>>, vector<1x8x128xbf16>
        %332 = vector.shape_cast %331 : vector<1x8x128xbf16> to vector<8x128xbf16>
        %333 = vector.shape_cast %329 : vector<8x128xbf16> to vector<1x8x128xbf16>
        tpu.vector_store %arg12[%330, %c0_102, %c0_103], %333 {strides = array<i32>} : memref<8x8x128xbf16, #tpu.memory_space<vmem>>, vector<1x8x128xbf16>,
      } else {
      }
      %c3_i32 = arith.constant 3 : i32
      %138 = arith.index_cast %c3_i32 : i32 to index
      %c0_51 = arith.constant 0 : index
      %c0_52 = arith.constant 0 : index
      %139 = vector.load %arg11[%138, %c0_51, %c0_52] : memref<8x8x512xbf16, #tpu.memory_space<vmem>>, vector<1x8x512xbf16>
      %140 = vector.shape_cast %139 : vector<1x8x512xbf16> to vector<8x512xbf16>
      %141 = arith.extf %140 : vector<8x512xbf16> to vector<8x512xf32>
      %142 = arith.truncf %132 : vector<8x128xf32> to vector<8x128xbf16>
      %cst_53 = arith.constant dense<0.000000e+00> : vector<8x512xf32>
      %143 = tpu.matmul %142, %2, %cst_53 {dimension_numbers = #tpu.dot_dimension_numbers<[1], [0], [0], [1], [0, 0, 1, 1], [], []>} : vector<8x128xbf16>, vector<128x512xbf16>, vector<8x512xf32> -> vector<8x512xf32>
      %144 = arith.addf %141, %143 : vector<8x512xf32>
      %145 = vector.extract_strided_slice %144 {offsets = [0, 0], sizes = [8, 128], strides = [1, 1]} : vector<8x512xf32> to vector<8x128xf32>
      %146 = arith.negf %145 : vector<8x128xf32>
      %147 = math.exp %146 : vector<8x128xf32>
      %cst_54 = arith.constant 1.000000e+00 : f32
      %148 = vector.broadcast %cst_54 : f32 to vector<8x128xf32>
      %149 = arith.addf %148, %147 : vector<8x128xf32>
      %150 = arith.divf %148, %149 : vector<8x128xf32>
      %151 = vector.extract_strided_slice %144 {offsets = [0, 128], sizes = [8, 128], strides = [1, 1]} : vector<8x512xf32> to vector<8x128xf32>
      %152 = arith.negf %151 : vector<8x128xf32>
      %153 = math.exp %152 : vector<8x128xf32>
      %cst_55 = arith.constant 1.000000e+00 : f32
      %154 = vector.broadcast %cst_55 : f32 to vector<8x128xf32>
      %155 = arith.addf %154, %153 : vector<8x128xf32>
      %156 = arith.divf %154, %155 : vector<8x128xf32>
      %157 = vector.extract_strided_slice %144 {offsets = [0, 256], sizes = [8, 128], strides = [1, 1]} : vector<8x512xf32> to vector<8x128xf32>
      %158 = math.tanh %157 : vector<8x128xf32>
      %159 = vector.extract_strided_slice %144 {offsets = [0, 384], sizes = [8, 128], strides = [1, 1]} : vector<8x512xf32> to vector<8x128xf32>
      %160 = arith.negf %159 : vector<8x128xf32>
      %161 = math.exp %160 : vector<8x128xf32>
      %cst_56 = arith.constant 1.000000e+00 : f32
      %162 = vector.broadcast %cst_56 : f32 to vector<8x128xf32>
      %163 = arith.addf %162, %161 : vector<8x128xf32>
      %164 = arith.divf %162, %163 : vector<8x128xf32>
      %165 = arith.mulf %156, %130 : vector<8x128xf32>
      %166 = arith.mulf %150, %158 : vector<8x128xf32>
      %167 = arith.addf %165, %166 : vector<8x128xf32>
      %168 = math.tanh %167 : vector<8x128xf32>
      %169 = arith.mulf %164, %168 : vector<8x128xf32>
      %170 = arith.extui %0 : i1 to i32
      %c0_i32_57 = arith.constant 0 : i32
      %171 = arith.cmpi ne, %170, %c0_i32_57 : i32
      scf.if %171 {
        %329 = arith.index_cast %c3_i32 : i32 to index
        %c0_102 = arith.constant 0 : index
        %c0_103 = arith.constant 0 : index
        %330 = vector.load %arg8[%329, %c0_102, %c0_103] : memref<8x8x128xf32, #tpu.memory_space<vmem>>, vector<1x8x128xf32>
        %331 = vector.shape_cast %330 : vector<1x8x128xf32> to vector<8x128xf32>
        %332 = vector.shape_cast %169 : vector<8x128xf32> to vector<1x8x128xf32>
        tpu.vector_store %arg8[%329, %c0_102, %c0_103], %332 {strides = array<i32>} : memref<8x8x128xf32, #tpu.memory_space<vmem>>, vector<1x8x128xf32>,
      } else {
      }
      %true_58 = arith.constant true
      %172 = arith.xori %0, %true_58 : i1
      %173 = arith.extui %172 : i1 to i32
      %c0_i32_59 = arith.constant 0 : i32
      %174 = arith.cmpi ne, %173, %c0_i32_59 : i32
      scf.if %174 {
        %329 = arith.truncf %169 : vector<8x128xf32> to vector<8x128xbf16>
        %330 = arith.index_cast %c3_i32 : i32 to index
        %c0_102 = arith.constant 0 : index
        %c0_103 = arith.constant 0 : index
        %331 = vector.load %arg12[%330, %c0_102, %c0_103] : memref<8x8x128xbf16, #tpu.memory_space<vmem>>, vector<1x8x128xbf16>
        %332 = vector.shape_cast %331 : vector<1x8x128xbf16> to vector<8x128xbf16>
        %333 = vector.shape_cast %329 : vector<8x128xbf16> to vector<1x8x128xbf16>
        tpu.vector_store %arg12[%330, %c0_102, %c0_103], %333 {strides = array<i32>} : memref<8x8x128xbf16, #tpu.memory_space<vmem>>, vector<1x8x128xbf16>,
      } else {
      }
      %c4_i32 = arith.constant 4 : i32
      %175 = arith.index_cast %c4_i32 : i32 to index
      %c0_60 = arith.constant 0 : index
      %c0_61 = arith.constant 0 : index
      %176 = vector.load %arg11[%175, %c0_60, %c0_61] : memref<8x8x512xbf16, #tpu.memory_space<vmem>>, vector<1x8x512xbf16>
      %177 = vector.shape_cast %176 : vector<1x8x512xbf16> to vector<8x512xbf16>
      %178 = arith.extf %177 : vector<8x512xbf16> to vector<8x512xf32>
      %179 = arith.truncf %169 : vector<8x128xf32> to vector<8x128xbf16>
      %cst_62 = arith.constant dense<0.000000e+00> : vector<8x512xf32>
      %180 = tpu.matmul %179, %2, %cst_62 {dimension_numbers = #tpu.dot_dimension_numbers<[1], [0], [0], [1], [0, 0, 1, 1], [], []>} : vector<8x128xbf16>, vector<128x512xbf16>, vector<8x512xf32> -> vector<8x512xf32>
      %181 = arith.addf %178, %180 : vector<8x512xf32>
      %182 = vector.extract_strided_slice %181 {offsets = [0, 0], sizes = [8, 128], strides = [1, 1]} : vector<8x512xf32> to vector<8x128xf32>
      %183 = arith.negf %182 : vector<8x128xf32>
      %184 = math.exp %183 : vector<8x128xf32>
      %cst_63 = arith.constant 1.000000e+00 : f32
      %185 = vector.broadcast %cst_63 : f32 to vector<8x128xf32>
      %186 = arith.addf %185, %184 : vector<8x128xf32>
      %187 = arith.divf %185, %186 : vector<8x128xf32>
      %188 = vector.extract_strided_slice %181 {offsets = [0, 128], sizes = [8, 128], strides = [1, 1]} : vector<8x512xf32> to vector<8x128xf32>
      %189 = arith.negf %188 : vector<8x128xf32>
      %190 = math.exp %189 : vector<8x128xf32>
      %cst_64 = arith.constant 1.000000e+00 : f32
      %191 = vector.broadcast %cst_64 : f32 to vector<8x128xf32>
      %192 = arith.addf %191, %190 : vector<8x128xf32>
      %193 = arith.divf %191, %192 : vector<8x128xf32>
      %194 = vector.extract_strided_slice %181 {offsets = [0, 256], sizes = [8, 128], strides = [1, 1]} : vector<8x512xf32> to vector<8x128xf32>
      %195 = math.tanh %194 : vector<8x128xf32>
      %196 = vector.extract_strided_slice %181 {offsets = [0, 384], sizes = [8, 128], strides = [1, 1]} : vector<8x512xf32> to vector<8x128xf32>
      %197 = arith.negf %196 : vector<8x128xf32>
      %198 = math.exp %197 : vector<8x128xf32>
      %cst_65 = arith.constant 1.000000e+00 : f32
      %199 = vector.broadcast %cst_65 : f32 to vector<8x128xf32>
      %200 = arith.addf %199, %198 : vector<8x128xf32>
      %201 = arith.divf %199, %200 : vector<8x128xf32>
      %202 = arith.mulf %193, %167 : vector<8x128xf32>
      %203 = arith.mulf %187, %195 : vector<8x128xf32>
      %204 = arith.addf %202, %203 : vector<8x128xf32>
      %205 = math.tanh %204 : vector<8x128xf32>
      %206 = arith.mulf %201, %205 : vector<8x128xf32>
      %207 = arith.extui %0 : i1 to i32
      %c0_i32_66 = arith.constant 0 : i32
      %208 = arith.cmpi ne, %207, %c0_i32_66 : i32
      scf.if %208 {
        %329 = arith.index_cast %c4_i32 : i32 to index
        %c0_102 = arith.constant 0 : index
        %c0_103 = arith.constant 0 : index
        %330 = vector.load %arg8[%329, %c0_102, %c0_103] : memref<8x8x128xf32, #tpu.memory_space<vmem>>, vector<1x8x128xf32>
        %331 = vector.shape_cast %330 : vector<1x8x128xf32> to vector<8x128xf32>
        %332 = vector.shape_cast %206 : vector<8x128xf32> to vector<1x8x128xf32>
        tpu.vector_store %arg8[%329, %c0_102, %c0_103], %332 {strides = array<i32>} : memref<8x8x128xf32, #tpu.memory_space<vmem>>, vector<1x8x128xf32>,
      } else {
      }
      %true_67 = arith.constant true
      %209 = arith.xori %0, %true_67 : i1
      %210 = arith.extui %209 : i1 to i32
      %c0_i32_68 = arith.constant 0 : i32
      %211 = arith.cmpi ne, %210, %c0_i32_68 : i32
      scf.if %211 {
        %329 = arith.truncf %206 : vector<8x128xf32> to vector<8x128xbf16>
        %330 = arith.index_cast %c4_i32 : i32 to index
        %c0_102 = arith.constant 0 : index
        %c0_103 = arith.constant 0 : index
        %331 = vector.load %arg12[%330, %c0_102, %c0_103] : memref<8x8x128xbf16, #tpu.memory_space<vmem>>, vector<1x8x128xbf16>
        %332 = vector.shape_cast %331 : vector<1x8x128xbf16> to vector<8x128xbf16>
        %333 = vector.shape_cast %329 : vector<8x128xbf16> to vector<1x8x128xbf16>
        tpu.vector_store %arg12[%330, %c0_102, %c0_103], %333 {strides = array<i32>} : memref<8x8x128xbf16, #tpu.memory_space<vmem>>, vector<1x8x128xbf16>,
      } else {
      }
      %c5_i32 = arith.constant 5 : i32
      %212 = arith.index_cast %c5_i32 : i32 to index
      %c0_69 = arith.constant 0 : index
      %c0_70 = arith.constant 0 : index
      %213 = vector.load %arg11[%212, %c0_69, %c0_70] : memref<8x8x512xbf16, #tpu.memory_space<vmem>>, vector<1x8x512xbf16>
      %214 = vector.shape_cast %213 : vector<1x8x512xbf16> to vector<8x512xbf16>
      %215 = arith.extf %214 : vector<8x512xbf16> to vector<8x512xf32>
      %216 = arith.truncf %206 : vector<8x128xf32> to vector<8x128xbf16>
      %cst_71 = arith.constant dense<0.000000e+00> : vector<8x512xf32>
      %217 = tpu.matmul %216, %2, %cst_71 {dimension_numbers = #tpu.dot_dimension_numbers<[1], [0], [0], [1], [0, 0, 1, 1], [], []>} : vector<8x128xbf16>, vector<128x512xbf16>, vector<8x512xf32> -> vector<8x512xf32>
      %218 = arith.addf %215, %217 : vector<8x512xf32>
      %219 = vector.extract_strided_slice %218 {offsets = [0, 0], sizes = [8, 128], strides = [1, 1]} : vector<8x512xf32> to vector<8x128xf32>
      %220 = arith.negf %219 : vector<8x128xf32>
      %221 = math.exp %220 : vector<8x128xf32>
      %cst_72 = arith.constant 1.000000e+00 : f32
      %222 = vector.broadcast %cst_72 : f32 to vector<8x128xf32>
      %223 = arith.addf %222, %221 : vector<8x128xf32>
      %224 = arith.divf %222, %223 : vector<8x128xf32>
      %225 = vector.extract_strided_slice %218 {offsets = [0, 128], sizes = [8, 128], strides = [1, 1]} : vector<8x512xf32> to vector<8x128xf32>
      %226 = arith.negf %225 : vector<8x128xf32>
      %227 = math.exp %226 : vector<8x128xf32>
      %cst_73 = arith.constant 1.000000e+00 : f32
      %228 = vector.broadcast %cst_73 : f32 to vector<8x128xf32>
      %229 = arith.addf %228, %227 : vector<8x128xf32>
      %230 = arith.divf %228, %229 : vector<8x128xf32>
      %231 = vector.extract_strided_slice %218 {offsets = [0, 256], sizes = [8, 128], strides = [1, 1]} : vector<8x512xf32> to vector<8x128xf32>
      %232 = math.tanh %231 : vector<8x128xf32>
      %233 = vector.extract_strided_slice %218 {offsets = [0, 384], sizes = [8, 128], strides = [1, 1]} : vector<8x512xf32> to vector<8x128xf32>
      %234 = arith.negf %233 : vector<8x128xf32>
      %235 = math.exp %234 : vector<8x128xf32>
      %cst_74 = arith.constant 1.000000e+00 : f32
      %236 = vector.broadcast %cst_74 : f32 to vector<8x128xf32>
      %237 = arith.addf %236, %235 : vector<8x128xf32>
      %238 = arith.divf %236, %237 : vector<8x128xf32>
      %239 = arith.mulf %230, %204 : vector<8x128xf32>
      %240 = arith.mulf %224, %232 : vector<8x128xf32>
      %241 = arith.addf %239, %240 : vector<8x128xf32>
      %242 = math.tanh %241 : vector<8x128xf32>
      %243 = arith.mulf %238, %242 : vector<8x128xf32>
      %244 = arith.extui %0 : i1 to i32
      %c0_i32_75 = arith.constant 0 : i32
      %245 = arith.cmpi ne, %244, %c0_i32_75 : i32
      scf.if %245 {
        %329 = arith.index_cast %c5_i32 : i32 to index
        %c0_102 = arith.constant 0 : index
        %c0_103 = arith.constant 0 : index
        %330 = vector.load %arg8[%329, %c0_102, %c0_103] : memref<8x8x128xf32, #tpu.memory_space<vmem>>, vector<1x8x128xf32>
        %331 = vector.shape_cast %330 : vector<1x8x128xf32> to vector<8x128xf32>
        %332 = vector.shape_cast %243 : vector<8x128xf32> to vector<1x8x128xf32>
        tpu.vector_store %arg8[%329, %c0_102, %c0_103], %332 {strides = array<i32>} : memref<8x8x128xf32, #tpu.memory_space<vmem>>, vector<1x8x128xf32>,
      } else {
      }
      %true_76 = arith.constant true
      %246 = arith.xori %0, %true_76 : i1
      %247 = arith.extui %246 : i1 to i32
      %c0_i32_77 = arith.constant 0 : i32
      %248 = arith.cmpi ne, %247, %c0_i32_77 : i32
      scf.if %248 {
        %329 = arith.truncf %243 : vector<8x128xf32> to vector<8x128xbf16>
        %330 = arith.index_cast %c5_i32 : i32 to index
        %c0_102 = arith.constant 0 : index
        %c0_103 = arith.constant 0 : index
        %331 = vector.load %arg12[%330, %c0_102, %c0_103] : memref<8x8x128xbf16, #tpu.memory_space<vmem>>, vector<1x8x128xbf16>
        %332 = vector.shape_cast %331 : vector<1x8x128xbf16> to vector<8x128xbf16>
        %333 = vector.shape_cast %329 : vector<8x128xbf16> to vector<1x8x128xbf16>
        tpu.vector_store %arg12[%330, %c0_102, %c0_103], %333 {strides = array<i32>} : memref<8x8x128xbf16, #tpu.memory_space<vmem>>, vector<1x8x128xbf16>,
      } else {
      }
      %c6_i32 = arith.constant 6 : i32
      %249 = arith.index_cast %c6_i32 : i32 to index
      %c0_78 = arith.constant 0 : index
      %c0_79 = arith.constant 0 : index
      %250 = vector.load %arg11[%249, %c0_78, %c0_79] : memref<8x8x512xbf16, #tpu.memory_space<vmem>>, vector<1x8x512xbf16>
      %251 = vector.shape_cast %250 : vector<1x8x512xbf16> to vector<8x512xbf16>
      %252 = arith.extf %251 : vector<8x512xbf16> to vector<8x512xf32>
      %253 = arith.truncf %243 : vector<8x128xf32> to vector<8x128xbf16>
      %cst_80 = arith.constant dense<0.000000e+00> : vector<8x512xf32>
      %254 = tpu.matmul %253, %2, %cst_80 {dimension_numbers = #tpu.dot_dimension_numbers<[1], [0], [0], [1], [0, 0, 1, 1], [], []>} : vector<8x128xbf16>, vector<128x512xbf16>, vector<8x512xf32> -> vector<8x512xf32>
      %255 = arith.addf %252, %254 : vector<8x512xf32>
      %256 = vector.extract_strided_slice %255 {offsets = [0, 0], sizes = [8, 128], strides = [1, 1]} : vector<8x512xf32> to vector<8x128xf32>
      %257 = arith.negf %256 : vector<8x128xf32>
      %258 = math.exp %257 : vector<8x128xf32>
      %cst_81 = arith.constant 1.000000e+00 : f32
      %259 = vector.broadcast %cst_81 : f32 to vector<8x128xf32>
      %260 = arith.addf %259, %258 : vector<8x128xf32>
      %261 = arith.divf %259, %260 : vector<8x128xf32>
      %262 = vector.extract_strided_slice %255 {offsets = [0, 128], sizes = [8, 128], strides = [1, 1]} : vector<8x512xf32> to vector<8x128xf32>
      %263 = arith.negf %262 : vector<8x128xf32>
      %264 = math.exp %263 : vector<8x128xf32>
      %cst_82 = arith.constant 1.000000e+00 : f32
      %265 = vector.broadcast %cst_82 : f32 to vector<8x128xf32>
      %266 = arith.addf %265, %264 : vector<8x128xf32>
      %267 = arith.divf %265, %266 : vector<8x128xf32>
      %268 = vector.extract_strided_slice %255 {offsets = [0, 256], sizes = [8, 128], strides = [1, 1]} : vector<8x512xf32> to vector<8x128xf32>
      %269 = math.tanh %268 : vector<8x128xf32>
      %270 = vector.extract_strided_slice %255 {offsets = [0, 384], sizes = [8, 128], strides = [1, 1]} : vector<8x512xf32> to vector<8x128xf32>
      %271 = arith.negf %270 : vector<8x128xf32>
      %272 = math.exp %271 : vector<8x128xf32>
      %cst_83 = arith.constant 1.000000e+00 : f32
      %273 = vector.broadcast %cst_83 : f32 to vector<8x128xf32>
      %274 = arith.addf %273, %272 : vector<8x128xf32>
      %275 = arith.divf %273, %274 : vector<8x128xf32>
      %276 = arith.mulf %267, %241 : vector<8x128xf32>
      %277 = arith.mulf %261, %269 : vector<8x128xf32>
      %278 = arith.addf %276, %277 : vector<8x128xf32>
      %279 = math.tanh %278 : vector<8x128xf32>
      %280 = arith.mulf %275, %279 : vector<8x128xf32>
      %281 = arith.extui %0 : i1 to i32
      %c0_i32_84 = arith.constant 0 : i32
      %282 = arith.cmpi ne, %281, %c0_i32_84 : i32
      scf.if %282 {
        %329 = arith.index_cast %c6_i32 : i32 to index
        %c0_102 = arith.constant 0 : index
        %c0_103 = arith.constant 0 : index
        %330 = vector.load %arg8[%329, %c0_102, %c0_103] : memref<8x8x128xf32, #tpu.memory_space<vmem>>, vector<1x8x128xf32>
        %331 = vector.shape_cast %330 : vector<1x8x128xf32> to vector<8x128xf32>
        %332 = vector.shape_cast %280 : vector<8x128xf32> to vector<1x8x128xf32>
        tpu.vector_store %arg8[%329, %c0_102, %c0_103], %332 {strides = array<i32>} : memref<8x8x128xf32, #tpu.memory_space<vmem>>, vector<1x8x128xf32>,
      } else {
      }
      %true_85 = arith.constant true
      %283 = arith.xori %0, %true_85 : i1
      %284 = arith.extui %283 : i1 to i32
      %c0_i32_86 = arith.constant 0 : i32
      %285 = arith.cmpi ne, %284, %c0_i32_86 : i32
      scf.if %285 {
        %329 = arith.truncf %280 : vector<8x128xf32> to vector<8x128xbf16>
        %330 = arith.index_cast %c6_i32 : i32 to index
        %c0_102 = arith.constant 0 : index
        %c0_103 = arith.constant 0 : index
        %331 = vector.load %arg12[%330, %c0_102, %c0_103] : memref<8x8x128xbf16, #tpu.memory_space<vmem>>, vector<1x8x128xbf16>
        %332 = vector.shape_cast %331 : vector<1x8x128xbf16> to vector<8x128xbf16>
        %333 = vector.shape_cast %329 : vector<8x128xbf16> to vector<1x8x128xbf16>
        tpu.vector_store %arg12[%330, %c0_102, %c0_103], %333 {strides = array<i32>} : memref<8x8x128xbf16, #tpu.memory_space<vmem>>, vector<1x8x128xbf16>,
      } else {
      }
      %c7_i32 = arith.constant 7 : i32
      %286 = arith.index_cast %c7_i32 : i32 to index
      %c0_87 = arith.constant 0 : index
      %c0_88 = arith.constant 0 : index
      %287 = vector.load %arg11[%286, %c0_87, %c0_88] : memref<8x8x512xbf16, #tpu.memory_space<vmem>>, vector<1x8x512xbf16>
      %288 = vector.shape_cast %287 : vector<1x8x512xbf16> to vector<8x512xbf16>
      %289 = arith.extf %288 : vector<8x512xbf16> to vector<8x512xf32>
      %290 = arith.truncf %280 : vector<8x128xf32> to vector<8x128xbf16>
      %cst_89 = arith.constant dense<0.000000e+00> : vector<8x512xf32>
      %291 = tpu.matmul %290, %2, %cst_89 {dimension_numbers = #tpu.dot_dimension_numbers<[1], [0], [0], [1], [0, 0, 1, 1], [], []>} : vector<8x128xbf16>, vector<128x512xbf16>, vector<8x512xf32> -> vector<8x512xf32>
      %292 = arith.addf %289, %291 : vector<8x512xf32>
      %293 = vector.extract_strided_slice %292 {offsets = [0, 0], sizes = [8, 128], strides = [1, 1]} : vector<8x512xf32> to vector<8x128xf32>
      %294 = arith.negf %293 : vector<8x128xf32>
      %295 = math.exp %294 : vector<8x128xf32>
      %cst_90 = arith.constant 1.000000e+00 : f32
      %296 = vector.broadcast %cst_90 : f32 to vector<8x128xf32>
      %297 = arith.addf %296, %295 : vector<8x128xf32>
      %298 = arith.divf %296, %297 : vector<8x128xf32>
      %299 = vector.extract_strided_slice %292 {offsets = [0, 128], sizes = [8, 128], strides = [1, 1]} : vector<8x512xf32> to vector<8x128xf32>
      %300 = arith.negf %299 : vector<8x128xf32>
      %301 = math.exp %300 : vector<8x128xf32>
      %cst_91 = arith.constant 1.000000e+00 : f32
      %302 = vector.broadcast %cst_91 : f32 to vector<8x128xf32>
      %303 = arith.addf %302, %301 : vector<8x128xf32>
      %304 = arith.divf %302, %303 : vector<8x128xf32>
      %305 = vector.extract_strided_slice %292 {offsets = [0, 256], sizes = [8, 128], strides = [1, 1]} : vector<8x512xf32> to vector<8x128xf32>
      %306 = math.tanh %305 : vector<8x128xf32>
      %307 = vector.extract_strided_slice %292 {offsets = [0, 384], sizes = [8, 128], strides = [1, 1]} : vector<8x512xf32> to vector<8x128xf32>
      %308 = arith.negf %307 : vector<8x128xf32>
      %309 = math.exp %308 : vector<8x128xf32>
      %cst_92 = arith.constant 1.000000e+00 : f32
      %310 = vector.broadcast %cst_92 : f32 to vector<8x128xf32>
      %311 = arith.addf %310, %309 : vector<8x128xf32>
      %312 = arith.divf %310, %311 : vector<8x128xf32>
      %313 = arith.mulf %304, %278 : vector<8x128xf32>
      %314 = arith.mulf %298, %306 : vector<8x128xf32>
      %315 = arith.addf %313, %314 : vector<8x128xf32>
      %316 = math.tanh %315 : vector<8x128xf32>
      %317 = arith.mulf %312, %316 : vector<8x128xf32>
      %318 = arith.extui %0 : i1 to i32
      %c0_i32_93 = arith.constant 0 : i32
      %319 = arith.cmpi ne, %318, %c0_i32_93 : i32
      scf.if %319 {
        %329 = arith.index_cast %c7_i32 : i32 to index
        %c0_102 = arith.constant 0 : index
        %c0_103 = arith.constant 0 : index
        %330 = vector.load %arg8[%329, %c0_102, %c0_103] : memref<8x8x128xf32, #tpu.memory_space<vmem>>, vector<1x8x128xf32>
        %331 = vector.shape_cast %330 : vector<1x8x128xf32> to vector<8x128xf32>
        %332 = vector.shape_cast %317 : vector<8x128xf32> to vector<1x8x128xf32>
        tpu.vector_store %arg8[%329, %c0_102, %c0_103], %332 {strides = array<i32>} : memref<8x8x128xf32, #tpu.memory_space<vmem>>, vector<1x8x128xf32>,
      } else {
      }
      %true_94 = arith.constant true
      %320 = arith.xori %0, %true_94 : i1
      %321 = arith.extui %320 : i1 to i32
      %c0_i32_95 = arith.constant 0 : i32
      %322 = arith.cmpi ne, %321, %c0_i32_95 : i32
      scf.if %322 {
        %329 = arith.truncf %317 : vector<8x128xf32> to vector<8x128xbf16>
        %330 = arith.index_cast %c7_i32 : i32 to index
        %c0_102 = arith.constant 0 : index
        %c0_103 = arith.constant 0 : index
        %331 = vector.load %arg12[%330, %c0_102, %c0_103] : memref<8x8x128xbf16, #tpu.memory_space<vmem>>, vector<1x8x128xbf16>
        %332 = vector.shape_cast %331 : vector<1x8x128xbf16> to vector<8x128xbf16>
        %333 = vector.shape_cast %329 : vector<8x128xbf16> to vector<1x8x128xbf16>
        tpu.vector_store %arg12[%330, %c0_102, %c0_103], %333 {strides = array<i32>} : memref<8x8x128xbf16, #tpu.memory_space<vmem>>, vector<1x8x128xbf16>,
      } else {
      }
      %c8_i32 = arith.constant 8 : i32
      %c0_96 = arith.constant 0 : index
      %c0_97 = arith.constant 0 : index
      %c0_98 = arith.constant 0 : index
      %323 = vector.load %arg9[%c0_96, %c0_97, %c0_98] : memref<1x8x128xf32, #tpu.memory_space<vmem>>, vector<1x8x128xf32>
      %324 = vector.shape_cast %323 : vector<1x8x128xf32> to vector<8x128xf32>
      %325 = vector.shape_cast %317 : vector<8x128xf32> to vector<1x8x128xf32>
      tpu.vector_store %arg9[%c0_96, %c0_97, %c0_98], %325 {strides = array<i32>} : memref<1x8x128xf32, #tpu.memory_space<vmem>>, vector<1x8x128xf32>,
      %c0_99 = arith.constant 0 : index
      %c0_100 = arith.constant 0 : index
      %c0_101 = arith.constant 0 : index
      %326 = vector.load %arg10[%c0_99, %c0_100, %c0_101] : memref<1x8x128xf32, #tpu.memory_space<vmem>>, vector<1x8x128xf32>
      %327 = vector.shape_cast %326 : vector<1x8x128xf32> to vector<8x128xf32>
      %328 = vector.shape_cast %315 : vector<8x128xf32> to vector<1x8x128xf32>
      tpu.vector_store %arg10[%c0_99, %c0_100, %c0_101], %328 {strides = array<i32>} : memref<1x8x128xf32, #tpu.memory_space<vmem>>, vector<1x8x128xf32>,
    } else {
    }
    return
  }
  func.func @transform_0(%arg0: i32, %arg1: i32) -> (i32, i32, i32) {
    %c0_i32 = arith.constant 0 : i32
    %c0_i32_0 = arith.constant 0 : i32
    %c0_i32_1 = arith.constant 0 : i32
    return %c0_i32, %arg0, %c0_i32_0 : i32, i32, i32
  }
  func.func @transform_1(%arg0: i32, %arg1: i32) -> (i32, i32, i32) {
    %c1_i32 = arith.constant 1 : i32
    %0 = arith.subi %arg1, %c1_i32 : i32
    %c0_i32 = arith.constant 0 : i32
    %1 = arith.maxsi %0, %c0_i32 : i32
    %c0_i32_0 = arith.constant 0 : i32
    %c0_i32_1 = arith.constant 0 : i32
    %c0_i32_2 = arith.constant 0 : i32
    return %1, %c0_i32_0, %c0_i32_1 : i32, i32, i32
  }
  func.func @transform_2(%arg0: i32, %arg1: i32) -> (i32, i32, i32) {
    %c0_i32 = arith.constant 0 : i32
    %c0_i32_0 = arith.constant 0 : i32
    %c0_i32_1 = arith.constant 0 : i32
    return %arg1, %c0_i32, %c0_i32_0 : i32, i32, i32
  }
  func.func @transform_3(%arg0: i32, %arg1: i32) -> (i32, i32, i32) {
    %c0_i32 = arith.constant 0 : i32
    %c0_i32_0 = arith.constant 0 : i32
    %c0_i32_1 = arith.constant 0 : i32
    return %arg1, %c0_i32, %c0_i32_0 : i32, i32, i32
  }
  func.func @transform_4(%arg0: i32, %arg1: i32) -> (i32, i32, i32) {
    %c0_i32 = arith.constant 0 : i32
    %c0_i32_0 = arith.constant 0 : i32
    return %arg1, %arg0, %c0_i32 : i32, i32, i32
  }
  func.func @transform_5(%arg0: i32, %arg1: i32) -> (i32, i32, i32) {
    %c0_i32 = arith.constant 0 : i32
    %c0_i32_0 = arith.constant 0 : i32
    return %arg1, %arg0, %c0_i32 : i32, i32, i32
  }
  func.func @transform_6(%arg0: i32, %arg1: i32) -> (i32, i32, i32) {
    %c0_i32 = arith.constant 0 : i32
    %c0_i32_0 = arith.constant 0 : i32
    %c0_i32_1 = arith.constant 0 : i32
    return %c0_i32, %arg0, %c0_i32_0 : i32, i32, i32
  }
  func.func @transform_7(%arg0: i32, %arg1: i32) -> (i32, i32, i32) {
    %c0_i32 = arith.constant 0 : i32
    %c0_i32_0 = arith.constant 0 : i32
    return %arg1, %arg0, %c0_i32 : i32, i32, i32
  }
  func.func @transform_8(%arg0: i32, %arg1: i32) -> (i32, i32, i32) {
    %c0_i32 = arith.constant 0 : i32
    %c0_i32_0 = arith.constant 0 : i32
    return %arg1, %arg0, %c0_i32 : i32, i32, i32
  }
}

module attributes {stable_mosaic.version = 11 : i64} {
  func.func @_decoder_lstm_kernel(%arg0: i32, %arg1: i32, %arg2: memref<8x8x512xbf16, #tpu.memory_space<vmem>>, %arg3: memref<1x128x512xbf16, #tpu.memory_space<vmem>>, %arg4: memref<1x128x512xbf16, #tpu.memory_space<vmem>>, %arg5: memref<1x1x512xf32, #tpu.memory_space<vmem>>, %arg6: memref<1x8x128xf32, #tpu.memory_space<vmem>>, %arg7: memref<1x8x128xf32, #tpu.memory_space<vmem>>, %arg8: memref<8x8x128xf32, #tpu.memory_space<vmem>>, %arg9: memref<1x8x128xf32, #tpu.memory_space<vmem>>, %arg10: memref<1x8x128xf32, #tpu.memory_space<vmem>>, %arg11: memref<8x8x512xbf16, #tpu.memory_space<vmem>>, %arg12: memref<8x8x128xbf16, #tpu.memory_space<vmem>>) attributes {dimension_semantics = [#tpu.dimension_semantics<arbitrary>, #tpu.dimension_semantics<arbitrary>], iteration_bounds = array<i64: 1, 2>, scalar_prefetch = 0 : i64, scratch_operands = 2 : i64, tpu.core_type = #tpu.core_type<tc>, window_params = [{transform_indices = @transform_0, window_bounds = array<i64: 8, 8, 512>}, {transform_indices = @transform_1, window_bounds = array<i64: 1, 128, 512>}, {transform_indices = @transform_2, window_bounds = array<i64: 1, 128, 512>}, {transform_indices = @transform_3, window_bounds = array<i64: 1, 1, 512>}, {transform_indices = @transform_4, window_bounds = array<i64: 1, 8, 128>}, {transform_indices = @transform_5, window_bounds = array<i64: 1, 8, 128>}, {transform_indices = @transform_6, window_bounds = array<i64: 8, 8, 128>}, {transform_indices = @transform_7, window_bounds = array<i64: 1, 8, 128>}, {transform_indices = @transform_8, window_bounds = array<i64: 1, 8, 128>}]} {
    %c1_i32 = arith.constant 1 : i32
    %0 = arith.cmpi eq, %arg1, %c1_i32 : i32
    %c0 = arith.constant 0 : index
    %c0_0 = arith.constant 0 : index
    %c0_1 = arith.constant 0 : index
    %1 = vector.load %arg4[%c0, %c0_0, %c0_1] : memref<1x128x512xbf16, #tpu.memory_space<vmem>>, vector<1x128x512xbf16>
    %2 = vector.shape_cast %1 : vector<1x128x512xbf16> to vector<128x512xbf16>
    %c0_2 = arith.constant 0 : index
    %c0_3 = arith.constant 0 : index
    %c0_4 = arith.constant 0 : index
    %3 = vector.load %arg6[%c0_2, %c0_3, %c0_4] : memref<1x8x128xf32, #tpu.memory_space<vmem>>, vector<1x8x128xf32>
    %4 = vector.shape_cast %3 : vector<1x8x128xf32> to vector<8x128xf32>
    %c0_5 = arith.constant 0 : index
    %c0_6 = arith.constant 0 : index
    %c0_7 = arith.constant 0 : index
    %5 = vector.load %arg7[%c0_5, %c0_6, %c0_7] : memref<1x8x128xf32, #tpu.memory_space<vmem>>, vector<1x8x128xf32>
    %6 = vector.shape_cast %5 : vector<1x8x128xf32> to vector<8x128xf32>
    %c0_i32 = arith.constant 0 : i32
    %7 = arith.cmpi eq, %arg1, %c0_i32 : i32
    %8 = arith.extui %7 : i1 to i32
    %c0_i32_8 = arith.constant 0 : i32
    %9 = arith.cmpi ne, %8, %c0_i32_8 : i32
    scf.if %9 {
      %c0_i32_11 = arith.constant 0 : i32
      %13 = arith.index_cast %c0_i32_11 : i32 to index
      %c0_12 = arith.constant 0 : index
      %c0_13 = arith.constant 0 : index
      %14 = vector.load %arg2[%13, %c0_12, %c0_13] : memref<8x8x512xbf16, #tpu.memory_space<vmem>>, vector<1x8x512xbf16>
      %15 = vector.shape_cast %14 : vector<1x8x512xbf16> to vector<8x512xbf16>
      %16 = arith.extf %15 : vector<8x512xbf16> to vector<8x512xf32>
      %17 = arith.truncf %4 : vector<8x128xf32> to vector<8x128xbf16>
      %cst = arith.constant dense<0.000000e+00> : vector<8x512xf32>
      %18 = tpu.matmul %17, %2, %cst {dimension_numbers = #tpu.dot_dimension_numbers<[1], [0], [0], [1], [0, 0, 1, 1], [], []>} : vector<8x128xbf16>, vector<128x512xbf16>, vector<8x512xf32> -> vector<8x512xf32>
      %19 = arith.addf %16, %18 : vector<8x512xf32>
      %20 = vector.extract_strided_slice %19 {offsets = [0, 0], sizes = [8, 128], strides = [1, 1]} : vector<8x512xf32> to vector<8x128xf32>
      %21 = arith.negf %20 : vector<8x128xf32>
      %22 = math.exp %21 : vector<8x128xf32>
      %cst_14 = arith.constant 1.000000e+00 : f32
      %23 = vector.broadcast %cst_14 : f32 to vector<8x128xf32>
      %24 = arith.addf %23, %22 : vector<8x128xf32>
      %25 = arith.divf %23, %24 : vector<8x128xf32>
      %26 = vector.extract_strided_slice %19 {offsets = [0, 128], sizes = [8, 128], strides = [1, 1]} : vector<8x512xf32> to vector<8x128xf32>
      %27 = arith.negf %26 : vector<8x128xf32>
      %28 = math.exp %27 : vector<8x128xf32>
      %cst_15 = arith.constant 1.000000e+00 : f32
      %29 = vector.broadcast %cst_15 : f32 to vector<8x128xf32>
      %30 = arith.addf %29, %28 : vector<8x128xf32>
      %31 = arith.divf %29, %30 : vector<8x128xf32>
      %32 = vector.extract_strided_slice %19 {offsets = [0, 256], sizes = [8, 128], strides = [1, 1]} : vector<8x512xf32> to vector<8x128xf32>
      %33 = math.tanh %32 : vector<8x128xf32>
      %34 = vector.extract_strided_slice %19 {offsets = [0, 384], sizes = [8, 128], strides = [1, 1]} : vector<8x512xf32> to vector<8x128xf32>
      %35 = arith.negf %34 : vector<8x128xf32>
      %36 = math.exp %35 : vector<8x128xf32>
      %cst_16 = arith.constant 1.000000e+00 : f32
      %37 = vector.broadcast %cst_16 : f32 to vector<8x128xf32>
      %38 = arith.addf %37, %36 : vector<8x128xf32>
      %39 = arith.divf %37, %38 : vector<8x128xf32>
      %40 = arith.mulf %31, %6 : vector<8x128xf32>
      %41 = arith.mulf %25, %33 : vector<8x128xf32>
      %42 = arith.addf %40, %41 : vector<8x128xf32>
      %43 = math.tanh %42 : vector<8x128xf32>
      %44 = arith.mulf %39, %43 : vector<8x128xf32>
      %45 = arith.extui %0 : i1 to i32
      %c0_i32_17 = arith.constant 0 : i32
      %46 = arith.cmpi ne, %45, %c0_i32_17 : i32
      scf.if %46 {
        %315 = arith.index_cast %c0_i32_11 : i32 to index
        %c0_89 = arith.constant 0 : index
        %c0_90 = arith.constant 0 : index
        %316 = vector.load %arg8[%315, %c0_89, %c0_90] : memref<8x8x128xf32, #tpu.memory_space<vmem>>, vector<1x8x128xf32>
        %317 = vector.shape_cast %316 : vector<1x8x128xf32> to vector<8x128xf32>
        %318 = vector.shape_cast %44 : vector<8x128xf32> to vector<1x8x128xf32>
        tpu.vector_store %arg8[%315, %c0_89, %c0_90], %318 {strides = array<i32>} : memref<8x8x128xf32, #tpu.memory_space<vmem>>, vector<1x8x128xf32>,
      } else {
      }
      %true = arith.constant true
      %47 = arith.xori %0, %true : i1
      %48 = arith.extui %47 : i1 to i32
      %c0_i32_18 = arith.constant 0 : i32
      %49 = arith.cmpi ne, %48, %c0_i32_18 : i32
      scf.if %49 {
        %315 = arith.truncf %44 : vector<8x128xf32> to vector<8x128xbf16>
        %316 = arith.index_cast %c0_i32_11 : i32 to index
        %c0_89 = arith.constant 0 : index
        %c0_90 = arith.constant 0 : index
        %317 = vector.load %arg12[%316, %c0_89, %c0_90] : memref<8x8x128xbf16, #tpu.memory_space<vmem>>, vector<1x8x128xbf16>
        %318 = vector.shape_cast %317 : vector<1x8x128xbf16> to vector<8x128xbf16>
        %319 = vector.shape_cast %315 : vector<8x128xbf16> to vector<1x8x128xbf16>
        tpu.vector_store %arg12[%316, %c0_89, %c0_90], %319 {strides = array<i32>} : memref<8x8x128xbf16, #tpu.memory_space<vmem>>, vector<1x8x128xbf16>,
      } else {
      }
      %c1_i32_19 = arith.constant 1 : i32
      %50 = arith.index_cast %c1_i32_19 : i32 to index
      %c0_20 = arith.constant 0 : index
      %c0_21 = arith.constant 0 : index
      %51 = vector.load %arg2[%50, %c0_20, %c0_21] : memref<8x8x512xbf16, #tpu.memory_space<vmem>>, vector<1x8x512xbf16>
      %52 = vector.shape_cast %51 : vector<1x8x512xbf16> to vector<8x512xbf16>
      %53 = arith.extf %52 : vector<8x512xbf16> to vector<8x512xf32>
      %54 = arith.truncf %44 : vector<8x128xf32> to vector<8x128xbf16>
      %cst_22 = arith.constant dense<0.000000e+00> : vector<8x512xf32>
      %55 = tpu.matmul %54, %2, %cst_22 {dimension_numbers = #tpu.dot_dimension_numbers<[1], [0], [0], [1], [0, 0, 1, 1], [], []>} : vector<8x128xbf16>, vector<128x512xbf16>, vector<8x512xf32> -> vector<8x512xf32>
      %56 = arith.addf %53, %55 : vector<8x512xf32>
      %57 = vector.extract_strided_slice %56 {offsets = [0, 0], sizes = [8, 128], strides = [1, 1]} : vector<8x512xf32> to vector<8x128xf32>
      %58 = arith.negf %57 : vector<8x128xf32>
      %59 = math.exp %58 : vector<8x128xf32>
      %cst_23 = arith.constant 1.000000e+00 : f32
      %60 = vector.broadcast %cst_23 : f32 to vector<8x128xf32>
      %61 = arith.addf %60, %59 : vector<8x128xf32>
      %62 = arith.divf %60, %61 : vector<8x128xf32>
      %63 = vector.extract_strided_slice %56 {offsets = [0, 128], sizes = [8, 128], strides = [1, 1]} : vector<8x512xf32> to vector<8x128xf32>
      %64 = arith.negf %63 : vector<8x128xf32>
      %65 = math.exp %64 : vector<8x128xf32>
      %cst_24 = arith.constant 1.000000e+00 : f32
      %66 = vector.broadcast %cst_24 : f32 to vector<8x128xf32>
      %67 = arith.addf %66, %65 : vector<8x128xf32>
      %68 = arith.divf %66, %67 : vector<8x128xf32>
      %69 = vector.extract_strided_slice %56 {offsets = [0, 256], sizes = [8, 128], strides = [1, 1]} : vector<8x512xf32> to vector<8x128xf32>
      %70 = math.tanh %69 : vector<8x128xf32>
      %71 = vector.extract_strided_slice %56 {offsets = [0, 384], sizes = [8, 128], strides = [1, 1]} : vector<8x512xf32> to vector<8x128xf32>
      %72 = arith.negf %71 : vector<8x128xf32>
      %73 = math.exp %72 : vector<8x128xf32>
      %cst_25 = arith.constant 1.000000e+00 : f32
      %74 = vector.broadcast %cst_25 : f32 to vector<8x128xf32>
      %75 = arith.addf %74, %73 : vector<8x128xf32>
      %76 = arith.divf %74, %75 : vector<8x128xf32>
      %77 = arith.mulf %68, %42 : vector<8x128xf32>
      %78 = arith.mulf %62, %70 : vector<8x128xf32>
      %79 = arith.addf %77, %78 : vector<8x128xf32>
      %80 = math.tanh %79 : vector<8x128xf32>
      %81 = arith.mulf %76, %80 : vector<8x128xf32>
      %82 = arith.extui %0 : i1 to i32
      %c0_i32_26 = arith.constant 0 : i32
      %83 = arith.cmpi ne, %82, %c0_i32_26 : i32
      scf.if %83 {
        %315 = arith.index_cast %c1_i32_19 : i32 to index
        %c0_89 = arith.constant 0 : index
        %c0_90 = arith.constant 0 : index
        %316 = vector.load %arg8[%315, %c0_89, %c0_90] : memref<8x8x128xf32, #tpu.memory_space<vmem>>, vector<1x8x128xf32>
        %317 = vector.shape_cast %316 : vector<1x8x128xf32> to vector<8x128xf32>
        %318 = vector.shape_cast %81 : vector<8x128xf32> to vector<1x8x128xf32>
        tpu.vector_store %arg8[%315, %c0_89, %c0_90], %318 {strides = array<i32>} : memref<8x8x128xf32, #tpu.memory_space<vmem>>, vector<1x8x128xf32>,
      } else {
      }
      %true_27 = arith.constant true
      %84 = arith.xori %0, %true_27 : i1
      %85 = arith.extui %84 : i1 to i32
      %c0_i32_28 = arith.constant 0 : i32
      %86 = arith.cmpi ne, %85, %c0_i32_28 : i32
      scf.if %86 {
        %315 = arith.truncf %81 : vector<8x128xf32> to vector<8x128xbf16>
        %316 = arith.index_cast %c1_i32_19 : i32 to index
        %c0_89 = arith.constant 0 : index
        %c0_90 = arith.constant 0 : index
        %317 = vector.load %arg12[%316, %c0_89, %c0_90] : memref<8x8x128xbf16, #tpu.memory_space<vmem>>, vector<1x8x128xbf16>
        %318 = vector.shape_cast %317 : vector<1x8x128xbf16> to vector<8x128xbf16>
        %319 = vector.shape_cast %315 : vector<8x128xbf16> to vector<1x8x128xbf16>
        tpu.vector_store %arg12[%316, %c0_89, %c0_90], %319 {strides = array<i32>} : memref<8x8x128xbf16, #tpu.memory_space<vmem>>, vector<1x8x128xbf16>,
      } else {
      }
      %c2_i32 = arith.constant 2 : i32
      %87 = arith.index_cast %c2_i32 : i32 to index
      %c0_29 = arith.constant 0 : index
      %c0_30 = arith.constant 0 : index
      %88 = vector.load %arg2[%87, %c0_29, %c0_30] : memref<8x8x512xbf16, #tpu.memory_space<vmem>>, vector<1x8x512xbf16>
      %89 = vector.shape_cast %88 : vector<1x8x512xbf16> to vector<8x512xbf16>
      %90 = arith.extf %89 : vector<8x512xbf16> to vector<8x512xf32>
      %91 = arith.truncf %81 : vector<8x128xf32> to vector<8x128xbf16>
      %cst_31 = arith.constant dense<0.000000e+00> : vector<8x512xf32>
      %92 = tpu.matmul %91, %2, %cst_31 {dimension_numbers = #tpu.dot_dimension_numbers<[1], [0], [0], [1], [0, 0, 1, 1], [], []>} : vector<8x128xbf16>, vector<128x512xbf16>, vector<8x512xf32> -> vector<8x512xf32>
      %93 = arith.addf %90, %92 : vector<8x512xf32>
      %94 = vector.extract_strided_slice %93 {offsets = [0, 0], sizes = [8, 128], strides = [1, 1]} : vector<8x512xf32> to vector<8x128xf32>
      %95 = arith.negf %94 : vector<8x128xf32>
      %96 = math.exp %95 : vector<8x128xf32>
      %cst_32 = arith.constant 1.000000e+00 : f32
      %97 = vector.broadcast %cst_32 : f32 to vector<8x128xf32>
      %98 = arith.addf %97, %96 : vector<8x128xf32>
      %99 = arith.divf %97, %98 : vector<8x128xf32>
      %100 = vector.extract_strided_slice %93 {offsets = [0, 128], sizes = [8, 128], strides = [1, 1]} : vector<8x512xf32> to vector<8x128xf32>
      %101 = arith.negf %100 : vector<8x128xf32>
      %102 = math.exp %101 : vector<8x128xf32>
      %cst_33 = arith.constant 1.000000e+00 : f32
      %103 = vector.broadcast %cst_33 : f32 to vector<8x128xf32>
      %104 = arith.addf %103, %102 : vector<8x128xf32>
      %105 = arith.divf %103, %104 : vector<8x128xf32>
      %106 = vector.extract_strided_slice %93 {offsets = [0, 256], sizes = [8, 128], strides = [1, 1]} : vector<8x512xf32> to vector<8x128xf32>
      %107 = math.tanh %106 : vector<8x128xf32>
      %108 = vector.extract_strided_slice %93 {offsets = [0, 384], sizes = [8, 128], strides = [1, 1]} : vector<8x512xf32> to vector<8x128xf32>
      %109 = arith.negf %108 : vector<8x128xf32>
      %110 = math.exp %109 : vector<8x128xf32>
      %cst_34 = arith.constant 1.000000e+00 : f32
      %111 = vector.broadcast %cst_34 : f32 to vector<8x128xf32>
      %112 = arith.addf %111, %110 : vector<8x128xf32>
      %113 = arith.divf %111, %112 : vector<8x128xf32>
      %114 = arith.mulf %105, %79 : vector<8x128xf32>
      %115 = arith.mulf %99, %107 : vector<8x128xf32>
      %116 = arith.addf %114, %115 : vector<8x128xf32>
      %117 = math.tanh %116 : vector<8x128xf32>
      %118 = arith.mulf %113, %117 : vector<8x128xf32>
      %119 = arith.extui %0 : i1 to i32
      %c0_i32_35 = arith.constant 0 : i32
      %120 = arith.cmpi ne, %119, %c0_i32_35 : i32
      scf.if %120 {
        %315 = arith.index_cast %c2_i32 : i32 to index
        %c0_89 = arith.constant 0 : index
        %c0_90 = arith.constant 0 : index
        %316 = vector.load %arg8[%315, %c0_89, %c0_90] : memref<8x8x128xf32, #tpu.memory_space<vmem>>, vector<1x8x128xf32>
        %317 = vector.shape_cast %316 : vector<1x8x128xf32> to vector<8x128xf32>
        %318 = vector.shape_cast %118 : vector<8x128xf32> to vector<1x8x128xf32>
        tpu.vector_store %arg8[%315, %c0_89, %c0_90], %318 {strides = array<i32>} : memref<8x8x128xf32, #tpu.memory_space<vmem>>, vector<1x8x128xf32>,
      } else {
      }
      %true_36 = arith.constant true
      %121 = arith.xori %0, %true_36 : i1
      %122 = arith.extui %121 : i1 to i32
      %c0_i32_37 = arith.constant 0 : i32
      %123 = arith.cmpi ne, %122, %c0_i32_37 : i32
      scf.if %123 {
        %315 = arith.truncf %118 : vector<8x128xf32> to vector<8x128xbf16>
        %316 = arith.index_cast %c2_i32 : i32 to index
        %c0_89 = arith.constant 0 : index
        %c0_90 = arith.constant 0 : index
        %317 = vector.load %arg12[%316, %c0_89, %c0_90] : memref<8x8x128xbf16, #tpu.memory_space<vmem>>, vector<1x8x128xbf16>
        %318 = vector.shape_cast %317 : vector<1x8x128xbf16> to vector<8x128xbf16>
        %319 = vector.shape_cast %315 : vector<8x128xbf16> to vector<1x8x128xbf16>
        tpu.vector_store %arg12[%316, %c0_89, %c0_90], %319 {strides = array<i32>} : memref<8x8x128xbf16, #tpu.memory_space<vmem>>, vector<1x8x128xbf16>,
      } else {
      }
      %c3_i32 = arith.constant 3 : i32
      %124 = arith.index_cast %c3_i32 : i32 to index
      %c0_38 = arith.constant 0 : index
      %c0_39 = arith.constant 0 : index
      %125 = vector.load %arg2[%124, %c0_38, %c0_39] : memref<8x8x512xbf16, #tpu.memory_space<vmem>>, vector<1x8x512xbf16>
      %126 = vector.shape_cast %125 : vector<1x8x512xbf16> to vector<8x512xbf16>
      %127 = arith.extf %126 : vector<8x512xbf16> to vector<8x512xf32>
      %128 = arith.truncf %118 : vector<8x128xf32> to vector<8x128xbf16>
      %cst_40 = arith.constant dense<0.000000e+00> : vector<8x512xf32>
      %129 = tpu.matmul %128, %2, %cst_40 {dimension_numbers = #tpu.dot_dimension_numbers<[1], [0], [0], [1], [0, 0, 1, 1], [], []>} : vector<8x128xbf16>, vector<128x512xbf16>, vector<8x512xf32> -> vector<8x512xf32>
      %130 = arith.addf %127, %129 : vector<8x512xf32>
      %131 = vector.extract_strided_slice %130 {offsets = [0, 0], sizes = [8, 128], strides = [1, 1]} : vector<8x512xf32> to vector<8x128xf32>
      %132 = arith.negf %131 : vector<8x128xf32>
      %133 = math.exp %132 : vector<8x128xf32>
      %cst_41 = arith.constant 1.000000e+00 : f32
      %134 = vector.broadcast %cst_41 : f32 to vector<8x128xf32>
      %135 = arith.addf %134, %133 : vector<8x128xf32>
      %136 = arith.divf %134, %135 : vector<8x128xf32>
      %137 = vector.extract_strided_slice %130 {offsets = [0, 128], sizes = [8, 128], strides = [1, 1]} : vector<8x512xf32> to vector<8x128xf32>
      %138 = arith.negf %137 : vector<8x128xf32>
      %139 = math.exp %138 : vector<8x128xf32>
      %cst_42 = arith.constant 1.000000e+00 : f32
      %140 = vector.broadcast %cst_42 : f32 to vector<8x128xf32>
      %141 = arith.addf %140, %139 : vector<8x128xf32>
      %142 = arith.divf %140, %141 : vector<8x128xf32>
      %143 = vector.extract_strided_slice %130 {offsets = [0, 256], sizes = [8, 128], strides = [1, 1]} : vector<8x512xf32> to vector<8x128xf32>
      %144 = math.tanh %143 : vector<8x128xf32>
      %145 = vector.extract_strided_slice %130 {offsets = [0, 384], sizes = [8, 128], strides = [1, 1]} : vector<8x512xf32> to vector<8x128xf32>
      %146 = arith.negf %145 : vector<8x128xf32>
      %147 = math.exp %146 : vector<8x128xf32>
      %cst_43 = arith.constant 1.000000e+00 : f32
      %148 = vector.broadcast %cst_43 : f32 to vector<8x128xf32>
      %149 = arith.addf %148, %147 : vector<8x128xf32>
      %150 = arith.divf %148, %149 : vector<8x128xf32>
      %151 = arith.mulf %142, %116 : vector<8x128xf32>
      %152 = arith.mulf %136, %144 : vector<8x128xf32>
      %153 = arith.addf %151, %152 : vector<8x128xf32>
      %154 = math.tanh %153 : vector<8x128xf32>
      %155 = arith.mulf %150, %154 : vector<8x128xf32>
      %156 = arith.extui %0 : i1 to i32
      %c0_i32_44 = arith.constant 0 : i32
      %157 = arith.cmpi ne, %156, %c0_i32_44 : i32
      scf.if %157 {
        %315 = arith.index_cast %c3_i32 : i32 to index
        %c0_89 = arith.constant 0 : index
        %c0_90 = arith.constant 0 : index
        %316 = vector.load %arg8[%315, %c0_89, %c0_90] : memref<8x8x128xf32, #tpu.memory_space<vmem>>, vector<1x8x128xf32>
        %317 = vector.shape_cast %316 : vector<1x8x128xf32> to vector<8x128xf32>
        %318 = vector.shape_cast %155 : vector<8x128xf32> to vector<1x8x128xf32>
        tpu.vector_store %arg8[%315, %c0_89, %c0_90], %318 {strides = array<i32>} : memref<8x8x128xf32, #tpu.memory_space<vmem>>, vector<1x8x128xf32>,
      } else {
      }
      %true_45 = arith.constant true
      %158 = arith.xori %0, %true_45 : i1
      %159 = arith.extui %158 : i1 to i32
      %c0_i32_46 = arith.constant 0 : i32
      %160 = arith.cmpi ne, %159, %c0_i32_46 : i32
      scf.if %160 {
        %315 = arith.truncf %155 : vector<8x128xf32> to vector<8x128xbf16>
        %316 = arith.index_cast %c3_i32 : i32 to index
        %c0_89 = arith.constant 0 : index
        %c0_90 = arith.constant 0 : index
        %317 = vector.load %arg12[%316, %c0_89, %c0_90] : memref<8x8x128xbf16, #tpu.memory_space<vmem>>, vector<1x8x128xbf16>
        %318 = vector.shape_cast %317 : vector<1x8x128xbf16> to vector<8x128xbf16>
        %319 = vector.shape_cast %315 : vector<8x128xbf16> to vector<1x8x128xbf16>
        tpu.vector_store %arg12[%316, %c0_89, %c0_90], %319 {strides = array<i32>} : memref<8x8x128xbf16, #tpu.memory_space<vmem>>, vector<1x8x128xbf16>,
      } else {
      }
      %c4_i32 = arith.constant 4 : i32
      %161 = arith.index_cast %c4_i32 : i32 to index
      %c0_47 = arith.constant 0 : index
      %c0_48 = arith.constant 0 : index
      %162 = vector.load %arg2[%161, %c0_47, %c0_48] : memref<8x8x512xbf16, #tpu.memory_space<vmem>>, vector<1x8x512xbf16>
      %163 = vector.shape_cast %162 : vector<1x8x512xbf16> to vector<8x512xbf16>
      %164 = arith.extf %163 : vector<8x512xbf16> to vector<8x512xf32>
      %165 = arith.truncf %155 : vector<8x128xf32> to vector<8x128xbf16>
      %cst_49 = arith.constant dense<0.000000e+00> : vector<8x512xf32>
      %166 = tpu.matmul %165, %2, %cst_49 {dimension_numbers = #tpu.dot_dimension_numbers<[1], [0], [0], [1], [0, 0, 1, 1], [], []>} : vector<8x128xbf16>, vector<128x512xbf16>, vector<8x512xf32> -> vector<8x512xf32>
      %167 = arith.addf %164, %166 : vector<8x512xf32>
      %168 = vector.extract_strided_slice %167 {offsets = [0, 0], sizes = [8, 128], strides = [1, 1]} : vector<8x512xf32> to vector<8x128xf32>
      %169 = arith.negf %168 : vector<8x128xf32>
      %170 = math.exp %169 : vector<8x128xf32>
      %cst_50 = arith.constant 1.000000e+00 : f32
      %171 = vector.broadcast %cst_50 : f32 to vector<8x128xf32>
      %172 = arith.addf %171, %170 : vector<8x128xf32>
      %173 = arith.divf %171, %172 : vector<8x128xf32>
      %174 = vector.extract_strided_slice %167 {offsets = [0, 128], sizes = [8, 128], strides = [1, 1]} : vector<8x512xf32> to vector<8x128xf32>
      %175 = arith.negf %174 : vector<8x128xf32>
      %176 = math.exp %175 : vector<8x128xf32>
      %cst_51 = arith.constant 1.000000e+00 : f32
      %177 = vector.broadcast %cst_51 : f32 to vector<8x128xf32>
      %178 = arith.addf %177, %176 : vector<8x128xf32>
      %179 = arith.divf %177, %178 : vector<8x128xf32>
      %180 = vector.extract_strided_slice %167 {offsets = [0, 256], sizes = [8, 128], strides = [1, 1]} : vector<8x512xf32> to vector<8x128xf32>
      %181 = math.tanh %180 : vector<8x128xf32>
      %182 = vector.extract_strided_slice %167 {offsets = [0, 384], sizes = [8, 128], strides = [1, 1]} : vector<8x512xf32> to vector<8x128xf32>
      %183 = arith.negf %182 : vector<8x128xf32>
      %184 = math.exp %183 : vector<8x128xf32>
      %cst_52 = arith.constant 1.000000e+00 : f32
      %185 = vector.broadcast %cst_52 : f32 to vector<8x128xf32>
      %186 = arith.addf %185, %184 : vector<8x128xf32>
      %187 = arith.divf %185, %186 : vector<8x128xf32>
      %188 = arith.mulf %179, %153 : vector<8x128xf32>
      %189 = arith.mulf %173, %181 : vector<8x128xf32>
      %190 = arith.addf %188, %189 : vector<8x128xf32>
      %191 = math.tanh %190 : vector<8x128xf32>
      %192 = arith.mulf %187, %191 : vector<8x128xf32>
      %193 = arith.extui %0 : i1 to i32
      %c0_i32_53 = arith.constant 0 : i32
      %194 = arith.cmpi ne, %193, %c0_i32_53 : i32
      scf.if %194 {
        %315 = arith.index_cast %c4_i32 : i32 to index
        %c0_89 = arith.constant 0 : index
        %c0_90 = arith.constant 0 : index
        %316 = vector.load %arg8[%315, %c0_89, %c0_90] : memref<8x8x128xf32, #tpu.memory_space<vmem>>, vector<1x8x128xf32>
        %317 = vector.shape_cast %316 : vector<1x8x128xf32> to vector<8x128xf32>
        %318 = vector.shape_cast %192 : vector<8x128xf32> to vector<1x8x128xf32>
        tpu.vector_store %arg8[%315, %c0_89, %c0_90], %318 {strides = array<i32>} : memref<8x8x128xf32, #tpu.memory_space<vmem>>, vector<1x8x128xf32>,
      } else {
      }
      %true_54 = arith.constant true
      %195 = arith.xori %0, %true_54 : i1
      %196 = arith.extui %195 : i1 to i32
      %c0_i32_55 = arith.constant 0 : i32
      %197 = arith.cmpi ne, %196, %c0_i32_55 : i32
      scf.if %197 {
        %315 = arith.truncf %192 : vector<8x128xf32> to vector<8x128xbf16>
        %316 = arith.index_cast %c4_i32 : i32 to index
        %c0_89 = arith.constant 0 : index
        %c0_90 = arith.constant 0 : index
        %317 = vector.load %arg12[%316, %c0_89, %c0_90] : memref<8x8x128xbf16, #tpu.memory_space<vmem>>, vector<1x8x128xbf16>
        %318 = vector.shape_cast %317 : vector<1x8x128xbf16> to vector<8x128xbf16>
        %319 = vector.shape_cast %315 : vector<8x128xbf16> to vector<1x8x128xbf16>
        tpu.vector_store %arg12[%316, %c0_89, %c0_90], %319 {strides = array<i32>} : memref<8x8x128xbf16, #tpu.memory_space<vmem>>, vector<1x8x128xbf16>,
      } else {
      }
      %c5_i32 = arith.constant 5 : i32
      %198 = arith.index_cast %c5_i32 : i32 to index
      %c0_56 = arith.constant 0 : index
      %c0_57 = arith.constant 0 : index
      %199 = vector.load %arg2[%198, %c0_56, %c0_57] : memref<8x8x512xbf16, #tpu.memory_space<vmem>>, vector<1x8x512xbf16>
      %200 = vector.shape_cast %199 : vector<1x8x512xbf16> to vector<8x512xbf16>
      %201 = arith.extf %200 : vector<8x512xbf16> to vector<8x512xf32>
      %202 = arith.truncf %192 : vector<8x128xf32> to vector<8x128xbf16>
      %cst_58 = arith.constant dense<0.000000e+00> : vector<8x512xf32>
      %203 = tpu.matmul %202, %2, %cst_58 {dimension_numbers = #tpu.dot_dimension_numbers<[1], [0], [0], [1], [0, 0, 1, 1], [], []>} : vector<8x128xbf16>, vector<128x512xbf16>, vector<8x512xf32> -> vector<8x512xf32>
      %204 = arith.addf %201, %203 : vector<8x512xf32>
      %205 = vector.extract_strided_slice %204 {offsets = [0, 0], sizes = [8, 128], strides = [1, 1]} : vector<8x512xf32> to vector<8x128xf32>
      %206 = arith.negf %205 : vector<8x128xf32>
      %207 = math.exp %206 : vector<8x128xf32>
      %cst_59 = arith.constant 1.000000e+00 : f32
      %208 = vector.broadcast %cst_59 : f32 to vector<8x128xf32>
      %209 = arith.addf %208, %207 : vector<8x128xf32>
      %210 = arith.divf %208, %209 : vector<8x128xf32>
      %211 = vector.extract_strided_slice %204 {offsets = [0, 128], sizes = [8, 128], strides = [1, 1]} : vector<8x512xf32> to vector<8x128xf32>
      %212 = arith.negf %211 : vector<8x128xf32>
      %213 = math.exp %212 : vector<8x128xf32>
      %cst_60 = arith.constant 1.000000e+00 : f32
      %214 = vector.broadcast %cst_60 : f32 to vector<8x128xf32>
      %215 = arith.addf %214, %213 : vector<8x128xf32>
      %216 = arith.divf %214, %215 : vector<8x128xf32>
      %217 = vector.extract_strided_slice %204 {offsets = [0, 256], sizes = [8, 128], strides = [1, 1]} : vector<8x512xf32> to vector<8x128xf32>
      %218 = math.tanh %217 : vector<8x128xf32>
      %219 = vector.extract_strided_slice %204 {offsets = [0, 384], sizes = [8, 128], strides = [1, 1]} : vector<8x512xf32> to vector<8x128xf32>
      %220 = arith.negf %219 : vector<8x128xf32>
      %221 = math.exp %220 : vector<8x128xf32>
      %cst_61 = arith.constant 1.000000e+00 : f32
      %222 = vector.broadcast %cst_61 : f32 to vector<8x128xf32>
      %223 = arith.addf %222, %221 : vector<8x128xf32>
      %224 = arith.divf %222, %223 : vector<8x128xf32>
      %225 = arith.mulf %216, %190 : vector<8x128xf32>
      %226 = arith.mulf %210, %218 : vector<8x128xf32>
      %227 = arith.addf %225, %226 : vector<8x128xf32>
      %228 = math.tanh %227 : vector<8x128xf32>
      %229 = arith.mulf %224, %228 : vector<8x128xf32>
      %230 = arith.extui %0 : i1 to i32
      %c0_i32_62 = arith.constant 0 : i32
      %231 = arith.cmpi ne, %230, %c0_i32_62 : i32
      scf.if %231 {
        %315 = arith.index_cast %c5_i32 : i32 to index
        %c0_89 = arith.constant 0 : index
        %c0_90 = arith.constant 0 : index
        %316 = vector.load %arg8[%315, %c0_89, %c0_90] : memref<8x8x128xf32, #tpu.memory_space<vmem>>, vector<1x8x128xf32>
        %317 = vector.shape_cast %316 : vector<1x8x128xf32> to vector<8x128xf32>
        %318 = vector.shape_cast %229 : vector<8x128xf32> to vector<1x8x128xf32>
        tpu.vector_store %arg8[%315, %c0_89, %c0_90], %318 {strides = array<i32>} : memref<8x8x128xf32, #tpu.memory_space<vmem>>, vector<1x8x128xf32>,
      } else {
      }
      %true_63 = arith.constant true
      %232 = arith.xori %0, %true_63 : i1
      %233 = arith.extui %232 : i1 to i32
      %c0_i32_64 = arith.constant 0 : i32
      %234 = arith.cmpi ne, %233, %c0_i32_64 : i32
      scf.if %234 {
        %315 = arith.truncf %229 : vector<8x128xf32> to vector<8x128xbf16>
        %316 = arith.index_cast %c5_i32 : i32 to index
        %c0_89 = arith.constant 0 : index
        %c0_90 = arith.constant 0 : index
        %317 = vector.load %arg12[%316, %c0_89, %c0_90] : memref<8x8x128xbf16, #tpu.memory_space<vmem>>, vector<1x8x128xbf16>
        %318 = vector.shape_cast %317 : vector<1x8x128xbf16> to vector<8x128xbf16>
        %319 = vector.shape_cast %315 : vector<8x128xbf16> to vector<1x8x128xbf16>
        tpu.vector_store %arg12[%316, %c0_89, %c0_90], %319 {strides = array<i32>} : memref<8x8x128xbf16, #tpu.memory_space<vmem>>, vector<1x8x128xbf16>,
      } else {
      }
      %c6_i32 = arith.constant 6 : i32
      %235 = arith.index_cast %c6_i32 : i32 to index
      %c0_65 = arith.constant 0 : index
      %c0_66 = arith.constant 0 : index
      %236 = vector.load %arg2[%235, %c0_65, %c0_66] : memref<8x8x512xbf16, #tpu.memory_space<vmem>>, vector<1x8x512xbf16>
      %237 = vector.shape_cast %236 : vector<1x8x512xbf16> to vector<8x512xbf16>
      %238 = arith.extf %237 : vector<8x512xbf16> to vector<8x512xf32>
      %239 = arith.truncf %229 : vector<8x128xf32> to vector<8x128xbf16>
      %cst_67 = arith.constant dense<0.000000e+00> : vector<8x512xf32>
      %240 = tpu.matmul %239, %2, %cst_67 {dimension_numbers = #tpu.dot_dimension_numbers<[1], [0], [0], [1], [0, 0, 1, 1], [], []>} : vector<8x128xbf16>, vector<128x512xbf16>, vector<8x512xf32> -> vector<8x512xf32>
      %241 = arith.addf %238, %240 : vector<8x512xf32>
      %242 = vector.extract_strided_slice %241 {offsets = [0, 0], sizes = [8, 128], strides = [1, 1]} : vector<8x512xf32> to vector<8x128xf32>
      %243 = arith.negf %242 : vector<8x128xf32>
      %244 = math.exp %243 : vector<8x128xf32>
      %cst_68 = arith.constant 1.000000e+00 : f32
      %245 = vector.broadcast %cst_68 : f32 to vector<8x128xf32>
      %246 = arith.addf %245, %244 : vector<8x128xf32>
      %247 = arith.divf %245, %246 : vector<8x128xf32>
      %248 = vector.extract_strided_slice %241 {offsets = [0, 128], sizes = [8, 128], strides = [1, 1]} : vector<8x512xf32> to vector<8x128xf32>
      %249 = arith.negf %248 : vector<8x128xf32>
      %250 = math.exp %249 : vector<8x128xf32>
      %cst_69 = arith.constant 1.000000e+00 : f32
      %251 = vector.broadcast %cst_69 : f32 to vector<8x128xf32>
      %252 = arith.addf %251, %250 : vector<8x128xf32>
      %253 = arith.divf %251, %252 : vector<8x128xf32>
      %254 = vector.extract_strided_slice %241 {offsets = [0, 256], sizes = [8, 128], strides = [1, 1]} : vector<8x512xf32> to vector<8x128xf32>
      %255 = math.tanh %254 : vector<8x128xf32>
      %256 = vector.extract_strided_slice %241 {offsets = [0, 384], sizes = [8, 128], strides = [1, 1]} : vector<8x512xf32> to vector<8x128xf32>
      %257 = arith.negf %256 : vector<8x128xf32>
      %258 = math.exp %257 : vector<8x128xf32>
      %cst_70 = arith.constant 1.000000e+00 : f32
      %259 = vector.broadcast %cst_70 : f32 to vector<8x128xf32>
      %260 = arith.addf %259, %258 : vector<8x128xf32>
      %261 = arith.divf %259, %260 : vector<8x128xf32>
      %262 = arith.mulf %253, %227 : vector<8x128xf32>
      %263 = arith.mulf %247, %255 : vector<8x128xf32>
      %264 = arith.addf %262, %263 : vector<8x128xf32>
      %265 = math.tanh %264 : vector<8x128xf32>
      %266 = arith.mulf %261, %265 : vector<8x128xf32>
      %267 = arith.extui %0 : i1 to i32
      %c0_i32_71 = arith.constant 0 : i32
      %268 = arith.cmpi ne, %267, %c0_i32_71 : i32
      scf.if %268 {
        %315 = arith.index_cast %c6_i32 : i32 to index
        %c0_89 = arith.constant 0 : index
        %c0_90 = arith.constant 0 : index
        %316 = vector.load %arg8[%315, %c0_89, %c0_90] : memref<8x8x128xf32, #tpu.memory_space<vmem>>, vector<1x8x128xf32>
        %317 = vector.shape_cast %316 : vector<1x8x128xf32> to vector<8x128xf32>
        %318 = vector.shape_cast %266 : vector<8x128xf32> to vector<1x8x128xf32>
        tpu.vector_store %arg8[%315, %c0_89, %c0_90], %318 {strides = array<i32>} : memref<8x8x128xf32, #tpu.memory_space<vmem>>, vector<1x8x128xf32>,
      } else {
      }
      %true_72 = arith.constant true
      %269 = arith.xori %0, %true_72 : i1
      %270 = arith.extui %269 : i1 to i32
      %c0_i32_73 = arith.constant 0 : i32
      %271 = arith.cmpi ne, %270, %c0_i32_73 : i32
      scf.if %271 {
        %315 = arith.truncf %266 : vector<8x128xf32> to vector<8x128xbf16>
        %316 = arith.index_cast %c6_i32 : i32 to index
        %c0_89 = arith.constant 0 : index
        %c0_90 = arith.constant 0 : index
        %317 = vector.load %arg12[%316, %c0_89, %c0_90] : memref<8x8x128xbf16, #tpu.memory_space<vmem>>, vector<1x8x128xbf16>
        %318 = vector.shape_cast %317 : vector<1x8x128xbf16> to vector<8x128xbf16>
        %319 = vector.shape_cast %315 : vector<8x128xbf16> to vector<1x8x128xbf16>
        tpu.vector_store %arg12[%316, %c0_89, %c0_90], %319 {strides = array<i32>} : memref<8x8x128xbf16, #tpu.memory_space<vmem>>, vector<1x8x128xbf16>,
      } else {
      }
      %c7_i32 = arith.constant 7 : i32
      %272 = arith.index_cast %c7_i32 : i32 to index
      %c0_74 = arith.constant 0 : index
      %c0_75 = arith.constant 0 : index
      %273 = vector.load %arg2[%272, %c0_74, %c0_75] : memref<8x8x512xbf16, #tpu.memory_space<vmem>>, vector<1x8x512xbf16>
      %274 = vector.shape_cast %273 : vector<1x8x512xbf16> to vector<8x512xbf16>
      %275 = arith.extf %274 : vector<8x512xbf16> to vector<8x512xf32>
      %276 = arith.truncf %266 : vector<8x128xf32> to vector<8x128xbf16>
      %cst_76 = arith.constant dense<0.000000e+00> : vector<8x512xf32>
      %277 = tpu.matmul %276, %2, %cst_76 {dimension_numbers = #tpu.dot_dimension_numbers<[1], [0], [0], [1], [0, 0, 1, 1], [], []>} : vector<8x128xbf16>, vector<128x512xbf16>, vector<8x512xf32> -> vector<8x512xf32>
      %278 = arith.addf %275, %277 : vector<8x512xf32>
      %279 = vector.extract_strided_slice %278 {offsets = [0, 0], sizes = [8, 128], strides = [1, 1]} : vector<8x512xf32> to vector<8x128xf32>
      %280 = arith.negf %279 : vector<8x128xf32>
      %281 = math.exp %280 : vector<8x128xf32>
      %cst_77 = arith.constant 1.000000e+00 : f32
      %282 = vector.broadcast %cst_77 : f32 to vector<8x128xf32>
      %283 = arith.addf %282, %281 : vector<8x128xf32>
      %284 = arith.divf %282, %283 : vector<8x128xf32>
      %285 = vector.extract_strided_slice %278 {offsets = [0, 128], sizes = [8, 128], strides = [1, 1]} : vector<8x512xf32> to vector<8x128xf32>
      %286 = arith.negf %285 : vector<8x128xf32>
      %287 = math.exp %286 : vector<8x128xf32>
      %cst_78 = arith.constant 1.000000e+00 : f32
      %288 = vector.broadcast %cst_78 : f32 to vector<8x128xf32>
      %289 = arith.addf %288, %287 : vector<8x128xf32>
      %290 = arith.divf %288, %289 : vector<8x128xf32>
      %291 = vector.extract_strided_slice %278 {offsets = [0, 256], sizes = [8, 128], strides = [1, 1]} : vector<8x512xf32> to vector<8x128xf32>
      %292 = math.tanh %291 : vector<8x128xf32>
      %293 = vector.extract_strided_slice %278 {offsets = [0, 384], sizes = [8, 128], strides = [1, 1]} : vector<8x512xf32> to vector<8x128xf32>
      %294 = arith.negf %293 : vector<8x128xf32>
      %295 = math.exp %294 : vector<8x128xf32>
      %cst_79 = arith.constant 1.000000e+00 : f32
      %296 = vector.broadcast %cst_79 : f32 to vector<8x128xf32>
      %297 = arith.addf %296, %295 : vector<8x128xf32>
      %298 = arith.divf %296, %297 : vector<8x128xf32>
      %299 = arith.mulf %290, %264 : vector<8x128xf32>
      %300 = arith.mulf %284, %292 : vector<8x128xf32>
      %301 = arith.addf %299, %300 : vector<8x128xf32>
      %302 = math.tanh %301 : vector<8x128xf32>
      %303 = arith.mulf %298, %302 : vector<8x128xf32>
      %304 = arith.extui %0 : i1 to i32
      %c0_i32_80 = arith.constant 0 : i32
      %305 = arith.cmpi ne, %304, %c0_i32_80 : i32
      scf.if %305 {
        %315 = arith.index_cast %c7_i32 : i32 to index
        %c0_89 = arith.constant 0 : index
        %c0_90 = arith.constant 0 : index
        %316 = vector.load %arg8[%315, %c0_89, %c0_90] : memref<8x8x128xf32, #tpu.memory_space<vmem>>, vector<1x8x128xf32>
        %317 = vector.shape_cast %316 : vector<1x8x128xf32> to vector<8x128xf32>
        %318 = vector.shape_cast %303 : vector<8x128xf32> to vector<1x8x128xf32>
        tpu.vector_store %arg8[%315, %c0_89, %c0_90], %318 {strides = array<i32>} : memref<8x8x128xf32, #tpu.memory_space<vmem>>, vector<1x8x128xf32>,
      } else {
      }
      %true_81 = arith.constant true
      %306 = arith.xori %0, %true_81 : i1
      %307 = arith.extui %306 : i1 to i32
      %c0_i32_82 = arith.constant 0 : i32
      %308 = arith.cmpi ne, %307, %c0_i32_82 : i32
      scf.if %308 {
        %315 = arith.truncf %303 : vector<8x128xf32> to vector<8x128xbf16>
        %316 = arith.index_cast %c7_i32 : i32 to index
        %c0_89 = arith.constant 0 : index
        %c0_90 = arith.constant 0 : index
        %317 = vector.load %arg12[%316, %c0_89, %c0_90] : memref<8x8x128xbf16, #tpu.memory_space<vmem>>, vector<1x8x128xbf16>
        %318 = vector.shape_cast %317 : vector<1x8x128xbf16> to vector<8x128xbf16>
        %319 = vector.shape_cast %315 : vector<8x128xbf16> to vector<1x8x128xbf16>
        tpu.vector_store %arg12[%316, %c0_89, %c0_90], %319 {strides = array<i32>} : memref<8x8x128xbf16, #tpu.memory_space<vmem>>, vector<1x8x128xbf16>,
      } else {
      }
      %c8_i32 = arith.constant 8 : i32
      %c0_83 = arith.constant 0 : index
      %c0_84 = arith.constant 0 : index
      %c0_85 = arith.constant 0 : index
      %309 = vector.load %arg9[%c0_83, %c0_84, %c0_85] : memref<1x8x128xf32, #tpu.memory_space<vmem>>, vector<1x8x128xf32>
      %310 = vector.shape_cast %309 : vector<1x8x128xf32> to vector<8x128xf32>
      %311 = vector.shape_cast %303 : vector<8x128xf32> to vector<1x8x128xf32>
      tpu.vector_store %arg9[%c0_83, %c0_84, %c0_85], %311 {strides = array<i32>} : memref<1x8x128xf32, #tpu.memory_space<vmem>>, vector<1x8x128xf32>,
      %c0_86 = arith.constant 0 : index
      %c0_87 = arith.constant 0 : index
      %c0_88 = arith.constant 0 : index
      %312 = vector.load %arg10[%c0_86, %c0_87, %c0_88] : memref<1x8x128xf32, #tpu.memory_space<vmem>>, vector<1x8x128xf32>
      %313 = vector.shape_cast %312 : vector<1x8x128xf32> to vector<8x128xf32>
      %314 = vector.shape_cast %301 : vector<8x128xf32> to vector<1x8x128xf32>
      tpu.vector_store %arg10[%c0_86, %c0_87, %c0_88], %314 {strides = array<i32>} : memref<1x8x128xf32, #tpu.memory_space<vmem>>, vector<1x8x128xf32>,
    } else {
    }
    %c0_i32_9 = arith.constant 0 : i32
    %10 = arith.cmpi sgt, %arg1, %c0_i32_9 : i32
    %11 = arith.extui %10 : i1 to i32
    %c0_i32_10 = arith.constant 0 : i32
    %12 = arith.cmpi ne, %11, %c0_i32_10 : i32
    scf.if %12 {
      %c0_11 = arith.constant 0 : index
      %c0_12 = arith.constant 0 : index
      %c0_13 = arith.constant 0 : index
      %13 = vector.load %arg12[%c0_11, %c0_12, %c0_13] : memref<8x8x128xbf16, #tpu.memory_space<vmem>>, vector<8x8x128xbf16>
      %14 = arith.extf %13 : vector<8x8x128xbf16> to vector<8x8x128xf32>
      %15 = vector.shape_cast %14 : vector<8x8x128xf32> to vector<64x128xf32>
      %16 = arith.truncf %15 : vector<64x128xf32> to vector<64x128xbf16>
      %c0_14 = arith.constant 0 : index
      %c0_15 = arith.constant 0 : index
      %c0_16 = arith.constant 0 : index
      %17 = vector.load %arg3[%c0_14, %c0_15, %c0_16] : memref<1x128x512xbf16, #tpu.memory_space<vmem>>, vector<1x128x512xbf16>
      %18 = vector.shape_cast %17 : vector<1x128x512xbf16> to vector<128x512xbf16>
      %cst = arith.constant dense<0.000000e+00> : vector<64x512xf32>
      %19 = tpu.matmul %16, %18, %cst {dimension_numbers = #tpu.dot_dimension_numbers<[1], [0], [0], [1], [0, 0, 1, 1], [], []>} : vector<64x128xbf16>, vector<128x512xbf16>, vector<64x512xf32> -> vector<64x512xf32>
      %c0_17 = arith.constant 0 : index
      %c0_18 = arith.constant 0 : index
      %c0_19 = arith.constant 0 : index
      %20 = vector.load %arg5[%c0_17, %c0_18, %c0_19] : memref<1x1x512xf32, #tpu.memory_space<vmem>>, vector<1x1x512xf32>
      %21 = vector.shape_cast %20 : vector<1x1x512xf32> to vector<1x512xf32>
      %22 = vector.broadcast %21 : vector<1x512xf32> to vector<64x512xf32>
      %23 = arith.addf %19, %22 : vector<64x512xf32>
      %24 = vector.shape_cast %23 : vector<64x512xf32> to vector<8x8x512xf32>
      %25 = arith.truncf %24 : vector<8x8x512xf32> to vector<8x8x512xbf16>
      %c0_20 = arith.constant 0 : index
      %c0_21 = arith.constant 0 : index
      %c0_22 = arith.constant 0 : index
      %26 = vector.load %arg11[%c0_20, %c0_21, %c0_22] : memref<8x8x512xbf16, #tpu.memory_space<vmem>>, vector<8x8x512xbf16>
      tpu.vector_store %arg11[%c0_20, %c0_21, %c0_22], %25 {strides = array<i32>} : memref<8x8x512xbf16, #tpu.memory_space<vmem>>, vector<8x8x512xbf16>,
      %c0_i32_23 = arith.constant 0 : i32
      %27 = arith.index_cast %c0_i32_23 : i32 to index
      %c0_24 = arith.constant 0 : index
      %c0_25 = arith.constant 0 : index
      %28 = vector.load %arg11[%27, %c0_24, %c0_25] : memref<8x8x512xbf16, #tpu.memory_space<vmem>>, vector<1x8x512xbf16>
      %29 = vector.shape_cast %28 : vector<1x8x512xbf16> to vector<8x512xbf16>
      %30 = arith.extf %29 : vector<8x512xbf16> to vector<8x512xf32>
      %31 = arith.truncf %4 : vector<8x128xf32> to vector<8x128xbf16>
      %cst_26 = arith.constant dense<0.000000e+00> : vector<8x512xf32>
      %32 = tpu.matmul %31, %2, %cst_26 {dimension_numbers = #tpu.dot_dimension_numbers<[1], [0], [0], [1], [0, 0, 1, 1], [], []>} : vector<8x128xbf16>, vector<128x512xbf16>, vector<8x512xf32> -> vector<8x512xf32>
      %33 = arith.addf %30, %32 : vector<8x512xf32>
      %34 = vector.extract_strided_slice %33 {offsets = [0, 0], sizes = [8, 128], strides = [1, 1]} : vector<8x512xf32> to vector<8x128xf32>
      %35 = arith.negf %34 : vector<8x128xf32>
      %36 = math.exp %35 : vector<8x128xf32>
      %cst_27 = arith.constant 1.000000e+00 : f32
      %37 = vector.broadcast %cst_27 : f32 to vector<8x128xf32>
      %38 = arith.addf %37, %36 : vector<8x128xf32>
      %39 = arith.divf %37, %38 : vector<8x128xf32>
      %40 = vector.extract_strided_slice %33 {offsets = [0, 128], sizes = [8, 128], strides = [1, 1]} : vector<8x512xf32> to vector<8x128xf32>
      %41 = arith.negf %40 : vector<8x128xf32>
      %42 = math.exp %41 : vector<8x128xf32>
      %cst_28 = arith.constant 1.000000e+00 : f32
      %43 = vector.broadcast %cst_28 : f32 to vector<8x128xf32>
      %44 = arith.addf %43, %42 : vector<8x128xf32>
      %45 = arith.divf %43, %44 : vector<8x128xf32>
      %46 = vector.extract_strided_slice %33 {offsets = [0, 256], sizes = [8, 128], strides = [1, 1]} : vector<8x512xf32> to vector<8x128xf32>
      %47 = math.tanh %46 : vector<8x128xf32>
      %48 = vector.extract_strided_slice %33 {offsets = [0, 384], sizes = [8, 128], strides = [1, 1]} : vector<8x512xf32> to vector<8x128xf32>
      %49 = arith.negf %48 : vector<8x128xf32>
      %50 = math.exp %49 : vector<8x128xf32>
      %cst_29 = arith.constant 1.000000e+00 : f32
      %51 = vector.broadcast %cst_29 : f32 to vector<8x128xf32>
      %52 = arith.addf %51, %50 : vector<8x128xf32>
      %53 = arith.divf %51, %52 : vector<8x128xf32>
      %54 = arith.mulf %45, %6 : vector<8x128xf32>
      %55 = arith.mulf %39, %47 : vector<8x128xf32>
      %56 = arith.addf %54, %55 : vector<8x128xf32>
      %57 = math.tanh %56 : vector<8x128xf32>
      %58 = arith.mulf %53, %57 : vector<8x128xf32>
      %59 = arith.extui %0 : i1 to i32
      %c0_i32_30 = arith.constant 0 : i32
      %60 = arith.cmpi ne, %59, %c0_i32_30 : i32
      scf.if %60 {
        %329 = arith.index_cast %c0_i32_23 : i32 to index
        %c0_102 = arith.constant 0 : index
        %c0_103 = arith.constant 0 : index
        %330 = vector.load %arg8[%329, %c0_102, %c0_103] : memref<8x8x128xf32, #tpu.memory_space<vmem>>, vector<1x8x128xf32>
        %331 = vector.shape_cast %330 : vector<1x8x128xf32> to vector<8x128xf32>
        %332 = vector.shape_cast %58 : vector<8x128xf32> to vector<1x8x128xf32>
        tpu.vector_store %arg8[%329, %c0_102, %c0_103], %332 {strides = array<i32>} : memref<8x8x128xf32, #tpu.memory_space<vmem>>, vector<1x8x128xf32>,
      } else {
      }
      %true = arith.constant true
      %61 = arith.xori %0, %true : i1
      %62 = arith.extui %61 : i1 to i32
      %c0_i32_31 = arith.constant 0 : i32
      %63 = arith.cmpi ne, %62, %c0_i32_31 : i32
      scf.if %63 {
        %329 = arith.truncf %58 : vector<8x128xf32> to vector<8x128xbf16>
        %330 = arith.index_cast %c0_i32_23 : i32 to index
        %c0_102 = arith.constant 0 : index
        %c0_103 = arith.constant 0 : index
        %331 = vector.load %arg12[%330, %c0_102, %c0_103] : memref<8x8x128xbf16, #tpu.memory_space<vmem>>, vector<1x8x128xbf16>
        %332 = vector.shape_cast %331 : vector<1x8x128xbf16> to vector<8x128xbf16>
        %333 = vector.shape_cast %329 : vector<8x128xbf16> to vector<1x8x128xbf16>
        tpu.vector_store %arg12[%330, %c0_102, %c0_103], %333 {strides = array<i32>} : memref<8x8x128xbf16, #tpu.memory_space<vmem>>, vector<1x8x128xbf16>,
      } else {
      }
      %c1_i32_32 = arith.constant 1 : i32
      %64 = arith.index_cast %c1_i32_32 : i32 to index
      %c0_33 = arith.constant 0 : index
      %c0_34 = arith.constant 0 : index
      %65 = vector.load %arg11[%64, %c0_33, %c0_34] : memref<8x8x512xbf16, #tpu.memory_space<vmem>>, vector<1x8x512xbf16>
      %66 = vector.shape_cast %65 : vector<1x8x512xbf16> to vector<8x512xbf16>
      %67 = arith.extf %66 : vector<8x512xbf16> to vector<8x512xf32>
      %68 = arith.truncf %58 : vector<8x128xf32> to vector<8x128xbf16>
      %cst_35 = arith.constant dense<0.000000e+00> : vector<8x512xf32>
      %69 = tpu.matmul %68, %2, %cst_35 {dimension_numbers = #tpu.dot_dimension_numbers<[1], [0], [0], [1], [0, 0, 1, 1], [], []>} : vector<8x128xbf16>, vector<128x512xbf16>, vector<8x512xf32> -> vector<8x512xf32>
      %70 = arith.addf %67, %69 : vector<8x512xf32>
      %71 = vector.extract_strided_slice %70 {offsets = [0, 0], sizes = [8, 128], strides = [1, 1]} : vector<8x512xf32> to vector<8x128xf32>
      %72 = arith.negf %71 : vector<8x128xf32>
      %73 = math.exp %72 : vector<8x128xf32>
      %cst_36 = arith.constant 1.000000e+00 : f32
      %74 = vector.broadcast %cst_36 : f32 to vector<8x128xf32>
      %75 = arith.addf %74, %73 : vector<8x128xf32>
      %76 = arith.divf %74, %75 : vector<8x128xf32>
      %77 = vector.extract_strided_slice %70 {offsets = [0, 128], sizes = [8, 128], strides = [1, 1]} : vector<8x512xf32> to vector<8x128xf32>
      %78 = arith.negf %77 : vector<8x128xf32>
      %79 = math.exp %78 : vector<8x128xf32>
      %cst_37 = arith.constant 1.000000e+00 : f32
      %80 = vector.broadcast %cst_37 : f32 to vector<8x128xf32>
      %81 = arith.addf %80, %79 : vector<8x128xf32>
      %82 = arith.divf %80, %81 : vector<8x128xf32>
      %83 = vector.extract_strided_slice %70 {offsets = [0, 256], sizes = [8, 128], strides = [1, 1]} : vector<8x512xf32> to vector<8x128xf32>
      %84 = math.tanh %83 : vector<8x128xf32>
      %85 = vector.extract_strided_slice %70 {offsets = [0, 384], sizes = [8, 128], strides = [1, 1]} : vector<8x512xf32> to vector<8x128xf32>
      %86 = arith.negf %85 : vector<8x128xf32>
      %87 = math.exp %86 : vector<8x128xf32>
      %cst_38 = arith.constant 1.000000e+00 : f32
      %88 = vector.broadcast %cst_38 : f32 to vector<8x128xf32>
      %89 = arith.addf %88, %87 : vector<8x128xf32>
      %90 = arith.divf %88, %89 : vector<8x128xf32>
      %91 = arith.mulf %82, %56 : vector<8x128xf32>
      %92 = arith.mulf %76, %84 : vector<8x128xf32>
      %93 = arith.addf %91, %92 : vector<8x128xf32>
      %94 = math.tanh %93 : vector<8x128xf32>
      %95 = arith.mulf %90, %94 : vector<8x128xf32>
      %96 = arith.extui %0 : i1 to i32
      %c0_i32_39 = arith.constant 0 : i32
      %97 = arith.cmpi ne, %96, %c0_i32_39 : i32
      scf.if %97 {
        %329 = arith.index_cast %c1_i32_32 : i32 to index
        %c0_102 = arith.constant 0 : index
        %c0_103 = arith.constant 0 : index
        %330 = vector.load %arg8[%329, %c0_102, %c0_103] : memref<8x8x128xf32, #tpu.memory_space<vmem>>, vector<1x8x128xf32>
        %331 = vector.shape_cast %330 : vector<1x8x128xf32> to vector<8x128xf32>
        %332 = vector.shape_cast %95 : vector<8x128xf32> to vector<1x8x128xf32>
        tpu.vector_store %arg8[%329, %c0_102, %c0_103], %332 {strides = array<i32>} : memref<8x8x128xf32, #tpu.memory_space<vmem>>, vector<1x8x128xf32>,
      } else {
      }
      %true_40 = arith.constant true
      %98 = arith.xori %0, %true_40 : i1
      %99 = arith.extui %98 : i1 to i32
      %c0_i32_41 = arith.constant 0 : i32
      %100 = arith.cmpi ne, %99, %c0_i32_41 : i32
      scf.if %100 {
        %329 = arith.truncf %95 : vector<8x128xf32> to vector<8x128xbf16>
        %330 = arith.index_cast %c1_i32_32 : i32 to index
        %c0_102 = arith.constant 0 : index
        %c0_103 = arith.constant 0 : index
        %331 = vector.load %arg12[%330, %c0_102, %c0_103] : memref<8x8x128xbf16, #tpu.memory_space<vmem>>, vector<1x8x128xbf16>
        %332 = vector.shape_cast %331 : vector<1x8x128xbf16> to vector<8x128xbf16>
        %333 = vector.shape_cast %329 : vector<8x128xbf16> to vector<1x8x128xbf16>
        tpu.vector_store %arg12[%330, %c0_102, %c0_103], %333 {strides = array<i32>} : memref<8x8x128xbf16, #tpu.memory_space<vmem>>, vector<1x8x128xbf16>,
      } else {
      }
      %c2_i32 = arith.constant 2 : i32
      %101 = arith.index_cast %c2_i32 : i32 to index
      %c0_42 = arith.constant 0 : index
      %c0_43 = arith.constant 0 : index
      %102 = vector.load %arg11[%101, %c0_42, %c0_43] : memref<8x8x512xbf16, #tpu.memory_space<vmem>>, vector<1x8x512xbf16>
      %103 = vector.shape_cast %102 : vector<1x8x512xbf16> to vector<8x512xbf16>
      %104 = arith.extf %103 : vector<8x512xbf16> to vector<8x512xf32>
      %105 = arith.truncf %95 : vector<8x128xf32> to vector<8x128xbf16>
      %cst_44 = arith.constant dense<0.000000e+00> : vector<8x512xf32>
      %106 = tpu.matmul %105, %2, %cst_44 {dimension_numbers = #tpu.dot_dimension_numbers<[1], [0], [0], [1], [0, 0, 1, 1], [], []>} : vector<8x128xbf16>, vector<128x512xbf16>, vector<8x512xf32> -> vector<8x512xf32>
      %107 = arith.addf %104, %106 : vector<8x512xf32>
      %108 = vector.extract_strided_slice %107 {offsets = [0, 0], sizes = [8, 128], strides = [1, 1]} : vector<8x512xf32> to vector<8x128xf32>
      %109 = arith.negf %108 : vector<8x128xf32>
      %110 = math.exp %109 : vector<8x128xf32>
      %cst_45 = arith.constant 1.000000e+00 : f32
      %111 = vector.broadcast %cst_45 : f32 to vector<8x128xf32>
      %112 = arith.addf %111, %110 : vector<8x128xf32>
      %113 = arith.divf %111, %112 : vector<8x128xf32>
      %114 = vector.extract_strided_slice %107 {offsets = [0, 128], sizes = [8, 128], strides = [1, 1]} : vector<8x512xf32> to vector<8x128xf32>
      %115 = arith.negf %114 : vector<8x128xf32>
      %116 = math.exp %115 : vector<8x128xf32>
      %cst_46 = arith.constant 1.000000e+00 : f32
      %117 = vector.broadcast %cst_46 : f32 to vector<8x128xf32>
      %118 = arith.addf %117, %116 : vector<8x128xf32>
      %119 = arith.divf %117, %118 : vector<8x128xf32>
      %120 = vector.extract_strided_slice %107 {offsets = [0, 256], sizes = [8, 128], strides = [1, 1]} : vector<8x512xf32> to vector<8x128xf32>
      %121 = math.tanh %120 : vector<8x128xf32>
      %122 = vector.extract_strided_slice %107 {offsets = [0, 384], sizes = [8, 128], strides = [1, 1]} : vector<8x512xf32> to vector<8x128xf32>
      %123 = arith.negf %122 : vector<8x128xf32>
      %124 = math.exp %123 : vector<8x128xf32>
      %cst_47 = arith.constant 1.000000e+00 : f32
      %125 = vector.broadcast %cst_47 : f32 to vector<8x128xf32>
      %126 = arith.addf %125, %124 : vector<8x128xf32>
      %127 = arith.divf %125, %126 : vector<8x128xf32>
      %128 = arith.mulf %119, %93 : vector<8x128xf32>
      %129 = arith.mulf %113, %121 : vector<8x128xf32>
      %130 = arith.addf %128, %129 : vector<8x128xf32>
      %131 = math.tanh %130 : vector<8x128xf32>
      %132 = arith.mulf %127, %131 : vector<8x128xf32>
      %133 = arith.extui %0 : i1 to i32
      %c0_i32_48 = arith.constant 0 : i32
      %134 = arith.cmpi ne, %133, %c0_i32_48 : i32
      scf.if %134 {
        %329 = arith.index_cast %c2_i32 : i32 to index
        %c0_102 = arith.constant 0 : index
        %c0_103 = arith.constant 0 : index
        %330 = vector.load %arg8[%329, %c0_102, %c0_103] : memref<8x8x128xf32, #tpu.memory_space<vmem>>, vector<1x8x128xf32>
        %331 = vector.shape_cast %330 : vector<1x8x128xf32> to vector<8x128xf32>
        %332 = vector.shape_cast %132 : vector<8x128xf32> to vector<1x8x128xf32>
        tpu.vector_store %arg8[%329, %c0_102, %c0_103], %332 {strides = array<i32>} : memref<8x8x128xf32, #tpu.memory_space<vmem>>, vector<1x8x128xf32>,
      } else {
      }
      %true_49 = arith.constant true
      %135 = arith.xori %0, %true_49 : i1
      %136 = arith.extui %135 : i1 to i32
      %c0_i32_50 = arith.constant 0 : i32
      %137 = arith.cmpi ne, %136, %c0_i32_50 : i32
      scf.if %137 {
        %329 = arith.truncf %132 : vector<8x128xf32> to vector<8x128xbf16>
        %330 = arith.index_cast %c2_i32 : i32 to index
        %c0_102 = arith.constant 0 : index
        %c0_103 = arith.constant 0 : index
        %331 = vector.load %arg12[%330, %c0_102, %c0_103] : memref<8x8x128xbf16, #tpu.memory_space<vmem>>, vector<1x8x128xbf16>
        %332 = vector.shape_cast %331 : vector<1x8x128xbf16> to vector<8x128xbf16>
        %333 = vector.shape_cast %329 : vector<8x128xbf16> to vector<1x8x128xbf16>
        tpu.vector_store %arg12[%330, %c0_102, %c0_103], %333 {strides = array<i32>} : memref<8x8x128xbf16, #tpu.memory_space<vmem>>, vector<1x8x128xbf16>,
      } else {
      }
      %c3_i32 = arith.constant 3 : i32
      %138 = arith.index_cast %c3_i32 : i32 to index
      %c0_51 = arith.constant 0 : index
      %c0_52 = arith.constant 0 : index
      %139 = vector.load %arg11[%138, %c0_51, %c0_52] : memref<8x8x512xbf16, #tpu.memory_space<vmem>>, vector<1x8x512xbf16>
      %140 = vector.shape_cast %139 : vector<1x8x512xbf16> to vector<8x512xbf16>
      %141 = arith.extf %140 : vector<8x512xbf16> to vector<8x512xf32>
      %142 = arith.truncf %132 : vector<8x128xf32> to vector<8x128xbf16>
      %cst_53 = arith.constant dense<0.000000e+00> : vector<8x512xf32>
      %143 = tpu.matmul %142, %2, %cst_53 {dimension_numbers = #tpu.dot_dimension_numbers<[1], [0], [0], [1], [0, 0, 1, 1], [], []>} : vector<8x128xbf16>, vector<128x512xbf16>, vector<8x512xf32> -> vector<8x512xf32>
      %144 = arith.addf %141, %143 : vector<8x512xf32>
      %145 = vector.extract_strided_slice %144 {offsets = [0, 0], sizes = [8, 128], strides = [1, 1]} : vector<8x512xf32> to vector<8x128xf32>
      %146 = arith.negf %145 : vector<8x128xf32>
      %147 = math.exp %146 : vector<8x128xf32>
      %cst_54 = arith.constant 1.000000e+00 : f32
      %148 = vector.broadcast %cst_54 : f32 to vector<8x128xf32>
      %149 = arith.addf %148, %147 : vector<8x128xf32>
      %150 = arith.divf %148, %149 : vector<8x128xf32>
      %151 = vector.extract_strided_slice %144 {offsets = [0, 128], sizes = [8, 128], strides = [1, 1]} : vector<8x512xf32> to vector<8x128xf32>
      %152 = arith.negf %151 : vector<8x128xf32>
      %153 = math.exp %152 : vector<8x128xf32>
      %cst_55 = arith.constant 1.000000e+00 : f32
      %154 = vector.broadcast %cst_55 : f32 to vector<8x128xf32>
      %155 = arith.addf %154, %153 : vector<8x128xf32>
      %156 = arith.divf %154, %155 : vector<8x128xf32>
      %157 = vector.extract_strided_slice %144 {offsets = [0, 256], sizes = [8, 128], strides = [1, 1]} : vector<8x512xf32> to vector<8x128xf32>
      %158 = math.tanh %157 : vector<8x128xf32>
      %159 = vector.extract_strided_slice %144 {offsets = [0, 384], sizes = [8, 128], strides = [1, 1]} : vector<8x512xf32> to vector<8x128xf32>
      %160 = arith.negf %159 : vector<8x128xf32>
      %161 = math.exp %160 : vector<8x128xf32>
      %cst_56 = arith.constant 1.000000e+00 : f32
      %162 = vector.broadcast %cst_56 : f32 to vector<8x128xf32>
      %163 = arith.addf %162, %161 : vector<8x128xf32>
      %164 = arith.divf %162, %163 : vector<8x128xf32>
      %165 = arith.mulf %156, %130 : vector<8x128xf32>
      %166 = arith.mulf %150, %158 : vector<8x128xf32>
      %167 = arith.addf %165, %166 : vector<8x128xf32>
      %168 = math.tanh %167 : vector<8x128xf32>
      %169 = arith.mulf %164, %168 : vector<8x128xf32>
      %170 = arith.extui %0 : i1 to i32
      %c0_i32_57 = arith.constant 0 : i32
      %171 = arith.cmpi ne, %170, %c0_i32_57 : i32
      scf.if %171 {
        %329 = arith.index_cast %c3_i32 : i32 to index
        %c0_102 = arith.constant 0 : index
        %c0_103 = arith.constant 0 : index
        %330 = vector.load %arg8[%329, %c0_102, %c0_103] : memref<8x8x128xf32, #tpu.memory_space<vmem>>, vector<1x8x128xf32>
        %331 = vector.shape_cast %330 : vector<1x8x128xf32> to vector<8x128xf32>
        %332 = vector.shape_cast %169 : vector<8x128xf32> to vector<1x8x128xf32>
        tpu.vector_store %arg8[%329, %c0_102, %c0_103], %332 {strides = array<i32>} : memref<8x8x128xf32, #tpu.memory_space<vmem>>, vector<1x8x128xf32>,
      } else {
      }
      %true_58 = arith.constant true
      %172 = arith.xori %0, %true_58 : i1
      %173 = arith.extui %172 : i1 to i32
      %c0_i32_59 = arith.constant 0 : i32
      %174 = arith.cmpi ne, %173, %c0_i32_59 : i32
      scf.if %174 {
        %329 = arith.truncf %169 : vector<8x128xf32> to vector<8x128xbf16>
        %330 = arith.index_cast %c3_i32 : i32 to index
        %c0_102 = arith.constant 0 : index
        %c0_103 = arith.constant 0 : index
        %331 = vector.load %arg12[%330, %c0_102, %c0_103] : memref<8x8x128xbf16, #tpu.memory_space<vmem>>, vector<1x8x128xbf16>
        %332 = vector.shape_cast %331 : vector<1x8x128xbf16> to vector<8x128xbf16>
        %333 = vector.shape_cast %329 : vector<8x128xbf16> to vector<1x8x128xbf16>
        tpu.vector_store %arg12[%330, %c0_102, %c0_103], %333 {strides = array<i32>} : memref<8x8x128xbf16, #tpu.memory_space<vmem>>, vector<1x8x128xbf16>,
      } else {
      }
      %c4_i32 = arith.constant 4 : i32
      %175 = arith.index_cast %c4_i32 : i32 to index
      %c0_60 = arith.constant 0 : index
      %c0_61 = arith.constant 0 : index
      %176 = vector.load %arg11[%175, %c0_60, %c0_61] : memref<8x8x512xbf16, #tpu.memory_space<vmem>>, vector<1x8x512xbf16>
      %177 = vector.shape_cast %176 : vector<1x8x512xbf16> to vector<8x512xbf16>
      %178 = arith.extf %177 : vector<8x512xbf16> to vector<8x512xf32>
      %179 = arith.truncf %169 : vector<8x128xf32> to vector<8x128xbf16>
      %cst_62 = arith.constant dense<0.000000e+00> : vector<8x512xf32>
      %180 = tpu.matmul %179, %2, %cst_62 {dimension_numbers = #tpu.dot_dimension_numbers<[1], [0], [0], [1], [0, 0, 1, 1], [], []>} : vector<8x128xbf16>, vector<128x512xbf16>, vector<8x512xf32> -> vector<8x512xf32>
      %181 = arith.addf %178, %180 : vector<8x512xf32>
      %182 = vector.extract_strided_slice %181 {offsets = [0, 0], sizes = [8, 128], strides = [1, 1]} : vector<8x512xf32> to vector<8x128xf32>
      %183 = arith.negf %182 : vector<8x128xf32>
      %184 = math.exp %183 : vector<8x128xf32>
      %cst_63 = arith.constant 1.000000e+00 : f32
      %185 = vector.broadcast %cst_63 : f32 to vector<8x128xf32>
      %186 = arith.addf %185, %184 : vector<8x128xf32>
      %187 = arith.divf %185, %186 : vector<8x128xf32>
      %188 = vector.extract_strided_slice %181 {offsets = [0, 128], sizes = [8, 128], strides = [1, 1]} : vector<8x512xf32> to vector<8x128xf32>
      %189 = arith.negf %188 : vector<8x128xf32>
      %190 = math.exp %189 : vector<8x128xf32>
      %cst_64 = arith.constant 1.000000e+00 : f32
      %191 = vector.broadcast %cst_64 : f32 to vector<8x128xf32>
      %192 = arith.addf %191, %190 : vector<8x128xf32>
      %193 = arith.divf %191, %192 : vector<8x128xf32>
      %194 = vector.extract_strided_slice %181 {offsets = [0, 256], sizes = [8, 128], strides = [1, 1]} : vector<8x512xf32> to vector<8x128xf32>
      %195 = math.tanh %194 : vector<8x128xf32>
      %196 = vector.extract_strided_slice %181 {offsets = [0, 384], sizes = [8, 128], strides = [1, 1]} : vector<8x512xf32> to vector<8x128xf32>
      %197 = arith.negf %196 : vector<8x128xf32>
      %198 = math.exp %197 : vector<8x128xf32>
      %cst_65 = arith.constant 1.000000e+00 : f32
      %199 = vector.broadcast %cst_65 : f32 to vector<8x128xf32>
      %200 = arith.addf %199, %198 : vector<8x128xf32>
      %201 = arith.divf %199, %200 : vector<8x128xf32>
      %202 = arith.mulf %193, %167 : vector<8x128xf32>
      %203 = arith.mulf %187, %195 : vector<8x128xf32>
      %204 = arith.addf %202, %203 : vector<8x128xf32>
      %205 = math.tanh %204 : vector<8x128xf32>
      %206 = arith.mulf %201, %205 : vector<8x128xf32>
      %207 = arith.extui %0 : i1 to i32
      %c0_i32_66 = arith.constant 0 : i32
      %208 = arith.cmpi ne, %207, %c0_i32_66 : i32
      scf.if %208 {
        %329 = arith.index_cast %c4_i32 : i32 to index
        %c0_102 = arith.constant 0 : index
        %c0_103 = arith.constant 0 : index
        %330 = vector.load %arg8[%329, %c0_102, %c0_103] : memref<8x8x128xf32, #tpu.memory_space<vmem>>, vector<1x8x128xf32>
        %331 = vector.shape_cast %330 : vector<1x8x128xf32> to vector<8x128xf32>
        %332 = vector.shape_cast %206 : vector<8x128xf32> to vector<1x8x128xf32>
        tpu.vector_store %arg8[%329, %c0_102, %c0_103], %332 {strides = array<i32>} : memref<8x8x128xf32, #tpu.memory_space<vmem>>, vector<1x8x128xf32>,
      } else {
      }
      %true_67 = arith.constant true
      %209 = arith.xori %0, %true_67 : i1
      %210 = arith.extui %209 : i1 to i32
      %c0_i32_68 = arith.constant 0 : i32
      %211 = arith.cmpi ne, %210, %c0_i32_68 : i32
      scf.if %211 {
        %329 = arith.truncf %206 : vector<8x128xf32> to vector<8x128xbf16>
        %330 = arith.index_cast %c4_i32 : i32 to index
        %c0_102 = arith.constant 0 : index
        %c0_103 = arith.constant 0 : index
        %331 = vector.load %arg12[%330, %c0_102, %c0_103] : memref<8x8x128xbf16, #tpu.memory_space<vmem>>, vector<1x8x128xbf16>
        %332 = vector.shape_cast %331 : vector<1x8x128xbf16> to vector<8x128xbf16>
        %333 = vector.shape_cast %329 : vector<8x128xbf16> to vector<1x8x128xbf16>
        tpu.vector_store %arg12[%330, %c0_102, %c0_103], %333 {strides = array<i32>} : memref<8x8x128xbf16, #tpu.memory_space<vmem>>, vector<1x8x128xbf16>,
      } else {
      }
      %c5_i32 = arith.constant 5 : i32
      %212 = arith.index_cast %c5_i32 : i32 to index
      %c0_69 = arith.constant 0 : index
      %c0_70 = arith.constant 0 : index
      %213 = vector.load %arg11[%212, %c0_69, %c0_70] : memref<8x8x512xbf16, #tpu.memory_space<vmem>>, vector<1x8x512xbf16>
      %214 = vector.shape_cast %213 : vector<1x8x512xbf16> to vector<8x512xbf16>
      %215 = arith.extf %214 : vector<8x512xbf16> to vector<8x512xf32>
      %216 = arith.truncf %206 : vector<8x128xf32> to vector<8x128xbf16>
      %cst_71 = arith.constant dense<0.000000e+00> : vector<8x512xf32>
      %217 = tpu.matmul %216, %2, %cst_71 {dimension_numbers = #tpu.dot_dimension_numbers<[1], [0], [0], [1], [0, 0, 1, 1], [], []>} : vector<8x128xbf16>, vector<128x512xbf16>, vector<8x512xf32> -> vector<8x512xf32>
      %218 = arith.addf %215, %217 : vector<8x512xf32>
      %219 = vector.extract_strided_slice %218 {offsets = [0, 0], sizes = [8, 128], strides = [1, 1]} : vector<8x512xf32> to vector<8x128xf32>
      %220 = arith.negf %219 : vector<8x128xf32>
      %221 = math.exp %220 : vector<8x128xf32>
      %cst_72 = arith.constant 1.000000e+00 : f32
      %222 = vector.broadcast %cst_72 : f32 to vector<8x128xf32>
      %223 = arith.addf %222, %221 : vector<8x128xf32>
      %224 = arith.divf %222, %223 : vector<8x128xf32>
      %225 = vector.extract_strided_slice %218 {offsets = [0, 128], sizes = [8, 128], strides = [1, 1]} : vector<8x512xf32> to vector<8x128xf32>
      %226 = arith.negf %225 : vector<8x128xf32>
      %227 = math.exp %226 : vector<8x128xf32>
      %cst_73 = arith.constant 1.000000e+00 : f32
      %228 = vector.broadcast %cst_73 : f32 to vector<8x128xf32>
      %229 = arith.addf %228, %227 : vector<8x128xf32>
      %230 = arith.divf %228, %229 : vector<8x128xf32>
      %231 = vector.extract_strided_slice %218 {offsets = [0, 256], sizes = [8, 128], strides = [1, 1]} : vector<8x512xf32> to vector<8x128xf32>
      %232 = math.tanh %231 : vector<8x128xf32>
      %233 = vector.extract_strided_slice %218 {offsets = [0, 384], sizes = [8, 128], strides = [1, 1]} : vector<8x512xf32> to vector<8x128xf32>
      %234 = arith.negf %233 : vector<8x128xf32>
      %235 = math.exp %234 : vector<8x128xf32>
      %cst_74 = arith.constant 1.000000e+00 : f32
      %236 = vector.broadcast %cst_74 : f32 to vector<8x128xf32>
      %237 = arith.addf %236, %235 : vector<8x128xf32>
      %238 = arith.divf %236, %237 : vector<8x128xf32>
      %239 = arith.mulf %230, %204 : vector<8x128xf32>
      %240 = arith.mulf %224, %232 : vector<8x128xf32>
      %241 = arith.addf %239, %240 : vector<8x128xf32>
      %242 = math.tanh %241 : vector<8x128xf32>
      %243 = arith.mulf %238, %242 : vector<8x128xf32>
      %244 = arith.extui %0 : i1 to i32
      %c0_i32_75 = arith.constant 0 : i32
      %245 = arith.cmpi ne, %244, %c0_i32_75 : i32
      scf.if %245 {
        %329 = arith.index_cast %c5_i32 : i32 to index
        %c0_102 = arith.constant 0 : index
        %c0_103 = arith.constant 0 : index
        %330 = vector.load %arg8[%329, %c0_102, %c0_103] : memref<8x8x128xf32, #tpu.memory_space<vmem>>, vector<1x8x128xf32>
        %331 = vector.shape_cast %330 : vector<1x8x128xf32> to vector<8x128xf32>
        %332 = vector.shape_cast %243 : vector<8x128xf32> to vector<1x8x128xf32>
        tpu.vector_store %arg8[%329, %c0_102, %c0_103], %332 {strides = array<i32>} : memref<8x8x128xf32, #tpu.memory_space<vmem>>, vector<1x8x128xf32>,
      } else {
      }
      %true_76 = arith.constant true
      %246 = arith.xori %0, %true_76 : i1
      %247 = arith.extui %246 : i1 to i32
      %c0_i32_77 = arith.constant 0 : i32
      %248 = arith.cmpi ne, %247, %c0_i32_77 : i32
      scf.if %248 {
        %329 = arith.truncf %243 : vector<8x128xf32> to vector<8x128xbf16>
        %330 = arith.index_cast %c5_i32 : i32 to index
        %c0_102 = arith.constant 0 : index
        %c0_103 = arith.constant 0 : index
        %331 = vector.load %arg12[%330, %c0_102, %c0_103] : memref<8x8x128xbf16, #tpu.memory_space<vmem>>, vector<1x8x128xbf16>
        %332 = vector.shape_cast %331 : vector<1x8x128xbf16> to vector<8x128xbf16>
        %333 = vector.shape_cast %329 : vector<8x128xbf16> to vector<1x8x128xbf16>
        tpu.vector_store %arg12[%330, %c0_102, %c0_103], %333 {strides = array<i32>} : memref<8x8x128xbf16, #tpu.memory_space<vmem>>, vector<1x8x128xbf16>,
      } else {
      }
      %c6_i32 = arith.constant 6 : i32
      %249 = arith.index_cast %c6_i32 : i32 to index
      %c0_78 = arith.constant 0 : index
      %c0_79 = arith.constant 0 : index
      %250 = vector.load %arg11[%249, %c0_78, %c0_79] : memref<8x8x512xbf16, #tpu.memory_space<vmem>>, vector<1x8x512xbf16>
      %251 = vector.shape_cast %250 : vector<1x8x512xbf16> to vector<8x512xbf16>
      %252 = arith.extf %251 : vector<8x512xbf16> to vector<8x512xf32>
      %253 = arith.truncf %243 : vector<8x128xf32> to vector<8x128xbf16>
      %cst_80 = arith.constant dense<0.000000e+00> : vector<8x512xf32>
      %254 = tpu.matmul %253, %2, %cst_80 {dimension_numbers = #tpu.dot_dimension_numbers<[1], [0], [0], [1], [0, 0, 1, 1], [], []>} : vector<8x128xbf16>, vector<128x512xbf16>, vector<8x512xf32> -> vector<8x512xf32>
      %255 = arith.addf %252, %254 : vector<8x512xf32>
      %256 = vector.extract_strided_slice %255 {offsets = [0, 0], sizes = [8, 128], strides = [1, 1]} : vector<8x512xf32> to vector<8x128xf32>
      %257 = arith.negf %256 : vector<8x128xf32>
      %258 = math.exp %257 : vector<8x128xf32>
      %cst_81 = arith.constant 1.000000e+00 : f32
      %259 = vector.broadcast %cst_81 : f32 to vector<8x128xf32>
      %260 = arith.addf %259, %258 : vector<8x128xf32>
      %261 = arith.divf %259, %260 : vector<8x128xf32>
      %262 = vector.extract_strided_slice %255 {offsets = [0, 128], sizes = [8, 128], strides = [1, 1]} : vector<8x512xf32> to vector<8x128xf32>
      %263 = arith.negf %262 : vector<8x128xf32>
      %264 = math.exp %263 : vector<8x128xf32>
      %cst_82 = arith.constant 1.000000e+00 : f32
      %265 = vector.broadcast %cst_82 : f32 to vector<8x128xf32>
      %266 = arith.addf %265, %264 : vector<8x128xf32>
      %267 = arith.divf %265, %266 : vector<8x128xf32>
      %268 = vector.extract_strided_slice %255 {offsets = [0, 256], sizes = [8, 128], strides = [1, 1]} : vector<8x512xf32> to vector<8x128xf32>
      %269 = math.tanh %268 : vector<8x128xf32>
      %270 = vector.extract_strided_slice %255 {offsets = [0, 384], sizes = [8, 128], strides = [1, 1]} : vector<8x512xf32> to vector<8x128xf32>
      %271 = arith.negf %270 : vector<8x128xf32>
      %272 = math.exp %271 : vector<8x128xf32>
      %cst_83 = arith.constant 1.000000e+00 : f32
      %273 = vector.broadcast %cst_83 : f32 to vector<8x128xf32>
      %274 = arith.addf %273, %272 : vector<8x128xf32>
      %275 = arith.divf %273, %274 : vector<8x128xf32>
      %276 = arith.mulf %267, %241 : vector<8x128xf32>
      %277 = arith.mulf %261, %269 : vector<8x128xf32>
      %278 = arith.addf %276, %277 : vector<8x128xf32>
      %279 = math.tanh %278 : vector<8x128xf32>
      %280 = arith.mulf %275, %279 : vector<8x128xf32>
      %281 = arith.extui %0 : i1 to i32
      %c0_i32_84 = arith.constant 0 : i32
      %282 = arith.cmpi ne, %281, %c0_i32_84 : i32
      scf.if %282 {
        %329 = arith.index_cast %c6_i32 : i32 to index
        %c0_102 = arith.constant 0 : index
        %c0_103 = arith.constant 0 : index
        %330 = vector.load %arg8[%329, %c0_102, %c0_103] : memref<8x8x128xf32, #tpu.memory_space<vmem>>, vector<1x8x128xf32>
        %331 = vector.shape_cast %330 : vector<1x8x128xf32> to vector<8x128xf32>
        %332 = vector.shape_cast %280 : vector<8x128xf32> to vector<1x8x128xf32>
        tpu.vector_store %arg8[%329, %c0_102, %c0_103], %332 {strides = array<i32>} : memref<8x8x128xf32, #tpu.memory_space<vmem>>, vector<1x8x128xf32>,
      } else {
      }
      %true_85 = arith.constant true
      %283 = arith.xori %0, %true_85 : i1
      %284 = arith.extui %283 : i1 to i32
      %c0_i32_86 = arith.constant 0 : i32
      %285 = arith.cmpi ne, %284, %c0_i32_86 : i32
      scf.if %285 {
        %329 = arith.truncf %280 : vector<8x128xf32> to vector<8x128xbf16>
        %330 = arith.index_cast %c6_i32 : i32 to index
        %c0_102 = arith.constant 0 : index
        %c0_103 = arith.constant 0 : index
        %331 = vector.load %arg12[%330, %c0_102, %c0_103] : memref<8x8x128xbf16, #tpu.memory_space<vmem>>, vector<1x8x128xbf16>
        %332 = vector.shape_cast %331 : vector<1x8x128xbf16> to vector<8x128xbf16>
        %333 = vector.shape_cast %329 : vector<8x128xbf16> to vector<1x8x128xbf16>
        tpu.vector_store %arg12[%330, %c0_102, %c0_103], %333 {strides = array<i32>} : memref<8x8x128xbf16, #tpu.memory_space<vmem>>, vector<1x8x128xbf16>,
      } else {
      }
      %c7_i32 = arith.constant 7 : i32
      %286 = arith.index_cast %c7_i32 : i32 to index
      %c0_87 = arith.constant 0 : index
      %c0_88 = arith.constant 0 : index
      %287 = vector.load %arg11[%286, %c0_87, %c0_88] : memref<8x8x512xbf16, #tpu.memory_space<vmem>>, vector<1x8x512xbf16>
      %288 = vector.shape_cast %287 : vector<1x8x512xbf16> to vector<8x512xbf16>
      %289 = arith.extf %288 : vector<8x512xbf16> to vector<8x512xf32>
      %290 = arith.truncf %280 : vector<8x128xf32> to vector<8x128xbf16>
      %cst_89 = arith.constant dense<0.000000e+00> : vector<8x512xf32>
      %291 = tpu.matmul %290, %2, %cst_89 {dimension_numbers = #tpu.dot_dimension_numbers<[1], [0], [0], [1], [0, 0, 1, 1], [], []>} : vector<8x128xbf16>, vector<128x512xbf16>, vector<8x512xf32> -> vector<8x512xf32>
      %292 = arith.addf %289, %291 : vector<8x512xf32>
      %293 = vector.extract_strided_slice %292 {offsets = [0, 0], sizes = [8, 128], strides = [1, 1]} : vector<8x512xf32> to vector<8x128xf32>
      %294 = arith.negf %293 : vector<8x128xf32>
      %295 = math.exp %294 : vector<8x128xf32>
      %cst_90 = arith.constant 1.000000e+00 : f32
      %296 = vector.broadcast %cst_90 : f32 to vector<8x128xf32>
      %297 = arith.addf %296, %295 : vector<8x128xf32>
      %298 = arith.divf %296, %297 : vector<8x128xf32>
      %299 = vector.extract_strided_slice %292 {offsets = [0, 128], sizes = [8, 128], strides = [1, 1]} : vector<8x512xf32> to vector<8x128xf32>
      %300 = arith.negf %299 : vector<8x128xf32>
      %301 = math.exp %300 : vector<8x128xf32>
      %cst_91 = arith.constant 1.000000e+00 : f32
      %302 = vector.broadcast %cst_91 : f32 to vector<8x128xf32>
      %303 = arith.addf %302, %301 : vector<8x128xf32>
      %304 = arith.divf %302, %303 : vector<8x128xf32>
      %305 = vector.extract_strided_slice %292 {offsets = [0, 256], sizes = [8, 128], strides = [1, 1]} : vector<8x512xf32> to vector<8x128xf32>
      %306 = math.tanh %305 : vector<8x128xf32>
      %307 = vector.extract_strided_slice %292 {offsets = [0, 384], sizes = [8, 128], strides = [1, 1]} : vector<8x512xf32> to vector<8x128xf32>
      %308 = arith.negf %307 : vector<8x128xf32>
      %309 = math.exp %308 : vector<8x128xf32>
      %cst_92 = arith.constant 1.000000e+00 : f32
      %310 = vector.broadcast %cst_92 : f32 to vector<8x128xf32>
      %311 = arith.addf %310, %309 : vector<8x128xf32>
      %312 = arith.divf %310, %311 : vector<8x128xf32>
      %313 = arith.mulf %304, %278 : vector<8x128xf32>
      %314 = arith.mulf %298, %306 : vector<8x128xf32>
      %315 = arith.addf %313, %314 : vector<8x128xf32>
      %316 = math.tanh %315 : vector<8x128xf32>
      %317 = arith.mulf %312, %316 : vector<8x128xf32>
      %318 = arith.extui %0 : i1 to i32
      %c0_i32_93 = arith.constant 0 : i32
      %319 = arith.cmpi ne, %318, %c0_i32_93 : i32
      scf.if %319 {
        %329 = arith.index_cast %c7_i32 : i32 to index
        %c0_102 = arith.constant 0 : index
        %c0_103 = arith.constant 0 : index
        %330 = vector.load %arg8[%329, %c0_102, %c0_103] : memref<8x8x128xf32, #tpu.memory_space<vmem>>, vector<1x8x128xf32>
        %331 = vector.shape_cast %330 : vector<1x8x128xf32> to vector<8x128xf32>
        %332 = vector.shape_cast %317 : vector<8x128xf32> to vector<1x8x128xf32>
        tpu.vector_store %arg8[%329, %c0_102, %c0_103], %332 {strides = array<i32>} : memref<8x8x128xf32, #tpu.memory_space<vmem>>, vector<1x8x128xf32>,
      } else {
      }
      %true_94 = arith.constant true
      %320 = arith.xori %0, %true_94 : i1
      %321 = arith.extui %320 : i1 to i32
      %c0_i32_95 = arith.constant 0 : i32
      %322 = arith.cmpi ne, %321, %c0_i32_95 : i32
      scf.if %322 {
        %329 = arith.truncf %317 : vector<8x128xf32> to vector<8x128xbf16>
        %330 = arith.index_cast %c7_i32 : i32 to index
        %c0_102 = arith.constant 0 : index
        %c0_103 = arith.constant 0 : index
        %331 = vector.load %arg12[%330, %c0_102, %c0_103] : memref<8x8x128xbf16, #tpu.memory_space<vmem>>, vector<1x8x128xbf16>
        %332 = vector.shape_cast %331 : vector<1x8x128xbf16> to vector<8x128xbf16>
        %333 = vector.shape_cast %329 : vector<8x128xbf16> to vector<1x8x128xbf16>
        tpu.vector_store %arg12[%330, %c0_102, %c0_103], %333 {strides = array<i32>} : memref<8x8x128xbf16, #tpu.memory_space<vmem>>, vector<1x8x128xbf16>,
      } else {
      }
      %c8_i32 = arith.constant 8 : i32
      %c0_96 = arith.constant 0 : index
      %c0_97 = arith.constant 0 : index
      %c0_98 = arith.constant 0 : index
      %323 = vector.load %arg9[%c0_96, %c0_97, %c0_98] : memref<1x8x128xf32, #tpu.memory_space<vmem>>, vector<1x8x128xf32>
      %324 = vector.shape_cast %323 : vector<1x8x128xf32> to vector<8x128xf32>
      %325 = vector.shape_cast %317 : vector<8x128xf32> to vector<1x8x128xf32>
      tpu.vector_store %arg9[%c0_96, %c0_97, %c0_98], %325 {strides = array<i32>} : memref<1x8x128xf32, #tpu.memory_space<vmem>>, vector<1x8x128xf32>,
      %c0_99 = arith.constant 0 : index
      %c0_100 = arith.constant 0 : index
      %c0_101 = arith.constant 0 : index
      %326 = vector.load %arg10[%c0_99, %c0_100, %c0_101] : memref<1x8x128xf32, #tpu.memory_space<vmem>>, vector<1x8x128xf32>
      %327 = vector.shape_cast %326 : vector<1x8x128xf32> to vector<8x128xf32>
      %328 = vector.shape_cast %315 : vector<8x128xf32> to vector<1x8x128xf32>
      tpu.vector_store %arg10[%c0_99, %c0_100, %c0_101], %328 {strides = array<i32>} : memref<1x8x128xf32, #tpu.memory_space<vmem>>, vector<1x8x128xf32>,
    } else {
    }
    return
  }
  func.func @transform_0(%arg0: i32, %arg1: i32) -> (i32, i32, i32) {
    %c0_i32 = arith.constant 0 : i32
    %c0_i32_0 = arith.constant 0 : i32
    %c0_i32_1 = arith.constant 0 : i32
    return %c0_i32, %arg0, %c0_i32_0 : i32, i32, i32
  }
  func.func @transform_1(%arg0: i32, %arg1: i32) -> (i32, i32, i32) {
    %c1_i32 = arith.constant 1 : i32
    %0 = arith.subi %arg1, %c1_i32 : i32
    %c0_i32 = arith.constant 0 : i32
    %1 = arith.maxsi %0, %c0_i32 : i32
    %c0_i32_0 = arith.constant 0 : i32
    %c0_i32_1 = arith.constant 0 : i32
    %c0_i32_2 = arith.constant 0 : i32
    return %1, %c0_i32_0, %c0_i32_1 : i32, i32, i32
  }
  func.func @transform_2(%arg0: i32, %arg1: i32) -> (i32, i32, i32) {
    %c0_i32 = arith.constant 0 : i32
    %c0_i32_0 = arith.constant 0 : i32
    %c0_i32_1 = arith.constant 0 : i32
    return %arg1, %c0_i32, %c0_i32_0 : i32, i32, i32
  }
  func.func @transform_3(%arg0: i32, %arg1: i32) -> (i32, i32, i32) {
    %c0_i32 = arith.constant 0 : i32
    %c0_i32_0 = arith.constant 0 : i32
    %c0_i32_1 = arith.constant 0 : i32
    return %arg1, %c0_i32, %c0_i32_0 : i32, i32, i32
  }
  func.func @transform_4(%arg0: i32, %arg1: i32) -> (i32, i32, i32) {
    %c0_i32 = arith.constant 0 : i32
    %c0_i32_0 = arith.constant 0 : i32
    return %arg1, %arg0, %c0_i32 : i32, i32, i32
  }
  func.func @transform_5(%arg0: i32, %arg1: i32) -> (i32, i32, i32) {
    %c0_i32 = arith.constant 0 : i32
    %c0_i32_0 = arith.constant 0 : i32
    return %arg1, %arg0, %c0_i32 : i32, i32, i32
  }
  func.func @transform_6(%arg0: i32, %arg1: i32) -> (i32, i32, i32) {
    %c0_i32 = arith.constant 0 : i32
    %c0_i32_0 = arith.constant 0 : i32
    %c0_i32_1 = arith.constant 0 : i32
    return %c0_i32, %arg0, %c0_i32_0 : i32, i32, i32
  }
  func.func @transform_7(%arg0: i32, %arg1: i32) -> (i32, i32, i32) {
    %c0_i32 = arith.constant 0 : i32
    %c0_i32_0 = arith.constant 0 : i32
    return %arg1, %arg0, %c0_i32 : i32, i32, i32
  }
  func.func @transform_8(%arg0: i32, %arg1: i32) -> (i32, i32, i32) {
    %c0_i32 = arith.constant 0 : i32
    %c0_i32_0 = arith.constant 0 : i32
    return %arg1, %arg0, %c0_i32 : i32, i32, i32
  }
}

</mosaic_0001>

<bundles_post_ra>
// kernel: tpu_custom_call.1
= control target key start
LH: loop header
LB: loop body
LE: loop exit
PB: predicated region body
PF: predicated region fallthrough
CT: control target
= control target key end

     0   :  { %s6354_s0 = inlined_call_operand.hbm [shape: bf16[8,8,512], index: 0, kind: input, shape index: {}]   ;;  %s6355_s1 = inlined_call_operand.hbm [shape: bf16[1,128,512], index: 1, kind: input, shape index: {}]   ;;  %s6356_s2 = inlined_call_operand.hbm [shape: bf16[2,128,512], index: 2, kind: input, shape index: {}]   ;;  %s6357_s3 = inlined_call_operand.hbm [shape: f32[2,1,512], index: 3, kind: input, shape index: {}]   ;;  %s6358_s4 = inlined_call_operand.hbm [shape: f32[2,8,128], index: 4, kind: input, shape index: {}]   ;;  %s6359_s5 = inlined_call_operand.hbm [shape: f32[2,8,128], index: 5, kind: input, shape index: {}]   ;;  %s6360_s6 = inlined_call_operand.hbm [shape: f32[8,8,128], index: 6, kind: output, shape index: {0}]   ;;  %s6361_s7 = inlined_call_operand.hbm [shape: f32[2,8,128], index: 7, kind: output, shape index: {1}]   ;;  %s6362_s8 = inlined_call_operand.hbm [shape: f32[2,8,128], index: 8, kind: output, shape index: {2}]  }
   0x1   :  { %6432 = sst [smem:[#allocation56_spill]] %s6355_s1 }
   0x2   :  { %6433 = sst [smem:[#allocation57_spill]] %s6356_s2 }
   0x3   :  { %6434 = sst [smem:[#allocation58_spill]] %s6357_s3 }
   0x4   :  { %6435 = sst [smem:[#allocation59_spill]] %s6360_s6 }
   0x5   :  { %14 = vsyncpa [#allocation5], 0 }
   0x6   :  { %15 = vsyncpa [#allocation8], 0 }
   0x7   :  { %17 = vsyncpa [#allocation8 + $0x1], 0 }
   0x8   :  { %18 = vsyncpa [#allocation11], 0 }
   0x9   :  { %20 = vsyncpa [#allocation11 + $0x1], 0 }
   0xa   :  { %21 = vsyncpa [#allocation14], 0 }
   0xb   :  { %23 = vsyncpa [#allocation14 + $0x1], 0 }
   0xc   :  { %24 = vsyncpa [#allocation6], 0 }
   0xd   :  { %25 = vsyncpa [#allocation17], 0 }
   0xe   :  { %27 = vsyncpa [#allocation17 + $0x1], 0  ;;  %s4862_s27 = smov 0   ;;  %s4864_s28 = smov 0  }
   0xf   :  { %s4866_s29 = smov 0   ;;  %s4868_s30 = smov 0  }
  0x10   :  { %s4870_s9 = smov 0   ;;  %s4872_s10 = smov 0  }
  0x11   :  { %s4874_s11 = smov 0   ;;  %s4876_s12 = smov 0  }
  0x12 LB: > { %6436 = sst [smem:[#allocation26_spill]] %s4780_s29  ;;  %s42_s13 = sadd.s32 1, %s4796_s11  ;;  %s4800_s12 = sphi %s4876_s12, %s33_s12   ;;  %s4796_s11 = sphi %s4874_s11, %s6532_s11   ;;  %s4792_s10 = sphi %s4872_s10, %s6531_s10   ;;  %s4788_s9 = sphi %s4870_s9, %s6344_s9   ;;  %s4784_s30 = sphi %s4868_s30, %s6530_s30   ;;  %s4780_s29 = sphi %s4866_s29, %s6526_s29   ;;  %s4776_s28 = sphi %s4864_s28, %s6529_s28   ;;  %s4772_s27 = sphi %s4862_s27, %s6528_s27  }
  0x13   : > { %6437 = sst [smem:[#allocation27_spill]] %s4800_s12  ;;  %p43_p0 = scmp.ge.s32.totalorder %s42_s13, 2 }
  0x14   : > { %p4769_p1 = scmp.ne.s32.totalorder %s4788_s9, 0  ;;  %p92_p2 = scmp.eq.s32.totalorder %s4800_s12, 0 }
  0x15   : > { %s6534_s13 = smov (%p43_p0, %s42_s13), 0  ;;  %p4070_p6 = scmp.lt.s32.totalorder %s4800_s12, 2 }
  0x16   : > { %6438 = sst [smem:[#allocation28_spill]] %s6534_s13  ;;  %s107_s14 = ssub.s32 %s4796_s11, %s6534_s13 }
  0x17   : > { %p93_p3 = por %p4769_p1, %p92_p2  ;;  %p4911_p4 = scmp.eq.s32.totalorder %s107_s14, 0 }
  0x18   : > { %s327_s16 = sand.u32 1, %s4800_s12   ;;  %s4802_s17 = smov [#allocation7]  }
  0x19   : > { %s341_s18 = sshll.u32 %s4802_s17, 4  ;;  %p4920_p7 = pnand %p4070_p6, %p93_p3  ;;  %s342_s18 = int_to_ptr.vmem [resolvable:$true] %s341_s18 }
  0x1a   : > { %s4926_s20 = scalar_lea.sflag [#allocation8], %s327_s16  ;;  %s4476_s21 = scalar_lea.vmem %s342_s18, 4096 }
  0x1b   : > { %p4465_p8 = pneg %p4920_p7  ;;  %p4477_p9 = scmp.ne.s32.totalorder %s342_s18, %s4476_s21 }
  0x1c   : > { %s4483_s22 = scalar_lea.vmem %s342_s18, 8192  ;;  %p4484_p12 = scmp.lt.s32.totalorder %s342_s18, %s342_s18 }
  0x1d   : > { %p4479_p10 = pnand %p4477_p9, %p4465_p8  ;;  %p4485_p13 = scmp.lt.s32.totalorder %s4483_s22, %s4476_s21 }
  0x1f   : > { %p4480_p11 = pneg %p4479_p10  ;;  %p4486_p0 = por %p4485_p13, %p4484_p12 }
  0x21   : > { %p4487_p1 = pnand %p4486_p0, %p4480_p11 }
  0x23   : > { %4490 = shalt.err (!%p4487_p1)
}
  0x24   : > { %s6364_s23 = smov 256   ;;  %s6366_s24 = smov 16  }
  0x25   : > { %s6441_s1 = sld [smem:[#allocation56_spill]]  ;;  %s6363_s14 = sadd.s32 4294967294, %s4800_s12  }
  0x26   : > { %s110_s17 = sadd.s32 1, %s4780_s29  ;;  %p117_p3 = scmp.ne.s32.totalorder %s4780_s29, %s4776_s28 }
  0x27   : > { %s4946_s21 = scalar_select %p4911_p4, %s4780_s29, %s110_s17  }
  0x28   : > { %p119_p8 = por %p117_p3, %p92_p2  ;;  %p123_p9 = scmp.ne.s32.totalorder %s4776_s28, %s4772_s27 }
  0x29   : > { %6442 = sst [smem:[#allocation29_spill]] %s4946_s21  ;;  %p263_p10 = scmp.eq.s32.totalorder %s6363_s14, 1 }
  0x2a   : > { %s4958_s19 = sand.u32 1, %s4780_s29   ;;  %s4003_s26 = sshll.u32 %s4796_s11, 6 }
  0x2b   : > { %4049 = dma.hbm_to_vmem [thread:$0]  (!%p4920_p7), %s6441_s1, 4096, %s342_s18, %s4926_s20, %s6364_s23, %s6364_s23, %s6366_s24  }
  0x2c   : > { %p4963_p7 = pnand %p4070_p6, %p119_p8  ;;  %p4970_p4 = por %p263_p10, %p123_p9 }
  0x2d   : > { %s3779_s25 = sshll.u32 %s4958_s19, 2  ;;  %s6446_s3 = sld [smem:[#allocation58_spill]] }
  0x2e   : > { %s6444_s15 = scalar_select %p4970_p4, 1, 0 }
  0x2f   : > { %s376_s24 = scalar_lea.vmem [#allocation10], %s3779_s25  ;;  %s4981_s1 = scalar_lea.sflag [#allocation11], %s327_s16 }
  0x30   : > { %6445 = sst [smem:[#allocation30_spill]] %s6444_s15  ;;  %s384_s22 = sshll.u32 %s376_s24, 4  ;;  %s385_s22 = int_to_ptr.vmem [resolvable:$true] %s384_s22 }
  0x31   : > { %p4493_p2 = pneg %p4963_p7  ;;  %s4504_s13 = scalar_lea.vmem %s385_s22, 64 }
  0x32   : > { %p4505_p6 = scmp.ne.s32.totalorder %s385_s22, %s4504_s13  ;;  %s4805_s21 = smov [#allocation10]  }
  0x33   : > { %s382_s23 = scalar_lea.hbm %s6446_s3, %s4003_s26  ;;  %s4509_s15 = sshll.u32 %s4805_s21, 4  ;;  %s4510_s15 = int_to_ptr.vmem [resolvable:$false] %s4509_s15 }
  0x34   : > { %p4507_p11 = pnand %p4505_p6, %p4493_p2  ;;  %s4511_s6 = scalar_lea.vmem %s4510_s15, 128 }
  0x35   : > { %p4512_p13 = scmp.lt.s32.totalorder %s385_s22, %s4510_s15  ;;  %p4513_p0 = scmp.lt.s32.totalorder %s4511_s6, %s4504_s13 }
  0x36   : > { %p4508_p12 = pneg %p4507_p11 }
  0x37   : > { %p4514_p1 = por %p4513_p0, %p4512_p13 }
  0x39   : > { %p4515_p8 = pnand %p4514_p1, %p4508_p12 }
  0x3b   : > { %4518 = shalt.err (!%p4515_p8)
}
  0x3c   : > { %4055 = dma.hbm_to_vmem [thread:$0]  (!%p4963_p7), %s382_s23, 64, %s385_s22, %s4981_s1  }
  0x3d   : > { %s4992_s16 = sadd.s32 4294967295, %s4800_s12   ;;  %p97_p10 = scmp.ne.s32.totalorder %s4788_s9, %s4784_s30 }
  0x3e   : > { %p98_p6 = scmp.eq.s32.totalorder %s4992_s16, 0  ;;  %p6373_p11 = scmp.eq.s32.totalorder %s4992_s16, 1 }
  0x3f   : > { %p3769_p12 = scmp.ge.s32.totalorder %s4800_s12, 1  ;;  %p298_p8 = scmp.lt.s32.totalorder %s4800_s12, 3 }
  0x40   : > { %p5001_p13 = por %p98_p6, %p97_p10  ;;  %p5010_p0 = por %p123_p9, %p98_p6 }
  0x41   : > { %p5019_p1 = por %p6373_p11, %p117_p3  ;;  %p5024_p5 = pnand %p3769_p12, %p298_p8 }
  0x42   : > { %s6448_s13 = scalar_select %p5010_p0, 1, 0 }
  0x43   : > { %s6449_s30 = scalar_select %p5019_p1, 1, 0 }
  0x44   : > { %s4806_s24 = smov [#allocation4]   ;;  %p4042_p9 = pneg %p5024_p5 }
  0x45   : > { %s313_s14 = sshll.u32 %s4806_s24, 4  ;;  %s4002_s27 = sshll.u32 %s4796_s11, 12  ;;  %s5028_s14 = int_to_ptr.vmem [resolvable:$true] %s313_s14 }
  0x46   : > { %s6451_s2 = sld [smem:[#allocation57_spill]]  ;;  %s6452_s25 = sshll.u32 %s4958_s19, 8 }
  0x47   : > { %s355_s26 = scalar_lea.vmem [#allocation9], %s6452_s25  ;;  %p5040_p3 = pnand %p4042_p9, %p98_p6 }
  0x48   : > { %s362_s17 = sshll.u32 %s355_s26, 4  ;;  %s4807_s24 = smov [#allocation9]   ;;  %s363_s17 = int_to_ptr.vmem [resolvable:$true] %s362_s17 }
  0x49   : > { %s4532_s29 = scalar_lea.vmem %s363_s17, 4096  ;;  %s4537_s12 = sshll.u32 %s4807_s24, 4  ;;  %s4538_s12 = int_to_ptr.vmem [resolvable:$false] %s4537_s12 }
  0x4a   : > { %p4533_p10 = scmp.ne.s32.totalorder %s363_s17, %s4532_s29  ;;  %s4539_s21 = scalar_lea.vmem %s4538_s12, 8192 }
  0x4b   : > { %p4540_p11 = scmp.lt.s32.totalorder %s363_s17, %s4538_s12  ;;  %p4541_p4 = scmp.lt.s32.totalorder %s4539_s21, %s4532_s29 }
  0x4c   : > { %s361_s15 = scalar_lea.hbm %s6451_s2, %s4002_s27  ;;  %p4535_p12 = pnand %p4533_p10, %p4493_p2 }
  0x4d   : > { %p4542_p1 = por %p4541_p4, %p4540_p11 }
  0x4e   : > { %p4536_p8 = pneg %p4535_p12 }
  0x50   : > { %p4543_p0 = pnand %p4542_p1, %p4536_p8 }
  0x52   : > { %4546 = shalt.err (!%p4543_p0)
}
  0x53   : > { %s6454_s27 = smov 16   ;;  %s6455_s22 = smov 256  }
  0x54   : > { %4052 = dma.hbm_to_vmem [thread:$0]  (!%p4963_p7), %s361_s15, 4096, %s363_s17, %s4926_s20, %s6455_s22, %s6455_s22, %s6454_s27  }
  0x55   : > { %s3782_s25 = sshll.u32 %s4958_s19, 3  ;;  %p4549_p9 = pneg %p5040_p3 }
  0x56   : > { %s4558_s12 = scalar_lea.vmem %s5028_s14, 2048  ;;  %p4566_p0 = scmp.lt.s32.totalorder %s5028_s14, %s5028_s14 }
  0x57   : > { %p4559_p10 = scmp.ne.s32.totalorder %s5028_s14, %s4558_s12  ;;  %p4567_p1 = scmp.lt.s32.totalorder %s4558_s12, %s4558_s12 }
  0x59   : > { %p4561_p4 = pnand %p4559_p10, %p4549_p9  ;;  %p4568_p12 = por %p4567_p1, %p4566_p0 }
  0x5b   : > { %p4562_p11 = pneg %p4561_p4 }
  0x5d   : > { %p4569_p8 = pnand %p4568_p12, %p4562_p11 }
  0x5f   : > { %4572 = shalt.err (!%p4569_p8)
}
  0x60   : > { %4045 = dma.hbm_to_vmem [thread:$0]  (!%p5040_p3), %s6354_s0, 2048, %s5028_s14, [#allocation5], %s6455_s22, %s6455_s22, %s6454_s27  }
  0x61   : > { %s3783_s15 = sshll.u32 %s4796_s11, 7  ;;  %s395_s21 = scalar_lea.vmem [#allocation12], %s3782_s25 }
  0x62   : > { %s401_s24 = scalar_lea.hbm %s6358_s4, %s3783_s15  ;;  %s403_s12 = sshll.u32 %s395_s21, 4  ;;  %s404_s12 = int_to_ptr.vmem [resolvable:$true] %s403_s12 }
  0x63   : > { %s4586_s3 = scalar_lea.vmem %s404_s12, 128  ;;  %s4808_s29 = smov [#allocation12]  }
  0x64   : > { %p4587_p9 = scmp.ne.s32.totalorder %s404_s12, %s4586_s3  ;;  %s4591_s20 = sshll.u32 %s4808_s29, 4  ;;  %s4592_s20 = int_to_ptr.vmem [resolvable:$false] %s4591_s20 }
  0x65   : > { %s4593_s2 = scalar_lea.vmem %s4592_s20, 256  ;;  %p4594_p3 = scmp.lt.s32.totalorder %s404_s12, %s4592_s20 }
  0x66   : > { %p4589_p10 = pnand %p4587_p9, %p4493_p2  ;;  %p4595_p11 = scmp.lt.s32.totalorder %s4593_s2, %s4586_s3 }
  0x68   : > { %p4590_p4 = pneg %p4589_p10  ;;  %p4596_p0 = por %p4595_p11, %p4594_p3 }
  0x6a   : > { %p4597_p1 = pnand %p4596_p0, %p4590_p4 }
  0x6c   : > { %4600 = shalt.err (!%p4597_p1)
}
  0x6d   : > { %4058 = dma.hbm_to_vmem [thread:$0]  (!%p4963_p7), %s401_s24, 128, %s404_s12, %s4981_s1  }
  0x6e   : > { %s420_s22 = scalar_lea.hbm %s6359_s5, %s3783_s15  ;;  %s414_s26 = scalar_lea.vmem [#allocation13], %s3782_s25 }
  0x6f   : > { %s422_s17 = sshll.u32 %s414_s26, 4  ;;  %s411_s21 = scalar_lea.sflag [#allocation14], %s4958_s19  ;;  %s423_s17 = int_to_ptr.vmem [resolvable:$true] %s422_s17 }
  0x70   : > { %s4614_s2 = scalar_lea.vmem %s423_s17, 128  ;;  %s4809_s3 = smov [#allocation13]  }
  0x71   : > { %p4615_p12 = scmp.ne.s32.totalorder %s423_s17, %s4614_s2  ;;  %s4619_s29 = sshll.u32 %s4809_s3, 4  ;;  %s4620_s29 = int_to_ptr.vmem [resolvable:$false] %s4619_s29 }
  0x72   : > { %s4621_s20 = scalar_lea.vmem %s4620_s29, 256  ;;  %p4622_p10 = scmp.lt.s32.totalorder %s423_s17, %s4620_s29 }
  0x73   : > { %p4617_p8 = pnand %p4615_p12, %p4493_p2  ;;  %p4623_p4 = scmp.lt.s32.totalorder %s4621_s20, %s4614_s2 }
  0x75   : > { %p4618_p9 = pneg %p4617_p8  ;;  %p4624_p3 = por %p4623_p4, %p4622_p10 }
  0x77   : > { %p4625_p11 = pnand %p4624_p3, %p4618_p9 }
  0x79   : > { %4628 = shalt.err (!%p4625_p11)
}
  0x7a   : > { %4061 = dma.hbm_to_vmem [thread:$0]  (!%p4963_p7), %s420_s22, 128, %s423_s17, %s411_s21  }
  0x7b   : > { %431 = sbr.rel (%p5024_p5) target bundleno = 4914 (0x1332), region = 44 }
  0x80   : > { %4742 = dma.done.wait (%p98_p6), [#allocation5], 2048  }
  0x81   : > { %4744 = vsyncadd (%p98_p6), [#allocation5], 4294965248  ;;  %s5099_s1 = sand.u32 1, %s4992_s16   ;;  %s439_s19 = sand.u32 1, %s4788_s9  }
  0x82   : > { %s3788_s25 = sshll.u32 %s439_s19, 8  ;;  %s438_s15 = scalar_lea.sflag [#allocation8], %s5099_s1 }
  0x83   : > { %s5103_s18 = scalar_lea.vmem [#allocation7], %s3788_s25 }
  0x84   : > { %4746 = dma.done.wait (%p5001_p13), %s438_s15, 4096  }
  0x85   : > { %4748 = vsyncadd (%p5001_p13), %s438_s15, 4294963200  ;;  %s448_s23 = sand.u32 1, %s4776_s28   ;;  %p6456_p5 = scmp.ne.s32.totalorder %s6448_s13, 0 }
  0x86   : > { %s3789_s24 = sshll.u32 %s448_s23, 8 }
  0x87   : > { %s5110_s12 = scalar_lea.vmem [#allocation9], %s3789_s24 }
  0x88   : > { %4750 = dma.done.wait (%p6456_p5), %s438_s15, 4096  }
  0x89   : > { %4752 = vsyncadd (%p6456_p5), %s438_s15, 4294963200  ;;  %s3790_s14 = sshll.u32 %s448_s23, 2  ;;  %s456_s27 = scalar_lea.sflag [#allocation11], %s5099_s1 }
  0x8a   : > { %s5117_s22 = scalar_lea.vmem [#allocation10], %s3790_s14 }
  0x8b   : > { %4754 = dma.done.wait (%p6456_p5), %s456_s27, 192  }
  0x8c   : > { %4756 = vsyncadd (%p6456_p5), %s456_s27, 4294967104  ;;  %s5123_s6 = sshll.u32 %s448_s23, 3  ;;  %s474_s17 = scalar_lea.sflag [#allocation14], %s448_s23 }
  0x8d   : > { %s468_s26 = scalar_lea.vmem [#allocation12], %s5123_s6  ;;  %s477_s21 = scalar_lea.vmem [#allocation13], %s5123_s6 }
  0x8e   : > { %4758 = dma.done.wait (%p6456_p5), %s474_s17, 128  }
  0x8f   : > { %4760 = vsyncadd (%p6456_p5), %s474_s17, 4294967168  ;;  %v5132_v0 = vld [vmem:[%s5110_s12] sm:$0xff]  ;;  %v5135_v1 = vld [vmem:[%s5110_s12 + $0x8] sm:$0xff]  ;;  %s5236_s13 = scalar_lea.vmem [#allocation16], %s5123_s6  ;;  %s5239_s2 = scalar_lea.vmem [#allocation18], %s5123_s6 }
  0x90   : > { %6457 = vst [vmem:[#allocation31_spill] sm:$0xff] %v5132_v0  ;;  %6458 = vst [vmem:[#allocation32_spill] sm:$0xff] %v5135_v1  ;;  %v5138_v2 = vld [vmem:[%s5110_s12 + $0x10] sm:$0xff]  ;;  %v5141_v3 = vld [vmem:[%s5110_s12 + $0x18] sm:$0xff]  ;;  %p3795_p7 = scmp.ne.s32.totalorder %s4792_s10, 0 }
  0x91   : > { %6459 = vst [vmem:[#allocation33_spill] sm:$0xff] %v5138_v2  ;;  %6460 = vst [vmem:[#allocation34_spill] sm:$0xff] %v5141_v3  ;;  %v5144_v4 = vld [vmem:[%s5110_s12 + $0x20] sm:$0xff]  ;;  %v5147_v5 = vld [vmem:[%s5110_s12 + $0x28] sm:$0xff]  ;;  %p3831_p2 = scmp.ne.s32.totalorder (!%p3795_p7), %s4792_s10, 1 }
  0x92   : > { %6461 = vst [vmem:[#allocation35_spill] sm:$0xff] %v5144_v4  ;;  %6462 = vst [vmem:[#allocation36_spill] sm:$0xff] %v5147_v5  ;;  %v5150_v6 = vld [vmem:[%s5110_s12 + $0x30] sm:$0xff]  ;;  %v5153_v7 = vld [vmem:[%s5110_s12 + $0x38] sm:$0xff] }
  0x93   : > { %6463 = vst [vmem:[#allocation37_spill] sm:$0xff] %v5150_v6  ;;  %6464 = vst [vmem:[#allocation38_spill] sm:$0xff] %v5153_v7  ;;  %v5156_v8 = vld [vmem:[%s5110_s12 + $0x40] sm:$0xff]  ;;  %v5159_v9 = vld [vmem:[%s5110_s12 + $0x48] sm:$0xff] }
  0x94   : > { %6465 = vst [vmem:[#allocation39_spill] sm:$0xff] %v5156_v8  ;;  %6466 = vst [vmem:[#allocation40_spill] sm:$0xff] %v5159_v9  ;;  %v5162_v10 = vld [vmem:[%s5110_s12 + $0x50] sm:$0xff]  ;;  %v5165_v11 = vld [vmem:[%s5110_s12 + $0x58] sm:$0xff] }
  0x95   : > { %6467 = vst [vmem:[#allocation41_spill] sm:$0xff] %v5162_v10  ;;  %6468 = vst [vmem:[#allocation42_spill] sm:$0xff] %v5165_v11  ;;  %v5168_v12 = vld [vmem:[%s5110_s12 + $0x60] sm:$0xff]  ;;  %v5171_v13 = vld [vmem:[%s5110_s12 + $0x68] sm:$0xff] }
  0x96   : > { %6469 = vst [vmem:[#allocation43_spill] sm:$0xff] %v5168_v12  ;;  %6470 = vst [vmem:[#allocation44_spill] sm:$0xff] %v5171_v13  ;;  %v5174_v14 = vld [vmem:[%s5110_s12 + $0x70] sm:$0xff]  ;;  %v5177_v15 = vld [vmem:[%s5110_s12 + $0x78] sm:$0xff] }
  0x97   : > { %6471 = vst [vmem:[#allocation45_spill] sm:$0xff] %v5174_v14  ;;  %6472 = vst [vmem:[#allocation46_spill] sm:$0xff] %v5177_v15  ;;  %v5180_v16 = vld [vmem:[%s5110_s12 + $0x80] sm:$0xff]  ;;  %v5183_v17 = vld [vmem:[%s5110_s12 + $0x88] sm:$0xff] }
  0x98   : > { %6473 = vst [vmem:[#allocation47_spill] sm:$0xff] %v5180_v16  ;;  %6474 = vst [vmem:[#allocation48_spill] sm:$0xff] %v5183_v17  ;;  %v5186_v18 = vld [vmem:[%s5110_s12 + $0x90] sm:$0xff]  ;;  %v5189_v19 = vld [vmem:[%s5110_s12 + $0x98] sm:$0xff] }
  0x99   : > { %6475 = vst [vmem:[#allocation49_spill] sm:$0xff] %v5186_v18  ;;  %6476 = vst [vmem:[#allocation50_spill] sm:$0xff] %v5189_v19  ;;  %v5192_v20 = vld [vmem:[%s5110_s12 + $0xa0] sm:$0xff]  ;;  %v5195_v21 = vld [vmem:[%s5110_s12 + $0xa8] sm:$0xff] }
  0x9a   : > { %6477 = vst [vmem:[#allocation51_spill] sm:$0xff] %v5192_v20  ;;  %6478 = vst [vmem:[#allocation52_spill] sm:$0xff] %v5195_v21  ;;  %v5198_v22 = vld [vmem:[%s5110_s12 + $0xb0] sm:$0xff]  ;;  %v5201_v23 = vld [vmem:[%s5110_s12 + $0xb8] sm:$0xff] }
  0x9b   : > { %6479 = vst [vmem:[#allocation53_spill] sm:$0xff] %v5201_v23  ;;  %v5204_v24 = vld [vmem:[%s5110_s12 + $0xc0] sm:$0xff]  ;;  %v5207_v25 = vld [vmem:[%s5110_s12 + $0xc8] sm:$0xff]  ;;  %v5210_v26 = vld [vmem:[%s5110_s12 + $0xd0] sm:$0xff]  ;;  %577 = sbr.rel (%p3795_p7) target bundleno = 2485 (0x9b5), region = 72 }
  0x9c   : > { %v5213_v27 = vld [vmem:[%s5110_s12 + $0xd8] sm:$0xff]  ;;  %v5216_v28 = vld [vmem:[%s5110_s12 + $0xe0] sm:$0xff]  ;;  %v5219_v29 = vld [vmem:[%s5110_s12 + $0xe8] sm:$0xff] }
  0x9d   : > { %v5222_v30 = vld [vmem:[%s5110_s12 + $0xf0] sm:$0xff]  ;;  %v5225_v31 = vld [vmem:[%s5110_s12 + $0xf8] sm:$0xff] }
  0x9e   : > { %v5229_v32 = vld [vmem:[%s468_s26] sm:$0xff]  ;;  %v5233_v33 = vld [vmem:[%s477_s21] sm:$0xff] }
  0x9f   : > { %6480 = vst [vmem:[#allocation54_spill] sm:$0xff] %v5229_v32  ;;  %6481 = vst [vmem:[#allocation55_spill] sm:$0xff] %v5233_v33 }
  0xa0   : > { %v5244_v34 = vcombine.high %v5216_v28, %v5222_v30  ;;  %v5248_v35 = vcombine.low %v5216_v28, %v5222_v30  ;;  %v5252_v36 = vcombine.high %v5204_v24, %v5210_v26  ;;  %v5256_v37 = vcombine.high %v5219_v29, %v5225_v31 }
  0xa1   : > { %v5261_v38 = vcombine.low %v5219_v29, %v5225_v31  ;;  %v5265_v39 = vcombine.high %v5207_v25, %v5213_v27  ;;  %v5270_v40 = vcombine.low %v5204_v24, %v5210_v26  ;;  %v5276_v41 = vcombine.high %v5192_v20, %v5198_v22 }
  0xa2   : > { %745 = vmatprep.subr.bf16.mxu0 %v5244_v34  ;;  %786 = vmatprep.subr.bf16.mxu1 %v5256_v37  ;;  %v5281_v42 = vcombine.low %v5207_v25, %v5213_v27  ;;  %v5286_v43 = vcombine.high %v5195_v21, %v5201_v23  ;;  %v6376_v44 = vmov 0   ;;  %v5292_v45 = vcombine.low %v5192_v20, %v5198_v22 }
  0xa3   : > { %746 = vmatpush1.bf16.msra.mxu0 %v5248_v35  ;;  %787 = vmatpush1.bf16.msra.mxu1 %v5261_v38  ;;  %v5297_v46 = vcombine.high %v5180_v16, %v5186_v18  ;;  %v5302_v47 = vcombine.low %v5195_v21, %v5201_v23  ;;  %v5307_v48 = vcombine.high %v5183_v17, %v5189_v19 }
  0xa4   : > { %747 = vmatprep.subr.bf16.mxu0 %v5252_v36  ;;  %788 = vmatprep.subr.bf16.mxu1 %v5265_v39  ;;  %v5313_v49 = vcombine.low %v5180_v16, %v5186_v18  ;;  %v5318_v50 = vcombine.high %v5168_v12, %v5174_v14  ;;  %v5323_v51 = vcombine.low %v5183_v17, %v5189_v19 }
  0xa5   : > { %777 = vmatprep.mubr.bf16.mxu0 %v6376_v44  ;;  %818 = vmatprep.mubr.bf16.mxu1 %v6376_v44  ;;  %v5328_v52 = vcombine.high %v5171_v13, %v5177_v15  ;;  %v5333_v53 = vcombine.low %v5168_v12, %v5174_v14  ;;  %v5338_v54 = vcombine.high %v5156_v8, %v5162_v10 }
  0xa6   : > { %v5343_v55 = vcombine.low %v5171_v13, %v5177_v15  ;;  %v5348_v56 = vcombine.high %v5159_v9, %v5165_v11  ;;  %v5353_v57 = vcombine.low %v5156_v8, %v5162_v10  ;;  %v5358_v58 = vcombine.high %v5144_v4, %v5150_v6 }
  0xa7   : > { %748 = vmatpush1.bf16.msra.mxu0 %v5270_v40  ;;  %789 = vmatpush1.bf16.msra.mxu1 %v5281_v42  ;;  %v5363_v59 = vcombine.low %v5159_v9, %v5165_v11  ;;  %v5368_v60 = vcombine.high %v5147_v5, %v5153_v7  ;;  %v5373_v61 = vcombine.low %v5144_v4, %v5150_v6 }
  0xa8   : > { %749 = vmatprep.subr.bf16.mxu0 %v5276_v41  ;;  %790 = vmatprep.subr.bf16.mxu1 %v5286_v43  ;;  %v5378_v62 = vcombine.high %v5132_v0, %v5138_v2  ;;  %v5383_v63 = vcombine.low %v5147_v5, %v5153_v7  ;;  %v5388_v44 = vcombine.high %v5135_v1, %v5141_v3 }
  0xa9   : > { %v5393_v4 = vcombine.low %v5132_v0, %v5138_v2  ;;  %v5399_v5 = vcombine.low %v5135_v1, %v5141_v3  ;;  %v584_v7 = vpack.c.bf16 %v5229_v32, %v5229_v32  ;;  %v578_v0 = vld [vmem:[#allocation4] sm:$0xff]  ;;  %v579_v32 = vld [vmem:[#allocation4 + $0x8] sm:$0xff] }
  0xaa   : > { %v580_v2 = vunpack.c.l.bf16 %v578_v0  ;;  %v581_v6 = vunpack.c.h.bf16 %v578_v0  ;;  %v583_v16 = vunpack.c.h.bf16 %v579_v32 }
  0xab   : > { %750 = vmatpush1.bf16.msra.mxu0 %v5292_v45  ;;  %791 = vmatpush1.bf16.msra.mxu1 %v5302_v47 }
  0xac   : > { %751 = vmatprep.subr.bf16.mxu0 %v5297_v46  ;;  %792 = vmatprep.subr.bf16.mxu1 %v5307_v48 }
  0xaf   : > { %752 = vmatpush1.bf16.msra.mxu0 %v5313_v49  ;;  %793 = vmatpush1.bf16.msra.mxu1 %v5323_v51 }
  0xb0   : > { %753 = vmatprep.subr.bf16.mxu0 %v5318_v50  ;;  %794 = vmatprep.subr.bf16.mxu1 %v5328_v52 }
  0xb3   : > { %754 = vmatpush1.bf16.msra.mxu0 %v5333_v53  ;;  %795 = vmatpush1.bf16.msra.mxu1 %v5343_v55 }
  0xb4   : > { %755 = vmatprep.subr.bf16.mxu0 %v5338_v54  ;;  %796 = vmatprep.subr.bf16.mxu1 %v5348_v56 }
  0xb7   : > { %756 = vmatpush1.bf16.msra.mxu0 %v5353_v57  ;;  %797 = vmatpush1.bf16.msra.mxu1 %v5363_v59 }
  0xb8   : > { %757 = vmatprep.subr.bf16.mxu0 %v5358_v58  ;;  %798 = vmatprep.subr.bf16.mxu1 %v5368_v60 }
  0xbb   : > { %758 = vmatpush1.bf16.msra.mxu0 %v5373_v61  ;;  %799 = vmatpush1.bf16.msra.mxu1 %v5383_v63 }
  0xbc   : > { %759 = vmatprep.subr.bf16.mxu0 %v5378_v62  ;;  %800 = vmatprep.subr.bf16.mxu1 %v5388_v44 }
  0xbf   : > { %760 = vmatpush1.bf16.msra.mxu0 %v5393_v4  ;;  %801 = vmatpush1.bf16.msra.mxu1 %v5399_v5 }
  0xc2   : > { %778 = vmatmul.mubr.bf16.vlgmr.msra.gmra.mxu0 %v584_v7  ;;  %819 = vmatmul.mubr.bf16.vlgmr.msra.gmra.mxu1 %v584_v7  ;;  %v582_v7 = vunpack.c.l.bf16 %v579_v32 }
 0x182   : > { %v779_v9 = vpop.f32.mrf.mxu0  ;;  %v820_v8 = vpop.f32.mrf.mxu1 }
 0x183   : > { %v827_v11 = vadd.f32 %v779_v9, %v580_v2  ;;  %v829_v21 = vadd.f32 %v820_v8, %v582_v7 }
 0x184   : > { %v781_v10 = vpop.f32.mrf.mxu0  ;;  %v822_v13 = vpop.f32.mrf.mxu1 }
 0x185   : > { %v3828_v1 = vmul.f32 -1.442695, %v827_v11  ;;  %v828_v3 = vadd.f32 %v781_v10, %v581_v6  ;;  %v830_v18 = vadd.f32 %v822_v13, %v583_v16 }
 0x186   : > { %v783_v15 = vpop.f32.mrf.mxu0  ;;  %v824_v14 = vpop.f32.mrf.mxu1 }
 0x187   : > { %4155 = vpow2.f32 %v3828_v1  ;;  %v3829_v12 = vmul.f32 -1.442695, %v828_v3  ;;  %v3830_v0 = vmul.f32 -1.442695, %v830_v18 }
 0x188   : > { %v784_v17 = vpop.f32.mrf.mxu0  ;;  %v825_v19 = vpop.f32.mrf.mxu1 }
 0x189   : > { %4157 = vpow2.f32 %v3829_v12 }
 0x18a   : > { %4159 = vtanh.f32 %v829_v21 }
 0x18b   : > { %4161 = vpow2.f32 %v3830_v0 }
 0x194   : > { %v4156_v23 = vpop.eup %4155 }
 0x195   : > { %v834_v2 = vadd.f32 1.0, %v4156_v23 }
 0x196   : > { %v4158_v9 = vpop.eup %4157 }
 0x197   : > { %4163 = vrcp.f32 %v834_v2  ;;  %v840_v6 = vadd.f32 1.0, %v4158_v9  ;;  %v4160_v1 = vpop.eup %4159 }
 0x198   : > { %v4162_v3 = vpop.eup %4161 }
 0x199   : > { %4165 = vrcp.f32 %v840_v6  ;;  %v847_v14 = vadd.f32 1.0, %v4162_v3 }
 0x19b   : > { %4167 = vrcp.f32 %v847_v14 }
 0x1a4   : > { %v4164_v10 = vpop.eup %4163 }
 0x1a5   : > { %v851_v15 = vmul.f32 %v4164_v10, %v4160_v1 }
 0x1a6   : > { %v4166_v11 = vpop.eup %4165 }
 0x1a7   : > { %v850_v12 = vmul.f32 %v4166_v11, %v5233_v33 }
 0x1a8   : > { %v4168_v8 = vpop.eup %4167 }
 0x1a9   : > { %v5407_v17 = vadd.f32 %v851_v15, %v850_v12 }
 0x1ab   : > { %4169 = vtanh.f32 %v5407_v17 }
 0x1b5   : > { %857 = sbr.rel (%p3831_p2) target bundleno = 444 (0x1bc), region = 76 }
 0x1b8   : > { %v4170_v13 = vpop.eup %4169 }
 0x1b9   : > { %v854_v16 = vmul.f32 %v4170_v13, %v4168_v8 }
 0x1bb   : > { %858 = vst [vmem:[#allocation15] sm:$0xff] %v854_v16 }
 0x1bc PF: > { %p3832_p6 = scmp.eq.s32.totalorder %s4792_s10, 1 }
 0x1be   : > { %862 = sbr.rel (%p3832_p6) target bundleno = 454 (0x1c6), region = 80 }
 0x1c3   : > { %v863_v18 = vpack.c.bf16 %v854_v16, %v854_v16 }
 0x1c5   : > { %864 = vst [vmem:[#allocation3] sm:$0xf] %v863_v18 }
 0x1c6 PF: > { %873 = vmatprep.subr.bf16.mxu0 %v5244_v34  ;;  %914 = vmatprep.subr.bf16.mxu1 %v5256_v37  ;;  %v6482_v19 = vmov 0   ;;  %v872_v21 = vpack.c.bf16 %v854_v16, %v854_v16  ;;  %v866_v23 = vld [vmem:[#allocation4 + $0x10] sm:$0xff]  ;;  %v867_v15 = vld [vmem:[#allocation4 + $0x18] sm:$0xff] }
 0x1c7   : > { %874 = vmatpush1.bf16.msra.mxu0 %v5248_v35  ;;  %915 = vmatpush1.bf16.msra.mxu1 %v5261_v38  ;;  %v868_v32 = vunpack.c.l.bf16 %v866_v23  ;;  %v869_v7 = vunpack.c.h.bf16 %v866_v23  ;;  %v871_v16 = vunpack.c.h.bf16 %v867_v15  ;;  %v870_v18 = vunpack.c.l.bf16 %v867_v15 }
 0x1c8   : > { %875 = vmatprep.subr.bf16.mxu0 %v5252_v36  ;;  %916 = vmatprep.subr.bf16.mxu1 %v5265_v39 }
 0x1c9   : > { %905 = vmatprep.mubr.bf16.mxu0 %v6482_v19  ;;  %946 = vmatprep.mubr.bf16.mxu1 %v6482_v19 }
 0x1cb   : > { %876 = vmatpush1.bf16.msra.mxu0 %v5270_v40  ;;  %917 = vmatpush1.bf16.msra.mxu1 %v5281_v42 }
 0x1cc   : > { %877 = vmatprep.subr.bf16.mxu0 %v5276_v41  ;;  %918 = vmatprep.subr.bf16.mxu1 %v5286_v43 }
 0x1cf   : > { %878 = vmatpush1.bf16.msra.mxu0 %v5292_v45  ;;  %919 = vmatpush1.bf16.msra.mxu1 %v5302_v47 }
 0x1d0   : > { %879 = vmatprep.subr.bf16.mxu0 %v5297_v46  ;;  %920 = vmatprep.subr.bf16.mxu1 %v5307_v48 }
 0x1d3   : > { %880 = vmatpush1.bf16.msra.mxu0 %v5313_v49  ;;  %921 = vmatpush1.bf16.msra.mxu1 %v5323_v51 }
 0x1d4   : > { %881 = vmatprep.subr.bf16.mxu0 %v5318_v50  ;;  %922 = vmatprep.subr.bf16.mxu1 %v5328_v52 }
 0x1d7   : > { %882 = vmatpush1.bf16.msra.mxu0 %v5333_v53  ;;  %923 = vmatpush1.bf16.msra.mxu1 %v5343_v55 }
 0x1d8   : > { %883 = vmatprep.subr.bf16.mxu0 %v5338_v54  ;;  %924 = vmatprep.subr.bf16.mxu1 %v5348_v56 }
 0x1db   : > { %884 = vmatpush1.bf16.msra.mxu0 %v5353_v57  ;;  %925 = vmatpush1.bf16.msra.mxu1 %v5363_v59 }
 0x1dc   : > { %885 = vmatprep.subr.bf16.mxu0 %v5358_v58  ;;  %926 = vmatprep.subr.bf16.mxu1 %v5368_v60 }
 0x1df   : > { %886 = vmatpush1.bf16.msra.mxu0 %v5373_v61  ;;  %927 = vmatpush1.bf16.msra.mxu1 %v5383_v63 }
 0x1e0   : > { %887 = vmatprep.subr.bf16.mxu0 %v5378_v62  ;;  %928 = vmatprep.subr.bf16.mxu1 %v5388_v44 }
 0x1e3   : > { %888 = vmatpush1.bf16.msra.mxu0 %v5393_v4  ;;  %929 = vmatpush1.bf16.msra.mxu1 %v5399_v5 }
 0x1e6   : > { %906 = vmatmul.mubr.bf16.vlgmr.msra.gmra.mxu0 %v872_v21  ;;  %947 = vmatmul.mubr.bf16.vlgmr.msra.gmra.mxu1 %v872_v21 }
 0x2a6   : > { %v907_v0 = vpop.f32.mrf.mxu0  ;;  %v948_v2 = vpop.f32.mrf.mxu1 }
 0x2a7   : > { %v955_v9 = vadd.f32 %v907_v0, %v868_v32  ;;  %v957_v21 = vadd.f32 %v948_v2, %v870_v18 }
 0x2a8   : > { %v909_v6 = vpop.f32.mrf.mxu0  ;;  %v950_v1 = vpop.f32.mrf.mxu1 }
 0x2a9   : > { %v3833_v3 = vmul.f32 -1.442695, %v955_v9  ;;  %v956_v10 = vadd.f32 %v909_v6, %v869_v7  ;;  %v958_v19 = vadd.f32 %v950_v1, %v871_v16 }
 0x2aa   : > { %v911_v11 = vpop.f32.mrf.mxu0  ;;  %v952_v14 = vpop.f32.mrf.mxu1 }
 0x2ab   : > { %4171 = vpow2.f32 %v3833_v3  ;;  %v3834_v12 = vmul.f32 -1.442695, %v956_v10  ;;  %v3835_v23 = vmul.f32 -1.442695, %v958_v19 }
 0x2ac   : > { %v912_v8 = vpop.f32.mrf.mxu0  ;;  %v953_v13 = vpop.f32.mrf.mxu1 }
 0x2ad   : > { %4173 = vpow2.f32 %v3834_v12 }
 0x2ae   : > { %4175 = vtanh.f32 %v957_v21 }
 0x2af   : > { %4177 = vpow2.f32 %v3835_v23 }
 0x2b8   : > { %v4172_v33 = vpop.eup %4171 }
 0x2b9   : > { %v962_v20 = vadd.f32 1.0, %v4172_v33 }
 0x2ba   : > { %v4174_v32 = vpop.eup %4173 }
 0x2bb   : > { %4179 = vrcp.f32 %v962_v20  ;;  %v968_v7 = vadd.f32 1.0, %v4174_v32  ;;  %v4176_v0 = vpop.eup %4175 }
 0x2bc   : > { %v4178_v9 = vpop.eup %4177 }
 0x2bd   : > { %4181 = vrcp.f32 %v968_v7  ;;  %v975_v10 = vadd.f32 1.0, %v4178_v9 }
 0x2bf   : > { %4183 = vrcp.f32 %v975_v10 }
 0x2c8   : > { %v4180_v6 = vpop.eup %4179 }
 0x2c9   : > { %v979_v14 = vmul.f32 %v4180_v6, %v4176_v0 }
 0x2ca   : > { %v4182_v3 = vpop.eup %4181 }
 0x2cb   : > { %v978_v11 = vmul.f32 %v4182_v3, %v5407_v17 }
 0x2cc   : > { %v4184_v33 = vpop.eup %4183 }
 0x2cd   : > { %v5451_v12 = vadd.f32 %v979_v14, %v978_v11 }
 0x2cf   : > { %4185 = vtanh.f32 %v5451_v12 }
 0x2d9   : > { %985 = sbr.rel (%p3831_p2) target bundleno = 736 (0x2e0), region = 84 }
 0x2dc   : > { %v4186_v2 = vpop.eup %4185 }
 0x2dd   : > { %v982_v1 = vmul.f32 %v4186_v2, %v4184_v33 }
 0x2df   : > { %987 = vst [vmem:[#allocation15 + $0x8] sm:$0xff] %v982_v1 }
 0x2e0 PF: > { %990 = sbr.rel (%p3832_p6) target bundleno = 744 (0x2e8), region = 88 }
 0x2e5   : > { %v991_v20 = vpack.c.bf16 %v982_v1, %v982_v1 }
 0x2e7   : > { %993 = vst [vmem:[#allocation3 + $0x4] sm:$0xf] %v991_v20 }
 0x2e8 PF: > { %1002 = vmatprep.subr.bf16.mxu0 %v5244_v34  ;;  %1043 = vmatprep.subr.bf16.mxu1 %v5256_v37  ;;  %v6483_v17 = vmov 0   ;;  %v1001_v15 = vpack.c.bf16 %v982_v1, %v982_v1  ;;  %v995_v8 = vld [vmem:[#allocation4 + $0x20] sm:$0xff]  ;;  %v996_v10 = vld [vmem:[#allocation4 + $0x28] sm:$0xff] }
 0x2e9   : > { %1003 = vmatpush1.bf16.msra.mxu0 %v5248_v35  ;;  %1044 = vmatpush1.bf16.msra.mxu1 %v5261_v38  ;;  %v997_v13 = vunpack.c.l.bf16 %v995_v8  ;;  %v998_v16 = vunpack.c.h.bf16 %v995_v8  ;;  %v1000_v33 = vunpack.c.h.bf16 %v996_v10  ;;  %v999_v2 = vunpack.c.l.bf16 %v996_v10 }
 0x2ea   : > { %1004 = vmatprep.subr.bf16.mxu0 %v5252_v36  ;;  %1045 = vmatprep.subr.bf16.mxu1 %v5265_v39 }
 0x2eb   : > { %1034 = vmatprep.mubr.bf16.mxu0 %v6483_v17  ;;  %1075 = vmatprep.mubr.bf16.mxu1 %v6483_v17 }
 0x2ed   : > { %1005 = vmatpush1.bf16.msra.mxu0 %v5270_v40  ;;  %1046 = vmatpush1.bf16.msra.mxu1 %v5281_v42 }
 0x2ee   : > { %1006 = vmatprep.subr.bf16.mxu0 %v5276_v41  ;;  %1047 = vmatprep.subr.bf16.mxu1 %v5286_v43 }
 0x2f1   : > { %1007 = vmatpush1.bf16.msra.mxu0 %v5292_v45  ;;  %1048 = vmatpush1.bf16.msra.mxu1 %v5302_v47 }
 0x2f2   : > { %1008 = vmatprep.subr.bf16.mxu0 %v5297_v46  ;;  %1049 = vmatprep.subr.bf16.mxu1 %v5307_v48 }
 0x2f5   : > { %1009 = vmatpush1.bf16.msra.mxu0 %v5313_v49  ;;  %1050 = vmatpush1.bf16.msra.mxu1 %v5323_v51 }
 0x2f6   : > { %1010 = vmatprep.subr.bf16.mxu0 %v5318_v50  ;;  %1051 = vmatprep.subr.bf16.mxu1 %v5328_v52 }
 0x2f9   : > { %1011 = vmatpush1.bf16.msra.mxu0 %v5333_v53  ;;  %1052 = vmatpush1.bf16.msra.mxu1 %v5343_v55 }
 0x2fa   : > { %1012 = vmatprep.subr.bf16.mxu0 %v5338_v54  ;;  %1053 = vmatprep.subr.bf16.mxu1 %v5348_v56 }
 0x2fd   : > { %1013 = vmatpush1.bf16.msra.mxu0 %v5353_v57  ;;  %1054 = vmatpush1.bf16.msra.mxu1 %v5363_v59 }
 0x2fe   : > { %1014 = vmatprep.subr.bf16.mxu0 %v5358_v58  ;;  %1055 = vmatprep.subr.bf16.mxu1 %v5368_v60 }
 0x301   : > { %1015 = vmatpush1.bf16.msra.mxu0 %v5373_v61  ;;  %1056 = vmatpush1.bf16.msra.mxu1 %v5383_v63 }
 0x302   : > { %1016 = vmatprep.subr.bf16.mxu0 %v5378_v62  ;;  %1057 = vmatprep.subr.bf16.mxu1 %v5388_v44 }
 0x305   : > { %1017 = vmatpush1.bf16.msra.mxu0 %v5393_v4  ;;  %1058 = vmatpush1.bf16.msra.mxu1 %v5399_v5 }
 0x308   : > { %1035 = vmatmul.mubr.bf16.vlgmr.msra.gmra.mxu0 %v1001_v15  ;;  %1076 = vmatmul.mubr.bf16.vlgmr.msra.gmra.mxu1 %v1001_v15 }
 0x3c8   : > { %v1036_v18 = vpop.f32.mrf.mxu0  ;;  %v1077_v19 = vpop.f32.mrf.mxu1 }
 0x3c9   : > { %v1084_v21 = vadd.f32 %v1036_v18, %v997_v13  ;;  %v1086_v20 = vadd.f32 %v1077_v19, %v999_v2 }
 0x3ca   : > { %v1038_v23 = vpop.f32.mrf.mxu0  ;;  %v1079_v32 = vpop.f32.mrf.mxu1 }
 0x3cb   : > { %v3838_v7 = vmul.f32 -1.442695, %v1084_v21  ;;  %v1085_v0 = vadd.f32 %v1038_v23, %v998_v16  ;;  %v1087_v1 = vadd.f32 %v1079_v32, %v1000_v33 }
 0x3cc   : > { %v1040_v9 = vpop.f32.mrf.mxu0  ;;  %v1081_v6 = vpop.f32.mrf.mxu1 }
 0x3cd   : > { %4187 = vpow2.f32 %v3838_v7  ;;  %v3839_v3 = vmul.f32 -1.442695, %v1085_v0  ;;  %v3840_v17 = vmul.f32 -1.442695, %v1087_v1 }
 0x3ce   : > { %v1041_v11 = vpop.f32.mrf.mxu0  ;;  %v1082_v14 = vpop.f32.mrf.mxu1 }
 0x3cf   : > { %4189 = vpow2.f32 %v3839_v3 }
 0x3d0   : > { %4191 = vtanh.f32 %v1086_v20 }
 0x3d1   : > { %4193 = vpow2.f32 %v3840_v17 }
 0x3da   : > { %v4188_v15 = vpop.eup %4187 }
 0x3db   : > { %v1091_v8 = vadd.f32 1.0, %v4188_v15 }
 0x3dc   : > { %v4190_v13 = vpop.eup %4189 }
 0x3dd   : > { %4195 = vrcp.f32 %v1091_v8  ;;  %v1097_v16 = vadd.f32 1.0, %v4190_v13  ;;  %v4192_v18 = vpop.eup %4191 }
 0x3de   : > { %v4194_v21 = vpop.eup %4193 }
 0x3df   : > { %4197 = vrcp.f32 %v1097_v16  ;;  %v1104_v0 = vadd.f32 1.0, %v4194_v21 }
 0x3e1   : > { %4199 = vrcp.f32 %v1104_v0 }
 0x3ea   : > { %v4196_v23 = vpop.eup %4195 }
 0x3eb   : > { %v1108_v6 = vmul.f32 %v4196_v23, %v4192_v18 }
 0x3ec   : > { %v4198_v7 = vpop.eup %4197 }
 0x3ed   : > { %v1107_v9 = vmul.f32 %v4198_v7, %v5451_v12 }
 0x3ee   : > { %v4200_v19 = vpop.eup %4199 }
 0x3ef   : > { %v5493_v3 = vadd.f32 %v1108_v6, %v1107_v9 }
 0x3f1   : > { %4201 = vtanh.f32 %v5493_v3 }
 0x3fb   : > { %1114 = sbr.rel (%p3831_p2) target bundleno = 1026 (0x402), region = 92 }
 0x3fe   : > { %v4202_v32 = vpop.eup %4201 }
 0x3ff   : > { %v1111_v10 = vmul.f32 %v4202_v32, %v4200_v19 }
 0x401   : > { %1116 = vst [vmem:[#allocation15 + $0x10] sm:$0xff] %v1111_v10 }
 0x402 PF: > { %1119 = sbr.rel (%p3832_p6) target bundleno = 1034 (0x40a), region = 96 }
 0x407   : > { %v1120_v11 = vpack.c.bf16 %v1111_v10, %v1111_v10 }
 0x409   : > { %1122 = vst [vmem:[#allocation3 + $0x8] sm:$0xf] %v1120_v11 }
 0x40a PF: > { %1131 = vmatprep.subr.bf16.mxu0 %v5244_v34  ;;  %1172 = vmatprep.subr.bf16.mxu1 %v5256_v37  ;;  %v6484_v12 = vmov 0   ;;  %v1130_v14 = vpack.c.bf16 %v1111_v10, %v1111_v10  ;;  %v1124_v33 = vld [vmem:[#allocation4 + $0x30] sm:$0xff]  ;;  %v1125_v0 = vld [vmem:[#allocation4 + $0x38] sm:$0xff] }
 0x40b   : > { %1132 = vmatpush1.bf16.msra.mxu0 %v5248_v35  ;;  %1173 = vmatpush1.bf16.msra.mxu1 %v5261_v38  ;;  %v1126_v2 = vunpack.c.l.bf16 %v1124_v33  ;;  %v1127_v1 = vunpack.c.h.bf16 %v1124_v33  ;;  %v1129_v19 = vunpack.c.h.bf16 %v1125_v0  ;;  %v1128_v32 = vunpack.c.l.bf16 %v1125_v0 }
 0x40c   : > { %1133 = vmatprep.subr.bf16.mxu0 %v5252_v36  ;;  %1174 = vmatprep.subr.bf16.mxu1 %v5265_v39 }
 0x40d   : > { %1163 = vmatprep.mubr.bf16.mxu0 %v6484_v12  ;;  %1204 = vmatprep.mubr.bf16.mxu1 %v6484_v12 }
 0x40f   : > { %1134 = vmatpush1.bf16.msra.mxu0 %v5270_v40  ;;  %1175 = vmatpush1.bf16.msra.mxu1 %v5281_v42 }
 0x410   : > { %1135 = vmatprep.subr.bf16.mxu0 %v5276_v41  ;;  %1176 = vmatprep.subr.bf16.mxu1 %v5286_v43 }
 0x413   : > { %1136 = vmatpush1.bf16.msra.mxu0 %v5292_v45  ;;  %1177 = vmatpush1.bf16.msra.mxu1 %v5302_v47 }
 0x414   : > { %1137 = vmatprep.subr.bf16.mxu0 %v5297_v46  ;;  %1178 = vmatprep.subr.bf16.mxu1 %v5307_v48 }
 0x417   : > { %1138 = vmatpush1.bf16.msra.mxu0 %v5313_v49  ;;  %1179 = vmatpush1.bf16.msra.mxu1 %v5323_v51 }
 0x418   : > { %1139 = vmatprep.subr.bf16.mxu0 %v5318_v50  ;;  %1180 = vmatprep.subr.bf16.mxu1 %v5328_v52 }
 0x41b   : > { %1140 = vmatpush1.bf16.msra.mxu0 %v5333_v53  ;;  %1181 = vmatpush1.bf16.msra.mxu1 %v5343_v55 }
 0x41c   : > { %1141 = vmatprep.subr.bf16.mxu0 %v5338_v54  ;;  %1182 = vmatprep.subr.bf16.mxu1 %v5348_v56 }
 0x41f   : > { %1142 = vmatpush1.bf16.msra.mxu0 %v5353_v57  ;;  %1183 = vmatpush1.bf16.msra.mxu1 %v5363_v59 }
 0x420   : > { %1143 = vmatprep.subr.bf16.mxu0 %v5358_v58  ;;  %1184 = vmatprep.subr.bf16.mxu1 %v5368_v60 }
 0x423   : > { %1144 = vmatpush1.bf16.msra.mxu0 %v5373_v61  ;;  %1185 = vmatpush1.bf16.msra.mxu1 %v5383_v63 }
 0x424   : > { %1145 = vmatprep.subr.bf16.mxu0 %v5378_v62  ;;  %1186 = vmatprep.subr.bf16.mxu1 %v5388_v44 }
 0x427   : > { %1146 = vmatpush1.bf16.msra.mxu0 %v5393_v4  ;;  %1187 = vmatpush1.bf16.msra.mxu1 %v5399_v5 }
 0x42a   : > { %1164 = vmatmul.mubr.bf16.vlgmr.msra.gmra.mxu0 %v1130_v14  ;;  %1205 = vmatmul.mubr.bf16.vlgmr.msra.gmra.mxu1 %v1130_v14 }
 0x4ea   : > { %v1165_v20 = vpop.f32.mrf.mxu0  ;;  %v1206_v17 = vpop.f32.mrf.mxu1 }
 0x4eb   : > { %v1213_v15 = vadd.f32 %v1165_v20, %v1126_v2  ;;  %v1215_v11 = vadd.f32 %v1206_v17, %v1128_v32 }
 0x4ec   : > { %v1167_v8 = vpop.f32.mrf.mxu0  ;;  %v1208_v13 = vpop.f32.mrf.mxu1 }
 0x4ed   : > { %v3843_v16 = vmul.f32 -1.442695, %v1213_v15  ;;  %v1214_v18 = vadd.f32 %v1167_v8, %v1127_v1  ;;  %v1216_v10 = vadd.f32 %v1208_v13, %v1129_v19 }
 0x4ee   : > { %v1169_v21 = vpop.f32.mrf.mxu0  ;;  %v1210_v23 = vpop.f32.mrf.mxu1 }
 0x4ef   : > { %4203 = vpow2.f32 %v3843_v16  ;;  %v3844_v7 = vmul.f32 -1.442695, %v1214_v18  ;;  %v3845_v12 = vmul.f32 -1.442695, %v1216_v10 }
 0x4f0   : > { %v1170_v9 = vpop.f32.mrf.mxu0  ;;  %v1211_v6 = vpop.f32.mrf.mxu1 }
 0x4f1   : > { %4205 = vpow2.f32 %v3844_v7 }
 0x4f2   : > { %4207 = vtanh.f32 %v1215_v11 }
 0x4f3   : > { %4209 = vpow2.f32 %v3845_v12 }
 0x4fc   : > { %v4204_v14 = vpop.eup %4203 }
 0x4fd   : > { %v1220_v33 = vadd.f32 1.0, %v4204_v14 }
 0x4fe   : > { %v4206_v2 = vpop.eup %4205 }
 0x4ff   : > { %4211 = vrcp.f32 %v1220_v33  ;;  %v1226_v1 = vadd.f32 1.0, %v4206_v2  ;;  %v4208_v20 = vpop.eup %4207 }
 0x500   : > { %v4210_v15 = vpop.eup %4209 }
 0x501   : > { %4213 = vrcp.f32 %v1226_v1  ;;  %v1233_v18 = vadd.f32 1.0, %v4210_v15 }
 0x503   : > { %4215 = vrcp.f32 %v1233_v18 }
 0x50c   : > { %v4212_v8 = vpop.eup %4211 }
 0x50d   : > { %v1237_v23 = vmul.f32 %v4212_v8, %v4208_v20 }
 0x50e   : > { %v4214_v16 = vpop.eup %4213 }
 0x50f   : > { %v1236_v21 = vmul.f32 %v4214_v16, %v5493_v3 }
 0x510   : > { %v4216_v17 = vpop.eup %4215 }
 0x511   : > { %v5535_v7 = vadd.f32 %v1237_v23, %v1236_v21 }
 0x513   : > { %4217 = vtanh.f32 %v5535_v7 }
 0x51d   : > { %1243 = sbr.rel (%p3831_p2) target bundleno = 1316 (0x524), region = 100 }
 0x520   : > { %v4218_v13 = vpop.eup %4217 }
 0x521   : > { %v1240_v0 = vmul.f32 %v4218_v13, %v4216_v17 }
 0x523   : > { %1245 = vst [vmem:[#allocation15 + $0x18] sm:$0xff] %v1240_v0 }
 0x524 PF: > { %1248 = sbr.rel (%p3832_p6) target bundleno = 1324 (0x52c), region = 104 }
 0x529   : > { %v1249_v9 = vpack.c.bf16 %v1240_v0, %v1240_v0 }
 0x52b   : > { %1251 = vst [vmem:[#allocation3 + $0xc] sm:$0xf] %v1249_v9 }
 0x52c PF: > { %1260 = vmatprep.subr.bf16.mxu0 %v5244_v34  ;;  %1301 = vmatprep.subr.bf16.mxu1 %v5256_v37  ;;  %v6485_v3 = vmov 0   ;;  %v1259_v6 = vpack.c.bf16 %v1240_v0, %v1240_v0  ;;  %v1253_v19 = vld [vmem:[#allocation4 + $0x40] sm:$0xff]  ;;  %v1254_v18 = vld [vmem:[#allocation4 + $0x48] sm:$0xff] }
 0x52d   : > { %1261 = vmatpush1.bf16.msra.mxu0 %v5248_v35  ;;  %1302 = vmatpush1.bf16.msra.mxu1 %v5261_v38  ;;  %v1255_v32 = vunpack.c.l.bf16 %v1253_v19  ;;  %v1256_v10 = vunpack.c.h.bf16 %v1253_v19  ;;  %v1258_v17 = vunpack.c.h.bf16 %v1254_v18  ;;  %v1257_v13 = vunpack.c.l.bf16 %v1254_v18 }
 0x52e   : > { %1262 = vmatprep.subr.bf16.mxu0 %v5252_v36  ;;  %1303 = vmatprep.subr.bf16.mxu1 %v5265_v39 }
 0x52f   : > { %1292 = vmatprep.mubr.bf16.mxu0 %v6485_v3  ;;  %1333 = vmatprep.mubr.bf16.mxu1 %v6485_v3 }
 0x531   : > { %1263 = vmatpush1.bf16.msra.mxu0 %v5270_v40  ;;  %1304 = vmatpush1.bf16.msra.mxu1 %v5281_v42 }
 0x532   : > { %1264 = vmatprep.subr.bf16.mxu0 %v5276_v41  ;;  %1305 = vmatprep.subr.bf16.mxu1 %v5286_v43 }
 0x535   : > { %1265 = vmatpush1.bf16.msra.mxu0 %v5292_v45  ;;  %1306 = vmatpush1.bf16.msra.mxu1 %v5302_v47 }
 0x536   : > { %1266 = vmatprep.subr.bf16.mxu0 %v5297_v46  ;;  %1307 = vmatprep.subr.bf16.mxu1 %v5307_v48 }
 0x539   : > { %1267 = vmatpush1.bf16.msra.mxu0 %v5313_v49  ;;  %1308 = vmatpush1.bf16.msra.mxu1 %v5323_v51 }
 0x53a   : > { %1268 = vmatprep.subr.bf16.mxu0 %v5318_v50  ;;  %1309 = vmatprep.subr.bf16.mxu1 %v5328_v52 }
 0x53d   : > { %1269 = vmatpush1.bf16.msra.mxu0 %v5333_v53  ;;  %1310 = vmatpush1.bf16.msra.mxu1 %v5343_v55 }
 0x53e   : > { %1270 = vmatprep.subr.bf16.mxu0 %v5338_v54  ;;  %1311 = vmatprep.subr.bf16.mxu1 %v5348_v56 }
 0x541   : > { %1271 = vmatpush1.bf16.msra.mxu0 %v5353_v57  ;;  %1312 = vmatpush1.bf16.msra.mxu1 %v5363_v59 }
 0x542   : > { %1272 = vmatprep.subr.bf16.mxu0 %v5358_v58  ;;  %1313 = vmatprep.subr.bf16.mxu1 %v5368_v60 }
 0x545   : > { %1273 = vmatpush1.bf16.msra.mxu0 %v5373_v61  ;;  %1314 = vmatpush1.bf16.msra.mxu1 %v5383_v63 }
 0x546   : > { %1274 = vmatprep.subr.bf16.mxu0 %v5378_v62  ;;  %1315 = vmatprep.subr.bf16.mxu1 %v5388_v44 }
 0x549   : > { %1275 = vmatpush1.bf16.msra.mxu0 %v5393_v4  ;;  %1316 = vmatpush1.bf16.msra.mxu1 %v5399_v5 }
 0x54c   : > { %1293 = vmatmul.mubr.bf16.vlgmr.msra.gmra.mxu0 %v1259_v6  ;;  %1334 = vmatmul.mubr.bf16.vlgmr.msra.gmra.mxu1 %v1259_v6 }
 0x60c   : > { %v1294_v11 = vpop.f32.mrf.mxu0  ;;  %v1335_v12 = vpop.f32.mrf.mxu1 }
 0x60d   : > { %v1342_v14 = vadd.f32 %v1294_v11, %v1255_v32  ;;  %v1344_v9 = vadd.f32 %v1335_v12, %v1257_v13 }
 0x60e   : > { %v1296_v33 = vpop.f32.mrf.mxu0  ;;  %v1337_v2 = vpop.f32.mrf.mxu1 }
 0x60f   : > { %v3848_v1 = vmul.f32 -1.442695, %v1342_v14  ;;  %v1343_v20 = vadd.f32 %v1296_v33, %v1256_v10  ;;  %v1345_v0 = vadd.f32 %v1337_v2, %v1258_v17 }
 0x610   : > { %v1298_v15 = vpop.f32.mrf.mxu0  ;;  %v1339_v8 = vpop.f32.mrf.mxu1 }
 0x611   : > { %4219 = vpow2.f32 %v3848_v1  ;;  %v3849_v16 = vmul.f32 -1.442695, %v1343_v20  ;;  %v3850_v3 = vmul.f32 -1.442695, %v1345_v0 }
 0x612   : > { %v1299_v21 = vpop.f32.mrf.mxu0  ;;  %v1340_v23 = vpop.f32.mrf.mxu1 }
 0x613   : > { %4221 = vpow2.f32 %v3849_v16 }
 0x614   : > { %4223 = vtanh.f32 %v1344_v9 }
 0x615   : > { %4225 = vpow2.f32 %v3850_v3 }
 0x61e   : > { %v4220_v6 = vpop.eup %4219 }
 0x61f   : > { %v1349_v19 = vadd.f32 1.0, %v4220_v6 }
 0x620   : > { %v4222_v32 = vpop.eup %4221 }
 0x621   : > { %4227 = vrcp.f32 %v1349_v19  ;;  %v1355_v10 = vadd.f32 1.0, %v4222_v32  ;;  %v4224_v11 = vpop.eup %4223 }
 0x622   : > { %v4226_v14 = vpop.eup %4225 }
 0x623   : > { %4229 = vrcp.f32 %v1355_v10  ;;  %v1362_v20 = vadd.f32 1.0, %v4226_v14 }
 0x625   : > { %4231 = vrcp.f32 %v1362_v20 }
 0x62e   : > { %v4228_v33 = vpop.eup %4227 }
 0x62f   : > { %v1366_v8 = vmul.f32 %v4228_v33, %v4224_v11 }
 0x630   : > { %v4230_v1 = vpop.eup %4229 }
 0x631   : > { %v1365_v15 = vmul.f32 %v4230_v1, %v5535_v7 }
 0x632   : > { %v4232_v12 = vpop.eup %4231 }
 0x633   : > { %v5577_v16 = vadd.f32 %v1366_v8, %v1365_v15 }
 0x635   : > { %4233 = vtanh.f32 %v5577_v16 }
 0x63f   : > { %1372 = sbr.rel (%p3831_p2) target bundleno = 1606 (0x646), region = 108 }
 0x642   : > { %v4234_v2 = vpop.eup %4233 }
 0x643   : > { %v1369_v18 = vmul.f32 %v4234_v2, %v4232_v12 }
 0x645   : > { %1374 = vst [vmem:[#allocation15 + $0x20] sm:$0xff] %v1369_v18 }
 0x646 PF: > { %1377 = sbr.rel (%p3832_p6) target bundleno = 1614 (0x64e), region = 112 }
 0x64b   : > { %v1378_v21 = vpack.c.bf16 %v1369_v18, %v1369_v18 }
 0x64d   : > { %1380 = vst [vmem:[#allocation3 + $0x10] sm:$0xf] %v1378_v21 }
 0x64e PF: > { %1389 = vmatprep.subr.bf16.mxu0 %v5244_v34  ;;  %1430 = vmatprep.subr.bf16.mxu1 %v5256_v37  ;;  %v6486_v7 = vmov 0   ;;  %v1388_v23 = vpack.c.bf16 %v1369_v18, %v1369_v18  ;;  %v1382_v17 = vld [vmem:[#allocation4 + $0x50] sm:$0xff]  ;;  %v1383_v20 = vld [vmem:[#allocation4 + $0x58] sm:$0xff] }
 0x64f   : > { %1390 = vmatpush1.bf16.msra.mxu0 %v5248_v35  ;;  %1431 = vmatpush1.bf16.msra.mxu1 %v5261_v38  ;;  %v1384_v13 = vunpack.c.l.bf16 %v1382_v17  ;;  %v1385_v0 = vunpack.c.h.bf16 %v1382_v17  ;;  %v1387_v12 = vunpack.c.h.bf16 %v1383_v20  ;;  %v1386_v2 = vunpack.c.l.bf16 %v1383_v20 }
 0x650   : > { %1391 = vmatprep.subr.bf16.mxu0 %v5252_v36  ;;  %1432 = vmatprep.subr.bf16.mxu1 %v5265_v39 }
 0x651   : > { %1421 = vmatprep.mubr.bf16.mxu0 %v6486_v7  ;;  %1462 = vmatprep.mubr.bf16.mxu1 %v6486_v7 }
 0x653   : > { %1392 = vmatpush1.bf16.msra.mxu0 %v5270_v40  ;;  %1433 = vmatpush1.bf16.msra.mxu1 %v5281_v42 }
 0x654   : > { %1393 = vmatprep.subr.bf16.mxu0 %v5276_v41  ;;  %1434 = vmatprep.subr.bf16.mxu1 %v5286_v43 }
 0x657   : > { %1394 = vmatpush1.bf16.msra.mxu0 %v5292_v45  ;;  %1435 = vmatpush1.bf16.msra.mxu1 %v5302_v47 }
 0x658   : > { %1395 = vmatprep.subr.bf16.mxu0 %v5297_v46  ;;  %1436 = vmatprep.subr.bf16.mxu1 %v5307_v48 }
 0x65b   : > { %1396 = vmatpush1.bf16.msra.mxu0 %v5313_v49  ;;  %1437 = vmatpush1.bf16.msra.mxu1 %v5323_v51 }
 0x65c   : > { %1397 = vmatprep.subr.bf16.mxu0 %v5318_v50  ;;  %1438 = vmatprep.subr.bf16.mxu1 %v5328_v52 }
 0x65f   : > { %1398 = vmatpush1.bf16.msra.mxu0 %v5333_v53  ;;  %1439 = vmatpush1.bf16.msra.mxu1 %v5343_v55 }
 0x660   : > { %1399 = vmatprep.subr.bf16.mxu0 %v5338_v54  ;;  %1440 = vmatprep.subr.bf16.mxu1 %v5348_v56 }
 0x663   : > { %1400 = vmatpush1.bf16.msra.mxu0 %v5353_v57  ;;  %1441 = vmatpush1.bf16.msra.mxu1 %v5363_v59 }
 0x664   : > { %1401 = vmatprep.subr.bf16.mxu0 %v5358_v58  ;;  %1442 = vmatprep.subr.bf16.mxu1 %v5368_v60 }
 0x667   : > { %1402 = vmatpush1.bf16.msra.mxu0 %v5373_v61  ;;  %1443 = vmatpush1.bf16.msra.mxu1 %v5383_v63 }
 0x668   : > { %1403 = vmatprep.subr.bf16.mxu0 %v5378_v62  ;;  %1444 = vmatprep.subr.bf16.mxu1 %v5388_v44 }
 0x66b   : > { %1404 = vmatpush1.bf16.msra.mxu0 %v5393_v4  ;;  %1445 = vmatpush1.bf16.msra.mxu1 %v5399_v5 }
 0x66e   : > { %1422 = vmatmul.mubr.bf16.vlgmr.msra.gmra.mxu0 %v1388_v23  ;;  %1463 = vmatmul.mubr.bf16.vlgmr.msra.gmra.mxu1 %v1388_v23 }
 0x72e   : > { %v1423_v9 = vpop.f32.mrf.mxu0  ;;  %v1464_v3 = vpop.f32.mrf.mxu1 }
 0x72f   : > { %v1471_v6 = vadd.f32 %v1423_v9, %v1384_v13  ;;  %v1473_v21 = vadd.f32 %v1464_v3, %v1386_v2 }
 0x730   : > { %v1425_v19 = vpop.f32.mrf.mxu0  ;;  %v1466_v32 = vpop.f32.mrf.mxu1 }
 0x731   : > { %v3853_v10 = vmul.f32 -1.442695, %v1471_v6  ;;  %v1472_v11 = vadd.f32 %v1425_v19, %v1385_v0  ;;  %v1474_v18 = vadd.f32 %v1466_v32, %v1387_v12 }
 0x732   : > { %v1427_v14 = vpop.f32.mrf.mxu0  ;;  %v1468_v33 = vpop.f32.mrf.mxu1 }
 0x733   : > { %4235 = vpow2.f32 %v3853_v10  ;;  %v3854_v1 = vmul.f32 -1.442695, %v1472_v11  ;;  %v3855_v7 = vmul.f32 -1.442695, %v1474_v18 }
 0x734   : > { %v1428_v15 = vpop.f32.mrf.mxu0  ;;  %v1469_v8 = vpop.f32.mrf.mxu1 }
 0x735   : > { %4237 = vpow2.f32 %v3854_v1 }
 0x736   : > { %4239 = vtanh.f32 %v1473_v21 }
 0x737   : > { %4241 = vpow2.f32 %v3855_v7 }
 0x740   : > { %v4236_v23 = vpop.eup %4235 }
 0x741   : > { %v1478_v17 = vadd.f32 1.0, %v4236_v23 }
 0x742   : > { %v4238_v13 = vpop.eup %4237 }
 0x743   : > { %4243 = vrcp.f32 %v1478_v17  ;;  %v1484_v0 = vadd.f32 1.0, %v4238_v13  ;;  %v4240_v9 = vpop.eup %4239 }
 0x744   : > { %v4242_v6 = vpop.eup %4241 }
 0x745   : > { %4245 = vrcp.f32 %v1484_v0  ;;  %v1491_v11 = vadd.f32 1.0, %v4242_v6 }
 0x747   : > { %4247 = vrcp.f32 %v1491_v11 }
 0x750   : > { %v4244_v19 = vpop.eup %4243 }
 0x751   : > { %v1495_v33 = vmul.f32 %v4244_v19, %v4240_v9 }
 0x752   : > { %v4246_v10 = vpop.eup %4245 }
 0x753   : > { %v1494_v14 = vmul.f32 %v4246_v10, %v5577_v16 }
 0x754   : > { %v4248_v3 = vpop.eup %4247 }
 0x755   : > { %v5619_v1 = vadd.f32 %v1495_v33, %v1494_v14 }
 0x757   : > { %4249 = vtanh.f32 %v5619_v1 }
 0x761   : > { %1501 = sbr.rel (%p3831_p2) target bundleno = 1896 (0x768), region = 116 }
 0x764   : > { %v4250_v32 = vpop.eup %4249 }
 0x765   : > { %v1498_v20 = vmul.f32 %v4250_v32, %v4248_v3 }
 0x767   : > { %1503 = vst [vmem:[#allocation15 + $0x28] sm:$0xff] %v1498_v20 }
 0x768 PF: > { %1506 = sbr.rel (%p3832_p6) target bundleno = 1904 (0x770), region = 120 }
 0x76d   : > { %v1507_v15 = vpack.c.bf16 %v1498_v20, %v1498_v20 }
 0x76f   : > { %1509 = vst [vmem:[#allocation3 + $0x14] sm:$0xf] %v1507_v15 }
 0x770 PF: > { %1518 = vmatprep.subr.bf16.mxu0 %v5244_v34  ;;  %1559 = vmatprep.subr.bf16.mxu1 %v5256_v37  ;;  %v6487_v16 = vmov 0   ;;  %v1517_v8 = vpack.c.bf16 %v1498_v20, %v1498_v20  ;;  %v1511_v12 = vld [vmem:[#allocation4 + $0x60] sm:$0xff]  ;;  %v1512_v11 = vld [vmem:[#allocation4 + $0x68] sm:$0xff] }
 0x771   : > { %1519 = vmatpush1.bf16.msra.mxu0 %v5248_v35  ;;  %1560 = vmatpush1.bf16.msra.mxu1 %v5261_v38  ;;  %v1513_v2 = vunpack.c.l.bf16 %v1511_v12  ;;  %v1514_v18 = vunpack.c.h.bf16 %v1511_v12  ;;  %v1516_v3 = vunpack.c.h.bf16 %v1512_v11  ;;  %v1515_v32 = vunpack.c.l.bf16 %v1512_v11 }
 0x772   : > { %1520 = vmatprep.subr.bf16.mxu0 %v5252_v36  ;;  %1561 = vmatprep.subr.bf16.mxu1 %v5265_v39 }
 0x773   : > { %1550 = vmatprep.mubr.bf16.mxu0 %v6487_v16  ;;  %1591 = vmatprep.mubr.bf16.mxu1 %v6487_v16 }
 0x775   : > { %1521 = vmatpush1.bf16.msra.mxu0 %v5270_v40  ;;  %1562 = vmatpush1.bf16.msra.mxu1 %v5281_v42 }
 0x776   : > { %1522 = vmatprep.subr.bf16.mxu0 %v5276_v41  ;;  %1563 = vmatprep.subr.bf16.mxu1 %v5286_v43 }
 0x779   : > { %1523 = vmatpush1.bf16.msra.mxu0 %v5292_v45  ;;  %1564 = vmatpush1.bf16.msra.mxu1 %v5302_v47 }
 0x77a   : > { %1524 = vmatprep.subr.bf16.mxu0 %v5297_v46  ;;  %1565 = vmatprep.subr.bf16.mxu1 %v5307_v48 }
 0x77d   : > { %1525 = vmatpush1.bf16.msra.mxu0 %v5313_v49  ;;  %1566 = vmatpush1.bf16.msra.mxu1 %v5323_v51 }
 0x77e   : > { %1526 = vmatprep.subr.bf16.mxu0 %v5318_v50  ;;  %1567 = vmatprep.subr.bf16.mxu1 %v5328_v52 }
 0x781   : > { %1527 = vmatpush1.bf16.msra.mxu0 %v5333_v53  ;;  %1568 = vmatpush1.bf16.msra.mxu1 %v5343_v55 }
 0x782   : > { %1528 = vmatprep.subr.bf16.mxu0 %v5338_v54  ;;  %1569 = vmatprep.subr.bf16.mxu1 %v5348_v56 }
 0x785   : > { %1529 = vmatpush1.bf16.msra.mxu0 %v5353_v57  ;;  %1570 = vmatpush1.bf16.msra.mxu1 %v5363_v59 }
 0x786   : > { %1530 = vmatprep.subr.bf16.mxu0 %v5358_v58  ;;  %1571 = vmatprep.subr.bf16.mxu1 %v5368_v60 }
 0x789   : > { %1531 = vmatpush1.bf16.msra.mxu0 %v5373_v61  ;;  %1572 = vmatpush1.bf16.msra.mxu1 %v5383_v63 }
 0x78a   : > { %1532 = vmatprep.subr.bf16.mxu0 %v5378_v62  ;;  %1573 = vmatprep.subr.bf16.mxu1 %v5388_v44 }
 0x78d   : > { %1533 = vmatpush1.bf16.msra.mxu0 %v5393_v4  ;;  %1574 = vmatpush1.bf16.msra.mxu1 %v5399_v5 }
 0x790   : > { %1551 = vmatmul.mubr.bf16.vlgmr.msra.gmra.mxu0 %v1517_v8  ;;  %1592 = vmatmul.mubr.bf16.vlgmr.msra.gmra.mxu1 %v1517_v8 }
 0x850   : > { %v1552_v21 = vpop.f32.mrf.mxu0  ;;  %v1593_v7 = vpop.f32.mrf.mxu1 }
 0x851   : > { %v1600_v23 = vadd.f32 %v1552_v21, %v1513_v2  ;;  %v1602_v15 = vadd.f32 %v1593_v7, %v1515_v32 }
 0x852   : > { %v1554_v17 = vpop.f32.mrf.mxu0  ;;  %v1595_v13 = vpop.f32.mrf.mxu1 }
 0x853   : > { %v3858_v0 = vmul.f32 -1.442695, %v1600_v23  ;;  %v1601_v9 = vadd.f32 %v1554_v17, %v1514_v18  ;;  %v1603_v20 = vadd.f32 %v1595_v13, %v1516_v3 }
 0x854   : > { %v1556_v6 = vpop.f32.mrf.mxu0  ;;  %v1597_v19 = vpop.f32.mrf.mxu1 }
 0x855   : > { %4251 = vpow2.f32 %v3858_v0  ;;  %v3859_v10 = vmul.f32 -1.442695, %v1601_v9  ;;  %v3860_v16 = vmul.f32 -1.442695, %v1603_v20 }
 0x856   : > { %v1557_v14 = vpop.f32.mrf.mxu0  ;;  %v1598_v33 = vpop.f32.mrf.mxu1 }
 0x857   : > { %4253 = vpow2.f32 %v3859_v10 }
 0x858   : > { %4255 = vtanh.f32 %v1602_v15 }
 0x859   : > { %4257 = vpow2.f32 %v3860_v16 }
 0x862   : > { %v4252_v8 = vpop.eup %4251 }
 0x863   : > { %v1607_v12 = vadd.f32 1.0, %v4252_v8 }
 0x864   : > { %v4254_v2 = vpop.eup %4253 }
 0x865   : > { %4259 = vrcp.f32 %v1607_v12  ;;  %v1613_v18 = vadd.f32 1.0, %v4254_v2  ;;  %v4256_v21 = vpop.eup %4255 }
 0x866   : > { %v4258_v23 = vpop.eup %4257 }
 0x867   : > { %4261 = vrcp.f32 %v1613_v18  ;;  %v1620_v9 = vadd.f32 1.0, %v4258_v23 }
 0x869   : > { %4263 = vrcp.f32 %v1620_v9 }
 0x872   : > { %v4260_v17 = vpop.eup %4259 }
 0x873   : > { %v1624_v19 = vmul.f32 %v4260_v17, %v4256_v21 }
 0x874   : > { %v4262_v0 = vpop.eup %4261 }
 0x875   : > { %v1623_v6 = vmul.f32 %v4262_v0, %v5619_v1 }
 0x876   : > { %v4264_v7 = vpop.eup %4263 }
 0x877   : > { %v5661_v10 = vadd.f32 %v1624_v19, %v1623_v6 }
 0x879   : > { %4265 = vtanh.f32 %v5661_v10 }
 0x883   : > { %1630 = sbr.rel (%p3831_p2) target bundleno = 2186 (0x88a), region = 124 }
 0x886   : > { %v4266_v13 = vpop.eup %4265 }
 0x887   : > { %v1627_v11 = vmul.f32 %v4266_v13, %v4264_v7 }
 0x889   : > { %1632 = vst [vmem:[#allocation15 + $0x30] sm:$0xff] %v1627_v11 }
 0x88a PF: > { %1635 = sbr.rel (%p3832_p6) target bundleno = 2194 (0x892), region = 128 }
 0x88f   : > { %v1636_v14 = vpack.c.bf16 %v1627_v11, %v1627_v11 }
 0x891   : > { %1638 = vst [vmem:[#allocation3 + $0x18] sm:$0xf] %v1636_v14 }
 0x892 PF: > { %1647 = vmatprep.subr.bf16.mxu0 %v5244_v34  ;;  %1688 = vmatprep.subr.bf16.mxu1 %v5256_v37  ;;  %v6488_v1 = vmov 0   ;;  %v1646_v34 = vpack.c.bf16 %v1627_v11, %v1627_v11 }
 0x893   : > { %1648 = vmatpush1.bf16.msra.mxu0 %v5248_v35  ;;  %1689 = vmatpush1.bf16.msra.mxu1 %v5261_v38  ;;  %v1640_v35 = vld [vmem:[#allocation4 + $0x70] sm:$0xff] }
 0x894   : > { %1649 = vmatprep.subr.bf16.mxu0 %v5252_v36  ;;  %1690 = vmatprep.subr.bf16.mxu1 %v5265_v39  ;;  %v1642_v36 = vunpack.c.l.bf16 %v1640_v35  ;;  %v1643_v37 = vunpack.c.h.bf16 %v1640_v35 }
 0x895   : > { %1679 = vmatprep.mubr.bf16.mxu0 %v6488_v1  ;;  %1720 = vmatprep.mubr.bf16.mxu1 %v6488_v1 }
 0x897   : > { %1650 = vmatpush1.bf16.msra.mxu0 %v5270_v40  ;;  %1691 = vmatpush1.bf16.msra.mxu1 %v5281_v42 }
 0x898   : > { %1651 = vmatprep.subr.bf16.mxu0 %v5276_v41  ;;  %1692 = vmatprep.subr.bf16.mxu1 %v5286_v43 }
 0x89b   : > { %1652 = vmatpush1.bf16.msra.mxu0 %v5292_v45  ;;  %1693 = vmatpush1.bf16.msra.mxu1 %v5302_v47 }
 0x89c   : > { %1653 = vmatprep.subr.bf16.mxu0 %v5297_v46  ;;  %1694 = vmatprep.subr.bf16.mxu1 %v5307_v48  ;;  %v1641_v48 = vld [vmem:[#allocation4 + $0x78] sm:$0xff] }
 0x89f   : > { %1654 = vmatpush1.bf16.msra.mxu0 %v5313_v49  ;;  %1695 = vmatpush1.bf16.msra.mxu1 %v5323_v51 }
 0x8a0   : > { %1655 = vmatprep.subr.bf16.mxu0 %v5318_v50  ;;  %1696 = vmatprep.subr.bf16.mxu1 %v5328_v52  ;;  %v1644_v50 = vunpack.c.l.bf16 %v1641_v48 }
 0x8a3   : > { %1656 = vmatpush1.bf16.msra.mxu0 %v5333_v53  ;;  %1697 = vmatpush1.bf16.msra.mxu1 %v5343_v55 }
 0x8a4   : > { %1657 = vmatprep.subr.bf16.mxu0 %v5338_v54  ;;  %1698 = vmatprep.subr.bf16.mxu1 %v5348_v56 }
 0x8a7   : > { %1658 = vmatpush1.bf16.msra.mxu0 %v5353_v57  ;;  %1699 = vmatpush1.bf16.msra.mxu1 %v5363_v59 }
 0x8a8   : > { %1659 = vmatprep.subr.bf16.mxu0 %v5358_v58  ;;  %1700 = vmatprep.subr.bf16.mxu1 %v5368_v60 }
 0x8ab   : > { %1660 = vmatpush1.bf16.msra.mxu0 %v5373_v61  ;;  %1701 = vmatpush1.bf16.msra.mxu1 %v5383_v63 }
 0x8ac   : > { %1661 = vmatprep.subr.bf16.mxu0 %v5378_v62  ;;  %1702 = vmatprep.subr.bf16.mxu1 %v5388_v44 }
 0x8af   : > { %1662 = vmatpush1.bf16.msra.mxu0 %v5393_v4  ;;  %1703 = vmatpush1.bf16.msra.mxu1 %v5399_v5  ;;  %v1645_v5 = vunpack.c.h.bf16 %v1641_v48 }
 0x8b2   : > { %1680 = vmatmul.mubr.bf16.vlgmr.msra.gmra.mxu0 %v1646_v34  ;;  %1721 = vmatmul.mubr.bf16.vlgmr.msra.gmra.mxu1 %v1646_v34 }
 0x972   : > { %v1681_v38 = vpop.f32.mrf.mxu0  ;;  %v1722_v39 = vpop.f32.mrf.mxu1 }
 0x973   : > { %v1729_v40 = vadd.f32 %v1681_v38, %v1642_v36  ;;  %v1731_v52 = vadd.f32 %v1722_v39, %v1644_v50 }
 0x974   : > { %v1683_v41 = vpop.f32.mrf.mxu0  ;;  %v1724_v42 = vpop.f32.mrf.mxu1 }
 0x975   : > { %v3863_v43 = vmul.f32 -1.442695, %v1729_v40  ;;  %v1730_v45 = vadd.f32 %v1683_v41, %v1643_v37  ;;  %v1732_v51 = vadd.f32 %v1724_v42, %v1645_v5 }
 0x976   : > { %v1685_v46 = vpop.f32.mrf.mxu0  ;;  %v1726_v47 = vpop.f32.mrf.mxu1 }
 0x977   : > { %4267 = vpow2.f32 %v3863_v43  ;;  %v3864_v44 = vmul.f32 -1.442695, %v1730_v45  ;;  %v3865_v53 = vmul.f32 -1.442695, %v1732_v51 }
 0x978   : > { %v1686_v4 = vpop.f32.mrf.mxu0  ;;  %v1727_v49 = vpop.f32.mrf.mxu1 }
 0x979   : > { %4269 = vpow2.f32 %v3864_v44 }
 0x97a   : > { %4271 = vtanh.f32 %v1731_v52 }
 0x97b   : > { %4273 = vpow2.f32 %v3865_v53 }
 0x984   : > { %v4268_v54 = vpop.eup %4267 }
 0x985   : > { %v1736_v55 = vadd.f32 1.0, %v4268_v54 }
 0x986   : > { %v4270_v56 = vpop.eup %4269 }
 0x987   : > { %4275 = vrcp.f32 %v1736_v55  ;;  %v1742_v57 = vadd.f32 1.0, %v4270_v56  ;;  %v4272_v58 = vpop.eup %4271 }
 0x988   : > { %v4274_v59 = vpop.eup %4273 }
 0x989   : > { %4277 = vrcp.f32 %v1742_v57  ;;  %v1749_v62 = vadd.f32 1.0, %v4274_v59 }
 0x98b   : > { %4279 = vrcp.f32 %v1749_v62 }
 0x994   : > { %v4276_v60 = vpop.eup %4275 }
 0x995   : > { %v1753_v33 = vmul.f32 %v4276_v60, %v4272_v58 }
 0x996   : > { %v4278_v61 = vpop.eup %4277 }
 0x997   : > { %v1752_v63 = vmul.f32 %v4278_v61, %v5661_v10 }
 0x998   : > { %v4280_v32 = vpop.eup %4279 }
 0x999   : > { %v1754_v3 = vadd.f32 %v1753_v33, %v1752_v63 }
 0x99b   : > { %4281 = vtanh.f32 %v1754_v3 }
 0x9a5   : > { %1759 = sbr.rel (%p3831_p2) target bundleno = 2476 (0x9ac), region = 132 }
 0x9a8   : > { %v4282_v20 = vpop.eup %4281 }
 0x9a9   : > { %v1756_v15 = vmul.f32 %v4282_v20, %v4280_v32 }
 0x9ab   : > { %1761 = vst [vmem:[#allocation15 + $0x38] sm:$0xff] %v1756_v15 }
 0x9ac PF: > { %1764 = sbr.rel (%p3832_p6) target bundleno = 2484 (0x9b4), region = 136 }
 0x9b1   : > { %v1765_v16 = vpack.c.bf16 %v1756_v15, %v1756_v15 }
 0x9b3   : > { %1767 = vst [vmem:[#allocation3 + $0x1c] sm:$0xf] %v1765_v16 }
 0x9b4 PF: > { %1768 = vst [vmem:[%s5236_s13] sm:$0xff] %v1756_v15  ;;  %1769 = vst [vmem:[%s5239_s2] sm:$0xff] %v1754_v3 }
 0x9b5 PF: > { %p3868_p13 = scmp.le.s32.totalorder %s4792_s10, 0 }
 0x9b6   : > { %p3956_p0 = scmp.ne.s32.totalorder (!%p3868_p13), %s4792_s10, 1 }
 0x9b7   : > { %1773 = sbr.rel (%p3868_p13) target bundleno = 4849 (0x12f1), region = 140 }
 0x9bc   : > { %v4283_v8 = vld [vmem:[%s5103_s18 + $0xe4] ss:$16 sps:$4 sm:$0xff]   ;;  %v4285_v12 = vld [vmem:[%s5103_s18 + $0xec] ss:$16 sps:$4 sm:$0xff]   ;;  %v4811_v2 = vmov 0   ;;  %v5746_v49 = vcombine.high %v5216_v28, %v5222_v30  ;;  %v5750_v5 = vcombine.high %v5219_v29, %v5225_v31  ;;  %v5754_v51 = vcombine.low %v5216_v28, %v5222_v30 }
 0x9bd   : > { %2040 = vmatprep.mubr.bf16.mxu0 %v4811_v2  ;;  %2113 = vmatprep.mubr.bf16.mxu1 %v4811_v2  ;;  %v4287_v18 = vld [vmem:[%s5103_s18 + $0xe0] ss:$16 sps:$4 sm:$0xff]   ;;  %v4288_v21 = vld [vmem:[%s5103_s18 + $0xe8] ss:$16 sps:$4 sm:$0xff]   ;;  %v4289_v23 = vld [vmem:[%s5103_s18 + $0xc4] ss:$16 sps:$4 sm:$0xff]   ;;  %v5758_v52 = vcombine.low %v5219_v29, %v5225_v31  ;;  %v5764_v53 = vcombine.high %v5204_v24, %v5210_v26  ;;  %v5768_v54 = vcombine.high %v5207_v25, %v5213_v27 }
 0x9be   : > { %2008 = vmatprep.subr.bf16.mxu0 %v4283_v8  ;;  %2081 = vmatprep.subr.bf16.mxu1 %v4285_v12  ;;  %v4291_v17 = vld [vmem:[%s5103_s18 + $0xcc] ss:$16 sps:$4 sm:$0xff]   ;;  %v4293_v0 = vld [vmem:[%s5103_s18 + $0xc0] ss:$16 sps:$4 sm:$0xff]   ;;  %v4294_v9 = vld [vmem:[%s5103_s18 + $0xc8] ss:$16 sps:$4 sm:$0xff]   ;;  %v5774_v28 = vcombine.low %v5204_v24, %v5210_v26  ;;  %v5778_v29 = vcombine.low %v5207_v25, %v5213_v27 }
 0x9bf   : > { %2009 = vmatpush1.bf16.msra.mxu0 %v4287_v18  ;;  %2082 = vmatpush1.bf16.msra.mxu1 %v4288_v21  ;;  %v4295_v6 = vld [vmem:[%s5103_s18 + $0xa4] ss:$16 sps:$4 sm:$0xff]   ;;  %v4297_v19 = vld [vmem:[%s5103_s18 + $0xac] ss:$16 sps:$4 sm:$0xff]   ;;  %v4299_v10 = vld [vmem:[%s5103_s18 + $0xa0] ss:$16 sps:$4 sm:$0xff]  }
 0x9c0   : > { %2010 = vmatprep.subr.bf16.mxu0 %v4289_v23  ;;  %2083 = vmatprep.subr.bf16.mxu1 %v4291_v17  ;;  %v4300_v7 = vld [vmem:[%s5103_s18 + $0xa8] ss:$16 sps:$4 sm:$0xff]   ;;  %v4301_v13 = vld [vmem:[%s5103_s18 + $0x84] ss:$16 sps:$4 sm:$0xff]   ;;  %v4303_v11 = vld [vmem:[%s5103_s18 + $0x8c] ss:$16 sps:$4 sm:$0xff]  }
 0x9c1   : > { %v4305_v14 = vld [vmem:[%s5103_s18 + $0x80] ss:$16 sps:$4 sm:$0xff]   ;;  %v4306_v1 = vld [vmem:[%s5103_s18 + $0x88] ss:$16 sps:$4 sm:$0xff]   ;;  %v4307_v34 = vld [vmem:[%s5103_s18 + $0x64] ss:$16 sps:$4 sm:$0xff]  }
 0x9c2   : > { %v4309_v35 = vld [vmem:[%s5103_s18 + $0x6c] ss:$16 sps:$4 sm:$0xff]   ;;  %v4311_v36 = vld [vmem:[%s5103_s18 + $0x60] ss:$16 sps:$4 sm:$0xff]   ;;  %v4312_v37 = vld [vmem:[%s5103_s18 + $0x68] ss:$16 sps:$4 sm:$0xff]  }
 0x9c3   : > { %2011 = vmatpush1.bf16.msra.mxu0 %v4293_v0  ;;  %2084 = vmatpush1.bf16.msra.mxu1 %v4294_v9  ;;  %v4313_v38 = vld [vmem:[%s5103_s18 + $0x44] ss:$16 sps:$4 sm:$0xff]   ;;  %v4315_v39 = vld [vmem:[%s5103_s18 + $0x4c] ss:$16 sps:$4 sm:$0xff]   ;;  %v4317_v40 = vld [vmem:[%s5103_s18 + $0x40] ss:$16 sps:$4 sm:$0xff]  }
 0x9c4   : > { %2012 = vmatprep.subr.bf16.mxu0 %v4295_v6  ;;  %2085 = vmatprep.subr.bf16.mxu1 %v4297_v19  ;;  %v4318_v41 = vld [vmem:[%s5103_s18 + $0x48] ss:$16 sps:$4 sm:$0xff]   ;;  %v4319_v42 = vld [vmem:[%s5103_s18 + $0x24] ss:$16 sps:$4 sm:$0xff]   ;;  %v4321_v43 = vld [vmem:[%s5103_s18 + $0x2c] ss:$16 sps:$4 sm:$0xff]  }
 0x9c5   : > { %v4323_v45 = vld [vmem:[%s5103_s18 + $0x20] ss:$16 sps:$4 sm:$0xff]   ;;  %v4324_v46 = vld [vmem:[%s5103_s18 + $0x28] ss:$16 sps:$4 sm:$0xff]   ;;  %v4325_v47 = vld [vmem:[%s5103_s18 + $0x4] ss:$16 sps:$4 sm:$0xff]  }
 0x9c6   : > { %v4327_v44 = vld [vmem:[%s5103_s18 + $0xc] ss:$16 sps:$4 sm:$0xff]   ;;  %v4329_v48 = vld [vmem:[%s5103_s18] ss:$16 sps:$4 sm:$0xff]   ;;  %v4330_v4 = vld [vmem:[%s5103_s18 + $0x8] ss:$16 sps:$4 sm:$0xff]  }
 0x9c7   : > { %2013 = vmatpush1.bf16.msra.mxu0 %v4299_v10  ;;  %2086 = vmatpush1.bf16.msra.mxu1 %v4300_v7  ;;  %v4331_v50 = vld [vmem:[#allocation3] sm:$0xff]   ;;  %v6489_v30 = vld [vmem:[#allocation51_spill] sm:$0xff]  ;;  %v6490_v55 = vld [vmem:[#allocation53_spill] sm:$0xff] }
 0x9c8   : > { %2014 = vmatprep.subr.bf16.mxu0 %v4301_v13  ;;  %2087 = vmatprep.subr.bf16.mxu1 %v4303_v11  ;;  %v5784_v31 = vcombine.high %v6489_v30, %v5198_v22  ;;  %v6491_v56 = vld [vmem:[#allocation52_spill] sm:$0xff]  ;;  %v4332_v24 = vld [vmem:[#allocation3 + $0x8] sm:$0xff]   ;;  %v5796_v25 = vcombine.low %v6489_v30, %v5198_v22  ;;  %v6492_v27 = vld [vmem:[#allocation49_spill] sm:$0xff] }
 0x9c9   : > { %v5788_v57 = vcombine.high %v6491_v56, %v6490_v55  ;;  %v5800_v26 = vcombine.low %v6491_v56, %v6490_v55  ;;  %v6493_v58 = vld [vmem:[#allocation47_spill] sm:$0xff]  ;;  %v6494_v60 = vld [vmem:[#allocation50_spill] sm:$0xff]  ;;  %v6495_v61 = vld [vmem:[#allocation48_spill] sm:$0xff] }
 0x9ca   : > { %v5806_v59 = vcombine.high %v6493_v58, %v6492_v27  ;;  %v5810_v62 = vcombine.high %v6495_v61, %v6494_v60  ;;  %v5816_v22 = vcombine.low %v6493_v58, %v6492_v27  ;;  %v5820_v63 = vcombine.low %v6495_v61, %v6494_v60  ;;  %v6496_v33 = vld [vmem:[#allocation45_spill] sm:$0xff]  ;;  %v6497_v3 = vld [vmem:[#allocation43_spill] sm:$0xff]  ;;  %v6498_v20 = vld [vmem:[#allocation46_spill] sm:$0xff] }
 0x9cb   : > { %2015 = vmatpush1.bf16.msra.mxu0 %v4305_v14  ;;  %2088 = vmatpush1.bf16.msra.mxu1 %v4306_v1  ;;  %v5826_v32 = vcombine.high %v6497_v3, %v6496_v33  ;;  %v6499_v15 = vld [vmem:[#allocation44_spill] sm:$0xff]  ;;  %v5838_v12 = vcombine.low %v6497_v3, %v6496_v33  ;;  %v6500_v21 = vld [vmem:[#allocation41_spill] sm:$0xff]  ;;  %v6501_v23 = vld [vmem:[#allocation39_spill] sm:$0xff] }
 0x9cc   : > { %2016 = vmatprep.subr.bf16.mxu0 %v4307_v34  ;;  %2089 = vmatprep.subr.bf16.mxu1 %v4309_v35  ;;  %v5830_v16 = vcombine.high %v6499_v15, %v6498_v20  ;;  %v4333_v8 = vld [vmem:[#allocation3 + $0x10] sm:$0xff]   ;;  %v5842_v18 = vcombine.low %v6499_v15, %v6498_v20  ;;  %v5848_v17 = vcombine.high %v6501_v23, %v6500_v21  ;;  %v6502_v0 = vld [vmem:[#allocation42_spill] sm:$0xff]  ;;  %v6504_v7 = vld [vmem:[#allocation37_spill] sm:$0xff] }
 0x9cd   : > { %v6503_v9 = vld [vmem:[#allocation40_spill] sm:$0xff]  ;;  %v5858_v19 = vcombine.low %v6501_v23, %v6500_v21  ;;  %v6505_v13 = vld [vmem:[#allocation35_spill] sm:$0xff]  ;;  %v6506_v14 = vld [vmem:[#allocation38_spill] sm:$0xff] }
 0x9ce   : > { %v5852_v6 = vcombine.high %v6503_v9, %v6502_v0  ;;  %v5862_v10 = vcombine.low %v6503_v9, %v6502_v0  ;;  %v5868_v11 = vcombine.high %v6505_v13, %v6504_v7  ;;  %v6507_v1 = vld [vmem:[#allocation36_spill] sm:$0xff]  ;;  %v4334_v35 = vld [vmem:[#allocation3 + $0x18] sm:$0xff]  }
 0x9cf   : > { %2017 = vmatpush1.bf16.msra.mxu0 %v4311_v36  ;;  %2090 = vmatpush1.bf16.msra.mxu1 %v4312_v37  ;;  %v5872_v34 = vcombine.high %v6507_v1, %v6506_v14  ;;  %v5880_v36 = vcombine.low %v6505_v13, %v6504_v7  ;;  %v5884_v37 = vcombine.low %v6507_v1, %v6506_v14 }
 0x9d0   : > { %2018 = vmatprep.subr.bf16.mxu0 %v4313_v38  ;;  %2091 = vmatprep.subr.bf16.mxu1 %v4315_v39  ;;  %v6508_v38 = vld [vmem:[#allocation33_spill] sm:$0xff]  ;;  %v6509_v39 = vld [vmem:[#allocation31_spill] sm:$0xff] }
 0x9d3   : > { %2019 = vmatpush1.bf16.msra.mxu0 %v4317_v40  ;;  %2092 = vmatpush1.bf16.msra.mxu1 %v4318_v41  ;;  %v5890_v40 = vcombine.high %v6509_v39, %v6508_v38  ;;  %v6510_v41 = vld [vmem:[#allocation34_spill] sm:$0xff] }
 0x9d4   : > { %2020 = vmatprep.subr.bf16.mxu0 %v4319_v42  ;;  %2093 = vmatprep.subr.bf16.mxu1 %v4321_v43  ;;  %v6511_v42 = vld [vmem:[#allocation32_spill] sm:$0xff] }
 0x9d5   : > { %v5894_v43 = vcombine.high %v6511_v42, %v6510_v41 }
 0x9d7   : > { %2021 = vmatpush1.bf16.msra.mxu0 %v4323_v45  ;;  %2094 = vmatpush1.bf16.msra.mxu1 %v4324_v46  ;;  %v5900_v45 = vcombine.low %v6509_v39, %v6508_v38  ;;  %v5904_v46 = vcombine.low %v6511_v42, %v6510_v41 }
 0x9d8   : > { %2022 = vmatprep.subr.bf16.mxu0 %v4325_v47  ;;  %2095 = vmatprep.subr.bf16.mxu1 %v4327_v44  ;;  %v6512_v47 = vld [vmem:[#allocation54_spill] sm:$0xff] }
 0x9d9   : > { %v2304_v44 = vpack.c.bf16 %v6512_v47, %v6512_v47 }
 0x9db   : > { %2023 = vmatpush1.bf16.msra.mxu0 %v4329_v48  ;;  %2096 = vmatpush1.bf16.msra.mxu1 %v4330_v4  ;;  %v1828_v48 = vlaneseq }
 0x9dc   : > { %2465 = vmatprep.subr.bf16.mxu0 %v5746_v49  ;;  %2506 = vmatprep.subr.bf16.mxu1 %v5750_v5 }
 0x9dd   : > { %v1829_v4 = vshrl.u32 %v1828_v48, 7 }
 0x9de   : > { %2041 = vmatmul.mubr.bf16.vlgmr.msra.gmra.mxu0 %v4331_v50  ;;  %2114 = vmatmul.mubr.bf16.vlgmr.msra.gmra.mxu1 %v4331_v50 }
 0x9df   : > { %2466 = vmatpush1.bf16.msra.mxu0 %v5754_v51  ;;  %2507 = vmatpush1.bf16.msra.mxu1 %v5758_v52  ;;  %v1838_v50 = vsub.s32 2, %v1829_v4  ;;  %v1830_v30 = vsub.s32 0, %v1829_v4  ;;  %v1834_v55 = vsub.s32 1, %v1829_v4  ;;  %v1842_v56 = vsub.s32 3, %v1829_v4 }
 0x9e0   : > { %2467 = vmatprep.subr.bf16.mxu0 %v5764_v53  ;;  %2508 = vmatprep.subr.bf16.mxu1 %v5768_v54 }
 0x9e1   : > { %2050 = vmatprep.mubr.bf16.mxu0 %v4811_v2  ;;  %2123 = vmatprep.mubr.bf16.mxu1 %v4811_v2 }
 0x9e3   : > { %2468 = vmatpush1.bf16.msra.mxu0 %v5774_v28  ;;  %2509 = vmatpush1.bf16.msra.mxu1 %v5778_v29 }
 0x9e4   : > { %2469 = vmatprep.subr.bf16.mxu0 %v5784_v31  ;;  %2510 = vmatprep.subr.bf16.mxu1 %v5788_v57 }
 0x9e6   : > { %2051 = vmatmul.mubr.bf16.gmra.mxu0 %v4332_v24  ;;  %2124 = vmatmul.mubr.bf16.gmra.mxu1 %v4332_v24  ;;  %v1826_v24 = vld [vmem:[%s5117_s22] sm:$0xf] }
 0x9e7   : > { %2470 = vmatpush1.bf16.msra.mxu0 %v5796_v25  ;;  %2511 = vmatpush1.bf16.msra.mxu1 %v5800_v26  ;;  %v5915_v27 = vrot.slane %v1826_v24, %v1838_v50  ;;  %v5917_v58 = vrot.slane %v1826_v24, %v1830_v30  ;;  %v5919_v60 = vrot.slane %v1826_v24, %v1834_v55 }
 0x9e8   : > { %2471 = vmatprep.subr.bf16.mxu0 %v5806_v59  ;;  %2512 = vmatprep.subr.bf16.mxu1 %v5810_v62  ;;  %v5921_v61 = vrot.slane %v1826_v24, %v1842_v56 }
 0x9e9   : > { %2060 = vmatprep.mubr.bf16.mxu0 %v4811_v2  ;;  %2133 = vmatprep.mubr.bf16.mxu1 %v4811_v2 }
 0x9eb   : > { %2472 = vmatpush1.bf16.msra.mxu0 %v5816_v22  ;;  %2513 = vmatpush1.bf16.msra.mxu1 %v5820_v63 }
 0x9ec   : > { %2473 = vmatprep.subr.bf16.mxu0 %v5826_v32  ;;  %2514 = vmatprep.subr.bf16.mxu1 %v5830_v16 }
 0x9ee   : > { %2061 = vmatmul.mubr.bf16.gmra.mxu0 %v4333_v8  ;;  %2134 = vmatmul.mubr.bf16.gmra.mxu1 %v4333_v8 }
 0x9ef   : > { %2474 = vmatpush1.bf16.msra.mxu0 %v5838_v12  ;;  %2515 = vmatpush1.bf16.msra.mxu1 %v5842_v18 }
 0x9f0   : > { %2475 = vmatprep.subr.bf16.mxu0 %v5848_v17  ;;  %2516 = vmatprep.subr.bf16.mxu1 %v5852_v6 }
 0x9f1   : > { %2070 = vmatprep.mubr.bf16.mxu0 %v4811_v2  ;;  %2143 = vmatprep.mubr.bf16.mxu1 %v4811_v2 }
 0x9f3   : > { %2476 = vmatpush1.bf16.msra.mxu0 %v5858_v19  ;;  %2517 = vmatpush1.bf16.msra.mxu1 %v5862_v10 }
 0x9f4   : > { %2477 = vmatprep.subr.bf16.mxu0 %v5868_v11  ;;  %2518 = vmatprep.subr.bf16.mxu1 %v5872_v34 }
 0x9f6   : > { %2071 = vmatmul.mubr.bf16.gmra.mxu0 %v4334_v35  ;;  %2144 = vmatmul.mubr.bf16.gmra.mxu1 %v4334_v35 }
 0x9f7   : > { %2478 = vmatpush1.bf16.msra.mxu0 %v5880_v36  ;;  %2519 = vmatpush1.bf16.msra.mxu1 %v5884_v37 }
 0x9f8   : > { %2479 = vmatprep.subr.bf16.mxu0 %v5890_v40  ;;  %2520 = vmatprep.subr.bf16.mxu1 %v5894_v43 }
 0x9f9   : > { %2497 = vmatprep.mubr.bf16.mxu0 %v4811_v2  ;;  %2538 = vmatprep.mubr.bf16.mxu1 %v4811_v2 }
 0x9fb   : > { %2480 = vmatpush1.bf16.msra.mxu0 %v5900_v45  ;;  %2521 = vmatpush1.bf16.msra.mxu1 %v5904_v46 }
 0x9fe   : > { %2498 = vmatmul.mubr.bf16.vlgmr.msra.gmra.mxu0 %v2304_v44  ;;  %2539 = vmatmul.mubr.bf16.vlgmr.msra.gmra.mxu1 %v2304_v44 }
 0xa9e   : > { %v2042_v33 = vpop.f32.mrf.mxu0  ;;  %v2115_v3 = vpop.f32.mrf.mxu1 }
 0xa9f   : > { %v2116_v20 = vadd.f32 %v2115_v3, %v5915_v27  ;;  %v2043_v21 = vadd.f32 %v2042_v33, %v5917_v58 }
 0xaa0   : > { %v2044_v15 = vpop.f32.mrf.mxu0  ;;  %v2117_v8 = vpop.f32.mrf.mxu1 }
 0xaa1   : > { %v2045_v23 = vadd.f32 %v2044_v15, %v5919_v60  ;;  %v2118_v0 = vadd.f32 %v2117_v8, %v5921_v61 }
 0xaa2   : > { %v2046_v9 = vpop.f32.mrf.mxu0  ;;  %v2119_v7 = vpop.f32.mrf.mxu1 }
 0xaa3   : > { %v5927_v13 = vpack.c.bf16 %v2045_v23, %v2043_v21  ;;  %v5929_v14 = vpack.c.bf16 %v2118_v0, %v2116_v20  ;;  %v2120_v1 = vadd.f32 %v2119_v7, %v5915_v27  ;;  %v2047_v39 = vadd.f32 %v2046_v9, %v5917_v58 }
 0xaa4   : > { %v2048_v35 = vpop.f32.mrf.mxu0  ;;  %v2121_v38 = vpop.f32.mrf.mxu1 }
 0xaa5   : > { %v2049_v41 = vadd.f32 %v2048_v35, %v5919_v60  ;;  %v2122_v42 = vadd.f32 %v2121_v38, %v5921_v61 }
 0xaa6   : > { %v2052_v47 = vpop.f32.mrf.mxu0  ;;  %v2125_v44 = vpop.f32.mrf.mxu1 }
 0xaa7   : > { %v4006_v48 = vpack.c.bf16 %v2049_v41, %v2047_v39  ;;  %v4007_v4 = vpack.c.bf16 %v2122_v42, %v2120_v1  ;;  %v2126_v50 = vadd.f32 %v2125_v44, %v5915_v27  ;;  %v2053_v56 = vadd.f32 %v2052_v47, %v5917_v58 }
 0xaa8   : > { %v2054_v30 = vpop.f32.mrf.mxu0  ;;  %v2127_v55 = vpop.f32.mrf.mxu1 }
 0xaa9   : > { %2284 = vst [vmem:[#allocation2 + $0x58] sm:$0xff] %v4006_v48  ;;  %2285 = vst [vmem:[#allocation2 + $0x18] sm:$0xff] %v4007_v4  ;;  %v2055_v24 = vadd.f32 %v2054_v30, %v5919_v60  ;;  %v2128_v33 = vadd.f32 %v2127_v55, %v5921_v61 }
 0xaaa   : > { %v2056_v3 = vpop.f32.mrf.mxu0  ;;  %v2129_v20 = vpop.f32.mrf.mxu1 }
 0xaab   : > { %v4008_v15 = vpack.c.bf16 %v2055_v24, %v2053_v56  ;;  %v4009_v8 = vpack.c.bf16 %v2128_v33, %v2126_v50  ;;  %v2130_v21 = vadd.f32 %v2129_v20, %v5915_v27  ;;  %v2057_v9 = vadd.f32 %v2056_v3, %v5917_v58 }
 0xaac   : > { %v2058_v23 = vpop.f32.mrf.mxu0  ;;  %v2131_v0 = vpop.f32.mrf.mxu1 }
 0xaad   : > { %2286 = vst [vmem:[#allocation2 + $0x50] sm:$0xff] %v4008_v15  ;;  %2287 = vst [vmem:[#allocation2 + $0x68] sm:$0xff] %v4009_v8  ;;  %v2059_v7 = vadd.f32 %v2058_v23, %v5919_v60  ;;  %v2132_v1 = vadd.f32 %v2131_v0, %v5921_v61 }
 0xaae   : > { %v2062_v35 = vpop.f32.mrf.mxu0  ;;  %v2135_v38 = vpop.f32.mrf.mxu1 }
 0xaaf   : > { %v4010_v39 = vpack.c.bf16 %v2059_v7, %v2057_v9  ;;  %v4011_v41 = vpack.c.bf16 %v2132_v1, %v2130_v21  ;;  %v2136_v42 = vadd.f32 %v2135_v38, %v5915_v27  ;;  %v2063_v48 = vadd.f32 %v2062_v35, %v5917_v58 }
 0xab0   : > { %v2064_v47 = vpop.f32.mrf.mxu0  ;;  %v2137_v44 = vpop.f32.mrf.mxu1 }
 0xab1   : > { %2288 = vst [vmem:[#allocation2 + $0x8] sm:$0xff] %v4010_v39  ;;  %2289 = vst [vmem:[#allocation2 + $0x48] sm:$0xff] %v4011_v41  ;;  %v2065_v4 = vadd.f32 %v2064_v47, %v5919_v60  ;;  %v2138_v50 = vadd.f32 %v2137_v44, %v5921_v61 }
 0xab2   : > { %v2066_v30 = vpop.f32.mrf.mxu0  ;;  %v2139_v55 = vpop.f32.mrf.mxu1 }
 0xab3   : > { %v4012_v56 = vpack.c.bf16 %v2065_v4, %v2063_v48  ;;  %v4013_v24 = vpack.c.bf16 %v2138_v50, %v2136_v42  ;;  %v2140_v33 = vadd.f32 %v2139_v55, %v5915_v27  ;;  %v2067_v15 = vadd.f32 %v2066_v30, %v5917_v58 }
 0xab4   : > { %v2068_v3 = vpop.f32.mrf.mxu0  ;;  %v2141_v20 = vpop.f32.mrf.mxu1 }
 0xab5   : > { %2290 = vst [vmem:[#allocation2 + $0x40] sm:$0xff] %v4012_v56  ;;  %2291 = vst [vmem:[#allocation2 + $0x20] sm:$0xff] %v4013_v24  ;;  %v2069_v8 = vadd.f32 %v2068_v3, %v5919_v60  ;;  %v2142_v21 = vadd.f32 %v2141_v20, %v5921_v61  ;;  %v2300_v3 = vunpack.c.l.bf16 %v5927_v13 }
 0xab6   : > { %v2072_v23 = vpop.f32.mrf.mxu0  ;;  %v2145_v0 = vpop.f32.mrf.mxu1 }
 0xab7   : > { %v4014_v9 = vpack.c.bf16 %v2069_v8, %v2067_v15  ;;  %v4015_v7 = vpack.c.bf16 %v2142_v21, %v2140_v33  ;;  %v2146_v1 = vadd.f32 %v2145_v0, %v5915_v27  ;;  %v2073_v39 = vadd.f32 %v2072_v23, %v5917_v58 }
 0xab8   : > { %v2074_v35 = vpop.f32.mrf.mxu0  ;;  %v2147_v38 = vpop.f32.mrf.mxu1  ;;  %v2301_v0 = vunpack.c.h.bf16 %v5927_v13 }
 0xab9   : > { %2292 = vst [vmem:[#allocation2 + $0x10] sm:$0xff] %v4014_v9  ;;  %2293 = vst [vmem:[#allocation2 + $0x38] sm:$0xff] %v4015_v7  ;;  %v2075_v41 = vadd.f32 %v2074_v35, %v5919_v60  ;;  %v2148_v42 = vadd.f32 %v2147_v38, %v5921_v61 }
 0xaba   : > { %v2076_v47 = vpop.f32.mrf.mxu0  ;;  %v2149_v44 = vpop.f32.mrf.mxu1 }
 0xabb   : > { %v4016_v48 = vpack.c.bf16 %v2075_v41, %v2073_v39  ;;  %v4017_v4 = vpack.c.bf16 %v2148_v42, %v2146_v1  ;;  %v2150_v50 = vadd.f32 %v2149_v44, %v5915_v27  ;;  %v2077_v56 = vadd.f32 %v2076_v47, %v5917_v58 }
 0xabc   : > { %v2078_v30 = vpop.f32.mrf.mxu0  ;;  %v2151_v55 = vpop.f32.mrf.mxu1  ;;  %v2303_v39 = vunpack.c.h.bf16 %v5929_v14  ;;  %v2302_v42 = vunpack.c.l.bf16 %v5929_v14 }
 0xabd   : > { %2294 = vst [vmem:[#allocation2 + $0x60] sm:$0xff] %v4016_v48  ;;  %2295 = vst [vmem:[#allocation2 + $0x70] sm:$0xff] %v4017_v4  ;;  %v2079_v24 = vadd.f32 %v2078_v30, %v5919_v60  ;;  %v2152_v33 = vadd.f32 %v2151_v55, %v5921_v61 }
 0xabe   : > { %v2499_v20 = vpop.f32.mrf.mxu0  ;;  %v2540_v15 = vpop.f32.mrf.mxu1 }
 0xabf   : > { %v4018_v8 = vpack.c.bf16 %v2079_v24, %v2077_v56  ;;  %v4019_v21 = vpack.c.bf16 %v2152_v33, %v2150_v50  ;;  %v2547_v23 = vadd.f32 %v2499_v20, %v2300_v3  ;;  %v2549_v44 = vadd.f32 %v2540_v15, %v2302_v42  ;;  %v6513_v3 = vld [vmem:[#allocation55_spill] sm:$0xff] }
 0xac0   : > { %v2501_v27 = vpop.f32.mrf.mxu0  ;;  %v2542_v9 = vpop.f32.mrf.mxu1 }
 0xac1   : > { %2296 = vst [vmem:[#allocation2 + $0x78] sm:$0xff] %v4018_v8  ;;  %2297 = vst [vmem:[#allocation2 + $0x28] sm:$0xff] %v4019_v21  ;;  %v3953_v7 = vmul.f32 -1.442695, %v2547_v23  ;;  %v2548_v1 = vadd.f32 %v2501_v27, %v2301_v0  ;;  %v2550_v41 = vadd.f32 %v2542_v9, %v2303_v39 }
 0xac2   : > { %v2503_v58 = vpop.f32.mrf.mxu0  ;;  %v2544_v35 = vpop.f32.mrf.mxu1 }
 0xac3   : > { %4335 = vpow2.f32 %v3953_v7  ;;  %v3954_v60 = vmul.f32 -1.442695, %v2548_v1  ;;  %v3955_v47 = vmul.f32 -1.442695, %v2550_v41 }
 0xac4   : > { %v2504_v61 = vpop.f32.mrf.mxu0  ;;  %v2545_v38 = vpop.f32.mrf.mxu1 }
 0xac5   : > { %4337 = vpow2.f32 %v3954_v60 }
 0xac6   : > { %4339 = vpow2.f32 %v3955_v47 }
 0xad0   : > { %v4336_v13 = vpop.eup %4335 }
 0xad1   : > { %v2554_v48 = vadd.f32 1.0, %v4336_v13 }
 0xad2   : > { %v4338_v4 = vpop.eup %4337 }
 0xad3   : > { %4341 = vrcp.f32 %v2554_v48  ;;  %v2560_v50 = vadd.f32 1.0, %v4338_v4  ;;  %v4340_v30 = vpop.eup %4339 }
 0xad4   : > { %4343 = vtanh.f32 %v2549_v44  ;;  %v2567_v33 = vadd.f32 1.0, %v4340_v30 }
 0xad5   : > { %4345 = vrcp.f32 %v2560_v50 }
 0xad6   : > { %4347 = vrcp.f32 %v2567_v33 }
 0xae0   : > { %v4342_v55 = vpop.eup %4341 }
 0xae1   : > { %v4344_v56 = vpop.eup %4343 }
 0xae2   : > { %v4346_v24 = vpop.eup %4345  ;;  %v2571_v8 = vmul.f32 %v4344_v56, %v4342_v55 }
 0xae3   : > { %v2570_v20 = vmul.f32 %v4346_v24, %v6513_v3  ;;  %v4348_v14 = vpop.eup %4347 }
 0xae5   : > { %v5964_v21 = vadd.f32 %v2571_v8, %v2570_v20 }
 0xae7   : > { %4349 = vtanh.f32 %v5964_v21 }
 0xaf1   : > { %2577 = sbr.rel (%p3956_p0) target bundleno = 2808 (0xaf8), region = 144 }
 0xaf4   : > { %v4350_v15 = vpop.eup %4349 }
 0xaf5   : > { %v2574_v23 = vmul.f32 %v4350_v15, %v4348_v14 }
 0xaf7   : > { %2578 = vst [vmem:[#allocation15] sm:$0xff] %v2574_v23 }
 0xaf8 PF: > { %p3957_p1 = scmp.eq.s32.totalorder %s4792_s10, 1 }
 0xafa   : > { %2582 = sbr.rel (%p3957_p1) target bundleno = 2818 (0xb02), region = 148 }
 0xaff   : > { %v2583_v0 = vpack.c.bf16 %v2574_v23, %v2574_v23 }
 0xb01   : > { %2584 = vst [vmem:[#allocation3] sm:$0xf] %v2583_v0 }
 0xb02 PF: > { %2593 = vmatprep.subr.bf16.mxu0 %v5746_v49  ;;  %2634 = vmatprep.subr.bf16.mxu1 %v5750_v5  ;;  %v2592_v27 = vpack.c.bf16 %v2574_v23, %v2574_v23  ;;  %v2586_v9 = vld [vmem:[#allocation2 + $0x58] sm:$0xff] }
 0xb03   : > { %2594 = vmatpush1.bf16.msra.mxu0 %v5754_v51  ;;  %2635 = vmatpush1.bf16.msra.mxu1 %v5758_v52  ;;  %v2588_v7 = vunpack.c.l.bf16 %v2586_v9  ;;  %v2589_v1 = vunpack.c.h.bf16 %v2586_v9  ;;  %v2587_v44 = vld [vmem:[#allocation2 + $0x18] sm:$0xff] }
 0xb04   : > { %2595 = vmatprep.subr.bf16.mxu0 %v5764_v53  ;;  %2636 = vmatprep.subr.bf16.mxu1 %v5768_v54  ;;  %v2591_v50 = vunpack.c.h.bf16 %v2587_v44  ;;  %v2590_v30 = vunpack.c.l.bf16 %v2587_v44 }
 0xb05   : > { %2625 = vmatprep.mubr.bf16.mxu0 %v4811_v2  ;;  %2666 = vmatprep.mubr.bf16.mxu1 %v4811_v2 }
 0xb07   : > { %2596 = vmatpush1.bf16.msra.mxu0 %v5774_v28  ;;  %2637 = vmatpush1.bf16.msra.mxu1 %v5778_v29 }
 0xb08   : > { %2597 = vmatprep.subr.bf16.mxu0 %v5784_v31  ;;  %2638 = vmatprep.subr.bf16.mxu1 %v5788_v57 }
 0xb0b   : > { %2598 = vmatpush1.bf16.msra.mxu0 %v5796_v25  ;;  %2639 = vmatpush1.bf16.msra.mxu1 %v5800_v26 }
 0xb0c   : > { %2599 = vmatprep.subr.bf16.mxu0 %v5806_v59  ;;  %2640 = vmatprep.subr.bf16.mxu1 %v5810_v62 }
 0xb0f   : > { %2600 = vmatpush1.bf16.msra.mxu0 %v5816_v22  ;;  %2641 = vmatpush1.bf16.msra.mxu1 %v5820_v63 }
 0xb10   : > { %2601 = vmatprep.subr.bf16.mxu0 %v5826_v32  ;;  %2642 = vmatprep.subr.bf16.mxu1 %v5830_v16 }
 0xb13   : > { %2602 = vmatpush1.bf16.msra.mxu0 %v5838_v12  ;;  %2643 = vmatpush1.bf16.msra.mxu1 %v5842_v18 }
 0xb14   : > { %2603 = vmatprep.subr.bf16.mxu0 %v5848_v17  ;;  %2644 = vmatprep.subr.bf16.mxu1 %v5852_v6 }
 0xb17   : > { %2604 = vmatpush1.bf16.msra.mxu0 %v5858_v19  ;;  %2645 = vmatpush1.bf16.msra.mxu1 %v5862_v10 }
 0xb18   : > { %2605 = vmatprep.subr.bf16.mxu0 %v5868_v11  ;;  %2646 = vmatprep.subr.bf16.mxu1 %v5872_v34 }
 0xb1b   : > { %2606 = vmatpush1.bf16.msra.mxu0 %v5880_v36  ;;  %2647 = vmatpush1.bf16.msra.mxu1 %v5884_v37 }
 0xb1c   : > { %2607 = vmatprep.subr.bf16.mxu0 %v5890_v40  ;;  %2648 = vmatprep.subr.bf16.mxu1 %v5894_v43 }
 0xb1f   : > { %2608 = vmatpush1.bf16.msra.mxu0 %v5900_v45  ;;  %2649 = vmatpush1.bf16.msra.mxu1 %v5904_v46 }
 0xb22   : > { %2626 = vmatmul.mubr.bf16.vlgmr.msra.gmra.mxu0 %v2592_v27  ;;  %2667 = vmatmul.mubr.bf16.vlgmr.msra.gmra.mxu1 %v2592_v27 }
 0xbe2   : > { %v2627_v58 = vpop.f32.mrf.mxu0  ;;  %v2668_v35 = vpop.f32.mrf.mxu1 }
 0xbe3   : > { %v2675_v60 = vadd.f32 %v2627_v58, %v2588_v7  ;;  %v2677_v56 = vadd.f32 %v2668_v35, %v2590_v30 }
 0xbe4   : > { %v2629_v61 = vpop.f32.mrf.mxu0  ;;  %v2670_v38 = vpop.f32.mrf.mxu1 }
 0xbe5   : > { %v3958_v39 = vmul.f32 -1.442695, %v2675_v60  ;;  %v2676_v41 = vadd.f32 %v2629_v61, %v2589_v1  ;;  %v2678_v55 = vadd.f32 %v2670_v38, %v2591_v50 }
 0xbe6   : > { %v2631_v42 = vpop.f32.mrf.mxu0  ;;  %v2672_v47 = vpop.f32.mrf.mxu1 }
 0xbe7   : > { %4351 = vpow2.f32 %v3958_v39  ;;  %v3959_v13 = vmul.f32 -1.442695, %v2676_v41  ;;  %v3960_v24 = vmul.f32 -1.442695, %v2678_v55 }
 0xbe8   : > { %v2632_v48 = vpop.f32.mrf.mxu0  ;;  %v2673_v4 = vpop.f32.mrf.mxu1 }
 0xbe9   : > { %4353 = vpow2.f32 %v3959_v13 }
 0xbea   : > { %4355 = vtanh.f32 %v2677_v56 }
 0xbeb   : > { %4357 = vpow2.f32 %v3960_v24 }
 0xbf4   : > { %v4352_v33 = vpop.eup %4351 }
 0xbf5   : > { %v2682_v3 = vadd.f32 1.0, %v4352_v33 }
 0xbf6   : > { %v4354_v20 = vpop.eup %4353 }
 0xbf7   : > { %4359 = vrcp.f32 %v2682_v3  ;;  %v2688_v8 = vadd.f32 1.0, %v4354_v20  ;;  %v4356_v14 = vpop.eup %4355 }
 0xbf8   : > { %v4358_v15 = vpop.eup %4357 }
 0xbf9   : > { %4361 = vrcp.f32 %v2688_v8  ;;  %v2695_v27 = vadd.f32 1.0, %v4358_v15 }
 0xbfb   : > { %4363 = vrcp.f32 %v2695_v27 }
 0xc04   : > { %v4360_v23 = vpop.eup %4359 }
 0xc05   : > { %v2699_v7 = vmul.f32 %v4360_v23, %v4356_v14 }
 0xc06   : > { %v4362_v0 = vpop.eup %4361 }
 0xc07   : > { %v2698_v9 = vmul.f32 %v4362_v0, %v5964_v21 }
 0xc08   : > { %v4364_v58 = vpop.eup %4363 }
 0xc09   : > { %v6008_v1 = vadd.f32 %v2699_v7, %v2698_v9 }
 0xc0b   : > { %4365 = vtanh.f32 %v6008_v1 }
 0xc15   : > { %2705 = sbr.rel (%p3956_p0) target bundleno = 3100 (0xc1c), region = 152 }
 0xc18   : > { %v4366_v35 = vpop.eup %4365 }
 0xc19   : > { %v2702_v60 = vmul.f32 %v4366_v35, %v4364_v58 }
 0xc1b   : > { %2707 = vst [vmem:[#allocation15 + $0x8] sm:$0xff] %v2702_v60 }
 0xc1c PF: > { %2710 = sbr.rel (%p3957_p1) target bundleno = 3108 (0xc24), region = 156 }
 0xc21   : > { %v2711_v61 = vpack.c.bf16 %v2702_v60, %v2702_v60 }
 0xc23   : > { %2713 = vst [vmem:[#allocation3 + $0x4] sm:$0xf] %v2711_v61 }
 0xc24 PF: > { %2722 = vmatprep.subr.bf16.mxu0 %v5746_v49  ;;  %2763 = vmatprep.subr.bf16.mxu1 %v5750_v5  ;;  %v2721_v21 = vpack.c.bf16 %v2702_v60, %v2702_v60  ;;  %v2715_v38 = vld [vmem:[#allocation2 + $0x50] sm:$0xff]  ;;  %v2716_v24 = vld [vmem:[#allocation2 + $0x68] sm:$0xff] }
 0xc25   : > { %2723 = vmatpush1.bf16.msra.mxu0 %v5754_v51  ;;  %2764 = vmatpush1.bf16.msra.mxu1 %v5758_v52  ;;  %v2717_v39 = vunpack.c.l.bf16 %v2715_v38  ;;  %v2718_v41 = vunpack.c.h.bf16 %v2715_v38  ;;  %v2720_v20 = vunpack.c.h.bf16 %v2716_v24  ;;  %v2719_v8 = vunpack.c.l.bf16 %v2716_v24 }
 0xc26   : > { %2724 = vmatprep.subr.bf16.mxu0 %v5764_v53  ;;  %2765 = vmatprep.subr.bf16.mxu1 %v5768_v54 }
 0xc27   : > { %2754 = vmatprep.mubr.bf16.mxu0 %v4811_v2  ;;  %2795 = vmatprep.mubr.bf16.mxu1 %v4811_v2 }
 0xc29   : > { %2725 = vmatpush1.bf16.msra.mxu0 %v5774_v28  ;;  %2766 = vmatpush1.bf16.msra.mxu1 %v5778_v29 }
 0xc2a   : > { %2726 = vmatprep.subr.bf16.mxu0 %v5784_v31  ;;  %2767 = vmatprep.subr.bf16.mxu1 %v5788_v57 }
 0xc2d   : > { %2727 = vmatpush1.bf16.msra.mxu0 %v5796_v25  ;;  %2768 = vmatpush1.bf16.msra.mxu1 %v5800_v26 }
 0xc2e   : > { %2728 = vmatprep.subr.bf16.mxu0 %v5806_v59  ;;  %2769 = vmatprep.subr.bf16.mxu1 %v5810_v62 }
 0xc31   : > { %2729 = vmatpush1.bf16.msra.mxu0 %v5816_v22  ;;  %2770 = vmatpush1.bf16.msra.mxu1 %v5820_v63 }
 0xc32   : > { %2730 = vmatprep.subr.bf16.mxu0 %v5826_v32  ;;  %2771 = vmatprep.subr.bf16.mxu1 %v5830_v16 }
 0xc35   : > { %2731 = vmatpush1.bf16.msra.mxu0 %v5838_v12  ;;  %2772 = vmatpush1.bf16.msra.mxu1 %v5842_v18 }
 0xc36   : > { %2732 = vmatprep.subr.bf16.mxu0 %v5848_v17  ;;  %2773 = vmatprep.subr.bf16.mxu1 %v5852_v6 }
 0xc39   : > { %2733 = vmatpush1.bf16.msra.mxu0 %v5858_v19  ;;  %2774 = vmatpush1.bf16.msra.mxu1 %v5862_v10 }
 0xc3a   : > { %2734 = vmatprep.subr.bf16.mxu0 %v5868_v11  ;;  %2775 = vmatprep.subr.bf16.mxu1 %v5872_v34 }
 0xc3d   : > { %2735 = vmatpush1.bf16.msra.mxu0 %v5880_v36  ;;  %2776 = vmatpush1.bf16.msra.mxu1 %v5884_v37 }
 0xc3e   : > { %2736 = vmatprep.subr.bf16.mxu0 %v5890_v40  ;;  %2777 = vmatprep.subr.bf16.mxu1 %v5894_v43 }
 0xc41   : > { %2737 = vmatpush1.bf16.msra.mxu0 %v5900_v45  ;;  %2778 = vmatpush1.bf16.msra.mxu1 %v5904_v46 }
 0xc44   : > { %2755 = vmatmul.mubr.bf16.vlgmr.msra.gmra.mxu0 %v2721_v21  ;;  %2796 = vmatmul.mubr.bf16.vlgmr.msra.gmra.mxu1 %v2721_v21 }
 0xd04   : > { %v2756_v42 = vpop.f32.mrf.mxu0  ;;  %v2797_v47 = vpop.f32.mrf.mxu1 }
 0xd05   : > { %v2804_v13 = vadd.f32 %v2756_v42, %v2717_v39  ;;  %v2806_v15 = vadd.f32 %v2797_v47, %v2719_v8 }
 0xd06   : > { %v2758_v44 = vpop.f32.mrf.mxu0  ;;  %v2799_v48 = vpop.f32.mrf.mxu1 }
 0xd07   : > { %v3963_v4 = vmul.f32 -1.442695, %v2804_v13  ;;  %v2805_v50 = vadd.f32 %v2758_v44, %v2718_v41  ;;  %v2807_v14 = vadd.f32 %v2799_v48, %v2720_v20 }
 0xd08   : > { %v2760_v30 = vpop.f32.mrf.mxu0  ;;  %v2801_v55 = vpop.f32.mrf.mxu1 }
 0xd09   : > { %4367 = vpow2.f32 %v3963_v4  ;;  %v3964_v56 = vmul.f32 -1.442695, %v2805_v50  ;;  %v3965_v23 = vmul.f32 -1.442695, %v2807_v14 }
 0xd0a   : > { %v2761_v33 = vpop.f32.mrf.mxu0  ;;  %v2802_v3 = vpop.f32.mrf.mxu1 }
 0xd0b   : > { %4369 = vpow2.f32 %v3964_v56 }
 0xd0c   : > { %4371 = vtanh.f32 %v2806_v15 }
 0xd0d   : > { %4373 = vpow2.f32 %v3965_v23 }
 0xd16   : > { %v4368_v0 = vpop.eup %4367 }
 0xd17   : > { %v2811_v27 = vadd.f32 1.0, %v4368_v0 }
 0xd18   : > { %v4370_v9 = vpop.eup %4369 }
 0xd19   : > { %4375 = vrcp.f32 %v2811_v27  ;;  %v2817_v7 = vadd.f32 1.0, %v4370_v9  ;;  %v4372_v58 = vpop.eup %4371 }
 0xd1a   : > { %v4374_v35 = vpop.eup %4373 }
 0xd1b   : > { %4377 = vrcp.f32 %v2817_v7  ;;  %v2824_v21 = vadd.f32 1.0, %v4374_v35 }
 0xd1d   : > { %4379 = vrcp.f32 %v2824_v21 }
 0xd26   : > { %v4376_v60 = vpop.eup %4375 }
 0xd27   : > { %v2828_v39 = vmul.f32 %v4376_v60, %v4372_v58 }
 0xd28   : > { %v4378_v61 = vpop.eup %4377 }
 0xd29   : > { %v2827_v38 = vmul.f32 %v4378_v61, %v6008_v1 }
 0xd2a   : > { %v4380_v42 = vpop.eup %4379 }
 0xd2b   : > { %v6050_v41 = vadd.f32 %v2828_v39, %v2827_v38 }
 0xd2d   : > { %4381 = vtanh.f32 %v6050_v41 }
 0xd37   : > { %2834 = sbr.rel (%p3956_p0) target bundleno = 3390 (0xd3e), region = 160 }
 0xd3a   : > { %v4382_v47 = vpop.eup %4381 }
 0xd3b   : > { %v2831_v13 = vmul.f32 %v4382_v47, %v4380_v42 }
 0xd3d   : > { %2836 = vst [vmem:[#allocation15 + $0x10] sm:$0xff] %v2831_v13 }
 0xd3e PF: > { %2839 = sbr.rel (%p3957_p1) target bundleno = 3398 (0xd46), region = 164 }
 0xd43   : > { %v2840_v44 = vpack.c.bf16 %v2831_v13, %v2831_v13 }
 0xd45   : > { %2842 = vst [vmem:[#allocation3 + $0x8] sm:$0xf] %v2840_v44 }
 0xd46 PF: > { %2851 = vmatprep.subr.bf16.mxu0 %v5746_v49  ;;  %2892 = vmatprep.subr.bf16.mxu1 %v5750_v5  ;;  %v2850_v1 = vpack.c.bf16 %v2831_v13, %v2831_v13  ;;  %v2844_v48 = vld [vmem:[#allocation2 + $0x8] sm:$0xff] }
 0xd47   : > { %2852 = vmatpush1.bf16.msra.mxu0 %v5754_v51  ;;  %2893 = vmatpush1.bf16.msra.mxu1 %v5758_v52  ;;  %v2846_v4 = vunpack.c.l.bf16 %v2844_v48  ;;  %v2847_v50 = vunpack.c.h.bf16 %v2844_v48  ;;  %v2845_v23 = vld [vmem:[#allocation2 + $0x48] sm:$0xff] }
 0xd48   : > { %2853 = vmatprep.subr.bf16.mxu0 %v5764_v53  ;;  %2894 = vmatprep.subr.bf16.mxu1 %v5768_v54  ;;  %v2849_v9 = vunpack.c.h.bf16 %v2845_v23  ;;  %v2848_v7 = vunpack.c.l.bf16 %v2845_v23 }
 0xd49   : > { %2883 = vmatprep.mubr.bf16.mxu0 %v4811_v2  ;;  %2924 = vmatprep.mubr.bf16.mxu1 %v4811_v2 }
 0xd4b   : > { %2854 = vmatpush1.bf16.msra.mxu0 %v5774_v28  ;;  %2895 = vmatpush1.bf16.msra.mxu1 %v5778_v29 }
 0xd4c   : > { %2855 = vmatprep.subr.bf16.mxu0 %v5784_v31  ;;  %2896 = vmatprep.subr.bf16.mxu1 %v5788_v57 }
 0xd4f   : > { %2856 = vmatpush1.bf16.msra.mxu0 %v5796_v25  ;;  %2897 = vmatpush1.bf16.msra.mxu1 %v5800_v26 }
 0xd50   : > { %2857 = vmatprep.subr.bf16.mxu0 %v5806_v59  ;;  %2898 = vmatprep.subr.bf16.mxu1 %v5810_v62 }
 0xd53   : > { %2858 = vmatpush1.bf16.msra.mxu0 %v5816_v22  ;;  %2899 = vmatpush1.bf16.msra.mxu1 %v5820_v63 }
 0xd54   : > { %2859 = vmatprep.subr.bf16.mxu0 %v5826_v32  ;;  %2900 = vmatprep.subr.bf16.mxu1 %v5830_v16 }
 0xd57   : > { %2860 = vmatpush1.bf16.msra.mxu0 %v5838_v12  ;;  %2901 = vmatpush1.bf16.msra.mxu1 %v5842_v18 }
 0xd58   : > { %2861 = vmatprep.subr.bf16.mxu0 %v5848_v17  ;;  %2902 = vmatprep.subr.bf16.mxu1 %v5852_v6 }
 0xd5b   : > { %2862 = vmatpush1.bf16.msra.mxu0 %v5858_v19  ;;  %2903 = vmatpush1.bf16.msra.mxu1 %v5862_v10 }
 0xd5c   : > { %2863 = vmatprep.subr.bf16.mxu0 %v5868_v11  ;;  %2904 = vmatprep.subr.bf16.mxu1 %v5872_v34 }
 0xd5f   : > { %2864 = vmatpush1.bf16.msra.mxu0 %v5880_v36  ;;  %2905 = vmatpush1.bf16.msra.mxu1 %v5884_v37 }
 0xd60   : > { %2865 = vmatprep.subr.bf16.mxu0 %v5890_v40  ;;  %2906 = vmatprep.subr.bf16.mxu1 %v5894_v43 }
 0xd63   : > { %2866 = vmatpush1.bf16.msra.mxu0 %v5900_v45  ;;  %2907 = vmatpush1.bf16.msra.mxu1 %v5904_v46 }
 0xd66   : > { %2884 = vmatmul.mubr.bf16.vlgmr.msra.gmra.mxu0 %v2850_v1  ;;  %2925 = vmatmul.mubr.bf16.vlgmr.msra.gmra.mxu1 %v2850_v1 }
 0xe26   : > { %v2885_v30 = vpop.f32.mrf.mxu0  ;;  %v2926_v55 = vpop.f32.mrf.mxu1 }
 0xe27   : > { %v2933_v56 = vadd.f32 %v2885_v30, %v2846_v4  ;;  %v2935_v35 = vadd.f32 %v2926_v55, %v2848_v7 }
 0xe28   : > { %v2887_v24 = vpop.f32.mrf.mxu0  ;;  %v2928_v33 = vpop.f32.mrf.mxu1 }
 0xe29   : > { %v3968_v3 = vmul.f32 -1.442695, %v2933_v56  ;;  %v2934_v20 = vadd.f32 %v2887_v24, %v2847_v50  ;;  %v2936_v58 = vadd.f32 %v2928_v33, %v2849_v9 }
 0xe2a   : > { %v2889_v8 = vpop.f32.mrf.mxu0  ;;  %v2930_v14 = vpop.f32.mrf.mxu1 }
 0xe2b   : > { %4383 = vpow2.f32 %v3968_v3  ;;  %v3969_v15 = vmul.f32 -1.442695, %v2934_v20  ;;  %v3970_v60 = vmul.f32 -1.442695, %v2936_v58 }
 0xe2c   : > { %v2890_v0 = vpop.f32.mrf.mxu0  ;;  %v2931_v27 = vpop.f32.mrf.mxu1 }
 0xe2d   : > { %4385 = vpow2.f32 %v3969_v15 }
 0xe2e   : > { %4387 = vtanh.f32 %v2935_v35 }
 0xe2f   : > { %4389 = vpow2.f32 %v3970_v60 }
 0xe38   : > { %v4384_v61 = vpop.eup %4383 }
 0xe39   : > { %v2940_v21 = vadd.f32 1.0, %v4384_v61 }
 0xe3a   : > { %v4386_v38 = vpop.eup %4385 }
 0xe3b   : > { %4391 = vrcp.f32 %v2940_v21  ;;  %v2946_v39 = vadd.f32 1.0, %v4386_v38  ;;  %v4388_v42 = vpop.eup %4387 }
 0xe3c   : > { %v4390_v47 = vpop.eup %4389 }
 0xe3d   : > { %4393 = vrcp.f32 %v2946_v39  ;;  %v2953_v1 = vadd.f32 1.0, %v4390_v47 }
 0xe3f   : > { %4395 = vrcp.f32 %v2953_v1 }
 0xe48   : > { %v4392_v13 = vpop.eup %4391 }
 0xe49   : > { %v2957_v4 = vmul.f32 %v4392_v13, %v4388_v42 }
 0xe4a   : > { %v4394_v44 = vpop.eup %4393 }
 0xe4b   : > { %v2956_v48 = vmul.f32 %v4394_v44, %v6050_v41 }
 0xe4c   : > { %v4396_v30 = vpop.eup %4395 }
 0xe4d   : > { %v6092_v50 = vadd.f32 %v2957_v4, %v2956_v48 }
 0xe4f   : > { %4397 = vtanh.f32 %v6092_v50 }
 0xe59   : > { %2963 = sbr.rel (%p3956_p0) target bundleno = 3680 (0xe60), region = 168 }
 0xe5c   : > { %v4398_v55 = vpop.eup %4397 }
 0xe5d   : > { %v2960_v56 = vmul.f32 %v4398_v55, %v4396_v30 }
 0xe5f   : > { %2965 = vst [vmem:[#allocation15 + $0x18] sm:$0xff] %v2960_v56 }
 0xe60 PF: > { %2968 = sbr.rel (%p3957_p1) target bundleno = 3688 (0xe68), region = 172 }
 0xe65   : > { %v2969_v24 = vpack.c.bf16 %v2960_v56, %v2960_v56 }
 0xe67   : > { %2971 = vst [vmem:[#allocation3 + $0xc] sm:$0xf] %v2969_v24 }
 0xe68 PF: > { %2980 = vmatprep.subr.bf16.mxu0 %v5746_v49  ;;  %3021 = vmatprep.subr.bf16.mxu1 %v5750_v5  ;;  %v2979_v41 = vpack.c.bf16 %v2960_v56, %v2960_v56  ;;  %v2973_v33 = vld [vmem:[#allocation2 + $0x40] sm:$0xff] }
 0xe69   : > { %2981 = vmatpush1.bf16.msra.mxu0 %v5754_v51  ;;  %3022 = vmatpush1.bf16.msra.mxu1 %v5758_v52  ;;  %v2975_v3 = vunpack.c.l.bf16 %v2973_v33  ;;  %v2976_v20 = vunpack.c.h.bf16 %v2973_v33  ;;  %v2974_v60 = vld [vmem:[#allocation2 + $0x20] sm:$0xff] }
 0xe6a   : > { %2982 = vmatprep.subr.bf16.mxu0 %v5764_v53  ;;  %3023 = vmatprep.subr.bf16.mxu1 %v5768_v54  ;;  %v2978_v38 = vunpack.c.h.bf16 %v2974_v60  ;;  %v2977_v39 = vunpack.c.l.bf16 %v2974_v60 }
 0xe6b   : > { %3012 = vmatprep.mubr.bf16.mxu0 %v4811_v2  ;;  %3053 = vmatprep.mubr.bf16.mxu1 %v4811_v2 }
 0xe6d   : > { %2983 = vmatpush1.bf16.msra.mxu0 %v5774_v28  ;;  %3024 = vmatpush1.bf16.msra.mxu1 %v5778_v29 }
 0xe6e   : > { %2984 = vmatprep.subr.bf16.mxu0 %v5784_v31  ;;  %3025 = vmatprep.subr.bf16.mxu1 %v5788_v57 }
 0xe71   : > { %2985 = vmatpush1.bf16.msra.mxu0 %v5796_v25  ;;  %3026 = vmatpush1.bf16.msra.mxu1 %v5800_v26 }
 0xe72   : > { %2986 = vmatprep.subr.bf16.mxu0 %v5806_v59  ;;  %3027 = vmatprep.subr.bf16.mxu1 %v5810_v62 }
 0xe75   : > { %2987 = vmatpush1.bf16.msra.mxu0 %v5816_v22  ;;  %3028 = vmatpush1.bf16.msra.mxu1 %v5820_v63 }
 0xe76   : > { %2988 = vmatprep.subr.bf16.mxu0 %v5826_v32  ;;  %3029 = vmatprep.subr.bf16.mxu1 %v5830_v16 }
 0xe79   : > { %2989 = vmatpush1.bf16.msra.mxu0 %v5838_v12  ;;  %3030 = vmatpush1.bf16.msra.mxu1 %v5842_v18 }
 0xe7a   : > { %2990 = vmatprep.subr.bf16.mxu0 %v5848_v17  ;;  %3031 = vmatprep.subr.bf16.mxu1 %v5852_v6 }
 0xe7d   : > { %2991 = vmatpush1.bf16.msra.mxu0 %v5858_v19  ;;  %3032 = vmatpush1.bf16.msra.mxu1 %v5862_v10 }
 0xe7e   : > { %2992 = vmatprep.subr.bf16.mxu0 %v5868_v11  ;;  %3033 = vmatprep.subr.bf16.mxu1 %v5872_v34 }
 0xe81   : > { %2993 = vmatpush1.bf16.msra.mxu0 %v5880_v36  ;;  %3034 = vmatpush1.bf16.msra.mxu1 %v5884_v37 }
 0xe82   : > { %2994 = vmatprep.subr.bf16.mxu0 %v5890_v40  ;;  %3035 = vmatprep.subr.bf16.mxu1 %v5894_v43 }
 0xe85   : > { %2995 = vmatpush1.bf16.msra.mxu0 %v5900_v45  ;;  %3036 = vmatpush1.bf16.msra.mxu1 %v5904_v46 }
 0xe88   : > { %3013 = vmatmul.mubr.bf16.vlgmr.msra.gmra.mxu0 %v2979_v41  ;;  %3054 = vmatmul.mubr.bf16.vlgmr.msra.gmra.mxu1 %v2979_v41 }
 0xf48   : > { %v3014_v8 = vpop.f32.mrf.mxu0  ;;  %v3055_v14 = vpop.f32.mrf.mxu1 }
 0xf49   : > { %v3062_v15 = vadd.f32 %v3014_v8, %v2975_v3  ;;  %v3064_v47 = vadd.f32 %v3055_v14, %v2977_v39 }
 0xf4a   : > { %v3016_v23 = vpop.f32.mrf.mxu0  ;;  %v3057_v0 = vpop.f32.mrf.mxu1 }
 0xf4b   : > { %v3973_v27 = vmul.f32 -1.442695, %v3062_v15  ;;  %v3063_v9 = vadd.f32 %v3016_v23, %v2976_v20  ;;  %v3065_v42 = vadd.f32 %v3057_v0, %v2978_v38 }
 0xf4c   : > { %v3018_v7 = vpop.f32.mrf.mxu0  ;;  %v3059_v58 = vpop.f32.mrf.mxu1 }
 0xf4d   : > { %4399 = vpow2.f32 %v3973_v27  ;;  %v3974_v35 = vmul.f32 -1.442695, %v3063_v9  ;;  %v3975_v13 = vmul.f32 -1.442695, %v3065_v42 }
 0xf4e   : > { %v3019_v61 = vpop.f32.mrf.mxu0  ;;  %v3060_v21 = vpop.f32.mrf.mxu1 }
 0xf4f   : > { %4401 = vpow2.f32 %v3974_v35 }
 0xf50   : > { %4403 = vtanh.f32 %v3064_v47 }
 0xf51   : > { %4405 = vpow2.f32 %v3975_v13 }
 0xf5a   : > { %v4400_v44 = vpop.eup %4399 }
 0xf5b   : > { %v3069_v1 = vadd.f32 1.0, %v4400_v44 }
 0xf5c   : > { %v4402_v48 = vpop.eup %4401 }
 0xf5d   : > { %4407 = vrcp.f32 %v3069_v1  ;;  %v3075_v4 = vadd.f32 1.0, %v4402_v48  ;;  %v4404_v30 = vpop.eup %4403 }
 0xf5e   : > { %v4406_v55 = vpop.eup %4405 }
 0xf5f   : > { %4409 = vrcp.f32 %v3075_v4  ;;  %v3082_v41 = vadd.f32 1.0, %v4406_v55 }
 0xf61   : > { %4411 = vrcp.f32 %v3082_v41 }
 0xf6a   : > { %v4408_v56 = vpop.eup %4407 }
 0xf6b   : > { %v3086_v3 = vmul.f32 %v4408_v56, %v4404_v30 }
 0xf6c   : > { %v4410_v24 = vpop.eup %4409 }
 0xf6d   : > { %v3085_v33 = vmul.f32 %v4410_v24, %v6092_v50 }
 0xf6e   : > { %v4412_v8 = vpop.eup %4411 }
 0xf6f   : > { %v6134_v20 = vadd.f32 %v3086_v3, %v3085_v33 }
 0xf71   : > { %4413 = vtanh.f32 %v6134_v20 }
 0xf7b   : > { %3092 = sbr.rel (%p3956_p0) target bundleno = 3970 (0xf82), region = 176 }
 0xf7e   : > { %v4414_v14 = vpop.eup %4413 }
 0xf7f   : > { %v3089_v15 = vmul.f32 %v4414_v14, %v4412_v8 }
 0xf81   : > { %3094 = vst [vmem:[#allocation15 + $0x20] sm:$0xff] %v3089_v15 }
 0xf82 PF: > { %3097 = sbr.rel (%p3957_p1) target bundleno = 3978 (0xf8a), region = 180 }
 0xf87   : > { %v3098_v23 = vpack.c.bf16 %v3089_v15, %v3089_v15 }
 0xf89   : > { %3100 = vst [vmem:[#allocation3 + $0x10] sm:$0xf] %v3098_v23 }
 0xf8a PF: > { %3109 = vmatprep.subr.bf16.mxu0 %v5746_v49  ;;  %3150 = vmatprep.subr.bf16.mxu1 %v5750_v5  ;;  %v3108_v50 = vpack.c.bf16 %v3089_v15, %v3089_v15  ;;  %v3102_v0 = vld [vmem:[#allocation2 + $0x10] sm:$0xff]  ;;  %v3103_v13 = vld [vmem:[#allocation2 + $0x38] sm:$0xff] }
 0xf8b   : > { %3110 = vmatpush1.bf16.msra.mxu0 %v5754_v51  ;;  %3151 = vmatpush1.bf16.msra.mxu1 %v5758_v52  ;;  %v3104_v27 = vunpack.c.l.bf16 %v3102_v0  ;;  %v3105_v9 = vunpack.c.h.bf16 %v3102_v0  ;;  %v3107_v48 = vunpack.c.h.bf16 %v3103_v13  ;;  %v3106_v4 = vunpack.c.l.bf16 %v3103_v13 }
 0xf8c   : > { %3111 = vmatprep.subr.bf16.mxu0 %v5764_v53  ;;  %3152 = vmatprep.subr.bf16.mxu1 %v5768_v54 }
 0xf8d   : > { %3141 = vmatprep.mubr.bf16.mxu0 %v4811_v2  ;;  %3182 = vmatprep.mubr.bf16.mxu1 %v4811_v2 }
 0xf8f   : > { %3112 = vmatpush1.bf16.msra.mxu0 %v5774_v28  ;;  %3153 = vmatpush1.bf16.msra.mxu1 %v5778_v29 }
 0xf90   : > { %3113 = vmatprep.subr.bf16.mxu0 %v5784_v31  ;;  %3154 = vmatprep.subr.bf16.mxu1 %v5788_v57 }
 0xf93   : > { %3114 = vmatpush1.bf16.msra.mxu0 %v5796_v25  ;;  %3155 = vmatpush1.bf16.msra.mxu1 %v5800_v26 }
 0xf94   : > { %3115 = vmatprep.subr.bf16.mxu0 %v5806_v59  ;;  %3156 = vmatprep.subr.bf16.mxu1 %v5810_v62 }
 0xf97   : > { %3116 = vmatpush1.bf16.msra.mxu0 %v5816_v22  ;;  %3157 = vmatpush1.bf16.msra.mxu1 %v5820_v63 }
 0xf98   : > { %3117 = vmatprep.subr.bf16.mxu0 %v5826_v32  ;;  %3158 = vmatprep.subr.bf16.mxu1 %v5830_v16 }
 0xf9b   : > { %3118 = vmatpush1.bf16.msra.mxu0 %v5838_v12  ;;  %3159 = vmatpush1.bf16.msra.mxu1 %v5842_v18 }
 0xf9c   : > { %3119 = vmatprep.subr.bf16.mxu0 %v5848_v17  ;;  %3160 = vmatprep.subr.bf16.mxu1 %v5852_v6 }
 0xf9f   : > { %3120 = vmatpush1.bf16.msra.mxu0 %v5858_v19  ;;  %3161 = vmatpush1.bf16.msra.mxu1 %v5862_v10 }
 0xfa0   : > { %3121 = vmatprep.subr.bf16.mxu0 %v5868_v11  ;;  %3162 = vmatprep.subr.bf16.mxu1 %v5872_v34 }
 0xfa3   : > { %3122 = vmatpush1.bf16.msra.mxu0 %v5880_v36  ;;  %3163 = vmatpush1.bf16.msra.mxu1 %v5884_v37 }
 0xfa4   : > { %3123 = vmatprep.subr.bf16.mxu0 %v5890_v40  ;;  %3164 = vmatprep.subr.bf16.mxu1 %v5894_v43 }
 0xfa7   : > { %3124 = vmatpush1.bf16.msra.mxu0 %v5900_v45  ;;  %3165 = vmatpush1.bf16.msra.mxu1 %v5904_v46 }
 0xfaa   : > { %3142 = vmatmul.mubr.bf16.vlgmr.msra.gmra.mxu0 %v3108_v50  ;;  %3183 = vmatmul.mubr.bf16.vlgmr.msra.gmra.mxu1 %v3108_v50 }
0x106a   : > { %v3143_v7 = vpop.f32.mrf.mxu0  ;;  %v3184_v58 = vpop.f32.mrf.mxu1 }
0x106b   : > { %v3191_v35 = vadd.f32 %v3143_v7, %v3104_v27  ;;  %v3193_v55 = vadd.f32 %v3184_v58, %v3106_v4 }
0x106c   : > { %v3145_v60 = vpop.f32.mrf.mxu0  ;;  %v3186_v61 = vpop.f32.mrf.mxu1 }
0x106d   : > { %v3978_v21 = vmul.f32 -1.442695, %v3191_v35  ;;  %v3192_v38 = vadd.f32 %v3145_v60, %v3105_v9  ;;  %v3194_v30 = vadd.f32 %v3186_v61, %v3107_v48 }
0x106e   : > { %v3147_v39 = vpop.f32.mrf.mxu0  ;;  %v3188_v42 = vpop.f32.mrf.mxu1 }
0x106f   : > { %4415 = vpow2.f32 %v3978_v21  ;;  %v3979_v47 = vmul.f32 -1.442695, %v3192_v38  ;;  %v3980_v56 = vmul.f32 -1.442695, %v3194_v30 }
0x1070   : > { %v3148_v44 = vpop.f32.mrf.mxu0  ;;  %v3189_v1 = vpop.f32.mrf.mxu1 }
0x1071   : > { %4417 = vpow2.f32 %v3979_v47 }
0x1072   : > { %4419 = vtanh.f32 %v3193_v55 }
0x1073   : > { %4421 = vpow2.f32 %v3980_v56 }
0x107c   : > { %v4416_v24 = vpop.eup %4415 }
0x107d   : > { %v3198_v41 = vadd.f32 1.0, %v4416_v24 }
0x107e   : > { %v4418_v33 = vpop.eup %4417 }
0x107f   : > { %4423 = vrcp.f32 %v3198_v41  ;;  %v3204_v3 = vadd.f32 1.0, %v4418_v33  ;;  %v4420_v8 = vpop.eup %4419 }
0x1080   : > { %v4422_v14 = vpop.eup %4421 }
0x1081   : > { %4425 = vrcp.f32 %v3204_v3  ;;  %v3211_v50 = vadd.f32 1.0, %v4422_v14 }
0x1083   : > { %4427 = vrcp.f32 %v3211_v50 }
0x108c   : > { %v4424_v15 = vpop.eup %4423 }
0x108d   : > { %v3215_v27 = vmul.f32 %v4424_v15, %v4420_v8 }
0x108e   : > { %v4426_v23 = vpop.eup %4425 }
0x108f   : > { %v3214_v0 = vmul.f32 %v4426_v23, %v6134_v20 }
0x1090   : > { %v4428_v7 = vpop.eup %4427 }
0x1091   : > { %v6176_v9 = vadd.f32 %v3215_v27, %v3214_v0 }
0x1093   : > { %4429 = vtanh.f32 %v6176_v9 }
0x109d   : > { %3221 = sbr.rel (%p3956_p0) target bundleno = 4260 (0x10a4), region = 184 }
0x10a0   : > { %v4430_v58 = vpop.eup %4429 }
0x10a1   : > { %v3218_v35 = vmul.f32 %v4430_v58, %v4428_v7 }
0x10a3   : > { %3223 = vst [vmem:[#allocation15 + $0x28] sm:$0xff] %v3218_v35 }
0x10a4 PF: > { %3226 = sbr.rel (%p3957_p1) target bundleno = 4268 (0x10ac), region = 188 }
0x10a9   : > { %v3227_v60 = vpack.c.bf16 %v3218_v35, %v3218_v35 }
0x10ab   : > { %3229 = vst [vmem:[#allocation3 + $0x14] sm:$0xf] %v3227_v60 }
0x10ac PF: > { %3238 = vmatprep.subr.bf16.mxu0 %v5746_v49  ;;  %3279 = vmatprep.subr.bf16.mxu1 %v5750_v5  ;;  %v3237_v20 = vpack.c.bf16 %v3218_v35, %v3218_v35  ;;  %v3231_v61 = vld [vmem:[#allocation2 + $0x60] sm:$0xff]  ;;  %v3232_v56 = vld [vmem:[#allocation2 + $0x70] sm:$0xff] }
0x10ad   : > { %3239 = vmatpush1.bf16.msra.mxu0 %v5754_v51  ;;  %3280 = vmatpush1.bf16.msra.mxu1 %v5758_v52  ;;  %v3233_v21 = vunpack.c.l.bf16 %v3231_v61  ;;  %v3234_v38 = vunpack.c.h.bf16 %v3231_v61  ;;  %v3236_v33 = vunpack.c.h.bf16 %v3232_v56  ;;  %v3235_v3 = vunpack.c.l.bf16 %v3232_v56 }
0x10ae   : > { %3240 = vmatprep.subr.bf16.mxu0 %v5764_v53  ;;  %3281 = vmatprep.subr.bf16.mxu1 %v5768_v54 }
0x10af   : > { %3270 = vmatprep.mubr.bf16.mxu0 %v4811_v2  ;;  %3311 = vmatprep.mubr.bf16.mxu1 %v4811_v2 }
0x10b1   : > { %3241 = vmatpush1.bf16.msra.mxu0 %v5774_v28  ;;  %3282 = vmatpush1.bf16.msra.mxu1 %v5778_v29 }
0x10b2   : > { %3242 = vmatprep.subr.bf16.mxu0 %v5784_v31  ;;  %3283 = vmatprep.subr.bf16.mxu1 %v5788_v57 }
0x10b5   : > { %3243 = vmatpush1.bf16.msra.mxu0 %v5796_v25  ;;  %3284 = vmatpush1.bf16.msra.mxu1 %v5800_v26 }
0x10b6   : > { %3244 = vmatprep.subr.bf16.mxu0 %v5806_v59  ;;  %3285 = vmatprep.subr.bf16.mxu1 %v5810_v62 }
0x10b9   : > { %3245 = vmatpush1.bf16.msra.mxu0 %v5816_v22  ;;  %3286 = vmatpush1.bf16.msra.mxu1 %v5820_v63 }
0x10ba   : > { %3246 = vmatprep.subr.bf16.mxu0 %v5826_v32  ;;  %3287 = vmatprep.subr.bf16.mxu1 %v5830_v16 }
0x10bd   : > { %3247 = vmatpush1.bf16.msra.mxu0 %v5838_v12  ;;  %3288 = vmatpush1.bf16.msra.mxu1 %v5842_v18 }
0x10be   : > { %3248 = vmatprep.subr.bf16.mxu0 %v5848_v17  ;;  %3289 = vmatprep.subr.bf16.mxu1 %v5852_v6 }
0x10c1   : > { %3249 = vmatpush1.bf16.msra.mxu0 %v5858_v19  ;;  %3290 = vmatpush1.bf16.msra.mxu1 %v5862_v10 }
0x10c2   : > { %3250 = vmatprep.subr.bf16.mxu0 %v5868_v11  ;;  %3291 = vmatprep.subr.bf16.mxu1 %v5872_v34 }
0x10c5   : > { %3251 = vmatpush1.bf16.msra.mxu0 %v5880_v36  ;;  %3292 = vmatpush1.bf16.msra.mxu1 %v5884_v37 }
0x10c6   : > { %3252 = vmatprep.subr.bf16.mxu0 %v5890_v40  ;;  %3293 = vmatprep.subr.bf16.mxu1 %v5894_v43 }
0x10c9   : > { %3253 = vmatpush1.bf16.msra.mxu0 %v5900_v45  ;;  %3294 = vmatpush1.bf16.msra.mxu1 %v5904_v46 }
0x10cc   : > { %3271 = vmatmul.mubr.bf16.vlgmr.msra.gmra.mxu0 %v3237_v20  ;;  %3312 = vmatmul.mubr.bf16.vlgmr.msra.gmra.mxu1 %v3237_v20 }
0x118c   : > { %v3272_v39 = vpop.f32.mrf.mxu0  ;;  %v3313_v42 = vpop.f32.mrf.mxu1 }
0x118d   : > { %v3320_v47 = vadd.f32 %v3272_v39, %v3233_v21  ;;  %v3322_v14 = vadd.f32 %v3313_v42, %v3235_v3 }
0x118e   : > { %v3274_v13 = vpop.f32.mrf.mxu0  ;;  %v3315_v44 = vpop.f32.mrf.mxu1 }
0x118f   : > { %v3983_v1 = vmul.f32 -1.442695, %v3320_v47  ;;  %v3321_v48 = vadd.f32 %v3274_v13, %v3234_v38  ;;  %v3323_v8 = vadd.f32 %v3315_v44, %v3236_v33 }
0x1190   : > { %v3276_v4 = vpop.f32.mrf.mxu0  ;;  %v3317_v30 = vpop.f32.mrf.mxu1 }
0x1191   : > { %4431 = vpow2.f32 %v3983_v1  ;;  %v3984_v55 = vmul.f32 -1.442695, %v3321_v48  ;;  %v3985_v15 = vmul.f32 -1.442695, %v3323_v8 }
0x1192   : > { %v3277_v24 = vpop.f32.mrf.mxu0  ;;  %v3318_v41 = vpop.f32.mrf.mxu1 }
0x1193   : > { %4433 = vpow2.f32 %v3984_v55 }
0x1194   : > { %4435 = vtanh.f32 %v3322_v14 }
0x1195   : > { %4437 = vpow2.f32 %v3985_v15 }
0x119e   : > { %v4432_v23 = vpop.eup %4431 }
0x119f   : > { %v3327_v50 = vadd.f32 1.0, %v4432_v23 }
0x11a0   : > { %v4434_v0 = vpop.eup %4433 }
0x11a1   : > { %4439 = vrcp.f32 %v3327_v50  ;;  %v3333_v27 = vadd.f32 1.0, %v4434_v0  ;;  %v4436_v7 = vpop.eup %4435 }
0x11a2   : > { %v4438_v58 = vpop.eup %4437 }
0x11a3   : > { %4441 = vrcp.f32 %v3333_v27  ;;  %v3340_v20 = vadd.f32 1.0, %v4438_v58 }
0x11a5   : > { %4443 = vrcp.f32 %v3340_v20 }
0x11ae   : > { %v4440_v35 = vpop.eup %4439 }
0x11af   : > { %v3344_v21 = vmul.f32 %v4440_v35, %v4436_v7 }
0x11b0   : > { %v4442_v60 = vpop.eup %4441 }
0x11b1   : > { %v3343_v61 = vmul.f32 %v4442_v60, %v6176_v9 }
0x11b2   : > { %v4444_v39 = vpop.eup %4443 }
0x11b3   : > { %v6218_v38 = vadd.f32 %v3344_v21, %v3343_v61 }
0x11b5   : > { %4445 = vtanh.f32 %v6218_v38 }
0x11bf   : > { %3350 = sbr.rel (%p3956_p0) target bundleno = 4550 (0x11c6), region = 192 }
0x11c2   : > { %v4446_v42 = vpop.eup %4445 }
0x11c3   : > { %v3347_v47 = vmul.f32 %v4446_v42, %v4444_v39 }
0x11c5   : > { %3352 = vst [vmem:[#allocation15 + $0x30] sm:$0xff] %v3347_v47 }
0x11c6 PF: > { %3355 = sbr.rel (%p3957_p1) target bundleno = 4558 (0x11ce), region = 196 }
0x11cb   : > { %v3356_v13 = vpack.c.bf16 %v3347_v47, %v3347_v47 }
0x11cd   : > { %3358 = vst [vmem:[#allocation3 + $0x18] sm:$0xf] %v3356_v13 }
0x11ce PF: > { %3367 = vmatprep.subr.bf16.mxu0 %v5746_v49  ;;  %3408 = vmatprep.subr.bf16.mxu1 %v5750_v5  ;;  %v3360_v49 = vld [vmem:[#allocation2 + $0x78] sm:$0xff] }
0x11cf   : > { %3368 = vmatpush1.bf16.msra.mxu0 %v5754_v51  ;;  %3409 = vmatpush1.bf16.msra.mxu1 %v5758_v52  ;;  %v3362_v5 = vunpack.c.l.bf16 %v3360_v49  ;;  %v3363_v51 = vunpack.c.h.bf16 %v3360_v49 }
0x11d0   : > { %3369 = vmatprep.subr.bf16.mxu0 %v5764_v53  ;;  %3410 = vmatprep.subr.bf16.mxu1 %v5768_v54 }
0x11d1   : > { %3399 = vmatprep.mubr.bf16.mxu0 %v4811_v2  ;;  %3440 = vmatprep.mubr.bf16.mxu1 %v4811_v2  ;;  %v3366_v2 = vpack.c.bf16 %v3347_v47, %v3347_v47 }
0x11d3   : > { %3370 = vmatpush1.bf16.msra.mxu0 %v5774_v28  ;;  %3411 = vmatpush1.bf16.msra.mxu1 %v5778_v29 }
0x11d4   : > { %3371 = vmatprep.subr.bf16.mxu0 %v5784_v31  ;;  %3412 = vmatprep.subr.bf16.mxu1 %v5788_v57 }
0x11d7   : > { %3372 = vmatpush1.bf16.msra.mxu0 %v5796_v25  ;;  %3413 = vmatpush1.bf16.msra.mxu1 %v5800_v26 }
0x11d8   : > { %3373 = vmatprep.subr.bf16.mxu0 %v5806_v59  ;;  %3414 = vmatprep.subr.bf16.mxu1 %v5810_v62  ;;  %v3361_v62 = vld [vmem:[#allocation2 + $0x28] sm:$0xff] }
0x11db   : > { %3374 = vmatpush1.bf16.msra.mxu0 %v5816_v22  ;;  %3415 = vmatpush1.bf16.msra.mxu1 %v5820_v63 }
0x11dc   : > { %3375 = vmatprep.subr.bf16.mxu0 %v5826_v32  ;;  %3416 = vmatprep.subr.bf16.mxu1 %v5830_v16  ;;  %v3365_v32 = vunpack.c.h.bf16 %v3361_v62  ;;  %v3364_v16 = vunpack.c.l.bf16 %v3361_v62 }
0x11df   : > { %3376 = vmatpush1.bf16.msra.mxu0 %v5838_v12  ;;  %3417 = vmatpush1.bf16.msra.mxu1 %v5842_v18 }
0x11e0   : > { %3377 = vmatprep.subr.bf16.mxu0 %v5848_v17  ;;  %3418 = vmatprep.subr.bf16.mxu1 %v5852_v6 }
0x11e3   : > { %3378 = vmatpush1.bf16.msra.mxu0 %v5858_v19  ;;  %3419 = vmatpush1.bf16.msra.mxu1 %v5862_v10 }
0x11e4   : > { %3379 = vmatprep.subr.bf16.mxu0 %v5868_v11  ;;  %3420 = vmatprep.subr.bf16.mxu1 %v5872_v34 }
0x11e7   : > { %3380 = vmatpush1.bf16.msra.mxu0 %v5880_v36  ;;  %3421 = vmatpush1.bf16.msra.mxu1 %v5884_v37 }
0x11e8   : > { %3381 = vmatprep.subr.bf16.mxu0 %v5890_v40  ;;  %3422 = vmatprep.subr.bf16.mxu1 %v5894_v43 }
0x11eb   : > { %3382 = vmatpush1.bf16.msra.mxu0 %v5900_v45  ;;  %3423 = vmatpush1.bf16.msra.mxu1 %v5904_v46 }
0x11ee   : > { %3400 = vmatmul.mubr.bf16.vlgmr.msra.gmra.mxu0 %v3366_v2  ;;  %3441 = vmatmul.mubr.bf16.vlgmr.msra.gmra.mxu1 %v3366_v2 }
0x12ae   : > { %v3401_v52 = vpop.f32.mrf.mxu0  ;;  %v3442_v53 = vpop.f32.mrf.mxu1 }
0x12af   : > { %v3449_v54 = vadd.f32 %v3401_v52, %v3362_v5  ;;  %v3451_v18 = vadd.f32 %v3442_v53, %v3364_v16 }
0x12b0   : > { %v3403_v28 = vpop.f32.mrf.mxu0  ;;  %v3444_v29 = vpop.f32.mrf.mxu1 }
0x12b1   : > { %v3988_v31 = vmul.f32 -1.442695, %v3449_v54  ;;  %v3450_v57 = vadd.f32 %v3403_v28, %v3363_v51  ;;  %v3452_v12 = vadd.f32 %v3444_v29, %v3365_v32 }
0x12b2   : > { %v3405_v25 = vpop.f32.mrf.mxu0  ;;  %v3446_v26 = vpop.f32.mrf.mxu1 }
0x12b3   : > { %4447 = vpow2.f32 %v3988_v31  ;;  %v3989_v59 = vmul.f32 -1.442695, %v3450_v57  ;;  %v3990_v17 = vmul.f32 -1.442695, %v3452_v12 }
0x12b4   : > { %v3406_v22 = vpop.f32.mrf.mxu0  ;;  %v3447_v63 = vpop.f32.mrf.mxu1 }
0x12b5   : > { %4449 = vpow2.f32 %v3989_v59 }
0x12b6   : > { %4451 = vtanh.f32 %v3451_v18 }
0x12b7   : > { %4453 = vpow2.f32 %v3990_v17 }
0x12c0   : > { %v4448_v6 = vpop.eup %4447 }
0x12c1   : > { %v3456_v19 = vadd.f32 1.0, %v4448_v6 }
0x12c2   : > { %v4450_v10 = vpop.eup %4449 }
0x12c3   : > { %4455 = vrcp.f32 %v3456_v19  ;;  %v3462_v11 = vadd.f32 1.0, %v4450_v10  ;;  %v4452_v34 = vpop.eup %4451 }
0x12c4   : > { %v4454_v36 = vpop.eup %4453 }
0x12c5   : > { %4457 = vrcp.f32 %v3462_v11  ;;  %v3469_v43 = vadd.f32 1.0, %v4454_v36 }
0x12c7   : > { %4459 = vrcp.f32 %v3469_v43 }
0x12d0   : > { %v4456_v37 = vpop.eup %4455 }
0x12d1   : > { %v3473_v46 = vmul.f32 %v4456_v37, %v4452_v34 }
0x12d2   : > { %v4458_v40 = vpop.eup %4457 }
0x12d3   : > { %v3472_v45 = vmul.f32 %v4458_v40, %v6218_v38 }
0x12d4   : > { %v4460_v44 = vpop.eup %4459 }
0x12d5   : > { %v3474_v9 = vadd.f32 %v3473_v46, %v3472_v45 }
0x12d7   : > { %4461 = vtanh.f32 %v3474_v9 }
0x12e1   : > { %3479 = sbr.rel (%p3956_p0) target bundleno = 4840 (0x12e8), region = 200 }
0x12e4   : > { %v4462_v1 = vpop.eup %4461 }
0x12e5   : > { %v3476_v48 = vmul.f32 %v4462_v1, %v4460_v44 }
0x12e7   : > { %3481 = vst [vmem:[#allocation15 + $0x38] sm:$0xff] %v3476_v48 }
0x12e8 PF: > { %3484 = sbr.rel (%p3957_p1) target bundleno = 4848 (0x12f0), region = 204 }
0x12ed   : > { %v3485_v4 = vpack.c.bf16 %v3476_v48, %v3476_v48 }
0x12ef   : > { %3487 = vst [vmem:[#allocation3 + $0x1c] sm:$0xf] %v3485_v4 }
0x12f0 PF: > { %3488 = vst [vmem:[%s5236_s13] sm:$0xff] %v3476_v48  ;;  %3489 = vst [vmem:[%s5239_s2] sm:$0xff] %v3474_v9 }
0x12f1 PF: > { %s3996_s3 = sshll.u32 %s4792_s10, 7  ;;  %s3525_s25 = sshll.u32 %s5236_s13, 4  ;;  %s3526_s25 = int_to_ptr.vmem [resolvable:$true] %s3525_s25 }
0x12f2   : > { %s3523_s19 = scalar_lea.hbm %s6361_s7, %s3996_s3  ;;  %s3491_s15 = scalar_lea.sflag [#allocation17], %s5099_s1 }
0x12f3   : > { %s4629_s18 = scalar_lea.vmem %s3526_s25, 128  ;;  %p6514_p8 = scmp.ne.s32.totalorder %s6449_s30, 0 }
0x12f4   : > { %p4630_p12 = scmp.ne.s32.totalorder %s3526_s25, %s4629_s18  ;;  %s4812_s23 = smov [#allocation16]  }
0x12f5   : > { %s4633_s24 = sshll.u32 %s4812_s23, 4  ;;  %s4634_s24 = int_to_ptr.vmem [resolvable:$false] %s4633_s24 }
0x12f6   : > { %p4631_p9 = pnand %p4630_p12, %p6514_p8  ;;  %s4635_s12 = scalar_lea.vmem %s4634_s24, 256 }
0x12f7   : > { %p4636_p4 = scmp.lt.s32.totalorder %s3526_s25, %s4634_s24  ;;  %p4637_p3 = scmp.lt.s32.totalorder %s4635_s12, %s4629_s18 }
0x12f8   : > { %p4632_p10 = pneg %p4631_p9 }
0x12f9   : > { %p4638_p11 = por %p4637_p3, %p4636_p4 }
0x12fb   : > { %p4639_p5 = pnand %p4638_p11, %p4632_p10 }
0x12fd   : > { %4642 = shalt.err (!%p4639_p5)
}
0x12fe   : > { %s4643_s14 = scalar_lea.hbm %s3523_s19, 128  ;;  %s4647_s6 = scalar_lea.hbm %s6361_s7, 256 }
0x12ff   : > { %p4644_p7 = scmp.ne.s32.totalorder %s3523_s19, %s4643_s14  ;;  %p4648_p13 = scmp.lt.s32.totalorder %s3523_s19, %s6361_s7 }
0x1300   : > { %p4649_p0 = scmp.lt.s32.totalorder %s4647_s6, %s4643_s14 }
0x1301   : > { %p4645_p2 = pnand %p4644_p7, %p6514_p8 }
0x1302   : > { %p4650_p1 = por %p4649_p0, %p4648_p13 }
0x1303   : > { %p4646_p6 = pneg %p4645_p2 }
0x1305   : > { %p4651_p12 = pnand %p4650_p1, %p4646_p6 }
0x1307   : > { %4654 = shalt.err (!%p4651_p12)
}
0x1308   : > { %4036 = dma.vmem_to_hbm [thread:$0]  (%p6514_p8), %s3526_s25, 128, %s3523_s19, %s3491_s15  }
0x1309   : > { %s4813_s21 = smov [#allocation15]   ;;  %s6293_s18 = scalar_lea.hbm %s6362_s8, %s3996_s3 }
0x130a   : > { %s3508_s13 = sshll.u32 %s4813_s21, 4  ;;  %p6515_p10 = scmp.eq.s32.totalorder %s4992_s16, 1  ;;  %s3509_s13 = int_to_ptr.vmem [resolvable:$true] %s3508_s13 }
0x130b   : > { %s4655_s23 = scalar_lea.vmem %s3509_s13, 1024  ;;  %p4662_p11 = scmp.lt.s32.totalorder %s3509_s13, %s3509_s13 }
0x130c   : > { %p4656_p9 = scmp.ne.s32.totalorder %s3509_s13, %s4655_s23  ;;  %p4663_p5 = scmp.lt.s32.totalorder %s4655_s23, %s4655_s23 }
0x130e   : > { %p4657_p4 = pnand %p4656_p9, %p6515_p10  ;;  %p4664_p7 = por %p4663_p5, %p4662_p11 }
0x1310   : > { %p4658_p3 = pneg %p4657_p4 }
0x1312   : > { %p4665_p2 = pnand %p4664_p7, %p4658_p3 }
0x1314   : > { %4668 = shalt.err (!%p4665_p2)
}
0x1315   : > { %s4814_s19 = smov 128   ;;  %s4815_s10 = smov 8  }
0x1316   : > { %p6516_p6 = pmov %p6515_p10  ;;  %s6517_s3 = sld [smem:[#allocation59_spill]] }
0x1317   : > { %s3539_s12 = sshll.u32 %s5239_s2, 4  ;;  %s4816_s27 = smov [#allocation18]   ;;  %s3540_s12 = int_to_ptr.vmem [resolvable:$true] %s3539_s12 }
0x1318   : > { %s4679_s14 = scalar_lea.vmem %s3540_s12, 128  ;;  %s4683_s22 = sshll.u32 %s4816_s27, 4  ;;  %s4684_s22 = int_to_ptr.vmem [resolvable:$false] %s4683_s22 }
0x1319   : > { %p4680_p13 = scmp.ne.s32.totalorder %s3540_s12, %s4679_s14  ;;  %s4685_s6 = scalar_lea.vmem %s4684_s22, 256 }
0x131a   : > { %p4686_p12 = scmp.lt.s32.totalorder %s3540_s12, %s4684_s22  ;;  %p4687_p9 = scmp.lt.s32.totalorder %s4685_s6, %s4679_s14 }
0x131b   : > { %p4681_p0 = pnand %p4680_p13, %p6514_p8 }
0x131c   : > { %4035 = dma.vmem_to_hbm [thread:$0]  (%p6516_p6), %s3509_s13, 1024, %s6517_s3, [#allocation6], %s4814_s19, %s4814_s19, %s4815_s10  }
0x131d   : > { %p4682_p1 = pneg %p4681_p0  ;;  %p4688_p10 = por %p4687_p9, %p4686_p12 }
0x131f   : > { %p4689_p4 = pnand %p4688_p10, %p4682_p1 }
0x1321   : > { %4692 = shalt.err (!%p4689_p4)
}
0x1322   : > { %s4693_s2 = scalar_lea.hbm %s6293_s18, 128  ;;  %s4697_s21 = scalar_lea.hbm %s6362_s8, 256 }
0x1323   : > { %p4694_p3 = scmp.ne.s32.totalorder %s6293_s18, %s4693_s2  ;;  %p4698_p7 = scmp.lt.s32.totalorder %s6293_s18, %s6362_s8 }
0x1324   : > { %p4699_p2 = scmp.lt.s32.totalorder %s4697_s21, %s4693_s2 }
0x1325   : > { %p4695_p11 = pnand %p4694_p3, %p6514_p8 }
0x1326   : > { %p4700_p6 = por %p4699_p2, %p4698_p7 }
0x1327   : > { %p4696_p5 = pneg %p4695_p11 }
0x1329   : > { %p4701_p13 = pnand %p4700_p6, %p4696_p5 }
0x132b   : > { %4704 = shalt.err (!%p4701_p13)
}
0x132c   : > { %4037 = dma.vmem_to_hbm [thread:$0]  (%p6514_p8), %s3540_s12, 128, %s6293_s18, %s3491_s15  }
0x132d   : > { %p6518_p0 = scmp.eq.s32.totalorder %s4992_s16, 1 }
0x132f   : > { %4762 = dma.done.wait (%p6518_p0), [#allocation6], 1024   ;;  %p6519_p1 = pmov %p6518_p0 }
0x1331   : > { %4764 = vsyncadd (%p6519_p1), [#allocation6], 4294966272 }
0x1332 PF: > { %s6520_s20 = sld [smem:[#allocation27_spill]] }
0x1333   : > { %s6522_s19 = sld [smem:[#allocation30_spill]] }
0x1338   : > { %s6521_s23 = sadd.s32 4294967294, %s6520_s20   ;;  %p6524_p9 = scmp.ge.s32.totalorder %s6520_s20, 2 }
0x1339   : > { %s3555_s10 = sand.u32 1, %s6521_s23   ;;  %p6523_p12 = scmp.ne.s32.totalorder %s6522_s19, 0 }
0x133a   : > { %s3556_s30 = scalar_lea.sflag [#allocation17], %s3555_s10 }
0x133b   : > { %p4063_p10 = pnand %p6524_p9, %p6523_p12 }
0x133d   : > { %p4064_p4 = pneg %p4063_p10 }
0x133f   : > { %4766 = dma.done.wait (%p4064_p4), %s3556_s30, 256  }
0x1340   : > { %4768 = vsyncadd (%p4064_p4), %s3556_s30, 4294967040  ;;  %s33_s12 = sadd.s32 1, %s6520_s20   ;;  %s6525_s1 = sld [smem:[#allocation26_spill]] }
0x1341   : > { %p30_p8 = scmp.ge.s32.totalorder %s33_s12, 4   ;;  %s6526_s29 = sld [smem:[#allocation29_spill]] }
0x1342   : > { %s6527_s16 = sld [smem:[#allocation28_spill]]  ;;  %s6528_s27 = smov %s4776_s28 }
0x1343   : > { %s6530_s30 = smov %s4788_s9  ;;  %s6344_s9 = smov 0  }
0x1344   : > { %s6531_s10 = smov %s4796_s11  ;;  %32 = sbr.rel (!%p30_p8) target bundleno = 18 (0x12), region = 346 }
0x1346   : > { %s6529_s28 = smov %s6525_s1 }
0x1348   : > { %s6532_s11 = smov %s6527_s16 }
0x1349   :  { %3570 = vsyncpa [#allocation5], 1 }
0x134a   :  { %3572 = vsyncpa [#allocation5 + $0x1], 1 }
0x134b   :  { %3573 = vsyncpa [#allocation8], 1 }
0x134c   :  { %3575 = vsyncpa [#allocation8 + $0x1], 1 }
0x134d   :  { %3576 = vsyncpa [#allocation11], 1 }
0x134e   :  { %3578 = vsyncpa [#allocation11 + $0x1], 1 }
0x134f   :  { %3579 = vsyncpa [#allocation14], 1 }
0x1350   :  { %3581 = vsyncpa [#allocation14 + $0x1], 1 }
0x1351   :  { %3582 = vsyncpa [#allocation6], 1 }
0x1352   :  { %3584 = vsyncpa [#allocation6 + $0x1], 1 }
0x1353   :  { %3585 = vsyncpa [#allocation17], 1 }
0x1354   :  { %3587 = vsyncpa [#allocation17 + $0x1], 1 }

// kernel: tpu_custom_call.1
= control target key start
LH: loop header
LB: loop body
LE: loop exit
PB: predicated region body
PF: predicated region fallthrough
CT: control target
= control target key end

     0   :  { %s6354_s0 = inlined_call_operand.hbm [shape: bf16[8,8,512], index: 0, kind: input, shape index: {}]   ;;  %s6355_s1 = inlined_call_operand.hbm [shape: bf16[1,128,512], index: 1, kind: input, shape index: {}]   ;;  %s6356_s2 = inlined_call_operand.hbm [shape: bf16[2,128,512], index: 2, kind: input, shape index: {}]   ;;  %s6357_s3 = inlined_call_operand.hbm [shape: f32[2,1,512], index: 3, kind: input, shape index: {}]   ;;  %s6358_s4 = inlined_call_operand.hbm [shape: f32[2,8,128], index: 4, kind: input, shape index: {}]   ;;  %s6359_s5 = inlined_call_operand.hbm [shape: f32[2,8,128], index: 5, kind: input, shape index: {}]   ;;  %s6360_s6 = inlined_call_operand.hbm [shape: f32[8,8,128], index: 6, kind: output, shape index: {0}]   ;;  %s6361_s7 = inlined_call_operand.hbm [shape: f32[2,8,128], index: 7, kind: output, shape index: {1}]   ;;  %s6362_s8 = inlined_call_operand.hbm [shape: f32[2,8,128], index: 8, kind: output, shape index: {2}]  }
   0x1   :  { %6432 = sst [smem:[#allocation56_spill]] %s6355_s1 }
   0x2   :  { %6433 = sst [smem:[#allocation57_spill]] %s6356_s2 }
   0x3   :  { %6434 = sst [smem:[#allocation58_spill]] %s6357_s3 }
   0x4   :  { %6435 = sst [smem:[#allocation59_spill]] %s6360_s6 }
   0x5   :  { %14 = vsyncpa [#allocation5], 0 }
   0x6   :  { %15 = vsyncpa [#allocation8], 0 }
   0x7   :  { %17 = vsyncpa [#allocation8 + $0x1], 0 }
   0x8   :  { %18 = vsyncpa [#allocation11], 0 }
   0x9   :  { %20 = vsyncpa [#allocation11 + $0x1], 0 }
   0xa   :  { %21 = vsyncpa [#allocation14], 0 }
   0xb   :  { %23 = vsyncpa [#allocation14 + $0x1], 0 }
   0xc   :  { %24 = vsyncpa [#allocation6], 0 }
   0xd   :  { %25 = vsyncpa [#allocation17], 0 }
   0xe   :  { %27 = vsyncpa [#allocation17 + $0x1], 0  ;;  %s4862_s27 = smov 0   ;;  %s4864_s28 = smov 0  }
   0xf   :  { %s4866_s29 = smov 0   ;;  %s4868_s30 = smov 0  }
  0x10   :  { %s4870_s9 = smov 0   ;;  %s4872_s10 = smov 0  }
  0x11   :  { %s4874_s11 = smov 0   ;;  %s4876_s12 = smov 0  }
  0x12 LB: > { %6436 = sst [smem:[#allocation26_spill]] %s4780_s29  ;;  %s42_s13 = sadd.s32 1, %s4796_s11  ;;  %s4800_s12 = sphi %s4876_s12, %s33_s12   ;;  %s4796_s11 = sphi %s4874_s11, %s6532_s11   ;;  %s4792_s10 = sphi %s4872_s10, %s6531_s10   ;;  %s4788_s9 = sphi %s4870_s9, %s6344_s9   ;;  %s4784_s30 = sphi %s4868_s30, %s6530_s30   ;;  %s4780_s29 = sphi %s4866_s29, %s6526_s29   ;;  %s4776_s28 = sphi %s4864_s28, %s6529_s28   ;;  %s4772_s27 = sphi %s4862_s27, %s6528_s27  }
  0x13   : > { %6437 = sst [smem:[#allocation27_spill]] %s4800_s12  ;;  %p43_p0 = scmp.ge.s32.totalorder %s42_s13, 2 }
  0x14   : > { %p4769_p1 = scmp.ne.s32.totalorder %s4788_s9, 0  ;;  %p92_p2 = scmp.eq.s32.totalorder %s4800_s12, 0 }
  0x15   : > { %s6534_s13 = smov (%p43_p0, %s42_s13), 0  ;;  %p4070_p6 = scmp.lt.s32.totalorder %s4800_s12, 2 }
  0x16   : > { %6438 = sst [smem:[#allocation28_spill]] %s6534_s13  ;;  %s107_s14 = ssub.s32 %s4796_s11, %s6534_s13 }
  0x17   : > { %p93_p3 = por %p4769_p1, %p92_p2  ;;  %p4911_p4 = scmp.eq.s32.totalorder %s107_s14, 0 }
  0x18   : > { %s327_s16 = sand.u32 1, %s4800_s12   ;;  %s4802_s17 = smov [#allocation7]  }
  0x19   : > { %s341_s18 = sshll.u32 %s4802_s17, 4  ;;  %p4920_p7 = pnand %p4070_p6, %p93_p3  ;;  %s342_s18 = int_to_ptr.vmem [resolvable:$true] %s341_s18 }
  0x1a   : > { %s4926_s20 = scalar_lea.sflag [#allocation8], %s327_s16  ;;  %s4476_s21 = scalar_lea.vmem %s342_s18, 4096 }
  0x1b   : > { %p4465_p8 = pneg %p4920_p7  ;;  %p4477_p9 = scmp.ne.s32.totalorder %s342_s18, %s4476_s21 }
  0x1c   : > { %s4483_s22 = scalar_lea.vmem %s342_s18, 8192  ;;  %p4484_p12 = scmp.lt.s32.totalorder %s342_s18, %s342_s18 }
  0x1d   : > { %p4479_p10 = pnand %p4477_p9, %p4465_p8  ;;  %p4485_p13 = scmp.lt.s32.totalorder %s4483_s22, %s4476_s21 }
  0x1f   : > { %p4480_p11 = pneg %p4479_p10  ;;  %p4486_p0 = por %p4485_p13, %p4484_p12 }
  0x21   : > { %p4487_p1 = pnand %p4486_p0, %p4480_p11 }
  0x23   : > { %4490 = shalt.err (!%p4487_p1)
}
  0x24   : > { %s6364_s23 = smov 256   ;;  %s6366_s24 = smov 16  }
  0x25   : > { %s6441_s1 = sld [smem:[#allocation56_spill]]  ;;  %s6363_s14 = sadd.s32 4294967294, %s4800_s12  }
  0x26   : > { %s110_s17 = sadd.s32 1, %s4780_s29  ;;  %p117_p3 = scmp.ne.s32.totalorder %s4780_s29, %s4776_s28 }
  0x27   : > { %s4946_s21 = scalar_select %p4911_p4, %s4780_s29, %s110_s17  }
  0x28   : > { %p119_p8 = por %p117_p3, %p92_p2  ;;  %p123_p9 = scmp.ne.s32.totalorder %s4776_s28, %s4772_s27 }
  0x29   : > { %6442 = sst [smem:[#allocation29_spill]] %s4946_s21  ;;  %p263_p10 = scmp.eq.s32.totalorder %s6363_s14, 1 }
  0x2a   : > { %s4958_s19 = sand.u32 1, %s4780_s29   ;;  %s4003_s26 = sshll.u32 %s4796_s11, 6 }
  0x2b   : > { %4049 = dma.hbm_to_vmem [thread:$0]  (!%p4920_p7), %s6441_s1, 4096, %s342_s18, %s4926_s20, %s6364_s23, %s6364_s23, %s6366_s24  }
  0x2c   : > { %p4963_p7 = pnand %p4070_p6, %p119_p8  ;;  %p4970_p4 = por %p263_p10, %p123_p9 }
  0x2d   : > { %s3779_s25 = sshll.u32 %s4958_s19, 2  ;;  %s6446_s3 = sld [smem:[#allocation58_spill]] }
  0x2e   : > { %s6444_s15 = scalar_select %p4970_p4, 1, 0 }
  0x2f   : > { %s376_s24 = scalar_lea.vmem [#allocation10], %s3779_s25  ;;  %s4981_s1 = scalar_lea.sflag [#allocation11], %s327_s16 }
  0x30   : > { %6445 = sst [smem:[#allocation30_spill]] %s6444_s15  ;;  %s384_s22 = sshll.u32 %s376_s24, 4  ;;  %s385_s22 = int_to_ptr.vmem [resolvable:$true] %s384_s22 }
  0x31   : > { %p4493_p2 = pneg %p4963_p7  ;;  %s4504_s13 = scalar_lea.vmem %s385_s22, 64 }
  0x32   : > { %p4505_p6 = scmp.ne.s32.totalorder %s385_s22, %s4504_s13  ;;  %s4805_s21 = smov [#allocation10]  }
  0x33   : > { %s382_s23 = scalar_lea.hbm %s6446_s3, %s4003_s26  ;;  %s4509_s15 = sshll.u32 %s4805_s21, 4  ;;  %s4510_s15 = int_to_ptr.vmem [resolvable:$false] %s4509_s15 }
  0x34   : > { %p4507_p11 = pnand %p4505_p6, %p4493_p2  ;;  %s4511_s6 = scalar_lea.vmem %s4510_s15, 128 }
  0x35   : > { %p4512_p13 = scmp.lt.s32.totalorder %s385_s22, %s4510_s15  ;;  %p4513_p0 = scmp.lt.s32.totalorder %s4511_s6, %s4504_s13 }
  0x36   : > { %p4508_p12 = pneg %p4507_p11 }
  0x37   : > { %p4514_p1 = por %p4513_p0, %p4512_p13 }
  0x39   : > { %p4515_p8 = pnand %p4514_p1, %p4508_p12 }
  0x3b   : > { %4518 = shalt.err (!%p4515_p8)
}
  0x3c   : > { %4055 = dma.hbm_to_vmem [thread:$0]  (!%p4963_p7), %s382_s23, 64, %s385_s22, %s4981_s1  }
  0x3d   : > { %s4992_s16 = sadd.s32 4294967295, %s4800_s12   ;;  %p97_p10 = scmp.ne.s32.totalorder %s4788_s9, %s4784_s30 }
  0x3e   : > { %p98_p6 = scmp.eq.s32.totalorder %s4992_s16, 0  ;;  %p6373_p11 = scmp.eq.s32.totalorder %s4992_s16, 1 }
  0x3f   : > { %p3769_p12 = scmp.ge.s32.totalorder %s4800_s12, 1  ;;  %p298_p8 = scmp.lt.s32.totalorder %s4800_s12, 3 }
  0x40   : > { %p5001_p13 = por %p98_p6, %p97_p10  ;;  %p5010_p0 = por %p123_p9, %p98_p6 }
  0x41   : > { %p5019_p1 = por %p6373_p11, %p117_p3  ;;  %p5024_p5 = pnand %p3769_p12, %p298_p8 }
  0x42   : > { %s6448_s13 = scalar_select %p5010_p0, 1, 0 }
  0x43   : > { %s6449_s30 = scalar_select %p5019_p1, 1, 0 }
  0x44   : > { %s4806_s24 = smov [#allocation4]   ;;  %p4042_p9 = pneg %p5024_p5 }
  0x45   : > { %s313_s14 = sshll.u32 %s4806_s24, 4  ;;  %s4002_s27 = sshll.u32 %s4796_s11, 12  ;;  %s5028_s14 = int_to_ptr.vmem [resolvable:$true] %s313_s14 }
  0x46   : > { %s6451_s2 = sld [smem:[#allocation57_spill]]  ;;  %s6452_s25 = sshll.u32 %s4958_s19, 8 }
  0x47   : > { %s355_s26 = scalar_lea.vmem [#allocation9], %s6452_s25  ;;  %p5040_p3 = pnand %p4042_p9, %p98_p6 }
  0x48   : > { %s362_s17 = sshll.u32 %s355_s26, 4  ;;  %s4807_s24 = smov [#allocation9]   ;;  %s363_s17 = int_to_ptr.vmem [resolvable:$true] %s362_s17 }
  0x49   : > { %s4532_s29 = scalar_lea.vmem %s363_s17, 4096  ;;  %s4537_s12 = sshll.u32 %s4807_s24, 4  ;;  %s4538_s12 = int_to_ptr.vmem [resolvable:$false] %s4537_s12 }
  0x4a   : > { %p4533_p10 = scmp.ne.s32.totalorder %s363_s17, %s4532_s29  ;;  %s4539_s21 = scalar_lea.vmem %s4538_s12, 8192 }
  0x4b   : > { %p4540_p11 = scmp.lt.s32.totalorder %s363_s17, %s4538_s12  ;;  %p4541_p4 = scmp.lt.s32.totalorder %s4539_s21, %s4532_s29 }
  0x4c   : > { %s361_s15 = scalar_lea.hbm %s6451_s2, %s4002_s27  ;;  %p4535_p12 = pnand %p4533_p10, %p4493_p2 }
  0x4d   : > { %p4542_p1 = por %p4541_p4, %p4540_p11 }
  0x4e   : > { %p4536_p8 = pneg %p4535_p12 }
  0x50   : > { %p4543_p0 = pnand %p4542_p1, %p4536_p8 }
  0x52   : > { %4546 = shalt.err (!%p4543_p0)
}
  0x53   : > { %s6454_s27 = smov 16   ;;  %s6455_s22 = smov 256  }
  0x54   : > { %4052 = dma.hbm_to_vmem [thread:$0]  (!%p4963_p7), %s361_s15, 4096, %s363_s17, %s4926_s20, %s6455_s22, %s6455_s22, %s6454_s27  }
  0x55   : > { %s3782_s25 = sshll.u32 %s4958_s19, 3  ;;  %p4549_p9 = pneg %p5040_p3 }
  0x56   : > { %s4558_s12 = scalar_lea.vmem %s5028_s14, 2048  ;;  %p4566_p0 = scmp.lt.s32.totalorder %s5028_s14, %s5028_s14 }
  0x57   : > { %p4559_p10 = scmp.ne.s32.totalorder %s5028_s14, %s4558_s12  ;;  %p4567_p1 = scmp.lt.s32.totalorder %s4558_s12, %s4558_s12 }
  0x59   : > { %p4561_p4 = pnand %p4559_p10, %p4549_p9  ;;  %p4568_p12 = por %p4567_p1, %p4566_p0 }
  0x5b   : > { %p4562_p11 = pneg %p4561_p4 }
  0x5d   : > { %p4569_p8 = pnand %p4568_p12, %p4562_p11 }
  0x5f   : > { %4572 = shalt.err (!%p4569_p8)
}
  0x60   : > { %4045 = dma.hbm_to_vmem [thread:$0]  (!%p5040_p3), %s6354_s0, 2048, %s5028_s14, [#allocation5], %s6455_s22, %s6455_s22, %s6454_s27  }
  0x61   : > { %s3783_s15 = sshll.u32 %s4796_s11, 7  ;;  %s395_s21 = scalar_lea.vmem [#allocation12], %s3782_s25 }
  0x62   : > { %s401_s24 = scalar_lea.hbm %s6358_s4, %s3783_s15  ;;  %s403_s12 = sshll.u32 %s395_s21, 4  ;;  %s404_s12 = int_to_ptr.vmem [resolvable:$true] %s403_s12 }
  0x63   : > { %s4586_s3 = scalar_lea.vmem %s404_s12, 128  ;;  %s4808_s29 = smov [#allocation12]  }
  0x64   : > { %p4587_p9 = scmp.ne.s32.totalorder %s404_s12, %s4586_s3  ;;  %s4591_s20 = sshll.u32 %s4808_s29, 4  ;;  %s4592_s20 = int_to_ptr.vmem [resolvable:$false] %s4591_s20 }
  0x65   : > { %s4593_s2 = scalar_lea.vmem %s4592_s20, 256  ;;  %p4594_p3 = scmp.lt.s32.totalorder %s404_s12, %s4592_s20 }
  0x66   : > { %p4589_p10 = pnand %p4587_p9, %p4493_p2  ;;  %p4595_p11 = scmp.lt.s32.totalorder %s4593_s2, %s4586_s3 }
  0x68   : > { %p4590_p4 = pneg %p4589_p10  ;;  %p4596_p0 = por %p4595_p11, %p4594_p3 }
  0x6a   : > { %p4597_p1 = pnand %p4596_p0, %p4590_p4 }
  0x6c   : > { %4600 = shalt.err (!%p4597_p1)
}
  0x6d   : > { %4058 = dma.hbm_to_vmem [thread:$0]  (!%p4963_p7), %s401_s24, 128, %s404_s12, %s4981_s1  }
  0x6e   : > { %s420_s22 = scalar_lea.hbm %s6359_s5, %s3783_s15  ;;  %s414_s26 = scalar_lea.vmem [#allocation13], %s3782_s25 }
  0x6f   : > { %s422_s17 = sshll.u32 %s414_s26, 4  ;;  %s411_s21 = scalar_lea.sflag [#allocation14], %s4958_s19  ;;  %s423_s17 = int_to_ptr.vmem [resolvable:$true] %s422_s17 }
  0x70   : > { %s4614_s2 = scalar_lea.vmem %s423_s17, 128  ;;  %s4809_s3 = smov [#allocation13]  }
  0x71   : > { %p4615_p12 = scmp.ne.s32.totalorder %s423_s17, %s4614_s2  ;;  %s4619_s29 = sshll.u32 %s4809_s3, 4  ;;  %s4620_s29 = int_to_ptr.vmem [resolvable:$false] %s4619_s29 }
  0x72   : > { %s4621_s20 = scalar_lea.vmem %s4620_s29, 256  ;;  %p4622_p10 = scmp.lt.s32.totalorder %s423_s17, %s4620_s29 }
  0x73   : > { %p4617_p8 = pnand %p4615_p12, %p4493_p2  ;;  %p4623_p4 = scmp.lt.s32.totalorder %s4621_s20, %s4614_s2 }
  0x75   : > { %p4618_p9 = pneg %p4617_p8  ;;  %p4624_p3 = por %p4623_p4, %p4622_p10 }
  0x77   : > { %p4625_p11 = pnand %p4624_p3, %p4618_p9 }
  0x79   : > { %4628 = shalt.err (!%p4625_p11)
}
  0x7a   : > { %4061 = dma.hbm_to_vmem [thread:$0]  (!%p4963_p7), %s420_s22, 128, %s423_s17, %s411_s21  }
  0x7b   : > { %431 = sbr.rel (%p5024_p5) target bundleno = 4914 (0x1332), region = 44 }
  0x80   : > { %4742 = dma.done.wait (%p98_p6), [#allocation5], 2048  }
  0x81   : > { %4744 = vsyncadd (%p98_p6), [#allocation5], 4294965248  ;;  %s5099_s1 = sand.u32 1, %s4992_s16   ;;  %s439_s19 = sand.u32 1, %s4788_s9  }
  0x82   : > { %s3788_s25 = sshll.u32 %s439_s19, 8  ;;  %s438_s15 = scalar_lea.sflag [#allocation8], %s5099_s1 }
  0x83   : > { %s5103_s18 = scalar_lea.vmem [#allocation7], %s3788_s25 }
  0x84   : > { %4746 = dma.done.wait (%p5001_p13), %s438_s15, 4096  }
  0x85   : > { %4748 = vsyncadd (%p5001_p13), %s438_s15, 4294963200  ;;  %s448_s23 = sand.u32 1, %s4776_s28   ;;  %p6456_p5 = scmp.ne.s32.totalorder %s6448_s13, 0 }
  0x86   : > { %s3789_s24 = sshll.u32 %s448_s23, 8 }
  0x87   : > { %s5110_s12 = scalar_lea.vmem [#allocation9], %s3789_s24 }
  0x88   : > { %4750 = dma.done.wait (%p6456_p5), %s438_s15, 4096  }
  0x89   : > { %4752 = vsyncadd (%p6456_p5), %s438_s15, 4294963200  ;;  %s3790_s14 = sshll.u32 %s448_s23, 2  ;;  %s456_s27 = scalar_lea.sflag [#allocation11], %s5099_s1 }
  0x8a   : > { %s5117_s22 = scalar_lea.vmem [#allocation10], %s3790_s14 }
  0x8b   : > { %4754 = dma.done.wait (%p6456_p5), %s456_s27, 192  }
  0x8c   : > { %4756 = vsyncadd (%p6456_p5), %s456_s27, 4294967104  ;;  %s5123_s6 = sshll.u32 %s448_s23, 3  ;;  %s474_s17 = scalar_lea.sflag [#allocation14], %s448_s23 }
  0x8d   : > { %s468_s26 = scalar_lea.vmem [#allocation12], %s5123_s6  ;;  %s477_s21 = scalar_lea.vmem [#allocation13], %s5123_s6 }
  0x8e   : > { %4758 = dma.done.wait (%p6456_p5), %s474_s17, 128  }
  0x8f   : > { %4760 = vsyncadd (%p6456_p5), %s474_s17, 4294967168  ;;  %v5132_v0 = vld [vmem:[%s5110_s12] sm:$0xff]  ;;  %v5135_v1 = vld [vmem:[%s5110_s12 + $0x8] sm:$0xff]  ;;  %s5236_s13 = scalar_lea.vmem [#allocation16], %s5123_s6  ;;  %s5239_s2 = scalar_lea.vmem [#allocation18], %s5123_s6 }
  0x90   : > { %6457 = vst [vmem:[#allocation31_spill] sm:$0xff] %v5132_v0  ;;  %6458 = vst [vmem:[#allocation32_spill] sm:$0xff] %v5135_v1  ;;  %v5138_v2 = vld [vmem:[%s5110_s12 + $0x10] sm:$0xff]  ;;  %v5141_v3 = vld [vmem:[%s5110_s12 + $0x18] sm:$0xff]  ;;  %p3795_p7 = scmp.ne.s32.totalorder %s4792_s10, 0 }
  0x91   : > { %6459 = vst [vmem:[#allocation33_spill] sm:$0xff] %v5138_v2  ;;  %6460 = vst [vmem:[#allocation34_spill] sm:$0xff] %v5141_v3  ;;  %v5144_v4 = vld [vmem:[%s5110_s12 + $0x20] sm:$0xff]  ;;  %v5147_v5 = vld [vmem:[%s5110_s12 + $0x28] sm:$0xff]  ;;  %p3831_p2 = scmp.ne.s32.totalorder (!%p3795_p7), %s4792_s10, 1 }
  0x92   : > { %6461 = vst [vmem:[#allocation35_spill] sm:$0xff] %v5144_v4  ;;  %6462 = vst [vmem:[#allocation36_spill] sm:$0xff] %v5147_v5  ;;  %v5150_v6 = vld [vmem:[%s5110_s12 + $0x30] sm:$0xff]  ;;  %v5153_v7 = vld [vmem:[%s5110_s12 + $0x38] sm:$0xff] }
  0x93   : > { %6463 = vst [vmem:[#allocation37_spill] sm:$0xff] %v5150_v6  ;;  %6464 = vst [vmem:[#allocation38_spill] sm:$0xff] %v5153_v7  ;;  %v5156_v8 = vld [vmem:[%s5110_s12 + $0x40] sm:$0xff]  ;;  %v5159_v9 = vld [vmem:[%s5110_s12 + $0x48] sm:$0xff] }
  0x94   : > { %6465 = vst [vmem:[#allocation39_spill] sm:$0xff] %v5156_v8  ;;  %6466 = vst [vmem:[#allocation40_spill] sm:$0xff] %v5159_v9  ;;  %v5162_v10 = vld [vmem:[%s5110_s12 + $0x50] sm:$0xff]  ;;  %v5165_v11 = vld [vmem:[%s5110_s12 + $0x58] sm:$0xff] }
  0x95   : > { %6467 = vst [vmem:[#allocation41_spill] sm:$0xff] %v5162_v10  ;;  %6468 = vst [vmem:[#allocation42_spill] sm:$0xff] %v5165_v11  ;;  %v5168_v12 = vld [vmem:[%s5110_s12 + $0x60] sm:$0xff]  ;;  %v5171_v13 = vld [vmem:[%s5110_s12 + $0x68] sm:$0xff] }
  0x96   : > { %6469 = vst [vmem:[#allocation43_spill] sm:$0xff] %v5168_v12  ;;  %6470 = vst [vmem:[#allocation44_spill] sm:$0xff] %v5171_v13  ;;  %v5174_v14 = vld [vmem:[%s5110_s12 + $0x70] sm:$0xff]  ;;  %v5177_v15 = vld [vmem:[%s5110_s12 + $0x78] sm:$0xff] }
  0x97   : > { %6471 = vst [vmem:[#allocation45_spill] sm:$0xff] %v5174_v14  ;;  %6472 = vst [vmem:[#allocation46_spill] sm:$0xff] %v5177_v15  ;;  %v5180_v16 = vld [vmem:[%s5110_s12 + $0x80] sm:$0xff]  ;;  %v5183_v17 = vld [vmem:[%s5110_s12 + $0x88] sm:$0xff] }
  0x98   : > { %6473 = vst [vmem:[#allocation47_spill] sm:$0xff] %v5180_v16  ;;  %6474 = vst [vmem:[#allocation48_spill] sm:$0xff] %v5183_v17  ;;  %v5186_v18 = vld [vmem:[%s5110_s12 + $0x90] sm:$0xff]  ;;  %v5189_v19 = vld [vmem:[%s5110_s12 + $0x98] sm:$0xff] }
  0x99   : > { %6475 = vst [vmem:[#allocation49_spill] sm:$0xff] %v5186_v18  ;;  %6476 = vst [vmem:[#allocation50_spill] sm:$0xff] %v5189_v19  ;;  %v5192_v20 = vld [vmem:[%s5110_s12 + $0xa0] sm:$0xff]  ;;  %v5195_v21 = vld [vmem:[%s5110_s12 + $0xa8] sm:$0xff] }
  0x9a   : > { %6477 = vst [vmem:[#allocation51_spill] sm:$0xff] %v5192_v20  ;;  %6478 = vst [vmem:[#allocation52_spill] sm:$0xff] %v5195_v21  ;;  %v5198_v22 = vld [vmem:[%s5110_s12 + $0xb0] sm:$0xff]  ;;  %v5201_v23 = vld [vmem:[%s5110_s12 + $0xb8] sm:$0xff] }
  0x9b   : > { %6479 = vst [vmem:[#allocation53_spill] sm:$0xff] %v5201_v23  ;;  %v5204_v24 = vld [vmem:[%s5110_s12 + $0xc0] sm:$0xff]  ;;  %v5207_v25 = vld [vmem:[%s5110_s12 + $0xc8] sm:$0xff]  ;;  %v5210_v26 = vld [vmem:[%s5110_s12 + $0xd0] sm:$0xff]  ;;  %577 = sbr.rel (%p3795_p7) target bundleno = 2485 (0x9b5), region = 72 }
  0x9c   : > { %v5213_v27 = vld [vmem:[%s5110_s12 + $0xd8] sm:$0xff]  ;;  %v5216_v28 = vld [vmem:[%s5110_s12 + $0xe0] sm:$0xff]  ;;  %v5219_v29 = vld [vmem:[%s5110_s12 + $0xe8] sm:$0xff] }
  0x9d   : > { %v5222_v30 = vld [vmem:[%s5110_s12 + $0xf0] sm:$0xff]  ;;  %v5225_v31 = vld [vmem:[%s5110_s12 + $0xf8] sm:$0xff] }
  0x9e   : > { %v5229_v32 = vld [vmem:[%s468_s26] sm:$0xff]  ;;  %v5233_v33 = vld [vmem:[%s477_s21] sm:$0xff] }
  0x9f   : > { %6480 = vst [vmem:[#allocation54_spill] sm:$0xff] %v5229_v32  ;;  %6481 = vst [vmem:[#allocation55_spill] sm:$0xff] %v5233_v33 }
  0xa0   : > { %v5244_v34 = vcombine.high %v5216_v28, %v5222_v30  ;;  %v5248_v35 = vcombine.low %v5216_v28, %v5222_v30  ;;  %v5252_v36 = vcombine.high %v5204_v24, %v5210_v26  ;;  %v5256_v37 = vcombine.high %v5219_v29, %v5225_v31 }
  0xa1   : > { %v5261_v38 = vcombine.low %v5219_v29, %v5225_v31  ;;  %v5265_v39 = vcombine.high %v5207_v25, %v5213_v27  ;;  %v5270_v40 = vcombine.low %v5204_v24, %v5210_v26  ;;  %v5276_v41 = vcombine.high %v5192_v20, %v5198_v22 }
  0xa2   : > { %745 = vmatprep.subr.bf16.mxu0 %v5244_v34  ;;  %786 = vmatprep.subr.bf16.mxu1 %v5256_v37  ;;  %v5281_v42 = vcombine.low %v5207_v25, %v5213_v27  ;;  %v5286_v43 = vcombine.high %v5195_v21, %v5201_v23  ;;  %v6376_v44 = vmov 0   ;;  %v5292_v45 = vcombine.low %v5192_v20, %v5198_v22 }
  0xa3   : > { %746 = vmatpush1.bf16.msra.mxu0 %v5248_v35  ;;  %787 = vmatpush1.bf16.msra.mxu1 %v5261_v38  ;;  %v5297_v46 = vcombine.high %v5180_v16, %v5186_v18  ;;  %v5302_v47 = vcombine.low %v5195_v21, %v5201_v23  ;;  %v5307_v48 = vcombine.high %v5183_v17, %v5189_v19 }
  0xa4   : > { %747 = vmatprep.subr.bf16.mxu0 %v5252_v36  ;;  %788 = vmatprep.subr.bf16.mxu1 %v5265_v39  ;;  %v5313_v49 = vcombine.low %v5180_v16, %v5186_v18  ;;  %v5318_v50 = vcombine.high %v5168_v12, %v5174_v14  ;;  %v5323_v51 = vcombine.low %v5183_v17, %v5189_v19 }
  0xa5   : > { %777 = vmatprep.mubr.bf16.mxu0 %v6376_v44  ;;  %818 = vmatprep.mubr.bf16.mxu1 %v6376_v44  ;;  %v5328_v52 = vcombine.high %v5171_v13, %v5177_v15  ;;  %v5333_v53 = vcombine.low %v5168_v12, %v5174_v14  ;;  %v5338_v54 = vcombine.high %v5156_v8, %v5162_v10 }
  0xa6   : > { %v5343_v55 = vcombine.low %v5171_v13, %v5177_v15  ;;  %v5348_v56 = vcombine.high %v5159_v9, %v5165_v11  ;;  %v5353_v57 = vcombine.low %v5156_v8, %v5162_v10  ;;  %v5358_v58 = vcombine.high %v5144_v4, %v5150_v6 }
  0xa7   : > { %748 = vmatpush1.bf16.msra.mxu0 %v5270_v40  ;;  %789 = vmatpush1.bf16.msra.mxu1 %v5281_v42  ;;  %v5363_v59 = vcombine.low %v5159_v9, %v5165_v11  ;;  %v5368_v60 = vcombine.high %v5147_v5, %v5153_v7  ;;  %v5373_v61 = vcombine.low %v5144_v4, %v5150_v6 }
  0xa8   : > { %749 = vmatprep.subr.bf16.mxu0 %v5276_v41  ;;  %790 = vmatprep.subr.bf16.mxu1 %v5286_v43  ;;  %v5378_v62 = vcombine.high %v5132_v0, %v5138_v2  ;;  %v5383_v63 = vcombine.low %v5147_v5, %v5153_v7  ;;  %v5388_v44 = vcombine.high %v5135_v1, %v5141_v3 }
  0xa9   : > { %v5393_v4 = vcombine.low %v5132_v0, %v5138_v2  ;;  %v5399_v5 = vcombine.low %v5135_v1, %v5141_v3  ;;  %v584_v7 = vpack.c.bf16 %v5229_v32, %v5229_v32  ;;  %v578_v0 = vld [vmem:[#allocation4] sm:$0xff]  ;;  %v579_v32 = vld [vmem:[#allocation4 + $0x8] sm:$0xff] }
  0xaa   : > { %v580_v2 = vunpack.c.l.bf16 %v578_v0  ;;  %v581_v6 = vunpack.c.h.bf16 %v578_v0  ;;  %v583_v16 = vunpack.c.h.bf16 %v579_v32 }
  0xab   : > { %750 = vmatpush1.bf16.msra.mxu0 %v5292_v45  ;;  %791 = vmatpush1.bf16.msra.mxu1 %v5302_v47 }
  0xac   : > { %751 = vmatprep.subr.bf16.mxu0 %v5297_v46  ;;  %792 = vmatprep.subr.bf16.mxu1 %v5307_v48 }
  0xaf   : > { %752 = vmatpush1.bf16.msra.mxu0 %v5313_v49  ;;  %793 = vmatpush1.bf16.msra.mxu1 %v5323_v51 }
  0xb0   : > { %753 = vmatprep.subr.bf16.mxu0 %v5318_v50  ;;  %794 = vmatprep.subr.bf16.mxu1 %v5328_v52 }
  0xb3   : > { %754 = vmatpush1.bf16.msra.mxu0 %v5333_v53  ;;  %795 = vmatpush1.bf16.msra.mxu1 %v5343_v55 }
  0xb4   : > { %755 = vmatprep.subr.bf16.mxu0 %v5338_v54  ;;  %796 = vmatprep.subr.bf16.mxu1 %v5348_v56 }
  0xb7   : > { %756 = vmatpush1.bf16.msra.mxu0 %v5353_v57  ;;  %797 = vmatpush1.bf16.msra.mxu1 %v5363_v59 }
  0xb8   : > { %757 = vmatprep.subr.bf16.mxu0 %v5358_v58  ;;  %798 = vmatprep.subr.bf16.mxu1 %v5368_v60 }
  0xbb   : > { %758 = vmatpush1.bf16.msra.mxu0 %v5373_v61  ;;  %799 = vmatpush1.bf16.msra.mxu1 %v5383_v63 }
  0xbc   : > { %759 = vmatprep.subr.bf16.mxu0 %v5378_v62  ;;  %800 = vmatprep.subr.bf16.mxu1 %v5388_v44 }
  0xbf   : > { %760 = vmatpush1.bf16.msra.mxu0 %v5393_v4  ;;  %801 = vmatpush1.bf16.msra.mxu1 %v5399_v5 }
  0xc2   : > { %778 = vmatmul.mubr.bf16.vlgmr.msra.gmra.mxu0 %v584_v7  ;;  %819 = vmatmul.mubr.bf16.vlgmr.msra.gmra.mxu1 %v584_v7  ;;  %v582_v7 = vunpack.c.l.bf16 %v579_v32 }
 0x182   : > { %v779_v9 = vpop.f32.mrf.mxu0  ;;  %v820_v8 = vpop.f32.mrf.mxu1 }
 0x183   : > { %v827_v11 = vadd.f32 %v779_v9, %v580_v2  ;;  %v829_v21 = vadd.f32 %v820_v8, %v582_v7 }
 0x184   : > { %v781_v10 = vpop.f32.mrf.mxu0  ;;  %v822_v13 = vpop.f32.mrf.mxu1 }
 0x185   : > { %v3828_v1 = vmul.f32 -1.442695, %v827_v11  ;;  %v828_v3 = vadd.f32 %v781_v10, %v581_v6  ;;  %v830_v18 = vadd.f32 %v822_v13, %v583_v16 }
 0x186   : > { %v783_v15 = vpop.f32.mrf.mxu0  ;;  %v824_v14 = vpop.f32.mrf.mxu1 }
 0x187   : > { %4155 = vpow2.f32 %v3828_v1  ;;  %v3829_v12 = vmul.f32 -1.442695, %v828_v3  ;;  %v3830_v0 = vmul.f32 -1.442695, %v830_v18 }
 0x188   : > { %v784_v17 = vpop.f32.mrf.mxu0  ;;  %v825_v19 = vpop.f32.mrf.mxu1 }
 0x189   : > { %4157 = vpow2.f32 %v3829_v12 }
 0x18a   : > { %4159 = vtanh.f32 %v829_v21 }
 0x18b   : > { %4161 = vpow2.f32 %v3830_v0 }
 0x194   : > { %v4156_v23 = vpop.eup %4155 }
 0x195   : > { %v834_v2 = vadd.f32 1.0, %v4156_v23 }
 0x196   : > { %v4158_v9 = vpop.eup %4157 }
 0x197   : > { %4163 = vrcp.f32 %v834_v2  ;;  %v840_v6 = vadd.f32 1.0, %v4158_v9  ;;  %v4160_v1 = vpop.eup %4159 }
 0x198   : > { %v4162_v3 = vpop.eup %4161 }
 0x199   : > { %4165 = vrcp.f32 %v840_v6  ;;  %v847_v14 = vadd.f32 1.0, %v4162_v3 }
 0x19b   : > { %4167 = vrcp.f32 %v847_v14 }
 0x1a4   : > { %v4164_v10 = vpop.eup %4163 }
 0x1a5   : > { %v851_v15 = vmul.f32 %v4164_v10, %v4160_v1 }
 0x1a6   : > { %v4166_v11 = vpop.eup %4165 }
 0x1a7   : > { %v850_v12 = vmul.f32 %v4166_v11, %v5233_v33 }
 0x1a8   : > { %v4168_v8 = vpop.eup %4167 }
 0x1a9   : > { %v5407_v17 = vadd.f32 %v851_v15, %v850_v12 }
 0x1ab   : > { %4169 = vtanh.f32 %v5407_v17 }
 0x1b5   : > { %857 = sbr.rel (%p3831_p2) target bundleno = 444 (0x1bc), region = 76 }
 0x1b8   : > { %v4170_v13 = vpop.eup %4169 }
 0x1b9   : > { %v854_v16 = vmul.f32 %v4170_v13, %v4168_v8 }
 0x1bb   : > { %858 = vst [vmem:[#allocation15] sm:$0xff] %v854_v16 }
 0x1bc PF: > { %p3832_p6 = scmp.eq.s32.totalorder %s4792_s10, 1 }
 0x1be   : > { %862 = sbr.rel (%p3832_p6) target bundleno = 454 (0x1c6), region = 80 }
 0x1c3   : > { %v863_v18 = vpack.c.bf16 %v854_v16, %v854_v16 }
 0x1c5   : > { %864 = vst [vmem:[#allocation3] sm:$0xf] %v863_v18 }
 0x1c6 PF: > { %873 = vmatprep.subr.bf16.mxu0 %v5244_v34  ;;  %914 = vmatprep.subr.bf16.mxu1 %v5256_v37  ;;  %v6482_v19 = vmov 0   ;;  %v872_v21 = vpack.c.bf16 %v854_v16, %v854_v16  ;;  %v866_v23 = vld [vmem:[#allocation4 + $0x10] sm:$0xff]  ;;  %v867_v15 = vld [vmem:[#allocation4 + $0x18] sm:$0xff] }
 0x1c7   : > { %874 = vmatpush1.bf16.msra.mxu0 %v5248_v35  ;;  %915 = vmatpush1.bf16.msra.mxu1 %v5261_v38  ;;  %v868_v32 = vunpack.c.l.bf16 %v866_v23  ;;  %v869_v7 = vunpack.c.h.bf16 %v866_v23  ;;  %v871_v16 = vunpack.c.h.bf16 %v867_v15  ;;  %v870_v18 = vunpack.c.l.bf16 %v867_v15 }
 0x1c8   : > { %875 = vmatprep.subr.bf16.mxu0 %v5252_v36  ;;  %916 = vmatprep.subr.bf16.mxu1 %v5265_v39 }
 0x1c9   : > { %905 = vmatprep.mubr.bf16.mxu0 %v6482_v19  ;;  %946 = vmatprep.mubr.bf16.mxu1 %v6482_v19 }
 0x1cb   : > { %876 = vmatpush1.bf16.msra.mxu0 %v5270_v40  ;;  %917 = vmatpush1.bf16.msra.mxu1 %v5281_v42 }
 0x1cc   : > { %877 = vmatprep.subr.bf16.mxu0 %v5276_v41  ;;  %918 = vmatprep.subr.bf16.mxu1 %v5286_v43 }
 0x1cf   : > { %878 = vmatpush1.bf16.msra.mxu0 %v5292_v45  ;;  %919 = vmatpush1.bf16.msra.mxu1 %v5302_v47 }
 0x1d0   : > { %879 = vmatprep.subr.bf16.mxu0 %v5297_v46  ;;  %920 = vmatprep.subr.bf16.mxu1 %v5307_v48 }
 0x1d3   : > { %880 = vmatpush1.bf16.msra.mxu0 %v5313_v49  ;;  %921 = vmatpush1.bf16.msra.mxu1 %v5323_v51 }
 0x1d4   : > { %881 = vmatprep.subr.bf16.mxu0 %v5318_v50  ;;  %922 = vmatprep.subr.bf16.mxu1 %v5328_v52 }
 0x1d7   : > { %882 = vmatpush1.bf16.msra.mxu0 %v5333_v53  ;;  %923 = vmatpush1.bf16.msra.mxu1 %v5343_v55 }
 0x1d8   : > { %883 = vmatprep.subr.bf16.mxu0 %v5338_v54  ;;  %924 = vmatprep.subr.bf16.mxu1 %v5348_v56 }
 0x1db   : > { %884 = vmatpush1.bf16.msra.mxu0 %v5353_v57  ;;  %925 = vmatpush1.bf16.msra.mxu1 %v5363_v59 }
 0x1dc   : > { %885 = vmatprep.subr.bf16.mxu0 %v5358_v58  ;;  %926 = vmatprep.subr.bf16.mxu1 %v5368_v60 }
 0x1df   : > { %886 = vmatpush1.bf16.msra.mxu0 %v5373_v61  ;;  %927 = vmatpush1.bf16.msra.mxu1 %v5383_v63 }
 0x1e0   : > { %887 = vmatprep.subr.bf16.mxu0 %v5378_v62  ;;  %928 = vmatprep.subr.bf16.mxu1 %v5388_v44 }
 0x1e3   : > { %888 = vmatpush1.bf16.msra.mxu0 %v5393_v4  ;;  %929 = vmatpush1.bf16.msra.mxu1 %v5399_v5 }
 0x1e6   : > { %906 = vmatmul.mubr.bf16.vlgmr.msra.gmra.mxu0 %v872_v21  ;;  %947 = vmatmul.mubr.bf16.vlgmr.msra.gmra.mxu1 %v872_v21 }
 0x2a6   : > { %v907_v0 = vpop.f32.mrf.mxu0  ;;  %v948_v2 = vpop.f32.mrf.mxu1 }
 0x2a7   : > { %v955_v9 = vadd.f32 %v907_v0, %v868_v32  ;;  %v957_v21 = vadd.f32 %v948_v2, %v870_v18 }
 0x2a8   : > { %v909_v6 = vpop.f32.mrf.mxu0  ;;  %v950_v1 = vpop.f32.mrf.mxu1 }
 0x2a9   : > { %v3833_v3 = vmul.f32 -1.442695, %v955_v9  ;;  %v956_v10 = vadd.f32 %v909_v6, %v869_v7  ;;  %v958_v19 = vadd.f32 %v950_v1, %v871_v16 }
 0x2aa   : > { %v911_v11 = vpop.f32.mrf.mxu0  ;;  %v952_v14 = vpop.f32.mrf.mxu1 }
 0x2ab   : > { %4171 = vpow2.f32 %v3833_v3  ;;  %v3834_v12 = vmul.f32 -1.442695, %v956_v10  ;;  %v3835_v23 = vmul.f32 -1.442695, %v958_v19 }
 0x2ac   : > { %v912_v8 = vpop.f32.mrf.mxu0  ;;  %v953_v13 = vpop.f32.mrf.mxu1 }
 0x2ad   : > { %4173 = vpow2.f32 %v3834_v12 }
 0x2ae   : > { %4175 = vtanh.f32 %v957_v21 }
 0x2af   : > { %4177 = vpow2.f32 %v3835_v23 }
 0x2b8   : > { %v4172_v33 = vpop.eup %4171 }
 0x2b9   : > { %v962_v20 = vadd.f32 1.0, %v4172_v33 }
 0x2ba   : > { %v4174_v32 = vpop.eup %4173 }
 0x2bb   : > { %4179 = vrcp.f32 %v962_v20  ;;  %v968_v7 = vadd.f32 1.0, %v4174_v32  ;;  %v4176_v0 = vpop.eup %4175 }
 0x2bc   : > { %v4178_v9 = vpop.eup %4177 }
 0x2bd   : > { %4181 = vrcp.f32 %v968_v7  ;;  %v975_v10 = vadd.f32 1.0, %v4178_v9 }
 0x2bf   : > { %4183 = vrcp.f32 %v975_v10 }
 0x2c8   : > { %v4180_v6 = vpop.eup %4179 }
 0x2c9   : > { %v979_v14 = vmul.f32 %v4180_v6, %v4176_v0 }
 0x2ca   : > { %v4182_v3 = vpop.eup %4181 }
 0x2cb   : > { %v978_v11 = vmul.f32 %v4182_v3, %v5407_v17 }
 0x2cc   : > { %v4184_v33 = vpop.eup %4183 }
 0x2cd   : > { %v5451_v12 = vadd.f32 %v979_v14, %v978_v11 }
 0x2cf   : > { %4185 = vtanh.f32 %v5451_v12 }
 0x2d9   : > { %985 = sbr.rel (%p3831_p2) target bundleno = 736 (0x2e0), region = 84 }
 0x2dc   : > { %v4186_v2 = vpop.eup %4185 }
 0x2dd   : > { %v982_v1 = vmul.f32 %v4186_v2, %v4184_v33 }
 0x2df   : > { %987 = vst [vmem:[#allocation15 + $0x8] sm:$0xff] %v982_v1 }
 0x2e0 PF: > { %990 = sbr.rel (%p3832_p6) target bundleno = 744 (0x2e8), region = 88 }
 0x2e5   : > { %v991_v20 = vpack.c.bf16 %v982_v1, %v982_v1 }
 0x2e7   : > { %993 = vst [vmem:[#allocation3 + $0x4] sm:$0xf] %v991_v20 }
 0x2e8 PF: > { %1002 = vmatprep.subr.bf16.mxu0 %v5244_v34  ;;  %1043 = vmatprep.subr.bf16.mxu1 %v5256_v37  ;;  %v6483_v17 = vmov 0   ;;  %v1001_v15 = vpack.c.bf16 %v982_v1, %v982_v1  ;;  %v995_v8 = vld [vmem:[#allocation4 + $0x20] sm:$0xff]  ;;  %v996_v10 = vld [vmem:[#allocation4 + $0x28] sm:$0xff] }
 0x2e9   : > { %1003 = vmatpush1.bf16.msra.mxu0 %v5248_v35  ;;  %1044 = vmatpush1.bf16.msra.mxu1 %v5261_v38  ;;  %v997_v13 = vunpack.c.l.bf16 %v995_v8  ;;  %v998_v16 = vunpack.c.h.bf16 %v995_v8  ;;  %v1000_v33 = vunpack.c.h.bf16 %v996_v10  ;;  %v999_v2 = vunpack.c.l.bf16 %v996_v10 }
 0x2ea   : > { %1004 = vmatprep.subr.bf16.mxu0 %v5252_v36  ;;  %1045 = vmatprep.subr.bf16.mxu1 %v5265_v39 }
 0x2eb   : > { %1034 = vmatprep.mubr.bf16.mxu0 %v6483_v17  ;;  %1075 = vmatprep.mubr.bf16.mxu1 %v6483_v17 }
 0x2ed   : > { %1005 = vmatpush1.bf16.msra.mxu0 %v5270_v40  ;;  %1046 = vmatpush1.bf16.msra.mxu1 %v5281_v42 }
 0x2ee   : > { %1006 = vmatprep.subr.bf16.mxu0 %v5276_v41  ;;  %1047 = vmatprep.subr.bf16.mxu1 %v5286_v43 }
 0x2f1   : > { %1007 = vmatpush1.bf16.msra.mxu0 %v5292_v45  ;;  %1048 = vmatpush1.bf16.msra.mxu1 %v5302_v47 }
 0x2f2   : > { %1008 = vmatprep.subr.bf16.mxu0 %v5297_v46  ;;  %1049 = vmatprep.subr.bf16.mxu1 %v5307_v48 }
 0x2f5   : > { %1009 = vmatpush1.bf16.msra.mxu0 %v5313_v49  ;;  %1050 = vmatpush1.bf16.msra.mxu1 %v5323_v51 }
 0x2f6   : > { %1010 = vmatprep.subr.bf16.mxu0 %v5318_v50  ;;  %1051 = vmatprep.subr.bf16.mxu1 %v5328_v52 }
 0x2f9   : > { %1011 = vmatpush1.bf16.msra.mxu0 %v5333_v53  ;;  %1052 = vmatpush1.bf16.msra.mxu1 %v5343_v55 }
 0x2fa   : > { %1012 = vmatprep.subr.bf16.mxu0 %v5338_v54  ;;  %1053 = vmatprep.subr.bf16.mxu1 %v5348_v56 }
 0x2fd   : > { %1013 = vmatpush1.bf16.msra.mxu0 %v5353_v57  ;;  %1054 = vmatpush1.bf16.msra.mxu1 %v5363_v59 }
 0x2fe   : > { %1014 = vmatprep.subr.bf16.mxu0 %v5358_v58  ;;  %1055 = vmatprep.subr.bf16.mxu1 %v5368_v60 }
 0x301   : > { %1015 = vmatpush1.bf16.msra.mxu0 %v5373_v61  ;;  %1056 = vmatpush1.bf16.msra.mxu1 %v5383_v63 }
 0x302   : > { %1016 = vmatprep.subr.bf16.mxu0 %v5378_v62  ;;  %1057 = vmatprep.subr.bf16.mxu1 %v5388_v44 }
 0x305   : > { %1017 = vmatpush1.bf16.msra.mxu0 %v5393_v4  ;;  %1058 = vmatpush1.bf16.msra.mxu1 %v5399_v5 }
 0x308   : > { %1035 = vmatmul.mubr.bf16.vlgmr.msra.gmra.mxu0 %v1001_v15  ;;  %1076 = vmatmul.mubr.bf16.vlgmr.msra.gmra.mxu1 %v1001_v15 }
 0x3c8   : > { %v1036_v18 = vpop.f32.mrf.mxu0  ;;  %v1077_v19 = vpop.f32.mrf.mxu1 }
 0x3c9   : > { %v1084_v21 = vadd.f32 %v1036_v18, %v997_v13  ;;  %v1086_v20 = vadd.f32 %v1077_v19, %v999_v2 }
 0x3ca   : > { %v1038_v23 = vpop.f32.mrf.mxu0  ;;  %v1079_v32 = vpop.f32.mrf.mxu1 }
 0x3cb   : > { %v3838_v7 = vmul.f32 -1.442695, %v1084_v21  ;;  %v1085_v0 = vadd.f32 %v1038_v23, %v998_v16  ;;  %v1087_v1 = vadd.f32 %v1079_v32, %v1000_v33 }
 0x3cc   : > { %v1040_v9 = vpop.f32.mrf.mxu0  ;;  %v1081_v6 = vpop.f32.mrf.mxu1 }
 0x3cd   : > { %4187 = vpow2.f32 %v3838_v7  ;;  %v3839_v3 = vmul.f32 -1.442695, %v1085_v0  ;;  %v3840_v17 = vmul.f32 -1.442695, %v1087_v1 }
 0x3ce   : > { %v1041_v11 = vpop.f32.mrf.mxu0  ;;  %v1082_v14 = vpop.f32.mrf.mxu1 }
 0x3cf   : > { %4189 = vpow2.f32 %v3839_v3 }
 0x3d0   : > { %4191 = vtanh.f32 %v1086_v20 }
 0x3d1   : > { %4193 = vpow2.f32 %v3840_v17 }
 0x3da   : > { %v4188_v15 = vpop.eup %4187 }
 0x3db   : > { %v1091_v8 = vadd.f32 1.0, %v4188_v15 }
 0x3dc   : > { %v4190_v13 = vpop.eup %4189 }
 0x3dd   : > { %4195 = vrcp.f32 %v1091_v8  ;;  %v1097_v16 = vadd.f32 1.0, %v4190_v13  ;;  %v4192_v18 = vpop.eup %4191 }
 0x3de   : > { %v4194_v21 = vpop.eup %4193 }
 0x3df   : > { %4197 = vrcp.f32 %v1097_v16  ;;  %v1104_v0 = vadd.f32 1.0, %v4194_v21 }
 0x3e1   : > { %4199 = vrcp.f32 %v1104_v0 }
 0x3ea   : > { %v4196_v23 = vpop.eup %4195 }
 0x3eb   : > { %v1108_v6 = vmul.f32 %v4196_v23, %v4192_v18 }
 0x3ec   : > { %v4198_v7 = vpop.eup %4197 }
 0x3ed   : > { %v1107_v9 = vmul.f32 %v4198_v7, %v5451_v12 }
 0x3ee   : > { %v4200_v19 = vpop.eup %4199 }
 0x3ef   : > { %v5493_v3 = vadd.f32 %v1108_v6, %v1107_v9 }
 0x3f1   : > { %4201 = vtanh.f32 %v5493_v3 }
 0x3fb   : > { %1114 = sbr.rel (%p3831_p2) target bundleno = 1026 (0x402), region = 92 }
 0x3fe   : > { %v4202_v32 = vpop.eup %4201 }
 0x3ff   : > { %v1111_v10 = vmul.f32 %v4202_v32, %v4200_v19 }
 0x401   : > { %1116 = vst [vmem:[#allocation15 + $0x10] sm:$0xff] %v1111_v10 }
 0x402 PF: > { %1119 = sbr.rel (%p3832_p6) target bundleno = 1034 (0x40a), region = 96 }
 0x407   : > { %v1120_v11 = vpack.c.bf16 %v1111_v10, %v1111_v10 }
 0x409   : > { %1122 = vst [vmem:[#allocation3 + $0x8] sm:$0xf] %v1120_v11 }
 0x40a PF: > { %1131 = vmatprep.subr.bf16.mxu0 %v5244_v34  ;;  %1172 = vmatprep.subr.bf16.mxu1 %v5256_v37  ;;  %v6484_v12 = vmov 0   ;;  %v1130_v14 = vpack.c.bf16 %v1111_v10, %v1111_v10  ;;  %v1124_v33 = vld [vmem:[#allocation4 + $0x30] sm:$0xff]  ;;  %v1125_v0 = vld [vmem:[#allocation4 + $0x38] sm:$0xff] }
 0x40b   : > { %1132 = vmatpush1.bf16.msra.mxu0 %v5248_v35  ;;  %1173 = vmatpush1.bf16.msra.mxu1 %v5261_v38  ;;  %v1126_v2 = vunpack.c.l.bf16 %v1124_v33  ;;  %v1127_v1 = vunpack.c.h.bf16 %v1124_v33  ;;  %v1129_v19 = vunpack.c.h.bf16 %v1125_v0  ;;  %v1128_v32 = vunpack.c.l.bf16 %v1125_v0 }
 0x40c   : > { %1133 = vmatprep.subr.bf16.mxu0 %v5252_v36  ;;  %1174 = vmatprep.subr.bf16.mxu1 %v5265_v39 }
 0x40d   : > { %1163 = vmatprep.mubr.bf16.mxu0 %v6484_v12  ;;  %1204 = vmatprep.mubr.bf16.mxu1 %v6484_v12 }
 0x40f   : > { %1134 = vmatpush1.bf16.msra.mxu0 %v5270_v40  ;;  %1175 = vmatpush1.bf16.msra.mxu1 %v5281_v42 }
 0x410   : > { %1135 = vmatprep.subr.bf16.mxu0 %v5276_v41  ;;  %1176 = vmatprep.subr.bf16.mxu1 %v5286_v43 }
 0x413   : > { %1136 = vmatpush1.bf16.msra.mxu0 %v5292_v45  ;;  %1177 = vmatpush1.bf16.msra.mxu1 %v5302_v47 }
 0x414   : > { %1137 = vmatprep.subr.bf16.mxu0 %v5297_v46  ;;  %1178 = vmatprep.subr.bf16.mxu1 %v5307_v48 }
 0x417   : > { %1138 = vmatpush1.bf16.msra.mxu0 %v5313_v49  ;;  %1179 = vmatpush1.bf16.msra.mxu1 %v5323_v51 }
 0x418   : > { %1139 = vmatprep.subr.bf16.mxu0 %v5318_v50  ;;  %1180 = vmatprep.subr.bf16.mxu1 %v5328_v52 }
 0x41b   : > { %1140 = vmatpush1.bf16.msra.mxu0 %v5333_v53  ;;  %1181 = vmatpush1.bf16.msra.mxu1 %v5343_v55 }
 0x41c   : > { %1141 = vmatprep.subr.bf16.mxu0 %v5338_v54  ;;  %1182 = vmatprep.subr.bf16.mxu1 %v5348_v56 }
 0x41f   : > { %1142 = vmatpush1.bf16.msra.mxu0 %v5353_v57  ;;  %1183 = vmatpush1.bf16.msra.mxu1 %v5363_v59 }
 0x420   : > { %1143 = vmatprep.subr.bf16.mxu0 %v5358_v58  ;;  %1184 = vmatprep.subr.bf16.mxu1 %v5368_v60 }
 0x423   : > { %1144 = vmatpush1.bf16.msra.mxu0 %v5373_v61  ;;  %1185 = vmatpush1.bf16.msra.mxu1 %v5383_v63 }
 0x424   : > { %1145 = vmatprep.subr.bf16.mxu0 %v5378_v62  ;;  %1186 = vmatprep.subr.bf16.mxu1 %v5388_v44 }
 0x427   : > { %1146 = vmatpush1.bf16.msra.mxu0 %v5393_v4  ;;  %1187 = vmatpush1.bf16.msra.mxu1 %v5399_v5 }
 0x42a   : > { %1164 = vmatmul.mubr.bf16.vlgmr.msra.gmra.mxu0 %v1130_v14  ;;  %1205 = vmatmul.mubr.bf16.vlgmr.msra.gmra.mxu1 %v1130_v14 }
 0x4ea   : > { %v1165_v20 = vpop.f32.mrf.mxu0  ;;  %v1206_v17 = vpop.f32.mrf.mxu1 }
 0x4eb   : > { %v1213_v15 = vadd.f32 %v1165_v20, %v1126_v2  ;;  %v1215_v11 = vadd.f32 %v1206_v17, %v1128_v32 }
 0x4ec   : > { %v1167_v8 = vpop.f32.mrf.mxu0  ;;  %v1208_v13 = vpop.f32.mrf.mxu1 }
 0x4ed   : > { %v3843_v16 = vmul.f32 -1.442695, %v1213_v15  ;;  %v1214_v18 = vadd.f32 %v1167_v8, %v1127_v1  ;;  %v1216_v10 = vadd.f32 %v1208_v13, %v1129_v19 }
 0x4ee   : > { %v1169_v21 = vpop.f32.mrf.mxu0  ;;  %v1210_v23 = vpop.f32.mrf.mxu1 }
 0x4ef   : > { %4203 = vpow2.f32 %v3843_v16  ;;  %v3844_v7 = vmul.f32 -1.442695, %v1214_v18  ;;  %v3845_v12 = vmul.f32 -1.442695, %v1216_v10 }
 0x4f0   : > { %v1170_v9 = vpop.f32.mrf.mxu0  ;;  %v1211_v6 = vpop.f32.mrf.mxu1 }
 0x4f1   : > { %4205 = vpow2.f32 %v3844_v7 }
 0x4f2   : > { %4207 = vtanh.f32 %v1215_v11 }
 0x4f3   : > { %4209 = vpow2.f32 %v3845_v12 }
 0x4fc   : > { %v4204_v14 = vpop.eup %4203 }
 0x4fd   : > { %v1220_v33 = vadd.f32 1.0, %v4204_v14 }
 0x4fe   : > { %v4206_v2 = vpop.eup %4205 }
 0x4ff   : > { %4211 = vrcp.f32 %v1220_v33  ;;  %v1226_v1 = vadd.f32 1.0, %v4206_v2  ;;  %v4208_v20 = vpop.eup %4207 }
 0x500   : > { %v4210_v15 = vpop.eup %4209 }
 0x501   : > { %4213 = vrcp.f32 %v1226_v1  ;;  %v1233_v18 = vadd.f32 1.0, %v4210_v15 }
 0x503   : > { %4215 = vrcp.f32 %v1233_v18 }
 0x50c   : > { %v4212_v8 = vpop.eup %4211 }
 0x50d   : > { %v1237_v23 = vmul.f32 %v4212_v8, %v4208_v20 }
 0x50e   : > { %v4214_v16 = vpop.eup %4213 }
 0x50f   : > { %v1236_v21 = vmul.f32 %v4214_v16, %v5493_v3 }
 0x510   : > { %v4216_v17 = vpop.eup %4215 }
 0x511   : > { %v5535_v7 = vadd.f32 %v1237_v23, %v1236_v21 }
 0x513   : > { %4217 = vtanh.f32 %v5535_v7 }
 0x51d   : > { %1243 = sbr.rel (%p3831_p2) target bundleno = 1316 (0x524), region = 100 }
 0x520   : > { %v4218_v13 = vpop.eup %4217 }
 0x521   : > { %v1240_v0 = vmul.f32 %v4218_v13, %v4216_v17 }
 0x523   : > { %1245 = vst [vmem:[#allocation15 + $0x18] sm:$0xff] %v1240_v0 }
 0x524 PF: > { %1248 = sbr.rel (%p3832_p6) target bundleno = 1324 (0x52c), region = 104 }
 0x529   : > { %v1249_v9 = vpack.c.bf16 %v1240_v0, %v1240_v0 }
 0x52b   : > { %1251 = vst [vmem:[#allocation3 + $0xc] sm:$0xf] %v1249_v9 }
 0x52c PF: > { %1260 = vmatprep.subr.bf16.mxu0 %v5244_v34  ;;  %1301 = vmatprep.subr.bf16.mxu1 %v5256_v37  ;;  %v6485_v3 = vmov 0   ;;  %v1259_v6 = vpack.c.bf16 %v1240_v0, %v1240_v0  ;;  %v1253_v19 = vld [vmem:[#allocation4 + $0x40] sm:$0xff]  ;;  %v1254_v18 = vld [vmem:[#allocation4 + $0x48] sm:$0xff] }
 0x52d   : > { %1261 = vmatpush1.bf16.msra.mxu0 %v5248_v35  ;;  %1302 = vmatpush1.bf16.msra.mxu1 %v5261_v38  ;;  %v1255_v32 = vunpack.c.l.bf16 %v1253_v19  ;;  %v1256_v10 = vunpack.c.h.bf16 %v1253_v19  ;;  %v1258_v17 = vunpack.c.h.bf16 %v1254_v18  ;;  %v1257_v13 = vunpack.c.l.bf16 %v1254_v18 }
 0x52e   : > { %1262 = vmatprep.subr.bf16.mxu0 %v5252_v36  ;;  %1303 = vmatprep.subr.bf16.mxu1 %v5265_v39 }
 0x52f   : > { %1292 = vmatprep.mubr.bf16.mxu0 %v6485_v3  ;;  %1333 = vmatprep.mubr.bf16.mxu1 %v6485_v3 }
 0x531   : > { %1263 = vmatpush1.bf16.msra.mxu0 %v5270_v40  ;;  %1304 = vmatpush1.bf16.msra.mxu1 %v5281_v42 }
 0x532   : > { %1264 = vmatprep.subr.bf16.mxu0 %v5276_v41  ;;  %1305 = vmatprep.subr.bf16.mxu1 %v5286_v43 }
 0x535   : > { %1265 = vmatpush1.bf16.msra.mxu0 %v5292_v45  ;;  %1306 = vmatpush1.bf16.msra.mxu1 %v5302_v47 }
 0x536   : > { %1266 = vmatprep.subr.bf16.mxu0 %v5297_v46  ;;  %1307 = vmatprep.subr.bf16.mxu1 %v5307_v48 }
 0x539   : > { %1267 = vmatpush1.bf16.msra.mxu0 %v5313_v49  ;;  %1308 = vmatpush1.bf16.msra.mxu1 %v5323_v51 }
 0x53a   : > { %1268 = vmatprep.subr.bf16.mxu0 %v5318_v50  ;;  %1309 = vmatprep.subr.bf16.mxu1 %v5328_v52 }
 0x53d   : > { %1269 = vmatpush1.bf16.msra.mxu0 %v5333_v53  ;;  %1310 = vmatpush1.bf16.msra.mxu1 %v5343_v55 }
 0x53e   : > { %1270 = vmatprep.subr.bf16.mxu0 %v5338_v54  ;;  %1311 = vmatprep.subr.bf16.mxu1 %v5348_v56 }
 0x541   : > { %1271 = vmatpush1.bf16.msra.mxu0 %v5353_v57  ;;  %1312 = vmatpush1.bf16.msra.mxu1 %v5363_v59 }
 0x542   : > { %1272 = vmatprep.subr.bf16.mxu0 %v5358_v58  ;;  %1313 = vmatprep.subr.bf16.mxu1 %v5368_v60 }
 0x545   : > { %1273 = vmatpush1.bf16.msra.mxu0 %v5373_v61  ;;  %1314 = vmatpush1.bf16.msra.mxu1 %v5383_v63 }
 0x546   : > { %1274 = vmatprep.subr.bf16.mxu0 %v5378_v62  ;;  %1315 = vmatprep.subr.bf16.mxu1 %v5388_v44 }
 0x549   : > { %1275 = vmatpush1.bf16.msra.mxu0 %v5393_v4  ;;  %1316 = vmatpush1.bf16.msra.mxu1 %v5399_v5 }
 0x54c   : > { %1293 = vmatmul.mubr.bf16.vlgmr.msra.gmra.mxu0 %v1259_v6  ;;  %1334 = vmatmul.mubr.bf16.vlgmr.msra.gmra.mxu1 %v1259_v6 }
 0x60c   : > { %v1294_v11 = vpop.f32.mrf.mxu0  ;;  %v1335_v12 = vpop.f32.mrf.mxu1 }
 0x60d   : > { %v1342_v14 = vadd.f32 %v1294_v11, %v1255_v32  ;;  %v1344_v9 = vadd.f32 %v1335_v12, %v1257_v13 }
 0x60e   : > { %v1296_v33 = vpop.f32.mrf.mxu0  ;;  %v1337_v2 = vpop.f32.mrf.mxu1 }
 0x60f   : > { %v3848_v1 = vmul.f32 -1.442695, %v1342_v14  ;;  %v1343_v20 = vadd.f32 %v1296_v33, %v1256_v10  ;;  %v1345_v0 = vadd.f32 %v1337_v2, %v1258_v17 }
 0x610   : > { %v1298_v15 = vpop.f32.mrf.mxu0  ;;  %v1339_v8 = vpop.f32.mrf.mxu1 }
 0x611   : > { %4219 = vpow2.f32 %v3848_v1  ;;  %v3849_v16 = vmul.f32 -1.442695, %v1343_v20  ;;  %v3850_v3 = vmul.f32 -1.442695, %v1345_v0 }
 0x612   : > { %v1299_v21 = vpop.f32.mrf.mxu0  ;;  %v1340_v23 = vpop.f32.mrf.mxu1 }
 0x613   : > { %4221 = vpow2.f32 %v3849_v16 }
 0x614   : > { %4223 = vtanh.f32 %v1344_v9 }
 0x615   : > { %4225 = vpow2.f32 %v3850_v3 }
 0x61e   : > { %v4220_v6 = vpop.eup %4219 }
 0x61f   : > { %v1349_v19 = vadd.f32 1.0, %v4220_v6 }
 0x620   : > { %v4222_v32 = vpop.eup %4221 }
 0x621   : > { %4227 = vrcp.f32 %v1349_v19  ;;  %v1355_v10 = vadd.f32 1.0, %v4222_v32  ;;  %v4224_v11 = vpop.eup %4223 }
 0x622   : > { %v4226_v14 = vpop.eup %4225 }
 0x623   : > { %4229 = vrcp.f32 %v1355_v10  ;;  %v1362_v20 = vadd.f32 1.0, %v4226_v14 }
 0x625   : > { %4231 = vrcp.f32 %v1362_v20 }
 0x62e   : > { %v4228_v33 = vpop.eup %4227 }
 0x62f   : > { %v1366_v8 = vmul.f32 %v4228_v33, %v4224_v11 }
 0x630   : > { %v4230_v1 = vpop.eup %4229 }
 0x631   : > { %v1365_v15 = vmul.f32 %v4230_v1, %v5535_v7 }
 0x632   : > { %v4232_v12 = vpop.eup %4231 }
 0x633   : > { %v5577_v16 = vadd.f32 %v1366_v8, %v1365_v15 }
 0x635   : > { %4233 = vtanh.f32 %v5577_v16 }
 0x63f   : > { %1372 = sbr.rel (%p3831_p2) target bundleno = 1606 (0x646), region = 108 }
 0x642   : > { %v4234_v2 = vpop.eup %4233 }
 0x643   : > { %v1369_v18 = vmul.f32 %v4234_v2, %v4232_v12 }
 0x645   : > { %1374 = vst [vmem:[#allocation15 + $0x20] sm:$0xff] %v1369_v18 }
 0x646 PF: > { %1377 = sbr.rel (%p3832_p6) target bundleno = 1614 (0x64e), region = 112 }
 0x64b   : > { %v1378_v21 = vpack.c.bf16 %v1369_v18, %v1369_v18 }
 0x64d   : > { %1380 = vst [vmem:[#allocation3 + $0x10] sm:$0xf] %v1378_v21 }
 0x64e PF: > { %1389 = vmatprep.subr.bf16.mxu0 %v5244_v34  ;;  %1430 = vmatprep.subr.bf16.mxu1 %v5256_v37  ;;  %v6486_v7 = vmov 0   ;;  %v1388_v23 = vpack.c.bf16 %v1369_v18, %v1369_v18  ;;  %v1382_v17 = vld [vmem:[#allocation4 + $0x50] sm:$0xff]  ;;  %v1383_v20 = vld [vmem:[#allocation4 + $0x58] sm:$0xff] }
 0x64f   : > { %1390 = vmatpush1.bf16.msra.mxu0 %v5248_v35  ;;  %1431 = vmatpush1.bf16.msra.mxu1 %v5261_v38  ;;  %v1384_v13 = vunpack.c.l.bf16 %v1382_v17  ;;  %v1385_v0 = vunpack.c.h.bf16 %v1382_v17  ;;  %v1387_v12 = vunpack.c.h.bf16 %v1383_v20  ;;  %v1386_v2 = vunpack.c.l.bf16 %v1383_v20 }
 0x650   : > { %1391 = vmatprep.subr.bf16.mxu0 %v5252_v36  ;;  %1432 = vmatprep.subr.bf16.mxu1 %v5265_v39 }
 0x651   : > { %1421 = vmatprep.mubr.bf16.mxu0 %v6486_v7  ;;  %1462 = vmatprep.mubr.bf16.mxu1 %v6486_v7 }
 0x653   : > { %1392 = vmatpush1.bf16.msra.mxu0 %v5270_v40  ;;  %1433 = vmatpush1.bf16.msra.mxu1 %v5281_v42 }
 0x654   : > { %1393 = vmatprep.subr.bf16.mxu0 %v5276_v41  ;;  %1434 = vmatprep.subr.bf16.mxu1 %v5286_v43 }
 0x657   : > { %1394 = vmatpush1.bf16.msra.mxu0 %v5292_v45  ;;  %1435 = vmatpush1.bf16.msra.mxu1 %v5302_v47 }
 0x658   : > { %1395 = vmatprep.subr.bf16.mxu0 %v5297_v46  ;;  %1436 = vmatprep.subr.bf16.mxu1 %v5307_v48 }
 0x65b   : > { %1396 = vmatpush1.bf16.msra.mxu0 %v5313_v49  ;;  %1437 = vmatpush1.bf16.msra.mxu1 %v5323_v51 }
 0x65c   : > { %1397 = vmatprep.subr.bf16.mxu0 %v5318_v50  ;;  %1438 = vmatprep.subr.bf16.mxu1 %v5328_v52 }
 0x65f   : > { %1398 = vmatpush1.bf16.msra.mxu0 %v5333_v53  ;;  %1439 = vmatpush1.bf16.msra.mxu1 %v5343_v55 }
 0x660   : > { %1399 = vmatprep.subr.bf16.mxu0 %v5338_v54  ;;  %1440 = vmatprep.subr.bf16.mxu1 %v5348_v56 }
 0x663   : > { %1400 = vmatpush1.bf16.msra.mxu0 %v5353_v57  ;;  %1441 = vmatpush1.bf16.msra.mxu1 %v5363_v59 }
 0x664   : > { %1401 = vmatprep.subr.bf16.mxu0 %v5358_v58  ;;  %1442 = vmatprep.subr.bf16.mxu1 %v5368_v60 }
 0x667   : > { %1402 = vmatpush1.bf16.msra.mxu0 %v5373_v61  ;;  %1443 = vmatpush1.bf16.msra.mxu1 %v5383_v63 }
 0x668   : > { %1403 = vmatprep.subr.bf16.mxu0 %v5378_v62  ;;  %1444 = vmatprep.subr.bf16.mxu1 %v5388_v44 }
 0x66b   : > { %1404 = vmatpush1.bf16.msra.mxu0 %v5393_v4  ;;  %1445 = vmatpush1.bf16.msra.mxu1 %v5399_v5 }
 0x66e   : > { %1422 = vmatmul.mubr.bf16.vlgmr.msra.gmra.mxu0 %v1388_v23  ;;  %1463 = vmatmul.mubr.bf16.vlgmr.msra.gmra.mxu1 %v1388_v23 }
 0x72e   : > { %v1423_v9 = vpop.f32.mrf.mxu0  ;;  %v1464_v3 = vpop.f32.mrf.mxu1 }
 0x72f   : > { %v1471_v6 = vadd.f32 %v1423_v9, %v1384_v13  ;;  %v1473_v21 = vadd.f32 %v1464_v3, %v1386_v2 }
 0x730   : > { %v1425_v19 = vpop.f32.mrf.mxu0  ;;  %v1466_v32 = vpop.f32.mrf.mxu1 }
 0x731   : > { %v3853_v10 = vmul.f32 -1.442695, %v1471_v6  ;;  %v1472_v11 = vadd.f32 %v1425_v19, %v1385_v0  ;;  %v1474_v18 = vadd.f32 %v1466_v32, %v1387_v12 }
 0x732   : > { %v1427_v14 = vpop.f32.mrf.mxu0  ;;  %v1468_v33 = vpop.f32.mrf.mxu1 }
 0x733   : > { %4235 = vpow2.f32 %v3853_v10  ;;  %v3854_v1 = vmul.f32 -1.442695, %v1472_v11  ;;  %v3855_v7 = vmul.f32 -1.442695, %v1474_v18 }
 0x734   : > { %v1428_v15 = vpop.f32.mrf.mxu0  ;;  %v1469_v8 = vpop.f32.mrf.mxu1 }
 0x735   : > { %4237 = vpow2.f32 %v3854_v1 }
 0x736   : > { %4239 = vtanh.f32 %v1473_v21 }
 0x737   : > { %4241 = vpow2.f32 %v3855_v7 }
 0x740   : > { %v4236_v23 = vpop.eup %4235 }
 0x741   : > { %v1478_v17 = vadd.f32 1.0, %v4236_v23 }
 0x742   : > { %v4238_v13 = vpop.eup %4237 }
 0x743   : > { %4243 = vrcp.f32 %v1478_v17  ;;  %v1484_v0 = vadd.f32 1.0, %v4238_v13  ;;  %v4240_v9 = vpop.eup %4239 }
 0x744   : > { %v4242_v6 = vpop.eup %4241 }
 0x745   : > { %4245 = vrcp.f32 %v1484_v0  ;;  %v1491_v11 = vadd.f32 1.0, %v4242_v6 }
 0x747   : > { %4247 = vrcp.f32 %v1491_v11 }
 0x750   : > { %v4244_v19 = vpop.eup %4243 }
 0x751   : > { %v1495_v33 = vmul.f32 %v4244_v19, %v4240_v9 }
 0x752   : > { %v4246_v10 = vpop.eup %4245 }
 0x753   : > { %v1494_v14 = vmul.f32 %v4246_v10, %v5577_v16 }
 0x754   : > { %v4248_v3 = vpop.eup %4247 }
 0x755   : > { %v5619_v1 = vadd.f32 %v1495_v33, %v1494_v14 }
 0x757   : > { %4249 = vtanh.f32 %v5619_v1 }
 0x761   : > { %1501 = sbr.rel (%p3831_p2) target bundleno = 1896 (0x768), region = 116 }
 0x764   : > { %v4250_v32 = vpop.eup %4249 }
 0x765   : > { %v1498_v20 = vmul.f32 %v4250_v32, %v4248_v3 }
 0x767   : > { %1503 = vst [vmem:[#allocation15 + $0x28] sm:$0xff] %v1498_v20 }
 0x768 PF: > { %1506 = sbr.rel (%p3832_p6) target bundleno = 1904 (0x770), region = 120 }
 0x76d   : > { %v1507_v15 = vpack.c.bf16 %v1498_v20, %v1498_v20 }
 0x76f   : > { %1509 = vst [vmem:[#allocation3 + $0x14] sm:$0xf] %v1507_v15 }
 0x770 PF: > { %1518 = vmatprep.subr.bf16.mxu0 %v5244_v34  ;;  %1559 = vmatprep.subr.bf16.mxu1 %v5256_v37  ;;  %v6487_v16 = vmov 0   ;;  %v1517_v8 = vpack.c.bf16 %v1498_v20, %v1498_v20  ;;  %v1511_v12 = vld [vmem:[#allocation4 + $0x60] sm:$0xff]  ;;  %v1512_v11 = vld [vmem:[#allocation4 + $0x68] sm:$0xff] }
 0x771   : > { %1519 = vmatpush1.bf16.msra.mxu0 %v5248_v35  ;;  %1560 = vmatpush1.bf16.msra.mxu1 %v5261_v38  ;;  %v1513_v2 = vunpack.c.l.bf16 %v1511_v12  ;;  %v1514_v18 = vunpack.c.h.bf16 %v1511_v12  ;;  %v1516_v3 = vunpack.c.h.bf16 %v1512_v11  ;;  %v1515_v32 = vunpack.c.l.bf16 %v1512_v11 }
 0x772   : > { %1520 = vmatprep.subr.bf16.mxu0 %v5252_v36  ;;  %1561 = vmatprep.subr.bf16.mxu1 %v5265_v39 }
 0x773   : > { %1550 = vmatprep.mubr.bf16.mxu0 %v6487_v16  ;;  %1591 = vmatprep.mubr.bf16.mxu1 %v6487_v16 }
 0x775   : > { %1521 = vmatpush1.bf16.msra.mxu0 %v5270_v40  ;;  %1562 = vmatpush1.bf16.msra.mxu1 %v5281_v42 }
 0x776   : > { %1522 = vmatprep.subr.bf16.mxu0 %v5276_v41  ;;  %1563 = vmatprep.subr.bf16.mxu1 %v5286_v43 }
 0x779   : > { %1523 = vmatpush1.bf16.msra.mxu0 %v5292_v45  ;;  %1564 = vmatpush1.bf16.msra.mxu1 %v5302_v47 }
 0x77a   : > { %1524 = vmatprep.subr.bf16.mxu0 %v5297_v46  ;;  %1565 = vmatprep.subr.bf16.mxu1 %v5307_v48 }
 0x77d   : > { %1525 = vmatpush1.bf16.msra.mxu0 %v5313_v49  ;;  %1566 = vmatpush1.bf16.msra.mxu1 %v5323_v51 }
 0x77e   : > { %1526 = vmatprep.subr.bf16.mxu0 %v5318_v50  ;;  %1567 = vmatprep.subr.bf16.mxu1 %v5328_v52 }
 0x781   : > { %1527 = vmatpush1.bf16.msra.mxu0 %v5333_v53  ;;  %1568 = vmatpush1.bf16.msra.mxu1 %v5343_v55 }
 0x782   : > { %1528 = vmatprep.subr.bf16.mxu0 %v5338_v54  ;;  %1569 = vmatprep.subr.bf16.mxu1 %v5348_v56 }
 0x785   : > { %1529 = vmatpush1.bf16.msra.mxu0 %v5353_v57  ;;  %1570 = vmatpush1.bf16.msra.mxu1 %v5363_v59 }
 0x786   : > { %1530 = vmatprep.subr.bf16.mxu0 %v5358_v58  ;;  %1571 = vmatprep.subr.bf16.mxu1 %v5368_v60 }
 0x789   : > { %1531 = vmatpush1.bf16.msra.mxu0 %v5373_v61  ;;  %1572 = vmatpush1.bf16.msra.mxu1 %v5383_v63 }
 0x78a   : > { %1532 = vmatprep.subr.bf16.mxu0 %v5378_v62  ;;  %1573 = vmatprep.subr.bf16.mxu1 %v5388_v44 }
 0x78d   : > { %1533 = vmatpush1.bf16.msra.mxu0 %v5393_v4  ;;  %1574 = vmatpush1.bf16.msra.mxu1 %v5399_v5 }
 0x790   : > { %1551 = vmatmul.mubr.bf16.vlgmr.msra.gmra.mxu0 %v1517_v8  ;;  %1592 = vmatmul.mubr.bf16.vlgmr.msra.gmra.mxu1 %v1517_v8 }
 0x850   : > { %v1552_v21 = vpop.f32.mrf.mxu0  ;;  %v1593_v7 = vpop.f32.mrf.mxu1 }
 0x851   : > { %v1600_v23 = vadd.f32 %v1552_v21, %v1513_v2  ;;  %v1602_v15 = vadd.f32 %v1593_v7, %v1515_v32 }
 0x852   : > { %v1554_v17 = vpop.f32.mrf.mxu0  ;;  %v1595_v13 = vpop.f32.mrf.mxu1 }
 0x853   : > { %v3858_v0 = vmul.f32 -1.442695, %v1600_v23  ;;  %v1601_v9 = vadd.f32 %v1554_v17, %v1514_v18  ;;  %v1603_v20 = vadd.f32 %v1595_v13, %v1516_v3 }
 0x854   : > { %v1556_v6 = vpop.f32.mrf.mxu0  ;;  %v1597_v19 = vpop.f32.mrf.mxu1 }
 0x855   : > { %4251 = vpow2.f32 %v3858_v0  ;;  %v3859_v10 = vmul.f32 -1.442695, %v1601_v9  ;;  %v3860_v16 = vmul.f32 -1.442695, %v1603_v20 }
 0x856   : > { %v1557_v14 = vpop.f32.mrf.mxu0  ;;  %v1598_v33 = vpop.f32.mrf.mxu1 }
 0x857   : > { %4253 = vpow2.f32 %v3859_v10 }
 0x858   : > { %4255 = vtanh.f32 %v1602_v15 }
 0x859   : > { %4257 = vpow2.f32 %v3860_v16 }
 0x862   : > { %v4252_v8 = vpop.eup %4251 }
 0x863   : > { %v1607_v12 = vadd.f32 1.0, %v4252_v8 }
 0x864   : > { %v4254_v2 = vpop.eup %4253 }
 0x865   : > { %4259 = vrcp.f32 %v1607_v12  ;;  %v1613_v18 = vadd.f32 1.0, %v4254_v2  ;;  %v4256_v21 = vpop.eup %4255 }
 0x866   : > { %v4258_v23 = vpop.eup %4257 }
 0x867   : > { %4261 = vrcp.f32 %v1613_v18  ;;  %v1620_v9 = vadd.f32 1.0, %v4258_v23 }
 0x869   : > { %4263 = vrcp.f32 %v1620_v9 }
 0x872   : > { %v4260_v17 = vpop.eup %4259 }
 0x873   : > { %v1624_v19 = vmul.f32 %v4260_v17, %v4256_v21 }
 0x874   : > { %v4262_v0 = vpop.eup %4261 }
 0x875   : > { %v1623_v6 = vmul.f32 %v4262_v0, %v5619_v1 }
 0x876   : > { %v4264_v7 = vpop.eup %4263 }
 0x877   : > { %v5661_v10 = vadd.f32 %v1624_v19, %v1623_v6 }
 0x879   : > { %4265 = vtanh.f32 %v5661_v10 }
 0x883   : > { %1630 = sbr.rel (%p3831_p2) target bundleno = 2186 (0x88a), region = 124 }
 0x886   : > { %v4266_v13 = vpop.eup %4265 }
 0x887   : > { %v1627_v11 = vmul.f32 %v4266_v13, %v4264_v7 }
 0x889   : > { %1632 = vst [vmem:[#allocation15 + $0x30] sm:$0xff] %v1627_v11 }
 0x88a PF: > { %1635 = sbr.rel (%p3832_p6) target bundleno = 2194 (0x892), region = 128 }
 0x88f   : > { %v1636_v14 = vpack.c.bf16 %v1627_v11, %v1627_v11 }
 0x891   : > { %1638 = vst [vmem:[#allocation3 + $0x18] sm:$0xf] %v1636_v14 }
 0x892 PF: > { %1647 = vmatprep.subr.bf16.mxu0 %v5244_v34  ;;  %1688 = vmatprep.subr.bf16.mxu1 %v5256_v37  ;;  %v6488_v1 = vmov 0   ;;  %v1646_v34 = vpack.c.bf16 %v1627_v11, %v1627_v11 }
 0x893   : > { %1648 = vmatpush1.bf16.msra.mxu0 %v5248_v35  ;;  %1689 = vmatpush1.bf16.msra.mxu1 %v5261_v38  ;;  %v1640_v35 = vld [vmem:[#allocation4 + $0x70] sm:$0xff] }
 0x894   : > { %1649 = vmatprep.subr.bf16.mxu0 %v5252_v36  ;;  %1690 = vmatprep.subr.bf16.mxu1 %v5265_v39  ;;  %v1642_v36 = vunpack.c.l.bf16 %v1640_v35  ;;  %v1643_v37 = vunpack.c.h.bf16 %v1640_v35 }
 0x895   : > { %1679 = vmatprep.mubr.bf16.mxu0 %v6488_v1  ;;  %1720 = vmatprep.mubr.bf16.mxu1 %v6488_v1 }
 0x897   : > { %1650 = vmatpush1.bf16.msra.mxu0 %v5270_v40  ;;  %1691 = vmatpush1.bf16.msra.mxu1 %v5281_v42 }
 0x898   : > { %1651 = vmatprep.subr.bf16.mxu0 %v5276_v41  ;;  %1692 = vmatprep.subr.bf16.mxu1 %v5286_v43 }
 0x89b   : > { %1652 = vmatpush1.bf16.msra.mxu0 %v5292_v45  ;;  %1693 = vmatpush1.bf16.msra.mxu1 %v5302_v47 }
 0x89c   : > { %1653 = vmatprep.subr.bf16.mxu0 %v5297_v46  ;;  %1694 = vmatprep.subr.bf16.mxu1 %v5307_v48  ;;  %v1641_v48 = vld [vmem:[#allocation4 + $0x78] sm:$0xff] }
 0x89f   : > { %1654 = vmatpush1.bf16.msra.mxu0 %v5313_v49  ;;  %1695 = vmatpush1.bf16.msra.mxu1 %v5323_v51 }
 0x8a0   : > { %1655 = vmatprep.subr.bf16.mxu0 %v5318_v50  ;;  %1696 = vmatprep.subr.bf16.mxu1 %v5328_v52  ;;  %v1644_v50 = vunpack.c.l.bf16 %v1641_v48 }
 0x8a3   : > { %1656 = vmatpush1.bf16.msra.mxu0 %v5333_v53  ;;  %1697 = vmatpush1.bf16.msra.mxu1 %v5343_v55 }
 0x8a4   : > { %1657 = vmatprep.subr.bf16.mxu0 %v5338_v54  ;;  %1698 = vmatprep.subr.bf16.mxu1 %v5348_v56 }
 0x8a7   : > { %1658 = vmatpush1.bf16.msra.mxu0 %v5353_v57  ;;  %1699 = vmatpush1.bf16.msra.mxu1 %v5363_v59 }
 0x8a8   : > { %1659 = vmatprep.subr.bf16.mxu0 %v5358_v58  ;;  %1700 = vmatprep.subr.bf16.mxu1 %v5368_v60 }
 0x8ab   : > { %1660 = vmatpush1.bf16.msra.mxu0 %v5373_v61  ;;  %1701 = vmatpush1.bf16.msra.mxu1 %v5383_v63 }
 0x8ac   : > { %1661 = vmatprep.subr.bf16.mxu0 %v5378_v62  ;;  %1702 = vmatprep.subr.bf16.mxu1 %v5388_v44 }
 0x8af   : > { %1662 = vmatpush1.bf16.msra.mxu0 %v5393_v4  ;;  %1703 = vmatpush1.bf16.msra.mxu1 %v5399_v5  ;;  %v1645_v5 = vunpack.c.h.bf16 %v1641_v48 }
 0x8b2   : > { %1680 = vmatmul.mubr.bf16.vlgmr.msra.gmra.mxu0 %v1646_v34  ;;  %1721 = vmatmul.mubr.bf16.vlgmr.msra.gmra.mxu1 %v1646_v34 }
 0x972   : > { %v1681_v38 = vpop.f32.mrf.mxu0  ;;  %v1722_v39 = vpop.f32.mrf.mxu1 }
 0x973   : > { %v1729_v40 = vadd.f32 %v1681_v38, %v1642_v36  ;;  %v1731_v52 = vadd.f32 %v1722_v39, %v1644_v50 }
 0x974   : > { %v1683_v41 = vpop.f32.mrf.mxu0  ;;  %v1724_v42 = vpop.f32.mrf.mxu1 }
 0x975   : > { %v3863_v43 = vmul.f32 -1.442695, %v1729_v40  ;;  %v1730_v45 = vadd.f32 %v1683_v41, %v1643_v37  ;;  %v1732_v51 = vadd.f32 %v1724_v42, %v1645_v5 }
 0x976   : > { %v1685_v46 = vpop.f32.mrf.mxu0  ;;  %v1726_v47 = vpop.f32.mrf.mxu1 }
 0x977   : > { %4267 = vpow2.f32 %v3863_v43  ;;  %v3864_v44 = vmul.f32 -1.442695, %v1730_v45  ;;  %v3865_v53 = vmul.f32 -1.442695, %v1732_v51 }
 0x978   : > { %v1686_v4 = vpop.f32.mrf.mxu0  ;;  %v1727_v49 = vpop.f32.mrf.mxu1 }
 0x979   : > { %4269 = vpow2.f32 %v3864_v44 }
 0x97a   : > { %4271 = vtanh.f32 %v1731_v52 }
 0x97b   : > { %4273 = vpow2.f32 %v3865_v53 }
 0x984   : > { %v4268_v54 = vpop.eup %4267 }
 0x985   : > { %v1736_v55 = vadd.f32 1.0, %v4268_v54 }
 0x986   : > { %v4270_v56 = vpop.eup %4269 }
 0x987   : > { %4275 = vrcp.f32 %v1736_v55  ;;  %v1742_v57 = vadd.f32 1.0, %v4270_v56  ;;  %v4272_v58 = vpop.eup %4271 }
 0x988   : > { %v4274_v59 = vpop.eup %4273 }
 0x989   : > { %4277 = vrcp.f32 %v1742_v57  ;;  %v1749_v62 = vadd.f32 1.0, %v4274_v59 }
 0x98b   : > { %4279 = vrcp.f32 %v1749_v62 }
 0x994   : > { %v4276_v60 = vpop.eup %4275 }
 0x995   : > { %v1753_v33 = vmul.f32 %v4276_v60, %v4272_v58 }
 0x996   : > { %v4278_v61 = vpop.eup %4277 }
 0x997   : > { %v1752_v63 = vmul.f32 %v4278_v61, %v5661_v10 }
 0x998   : > { %v4280_v32 = vpop.eup %4279 }
 0x999   : > { %v1754_v3 = vadd.f32 %v1753_v33, %v1752_v63 }
 0x99b   : > { %4281 = vtanh.f32 %v1754_v3 }
 0x9a5   : > { %1759 = sbr.rel (%p3831_p2) target bundleno = 2476 (0x9ac), region = 132 }
 0x9a8   : > { %v4282_v20 = vpop.eup %4281 }
 0x9a9   : > { %v1756_v15 = vmul.f32 %v4282_v20, %v4280_v32 }
 0x9ab   : > { %1761 = vst [vmem:[#allocation15 + $0x38] sm:$0xff] %v1756_v15 }
 0x9ac PF: > { %1764 = sbr.rel (%p3832_p6) target bundleno = 2484 (0x9b4), region = 136 }
 0x9b1   : > { %v1765_v16 = vpack.c.bf16 %v1756_v15, %v1756_v15 }
 0x9b3   : > { %1767 = vst [vmem:[#allocation3 + $0x1c] sm:$0xf] %v1765_v16 }
 0x9b4 PF: > { %1768 = vst [vmem:[%s5236_s13] sm:$0xff] %v1756_v15  ;;  %1769 = vst [vmem:[%s5239_s2] sm:$0xff] %v1754_v3 }
 0x9b5 PF: > { %p3868_p13 = scmp.le.s32.totalorder %s4792_s10, 0 }
 0x9b6   : > { %p3956_p0 = scmp.ne.s32.totalorder (!%p3868_p13), %s4792_s10, 1 }
 0x9b7   : > { %1773 = sbr.rel (%p3868_p13) target bundleno = 4849 (0x12f1), region = 140 }
 0x9bc   : > { %v4283_v8 = vld [vmem:[%s5103_s18 + $0xe4] ss:$16 sps:$4 sm:$0xff]   ;;  %v4285_v12 = vld [vmem:[%s5103_s18 + $0xec] ss:$16 sps:$4 sm:$0xff]   ;;  %v4811_v2 = vmov 0   ;;  %v5746_v49 = vcombine.high %v5216_v28, %v5222_v30  ;;  %v5750_v5 = vcombine.high %v5219_v29, %v5225_v31  ;;  %v5754_v51 = vcombine.low %v5216_v28, %v5222_v30 }
 0x9bd   : > { %2040 = vmatprep.mubr.bf16.mxu0 %v4811_v2  ;;  %2113 = vmatprep.mubr.bf16.mxu1 %v4811_v2  ;;  %v4287_v18 = vld [vmem:[%s5103_s18 + $0xe0] ss:$16 sps:$4 sm:$0xff]   ;;  %v4288_v21 = vld [vmem:[%s5103_s18 + $0xe8] ss:$16 sps:$4 sm:$0xff]   ;;  %v4289_v23 = vld [vmem:[%s5103_s18 + $0xc4] ss:$16 sps:$4 sm:$0xff]   ;;  %v5758_v52 = vcombine.low %v5219_v29, %v5225_v31  ;;  %v5764_v53 = vcombine.high %v5204_v24, %v5210_v26  ;;  %v5768_v54 = vcombine.high %v5207_v25, %v5213_v27 }
 0x9be   : > { %2008 = vmatprep.subr.bf16.mxu0 %v4283_v8  ;;  %2081 = vmatprep.subr.bf16.mxu1 %v4285_v12  ;;  %v4291_v17 = vld [vmem:[%s5103_s18 + $0xcc] ss:$16 sps:$4 sm:$0xff]   ;;  %v4293_v0 = vld [vmem:[%s5103_s18 + $0xc0] ss:$16 sps:$4 sm:$0xff]   ;;  %v4294_v9 = vld [vmem:[%s5103_s18 + $0xc8] ss:$16 sps:$4 sm:$0xff]   ;;  %v5774_v28 = vcombine.low %v5204_v24, %v5210_v26  ;;  %v5778_v29 = vcombine.low %v5207_v25, %v5213_v27 }
 0x9bf   : > { %2009 = vmatpush1.bf16.msra.mxu0 %v4287_v18  ;;  %2082 = vmatpush1.bf16.msra.mxu1 %v4288_v21  ;;  %v4295_v6 = vld [vmem:[%s5103_s18 + $0xa4] ss:$16 sps:$4 sm:$0xff]   ;;  %v4297_v19 = vld [vmem:[%s5103_s18 + $0xac] ss:$16 sps:$4 sm:$0xff]   ;;  %v4299_v10 = vld [vmem:[%s5103_s18 + $0xa0] ss:$16 sps:$4 sm:$0xff]  }
 0x9c0   : > { %2010 = vmatprep.subr.bf16.mxu0 %v4289_v23  ;;  %2083 = vmatprep.subr.bf16.mxu1 %v4291_v17  ;;  %v4300_v7 = vld [vmem:[%s5103_s18 + $0xa8] ss:$16 sps:$4 sm:$0xff]   ;;  %v4301_v13 = vld [vmem:[%s5103_s18 + $0x84] ss:$16 sps:$4 sm:$0xff]   ;;  %v4303_v11 = vld [vmem:[%s5103_s18 + $0x8c] ss:$16 sps:$4 sm:$0xff]  }
 0x9c1   : > { %v4305_v14 = vld [vmem:[%s5103_s18 + $0x80] ss:$16 sps:$4 sm:$0xff]   ;;  %v4306_v1 = vld [vmem:[%s5103_s18 + $0x88] ss:$16 sps:$4 sm:$0xff]   ;;  %v4307_v34 = vld [vmem:[%s5103_s18 + $0x64] ss:$16 sps:$4 sm:$0xff]  }
 0x9c2   : > { %v4309_v35 = vld [vmem:[%s5103_s18 + $0x6c] ss:$16 sps:$4 sm:$0xff]   ;;  %v4311_v36 = vld [vmem:[%s5103_s18 + $0x60] ss:$16 sps:$4 sm:$0xff]   ;;  %v4312_v37 = vld [vmem:[%s5103_s18 + $0x68] ss:$16 sps:$4 sm:$0xff]  }
 0x9c3   : > { %2011 = vmatpush1.bf16.msra.mxu0 %v4293_v0  ;;  %2084 = vmatpush1.bf16.msra.mxu1 %v4294_v9  ;;  %v4313_v38 = vld [vmem:[%s5103_s18 + $0x44] ss:$16 sps:$4 sm:$0xff]   ;;  %v4315_v39 = vld [vmem:[%s5103_s18 + $0x4c] ss:$16 sps:$4 sm:$0xff]   ;;  %v4317_v40 = vld [vmem:[%s5103_s18 + $0x40] ss:$16 sps:$4 sm:$0xff]  }
 0x9c4   : > { %2012 = vmatprep.subr.bf16.mxu0 %v4295_v6  ;;  %2085 = vmatprep.subr.bf16.mxu1 %v4297_v19  ;;  %v4318_v41 = vld [vmem:[%s5103_s18 + $0x48] ss:$16 sps:$4 sm:$0xff]   ;;  %v4319_v42 = vld [vmem:[%s5103_s18 + $0x24] ss:$16 sps:$4 sm:$0xff]   ;;  %v4321_v43 = vld [vmem:[%s5103_s18 + $0x2c] ss:$16 sps:$4 sm:$0xff]  }
 0x9c5   : > { %v4323_v45 = vld [vmem:[%s5103_s18 + $0x20] ss:$16 sps:$4 sm:$0xff]   ;;  %v4324_v46 = vld [vmem:[%s5103_s18 + $0x28] ss:$16 sps:$4 sm:$0xff]   ;;  %v4325_v47 = vld [vmem:[%s5103_s18 + $0x4] ss:$16 sps:$4 sm:$0xff]  }
 0x9c6   : > { %v4327_v44 = vld [vmem:[%s5103_s18 + $0xc] ss:$16 sps:$4 sm:$0xff]   ;;  %v4329_v48 = vld [vmem:[%s5103_s18] ss:$16 sps:$4 sm:$0xff]   ;;  %v4330_v4 = vld [vmem:[%s5103_s18 + $0x8] ss:$16 sps:$4 sm:$0xff]  }
 0x9c7   : > { %2013 = vmatpush1.bf16.msra.mxu0 %v4299_v10  ;;  %2086 = vmatpush1.bf16.msra.mxu1 %v4300_v7  ;;  %v4331_v50 = vld [vmem:[#allocation3] sm:$0xff]   ;;  %v6489_v30 = vld [vmem:[#allocation51_spill] sm:$0xff]  ;;  %v6490_v55 = vld [vmem:[#allocation53_spill] sm:$0xff] }
 0x9c8   : > { %2014 = vmatprep.subr.bf16.mxu0 %v4301_v13  ;;  %2087 = vmatprep.subr.bf16.mxu1 %v4303_v11  ;;  %v5784_v31 = vcombine.high %v6489_v30, %v5198_v22  ;;  %v6491_v56 = vld [vmem:[#allocation52_spill] sm:$0xff]  ;;  %v4332_v24 = vld [vmem:[#allocation3 + $0x8] sm:$0xff]   ;;  %v5796_v25 = vcombine.low %v6489_v30, %v5198_v22  ;;  %v6492_v27 = vld [vmem:[#allocation49_spill] sm:$0xff] }
 0x9c9   : > { %v5788_v57 = vcombine.high %v6491_v56, %v6490_v55  ;;  %v5800_v26 = vcombine.low %v6491_v56, %v6490_v55  ;;  %v6493_v58 = vld [vmem:[#allocation47_spill] sm:$0xff]  ;;  %v6494_v60 = vld [vmem:[#allocation50_spill] sm:$0xff]  ;;  %v6495_v61 = vld [vmem:[#allocation48_spill] sm:$0xff] }
 0x9ca   : > { %v5806_v59 = vcombine.high %v6493_v58, %v6492_v27  ;;  %v5810_v62 = vcombine.high %v6495_v61, %v6494_v60  ;;  %v5816_v22 = vcombine.low %v6493_v58, %v6492_v27  ;;  %v5820_v63 = vcombine.low %v6495_v61, %v6494_v60  ;;  %v6496_v33 = vld [vmem:[#allocation45_spill] sm:$0xff]  ;;  %v6497_v3 = vld [vmem:[#allocation43_spill] sm:$0xff]  ;;  %v6498_v20 = vld [vmem:[#allocation46_spill] sm:$0xff] }
 0x9cb   : > { %2015 = vmatpush1.bf16.msra.mxu0 %v4305_v14  ;;  %2088 = vmatpush1.bf16.msra.mxu1 %v4306_v1  ;;  %v5826_v32 = vcombine.high %v6497_v3, %v6496_v33  ;;  %v6499_v15 = vld [vmem:[#allocation44_spill] sm:$0xff]  ;;  %v5838_v12 = vcombine.low %v6497_v3, %v6496_v33  ;;  %v6500_v21 = vld [vmem:[#allocation41_spill] sm:$0xff]  ;;  %v6501_v23 = vld [vmem:[#allocation39_spill] sm:$0xff] }
 0x9cc   : > { %2016 = vmatprep.subr.bf16.mxu0 %v4307_v34  ;;  %2089 = vmatprep.subr.bf16.mxu1 %v4309_v35  ;;  %v5830_v16 = vcombine.high %v6499_v15, %v6498_v20  ;;  %v4333_v8 = vld [vmem:[#allocation3 + $0x10] sm:$0xff]   ;;  %v5842_v18 = vcombine.low %v6499_v15, %v6498_v20  ;;  %v5848_v17 = vcombine.high %v6501_v23, %v6500_v21  ;;  %v6502_v0 = vld [vmem:[#allocation42_spill] sm:$0xff]  ;;  %v6504_v7 = vld [vmem:[#allocation37_spill] sm:$0xff] }
 0x9cd   : > { %v6503_v9 = vld [vmem:[#allocation40_spill] sm:$0xff]  ;;  %v5858_v19 = vcombine.low %v6501_v23, %v6500_v21  ;;  %v6505_v13 = vld [vmem:[#allocation35_spill] sm:$0xff]  ;;  %v6506_v14 = vld [vmem:[#allocation38_spill] sm:$0xff] }
 0x9ce   : > { %v5852_v6 = vcombine.high %v6503_v9, %v6502_v0  ;;  %v5862_v10 = vcombine.low %v6503_v9, %v6502_v0  ;;  %v5868_v11 = vcombine.high %v6505_v13, %v6504_v7  ;;  %v6507_v1 = vld [vmem:[#allocation36_spill] sm:$0xff]  ;;  %v4334_v35 = vld [vmem:[#allocation3 + $0x18] sm:$0xff]  }
 0x9cf   : > { %2017 = vmatpush1.bf16.msra.mxu0 %v4311_v36  ;;  %2090 = vmatpush1.bf16.msra.mxu1 %v4312_v37  ;;  %v5872_v34 = vcombine.high %v6507_v1, %v6506_v14  ;;  %v5880_v36 = vcombine.low %v6505_v13, %v6504_v7  ;;  %v5884_v37 = vcombine.low %v6507_v1, %v6506_v14 }
 0x9d0   : > { %2018 = vmatprep.subr.bf16.mxu0 %v4313_v38  ;;  %2091 = vmatprep.subr.bf16.mxu1 %v4315_v39  ;;  %v6508_v38 = vld [vmem:[#allocation33_spill] sm:$0xff]  ;;  %v6509_v39 = vld [vmem:[#allocation31_spill] sm:$0xff] }
 0x9d3   : > { %2019 = vmatpush1.bf16.msra.mxu0 %v4317_v40  ;;  %2092 = vmatpush1.bf16.msra.mxu1 %v4318_v41  ;;  %v5890_v40 = vcombine.high %v6509_v39, %v6508_v38  ;;  %v6510_v41 = vld [vmem:[#allocation34_spill] sm:$0xff] }
 0x9d4   : > { %2020 = vmatprep.subr.bf16.mxu0 %v4319_v42  ;;  %2093 = vmatprep.subr.bf16.mxu1 %v4321_v43  ;;  %v6511_v42 = vld [vmem:[#allocation32_spill] sm:$0xff] }
 0x9d5   : > { %v5894_v43 = vcombine.high %v6511_v42, %v6510_v41 }
 0x9d7   : > { %2021 = vmatpush1.bf16.msra.mxu0 %v4323_v45  ;;  %2094 = vmatpush1.bf16.msra.mxu1 %v4324_v46  ;;  %v5900_v45 = vcombine.low %v6509_v39, %v6508_v38  ;;  %v5904_v46 = vcombine.low %v6511_v42, %v6510_v41 }
 0x9d8   : > { %2022 = vmatprep.subr.bf16.mxu0 %v4325_v47  ;;  %2095 = vmatprep.subr.bf16.mxu1 %v4327_v44  ;;  %v6512_v47 = vld [vmem:[#allocation54_spill] sm:$0xff] }
 0x9d9   : > { %v2304_v44 = vpack.c.bf16 %v6512_v47, %v6512_v47 }
 0x9db   : > { %2023 = vmatpush1.bf16.msra.mxu0 %v4329_v48  ;;  %2096 = vmatpush1.bf16.msra.mxu1 %v4330_v4  ;;  %v1828_v48 = vlaneseq }
 0x9dc   : > { %2465 = vmatprep.subr.bf16.mxu0 %v5746_v49  ;;  %2506 = vmatprep.subr.bf16.mxu1 %v5750_v5 }
 0x9dd   : > { %v1829_v4 = vshrl.u32 %v1828_v48, 7 }
 0x9de   : > { %2041 = vmatmul.mubr.bf16.vlgmr.msra.gmra.mxu0 %v4331_v50  ;;  %2114 = vmatmul.mubr.bf16.vlgmr.msra.gmra.mxu1 %v4331_v50 }
 0x9df   : > { %2466 = vmatpush1.bf16.msra.mxu0 %v5754_v51  ;;  %2507 = vmatpush1.bf16.msra.mxu1 %v5758_v52  ;;  %v1838_v50 = vsub.s32 2, %v1829_v4  ;;  %v1830_v30 = vsub.s32 0, %v1829_v4  ;;  %v1834_v55 = vsub.s32 1, %v1829_v4  ;;  %v1842_v56 = vsub.s32 3, %v1829_v4 }
 0x9e0   : > { %2467 = vmatprep.subr.bf16.mxu0 %v5764_v53  ;;  %2508 = vmatprep.subr.bf16.mxu1 %v5768_v54 }
 0x9e1   : > { %2050 = vmatprep.mubr.bf16.mxu0 %v4811_v2  ;;  %2123 = vmatprep.mubr.bf16.mxu1 %v4811_v2 }
 0x9e3   : > { %2468 = vmatpush1.bf16.msra.mxu0 %v5774_v28  ;;  %2509 = vmatpush1.bf16.msra.mxu1 %v5778_v29 }
 0x9e4   : > { %2469 = vmatprep.subr.bf16.mxu0 %v5784_v31  ;;  %2510 = vmatprep.subr.bf16.mxu1 %v5788_v57 }
 0x9e6   : > { %2051 = vmatmul.mubr.bf16.gmra.mxu0 %v4332_v24  ;;  %2124 = vmatmul.mubr.bf16.gmra.mxu1 %v4332_v24  ;;  %v1826_v24 = vld [vmem:[%s5117_s22] sm:$0xf] }
 0x9e7   : > { %2470 = vmatpush1.bf16.msra.mxu0 %v5796_v25  ;;  %2511 = vmatpush1.bf16.msra.mxu1 %v5800_v26  ;;  %v5915_v27 = vrot.slane %v1826_v24, %v1838_v50  ;;  %v5917_v58 = vrot.slane %v1826_v24, %v1830_v30  ;;  %v5919_v60 = vrot.slane %v1826_v24, %v1834_v55 }
 0x9e8   : > { %2471 = vmatprep.subr.bf16.mxu0 %v5806_v59  ;;  %2512 = vmatprep.subr.bf16.mxu1 %v5810_v62  ;;  %v5921_v61 = vrot.slane %v1826_v24, %v1842_v56 }
 0x9e9   : > { %2060 = vmatprep.mubr.bf16.mxu0 %v4811_v2  ;;  %2133 = vmatprep.mubr.bf16.mxu1 %v4811_v2 }
 0x9eb   : > { %2472 = vmatpush1.bf16.msra.mxu0 %v5816_v22  ;;  %2513 = vmatpush1.bf16.msra.mxu1 %v5820_v63 }
 0x9ec   : > { %2473 = vmatprep.subr.bf16.mxu0 %v5826_v32  ;;  %2514 = vmatprep.subr.bf16.mxu1 %v5830_v16 }
 0x9ee   : > { %2061 = vmatmul.mubr.bf16.gmra.mxu0 %v4333_v8  ;;  %2134 = vmatmul.mubr.bf16.gmra.mxu1 %v4333_v8 }
 0x9ef   : > { %2474 = vmatpush1.bf16.msra.mxu0 %v5838_v12  ;;  %2515 = vmatpush1.bf16.msra.mxu1 %v5842_v18 }
 0x9f0   : > { %2475 = vmatprep.subr.bf16.mxu0 %v5848_v17  ;;  %2516 = vmatprep.subr.bf16.mxu1 %v5852_v6 }
 0x9f1   : > { %2070 = vmatprep.mubr.bf16.mxu0 %v4811_v2  ;;  %2143 = vmatprep.mubr.bf16.mxu1 %v4811_v2 }
 0x9f3   : > { %2476 = vmatpush1.bf16.msra.mxu0 %v5858_v19  ;;  %2517 = vmatpush1.bf16.msra.mxu1 %v5862_v10 }
 0x9f4   : > { %2477 = vmatprep.subr.bf16.mxu0 %v5868_v11  ;;  %2518 = vmatprep.subr.bf16.mxu1 %v5872_v34 }
 0x9f6   : > { %2071 = vmatmul.mubr.bf16.gmra.mxu0 %v4334_v35  ;;  %2144 = vmatmul.mubr.bf16.gmra.mxu1 %v4334_v35 }
 0x9f7   : > { %2478 = vmatpush1.bf16.msra.mxu0 %v5880_v36  ;;  %2519 = vmatpush1.bf16.msra.mxu1 %v5884_v37 }
 0x9f8   : > { %2479 = vmatprep.subr.bf16.mxu0 %v5890_v40  ;;  %2520 = vmatprep.subr.bf16.mxu1 %v5894_v43 }
 0x9f9   : > { %2497 = vmatprep.mubr.bf16.mxu0 %v4811_v2  ;;  %2538 = vmatprep.mubr.bf16.mxu1 %v4811_v2 }
 0x9fb   : > { %2480 = vmatpush1.bf16.msra.mxu0 %v5900_v45  ;;  %2521 = vmatpush1.bf16.msra.mxu1 %v5904_v46 }
 0x9fe   : > { %2498 = vmatmul.mubr.bf16.vlgmr.msra.gmra.mxu0 %v2304_v44  ;;  %2539 = vmatmul.mubr.bf16.vlgmr.msra.gmra.mxu1 %v2304_v44 }
 0xa9e   : > { %v2042_v33 = vpop.f32.mrf.mxu0  ;;  %v2115_v3 = vpop.f32.mrf.mxu1 }
 0xa9f   : > { %v2116_v20 = vadd.f32 %v2115_v3, %v5915_v27  ;;  %v2043_v21 = vadd.f32 %v2042_v33, %v5917_v58 }
 0xaa0   : > { %v2044_v15 = vpop.f32.mrf.mxu0  ;;  %v2117_v8 = vpop.f32.mrf.mxu1 }
 0xaa1   : > { %v2045_v23 = vadd.f32 %v2044_v15, %v5919_v60  ;;  %v2118_v0 = vadd.f32 %v2117_v8, %v5921_v61 }
 0xaa2   : > { %v2046_v9 = vpop.f32.mrf.mxu0  ;;  %v2119_v7 = vpop.f32.mrf.mxu1 }
 0xaa3   : > { %v5927_v13 = vpack.c.bf16 %v2045_v23, %v2043_v21  ;;  %v5929_v14 = vpack.c.bf16 %v2118_v0, %v2116_v20  ;;  %v2120_v1 = vadd.f32 %v2119_v7, %v5915_v27  ;;  %v2047_v39 = vadd.f32 %v2046_v9, %v5917_v58 }
 0xaa4   : > { %v2048_v35 = vpop.f32.mrf.mxu0  ;;  %v2121_v38 = vpop.f32.mrf.mxu1 }
 0xaa5   : > { %v2049_v41 = vadd.f32 %v2048_v35, %v5919_v60  ;;  %v2122_v42 = vadd.f32 %v2121_v38, %v5921_v61 }
 0xaa6   : > { %v2052_v47 = vpop.f32.mrf.mxu0  ;;  %v2125_v44 = vpop.f32.mrf.mxu1 }
 0xaa7   : > { %v4006_v48 = vpack.c.bf16 %v2049_v41, %v2047_v39  ;;  %v4007_v4 = vpack.c.bf16 %v2122_v42, %v2120_v1  ;;  %v2126_v50 = vadd.f32 %v2125_v44, %v5915_v27  ;;  %v2053_v56 = vadd.f32 %v2052_v47, %v5917_v58 }
 0xaa8   : > { %v2054_v30 = vpop.f32.mrf.mxu0  ;;  %v2127_v55 = vpop.f32.mrf.mxu1 }
 0xaa9   : > { %2284 = vst [vmem:[#allocation2 + $0x58] sm:$0xff] %v4006_v48  ;;  %2285 = vst [vmem:[#allocation2 + $0x18] sm:$0xff] %v4007_v4  ;;  %v2055_v24 = vadd.f32 %v2054_v30, %v5919_v60  ;;  %v2128_v33 = vadd.f32 %v2127_v55, %v5921_v61 }
 0xaaa   : > { %v2056_v3 = vpop.f32.mrf.mxu0  ;;  %v2129_v20 = vpop.f32.mrf.mxu1 }
 0xaab   : > { %v4008_v15 = vpack.c.bf16 %v2055_v24, %v2053_v56  ;;  %v4009_v8 = vpack.c.bf16 %v2128_v33, %v2126_v50  ;;  %v2130_v21 = vadd.f32 %v2129_v20, %v5915_v27  ;;  %v2057_v9 = vadd.f32 %v2056_v3, %v5917_v58 }
 0xaac   : > { %v2058_v23 = vpop.f32.mrf.mxu0  ;;  %v2131_v0 = vpop.f32.mrf.mxu1 }
 0xaad   : > { %2286 = vst [vmem:[#allocation2 + $0x50] sm:$0xff] %v4008_v15  ;;  %2287 = vst [vmem:[#allocation2 + $0x68] sm:$0xff] %v4009_v8  ;;  %v2059_v7 = vadd.f32 %v2058_v23, %v5919_v60  ;;  %v2132_v1 = vadd.f32 %v2131_v0, %v5921_v61 }
 0xaae   : > { %v2062_v35 = vpop.f32.mrf.mxu0  ;;  %v2135_v38 = vpop.f32.mrf.mxu1 }
 0xaaf   : > { %v4010_v39 = vpack.c.bf16 %v2059_v7, %v2057_v9  ;;  %v4011_v41 = vpack.c.bf16 %v2132_v1, %v2130_v21  ;;  %v2136_v42 = vadd.f32 %v2135_v38, %v5915_v27  ;;  %v2063_v48 = vadd.f32 %v2062_v35, %v5917_v58 }
 0xab0   : > { %v2064_v47 = vpop.f32.mrf.mxu0  ;;  %v2137_v44 = vpop.f32.mrf.mxu1 }
 0xab1   : > { %2288 = vst [vmem:[#allocation2 + $0x8] sm:$0xff] %v4010_v39  ;;  %2289 = vst [vmem:[#allocation2 + $0x48] sm:$0xff] %v4011_v41  ;;  %v2065_v4 = vadd.f32 %v2064_v47, %v5919_v60  ;;  %v2138_v50 = vadd.f32 %v2137_v44, %v5921_v61 }
 0xab2   : > { %v2066_v30 = vpop.f32.mrf.mxu0  ;;  %v2139_v55 = vpop.f32.mrf.mxu1 }
 0xab3   : > { %v4012_v56 = vpack.c.bf16 %v2065_v4, %v2063_v48  ;;  %v4013_v24 = vpack.c.bf16 %v2138_v50, %v2136_v42  ;;  %v2140_v33 = vadd.f32 %v2139_v55, %v5915_v27  ;;  %v2067_v15 = vadd.f32 %v2066_v30, %v5917_v58 }
 0xab4   : > { %v2068_v3 = vpop.f32.mrf.mxu0  ;;  %v2141_v20 = vpop.f32.mrf.mxu1 }
 0xab5   : > { %2290 = vst [vmem:[#allocation2 + $0x40] sm:$0xff] %v4012_v56  ;;  %2291 = vst [vmem:[#allocation2 + $0x20] sm:$0xff] %v4013_v24  ;;  %v2069_v8 = vadd.f32 %v2068_v3, %v5919_v60  ;;  %v2142_v21 = vadd.f32 %v2141_v20, %v5921_v61  ;;  %v2300_v3 = vunpack.c.l.bf16 %v5927_v13 }
 0xab6   : > { %v2072_v23 = vpop.f32.mrf.mxu0  ;;  %v2145_v0 = vpop.f32.mrf.mxu1 }
 0xab7   : > { %v4014_v9 = vpack.c.bf16 %v2069_v8, %v2067_v15  ;;  %v4015_v7 = vpack.c.bf16 %v2142_v21, %v2140_v33  ;;  %v2146_v1 = vadd.f32 %v2145_v0, %v5915_v27  ;;  %v2073_v39 = vadd.f32 %v2072_v23, %v5917_v58 }
 0xab8   : > { %v2074_v35 = vpop.f32.mrf.mxu0  ;;  %v2147_v38 = vpop.f32.mrf.mxu1  ;;  %v2301_v0 = vunpack.c.h.bf16 %v5927_v13 }
 0xab9   : > { %2292 = vst [vmem:[#allocation2 + $0x10] sm:$0xff] %v4014_v9  ;;  %2293 = vst [vmem:[#allocation2 + $0x38] sm:$0xff] %v4015_v7  ;;  %v2075_v41 = vadd.f32 %v2074_v35, %v5919_v60  ;;  %v2148_v42 = vadd.f32 %v2147_v38, %v5921_v61 }
 0xaba   : > { %v2076_v47 = vpop.f32.mrf.mxu0  ;;  %v2149_v44 = vpop.f32.mrf.mxu1 }
 0xabb   : > { %v4016_v48 = vpack.c.bf16 %v2075_v41, %v2073_v39  ;;  %v4017_v4 = vpack.c.bf16 %v2148_v42, %v2146_v1  ;;  %v2150_v50 = vadd.f32 %v2149_v44, %v5915_v27  ;;  %v2077_v56 = vadd.f32 %v2076_v47, %v5917_v58 }
 0xabc   : > { %v2078_v30 = vpop.f32.mrf.mxu0  ;;  %v2151_v55 = vpop.f32.mrf.mxu1  ;;  %v2303_v39 = vunpack.c.h.bf16 %v5929_v14  ;;  %v2302_v42 = vunpack.c.l.bf16 %v5929_v14 }
 0xabd   : > { %2294 = vst [vmem:[#allocation2 + $0x60] sm:$0xff] %v4016_v48  ;;  %2295 = vst [vmem:[#allocation2 + $0x70] sm:$0xff] %v4017_v4  ;;  %v2079_v24 = vadd.f32 %v2078_v30, %v5919_v60  ;;  %v2152_v33 = vadd.f32 %v2151_v55, %v5921_v61 }
 0xabe   : > { %v2499_v20 = vpop.f32.mrf.mxu0  ;;  %v2540_v15 = vpop.f32.mrf.mxu1 }
 0xabf   : > { %v4018_v8 = vpack.c.bf16 %v2079_v24, %v2077_v56  ;;  %v4019_v21 = vpack.c.bf16 %v2152_v33, %v2150_v50  ;;  %v2547_v23 = vadd.f32 %v2499_v20, %v2300_v3  ;;  %v2549_v44 = vadd.f32 %v2540_v15, %v2302_v42  ;;  %v6513_v3 = vld [vmem:[#allocation55_spill] sm:$0xff] }
 0xac0   : > { %v2501_v27 = vpop.f32.mrf.mxu0  ;;  %v2542_v9 = vpop.f32.mrf.mxu1 }
 0xac1   : > { %2296 = vst [vmem:[#allocation2 + $0x78] sm:$0xff] %v4018_v8  ;;  %2297 = vst [vmem:[#allocation2 + $0x28] sm:$0xff] %v4019_v21  ;;  %v3953_v7 = vmul.f32 -1.442695, %v2547_v23  ;;  %v2548_v1 = vadd.f32 %v2501_v27, %v2301_v0  ;;  %v2550_v41 = vadd.f32 %v2542_v9, %v2303_v39 }
 0xac2   : > { %v2503_v58 = vpop.f32.mrf.mxu0  ;;  %v2544_v35 = vpop.f32.mrf.mxu1 }
 0xac3   : > { %4335 = vpow2.f32 %v3953_v7  ;;  %v3954_v60 = vmul.f32 -1.442695, %v2548_v1  ;;  %v3955_v47 = vmul.f32 -1.442695, %v2550_v41 }
 0xac4   : > { %v2504_v61 = vpop.f32.mrf.mxu0  ;;  %v2545_v38 = vpop.f32.mrf.mxu1 }
 0xac5   : > { %4337 = vpow2.f32 %v3954_v60 }
 0xac6   : > { %4339 = vpow2.f32 %v3955_v47 }
 0xad0   : > { %v4336_v13 = vpop.eup %4335 }
 0xad1   : > { %v2554_v48 = vadd.f32 1.0, %v4336_v13 }
 0xad2   : > { %v4338_v4 = vpop.eup %4337 }
 0xad3   : > { %4341 = vrcp.f32 %v2554_v48  ;;  %v2560_v50 = vadd.f32 1.0, %v4338_v4  ;;  %v4340_v30 = vpop.eup %4339 }
 0xad4   : > { %4343 = vtanh.f32 %v2549_v44  ;;  %v2567_v33 = vadd.f32 1.0, %v4340_v30 }
 0xad5   : > { %4345 = vrcp.f32 %v2560_v50 }
 0xad6   : > { %4347 = vrcp.f32 %v2567_v33 }
 0xae0   : > { %v4342_v55 = vpop.eup %4341 }
 0xae1   : > { %v4344_v56 = vpop.eup %4343 }
 0xae2   : > { %v4346_v24 = vpop.eup %4345  ;;  %v2571_v8 = vmul.f32 %v4344_v56, %v4342_v55 }
 0xae3   : > { %v2570_v20 = vmul.f32 %v4346_v24, %v6513_v3  ;;  %v4348_v14 = vpop.eup %4347 }
 0xae5   : > { %v5964_v21 = vadd.f32 %v2571_v8, %v2570_v20 }
 0xae7   : > { %4349 = vtanh.f32 %v5964_v21 }
 0xaf1   : > { %2577 = sbr.rel (%p3956_p0) target bundleno = 2808 (0xaf8), region = 144 }
 0xaf4   : > { %v4350_v15 = vpop.eup %4349 }
 0xaf5   : > { %v2574_v23 = vmul.f32 %v4350_v15, %v4348_v14 }
 0xaf7   : > { %2578 = vst [vmem:[#allocation15] sm:$0xff] %v2574_v23 }
 0xaf8 PF: > { %p3957_p1 = scmp.eq.s32.totalorder %s4792_s10, 1 }
 0xafa   : > { %2582 = sbr.rel (%p3957_p1) target bundleno = 2818 (0xb02), region = 148 }
 0xaff   : > { %v2583_v0 = vpack.c.bf16 %v2574_v23, %v2574_v23 }
 0xb01   : > { %2584 = vst [vmem:[#allocation3] sm:$0xf] %v2583_v0 }
 0xb02 PF: > { %2593 = vmatprep.subr.bf16.mxu0 %v5746_v49  ;;  %2634 = vmatprep.subr.bf16.mxu1 %v5750_v5  ;;  %v2592_v27 = vpack.c.bf16 %v2574_v23, %v2574_v23  ;;  %v2586_v9 = vld [vmem:[#allocation2 + $0x58] sm:$0xff] }
 0xb03   : > { %2594 = vmatpush1.bf16.msra.mxu0 %v5754_v51  ;;  %2635 = vmatpush1.bf16.msra.mxu1 %v5758_v52  ;;  %v2588_v7 = vunpack.c.l.bf16 %v2586_v9  ;;  %v2589_v1 = vunpack.c.h.bf16 %v2586_v9  ;;  %v2587_v44 = vld [vmem:[#allocation2 + $0x18] sm:$0xff] }
 0xb04   : > { %2595 = vmatprep.subr.bf16.mxu0 %v5764_v53  ;;  %2636 = vmatprep.subr.bf16.mxu1 %v5768_v54  ;;  %v2591_v50 = vunpack.c.h.bf16 %v2587_v44  ;;  %v2590_v30 = vunpack.c.l.bf16 %v2587_v44 }
 0xb05   : > { %2625 = vmatprep.mubr.bf16.mxu0 %v4811_v2  ;;  %2666 = vmatprep.mubr.bf16.mxu1 %v4811_v2 }
 0xb07   : > { %2596 = vmatpush1.bf16.msra.mxu0 %v5774_v28  ;;  %2637 = vmatpush1.bf16.msra.mxu1 %v5778_v29 }
 0xb08   : > { %2597 = vmatprep.subr.bf16.mxu0 %v5784_v31  ;;  %2638 = vmatprep.subr.bf16.mxu1 %v5788_v57 }
 0xb0b   : > { %2598 = vmatpush1.bf16.msra.mxu0 %v5796_v25  ;;  %2639 = vmatpush1.bf16.msra.mxu1 %v5800_v26 }
 0xb0c   : > { %2599 = vmatprep.subr.bf16.mxu0 %v5806_v59  ;;  %2640 = vmatprep.subr.bf16.mxu1 %v5810_v62 }
 0xb0f   : > { %2600 = vmatpush1.bf16.msra.mxu0 %v5816_v22  ;;  %2641 = vmatpush1.bf16.msra.mxu1 %v5820_v63 }
 0xb10   : > { %2601 = vmatprep.subr.bf16.mxu0 %v5826_v32  ;;  %2642 = vmatprep.subr.bf16.mxu1 %v5830_v16 }
 0xb13   : > { %2602 = vmatpush1.bf16.msra.mxu0 %v5838_v12  ;;  %2643 = vmatpush1.bf16.msra.mxu1 %v5842_v18 }
 0xb14   : > { %2603 = vmatprep.subr.bf16.mxu0 %v5848_v17  ;;  %2644 = vmatprep.subr.bf16.mxu1 %v5852_v6 }
 0xb17   : > { %2604 = vmatpush1.bf16.msra.mxu0 %v5858_v19  ;;  %2645 = vmatpush1.bf16.msra.mxu1 %v5862_v10 }
 0xb18   : > { %2605 = vmatprep.subr.bf16.mxu0 %v5868_v11  ;;  %2646 = vmatprep.subr.bf16.mxu1 %v5872_v34 }
 0xb1b   : > { %2606 = vmatpush1.bf16.msra.mxu0 %v5880_v36  ;;  %2647 = vmatpush1.bf16.msra.mxu1 %v5884_v37 }
 0xb1c   : > { %2607 = vmatprep.subr.bf16.mxu0 %v5890_v40  ;;  %2648 = vmatprep.subr.bf16.mxu1 %v5894_v43 }
 0xb1f   : > { %2608 = vmatpush1.bf16.msra.mxu0 %v5900_v45  ;;  %2649 = vmatpush1.bf16.msra.mxu1 %v5904_v46 }
 0xb22   : > { %2626 = vmatmul.mubr.bf16.vlgmr.msra.gmra.mxu0 %v2592_v27  ;;  %2667 = vmatmul.mubr.bf16.vlgmr.msra.gmra.mxu1 %v2592_v27 }
 0xbe2   : > { %v2627_v58 = vpop.f32.mrf.mxu0  ;;  %v2668_v35 = vpop.f32.mrf.mxu1 }
 0xbe3   : > { %v2675_v60 = vadd.f32 %v2627_v58, %v2588_v7  ;;  %v2677_v56 = vadd.f32 %v2668_v35, %v2590_v30 }
 0xbe4   : > { %v2629_v61 = vpop.f32.mrf.mxu0  ;;  %v2670_v38 = vpop.f32.mrf.mxu1 }
 0xbe5   : > { %v3958_v39 = vmul.f32 -1.442695, %v2675_v60  ;;  %v2676_v41 = vadd.f32 %v2629_v61, %v2589_v1  ;;  %v2678_v55 = vadd.f32 %v2670_v38, %v2591_v50 }
 0xbe6   : > { %v2631_v42 = vpop.f32.mrf.mxu0  ;;  %v2672_v47 = vpop.f32.mrf.mxu1 }
 0xbe7   : > { %4351 = vpow2.f32 %v3958_v39  ;;  %v3959_v13 = vmul.f32 -1.442695, %v2676_v41  ;;  %v3960_v24 = vmul.f32 -1.442695, %v2678_v55 }
 0xbe8   : > { %v2632_v48 = vpop.f32.mrf.mxu0  ;;  %v2673_v4 = vpop.f32.mrf.mxu1 }
 0xbe9   : > { %4353 = vpow2.f32 %v3959_v13 }
 0xbea   : > { %4355 = vtanh.f32 %v2677_v56 }
 0xbeb   : > { %4357 = vpow2.f32 %v3960_v24 }
 0xbf4   : > { %v4352_v33 = vpop.eup %4351 }
 0xbf5   : > { %v2682_v3 = vadd.f32 1.0, %v4352_v33 }
 0xbf6   : > { %v4354_v20 = vpop.eup %4353 }
 0xbf7   : > { %4359 = vrcp.f32 %v2682_v3  ;;  %v2688_v8 = vadd.f32 1.0, %v4354_v20  ;;  %v4356_v14 = vpop.eup %4355 }
 0xbf8   : > { %v4358_v15 = vpop.eup %4357 }
 0xbf9   : > { %4361 = vrcp.f32 %v2688_v8  ;;  %v2695_v27 = vadd.f32 1.0, %v4358_v15 }
 0xbfb   : > { %4363 = vrcp.f32 %v2695_v27 }
 0xc04   : > { %v4360_v23 = vpop.eup %4359 }
 0xc05   : > { %v2699_v7 = vmul.f32 %v4360_v23, %v4356_v14 }
 0xc06   : > { %v4362_v0 = vpop.eup %4361 }
 0xc07   : > { %v2698_v9 = vmul.f32 %v4362_v0, %v5964_v21 }
 0xc08   : > { %v4364_v58 = vpop.eup %4363 }
 0xc09   : > { %v6008_v1 = vadd.f32 %v2699_v7, %v2698_v9 }
 0xc0b   : > { %4365 = vtanh.f32 %v6008_v1 }
 0xc15   : > { %2705 = sbr.rel (%p3956_p0) target bundleno = 3100 (0xc1c), region = 152 }
 0xc18   : > { %v4366_v35 = vpop.eup %4365 }
 0xc19   : > { %v2702_v60 = vmul.f32 %v4366_v35, %v4364_v58 }
 0xc1b   : > { %2707 = vst [vmem:[#allocation15 + $0x8] sm:$0xff] %v2702_v60 }
 0xc1c PF: > { %2710 = sbr.rel (%p3957_p1) target bundleno = 3108 (0xc24), region = 156 }
 0xc21   : > { %v2711_v61 = vpack.c.bf16 %v2702_v60, %v2702_v60 }
 0xc23   : > { %2713 = vst [vmem:[#allocation3 + $0x4] sm:$0xf] %v2711_v61 }
 0xc24 PF: > { %2722 = vmatprep.subr.bf16.mxu0 %v5746_v49  ;;  %2763 = vmatprep.subr.bf16.mxu1 %v5750_v5  ;;  %v2721_v21 = vpack.c.bf16 %v2702_v60, %v2702_v60  ;;  %v2715_v38 = vld [vmem:[#allocation2 + $0x50] sm:$0xff]  ;;  %v2716_v24 = vld [vmem:[#allocation2 + $0x68] sm:$0xff] }
 0xc25   : > { %2723 = vmatpush1.bf16.msra.mxu0 %v5754_v51  ;;  %2764 = vmatpush1.bf16.msra.mxu1 %v5758_v52  ;;  %v2717_v39 = vunpack.c.l.bf16 %v2715_v38  ;;  %v2718_v41 = vunpack.c.h.bf16 %v2715_v38  ;;  %v2720_v20 = vunpack.c.h.bf16 %v2716_v24  ;;  %v2719_v8 = vunpack.c.l.bf16 %v2716_v24 }
 0xc26   : > { %2724 = vmatprep.subr.bf16.mxu0 %v5764_v53  ;;  %2765 = vmatprep.subr.bf16.mxu1 %v5768_v54 }
 0xc27   : > { %2754 = vmatprep.mubr.bf16.mxu0 %v4811_v2  ;;  %2795 = vmatprep.mubr.bf16.mxu1 %v4811_v2 }
 0xc29   : > { %2725 = vmatpush1.bf16.msra.mxu0 %v5774_v28  ;;  %2766 = vmatpush1.bf16.msra.mxu1 %v5778_v29 }
 0xc2a   : > { %2726 = vmatprep.subr.bf16.mxu0 %v5784_v31  ;;  %2767 = vmatprep.subr.bf16.mxu1 %v5788_v57 }
 0xc2d   : > { %2727 = vmatpush1.bf16.msra.mxu0 %v5796_v25  ;;  %2768 = vmatpush1.bf16.msra.mxu1 %v5800_v26 }
 0xc2e   : > { %2728 = vmatprep.subr.bf16.mxu0 %v5806_v59  ;;  %2769 = vmatprep.subr.bf16.mxu1 %v5810_v62 }
 0xc31   : > { %2729 = vmatpush1.bf16.msra.mxu0 %v5816_v22  ;;  %2770 = vmatpush1.bf16.msra.mxu1 %v5820_v63 }
 0xc32   : > { %2730 = vmatprep.subr.bf16.mxu0 %v5826_v32  ;;  %2771 = vmatprep.subr.bf16.mxu1 %v5830_v16 }
 0xc35   : > { %2731 = vmatpush1.bf16.msra.mxu0 %v5838_v12  ;;  %2772 = vmatpush1.bf16.msra.mxu1 %v5842_v18 }
 0xc36   : > { %2732 = vmatprep.subr.bf16.mxu0 %v5848_v17  ;;  %2773 = vmatprep.subr.bf16.mxu1 %v5852_v6 }
 0xc39   : > { %2733 = vmatpush1.bf16.msra.mxu0 %v5858_v19  ;;  %2774 = vmatpush1.bf16.msra.mxu1 %v5862_v10 }
 0xc3a   : > { %2734 = vmatprep.subr.bf16.mxu0 %v5868_v11  ;;  %2775 = vmatprep.subr.bf16.mxu1 %v5872_v34 }
 0xc3d   : > { %2735 = vmatpush1.bf16.msra.mxu0 %v5880_v36  ;;  %2776 = vmatpush1.bf16.msra.mxu1 %v5884_v37 }
 0xc3e   : > { %2736 = vmatprep.subr.bf16.mxu0 %v5890_v40  ;;  %2777 = vmatprep.subr.bf16.mxu1 %v5894_v43 }
 0xc41   : > { %2737 = vmatpush1.bf16.msra.mxu0 %v5900_v45  ;;  %2778 = vmatpush1.bf16.msra.mxu1 %v5904_v46 }
 0xc44   : > { %2755 = vmatmul.mubr.bf16.vlgmr.msra.gmra.mxu0 %v2721_v21  ;;  %2796 = vmatmul.mubr.bf16.vlgmr.msra.gmra.mxu1 %v2721_v21 }
 0xd04   : > { %v2756_v42 = vpop.f32.mrf.mxu0  ;;  %v2797_v47 = vpop.f32.mrf.mxu1 }
 0xd05   : > { %v2804_v13 = vadd.f32 %v2756_v42, %v2717_v39  ;;  %v2806_v15 = vadd.f32 %v2797_v47, %v2719_v8 }
 0xd06   : > { %v2758_v44 = vpop.f32.mrf.mxu0  ;;  %v2799_v48 = vpop.f32.mrf.mxu1 }
 0xd07   : > { %v3963_v4 = vmul.f32 -1.442695, %v2804_v13  ;;  %v2805_v50 = vadd.f32 %v2758_v44, %v2718_v41  ;;  %v2807_v14 = vadd.f32 %v2799_v48, %v2720_v20 }
 0xd08   : > { %v2760_v30 = vpop.f32.mrf.mxu0  ;;  %v2801_v55 = vpop.f32.mrf.mxu1 }
 0xd09   : > { %4367 = vpow2.f32 %v3963_v4  ;;  %v3964_v56 = vmul.f32 -1.442695, %v2805_v50  ;;  %v3965_v23 = vmul.f32 -1.442695, %v2807_v14 }
 0xd0a   : > { %v2761_v33 = vpop.f32.mrf.mxu0  ;;  %v2802_v3 = vpop.f32.mrf.mxu1 }
 0xd0b   : > { %4369 = vpow2.f32 %v3964_v56 }
 0xd0c   : > { %4371 = vtanh.f32 %v2806_v15 }
 0xd0d   : > { %4373 = vpow2.f32 %v3965_v23 }
 0xd16   : > { %v4368_v0 = vpop.eup %4367 }
 0xd17   : > { %v2811_v27 = vadd.f32 1.0, %v4368_v0 }
 0xd18   : > { %v4370_v9 = vpop.eup %4369 }
 0xd19   : > { %4375 = vrcp.f32 %v2811_v27  ;;  %v2817_v7 = vadd.f32 1.0, %v4370_v9  ;;  %v4372_v58 = vpop.eup %4371 }
 0xd1a   : > { %v4374_v35 = vpop.eup %4373 }
 0xd1b   : > { %4377 = vrcp.f32 %v2817_v7  ;;  %v2824_v21 = vadd.f32 1.0, %v4374_v35 }
 0xd1d   : > { %4379 = vrcp.f32 %v2824_v21 }
 0xd26   : > { %v4376_v60 = vpop.eup %4375 }
 0xd27   : > { %v2828_v39 = vmul.f32 %v4376_v60, %v4372_v58 }
 0xd28   : > { %v4378_v61 = vpop.eup %4377 }
 0xd29   : > { %v2827_v38 = vmul.f32 %v4378_v61, %v6008_v1 }
 0xd2a   : > { %v4380_v42 = vpop.eup %4379 }
 0xd2b   : > { %v6050_v41 = vadd.f32 %v2828_v39, %v2827_v38 }
 0xd2d   : > { %4381 = vtanh.f32 %v6050_v41 }
 0xd37   : > { %2834 = sbr.rel (%p3956_p0) target bundleno = 3390 (0xd3e), region = 160 }
 0xd3a   : > { %v4382_v47 = vpop.eup %4381 }
 0xd3b   : > { %v2831_v13 = vmul.f32 %v4382_v47, %v4380_v42 }
 0xd3d   : > { %2836 = vst [vmem:[#allocation15 + $0x10] sm:$0xff] %v2831_v13 }
 0xd3e PF: > { %2839 = sbr.rel (%p3957_p1) target bundleno = 3398 (0xd46), region = 164 }
 0xd43   : > { %v2840_v44 = vpack.c.bf16 %v2831_v13, %v2831_v13 }
 0xd45   : > { %2842 = vst [vmem:[#allocation3 + $0x8] sm:$0xf] %v2840_v44 }
 0xd46 PF: > { %2851 = vmatprep.subr.bf16.mxu0 %v5746_v49  ;;  %2892 = vmatprep.subr.bf16.mxu1 %v5750_v5  ;;  %v2850_v1 = vpack.c.bf16 %v2831_v13, %v2831_v13  ;;  %v2844_v48 = vld [vmem:[#allocation2 + $0x8] sm:$0xff] }
 0xd47   : > { %2852 = vmatpush1.bf16.msra.mxu0 %v5754_v51  ;;  %2893 = vmatpush1.bf16.msra.mxu1 %v5758_v52  ;;  %v2846_v4 = vunpack.c.l.bf16 %v2844_v48  ;;  %v2847_v50 = vunpack.c.h.bf16 %v2844_v48  ;;  %v2845_v23 = vld [vmem:[#allocation2 + $0x48] sm:$0xff] }
 0xd48   : > { %2853 = vmatprep.subr.bf16.mxu0 %v5764_v53  ;;  %2894 = vmatprep.subr.bf16.mxu1 %v5768_v54  ;;  %v2849_v9 = vunpack.c.h.bf16 %v2845_v23  ;;  %v2848_v7 = vunpack.c.l.bf16 %v2845_v23 }
 0xd49   : > { %2883 = vmatprep.mubr.bf16.mxu0 %v4811_v2  ;;  %2924 = vmatprep.mubr.bf16.mxu1 %v4811_v2 }
 0xd4b   : > { %2854 = vmatpush1.bf16.msra.mxu0 %v5774_v28  ;;  %2895 = vmatpush1.bf16.msra.mxu1 %v5778_v29 }
 0xd4c   : > { %2855 = vmatprep.subr.bf16.mxu0 %v5784_v31  ;;  %2896 = vmatprep.subr.bf16.mxu1 %v5788_v57 }
 0xd4f   : > { %2856 = vmatpush1.bf16.msra.mxu0 %v5796_v25  ;;  %2897 = vmatpush1.bf16.msra.mxu1 %v5800_v26 }
 0xd50   : > { %2857 = vmatprep.subr.bf16.mxu0 %v5806_v59  ;;  %2898 = vmatprep.subr.bf16.mxu1 %v5810_v62 }
 0xd53   : > { %2858 = vmatpush1.bf16.msra.mxu0 %v5816_v22  ;;  %2899 = vmatpush1.bf16.msra.mxu1 %v5820_v63 }
 0xd54   : > { %2859 = vmatprep.subr.bf16.mxu0 %v5826_v32  ;;  %2900 = vmatprep.subr.bf16.mxu1 %v5830_v16 }
 0xd57   : > { %2860 = vmatpush1.bf16.msra.mxu0 %v5838_v12  ;;  %2901 = vmatpush1.bf16.msra.mxu1 %v5842_v18 }
 0xd58   : > { %2861 = vmatprep.subr.bf16.mxu0 %v5848_v17  ;;  %2902 = vmatprep.subr.bf16.mxu1 %v5852_v6 }
 0xd5b   : > { %2862 = vmatpush1.bf16.msra.mxu0 %v5858_v19  ;;  %2903 = vmatpush1.bf16.msra.mxu1 %v5862_v10 }
 0xd5c   : > { %2863 = vmatprep.subr.bf16.mxu0 %v5868_v11  ;;  %2904 = vmatprep.subr.bf16.mxu1 %v5872_v34 }
 0xd5f   : > { %2864 = vmatpush1.bf16.msra.mxu0 %v5880_v36  ;;  %2905 = vmatpush1.bf16.msra.mxu1 %v5884_v37 }
 0xd60   : > { %2865 = vmatprep.subr.bf16.mxu0 %v5890_v40  ;;  %2906 = vmatprep.subr.bf16.mxu1 %v5894_v43 }
 0xd63   : > { %2866 = vmatpush1.bf16.msra.mxu0 %v5900_v45  ;;  %2907 = vmatpush1.bf16.msra.mxu1 %v5904_v46 }
 0xd66   : > { %2884 = vmatmul.mubr.bf16.vlgmr.msra.gmra.mxu0 %v2850_v1  ;;  %2925 = vmatmul.mubr.bf16.vlgmr.msra.gmra.mxu1 %v2850_v1 }
 0xe26   : > { %v2885_v30 = vpop.f32.mrf.mxu0  ;;  %v2926_v55 = vpop.f32.mrf.mxu1 }
 0xe27   : > { %v2933_v56 = vadd.f32 %v2885_v30, %v2846_v4  ;;  %v2935_v35 = vadd.f32 %v2926_v55, %v2848_v7 }
 0xe28   : > { %v2887_v24 = vpop.f32.mrf.mxu0  ;;  %v2928_v33 = vpop.f32.mrf.mxu1 }
 0xe29   : > { %v3968_v3 = vmul.f32 -1.442695, %v2933_v56  ;;  %v2934_v20 = vadd.f32 %v2887_v24, %v2847_v50  ;;  %v2936_v58 = vadd.f32 %v2928_v33, %v2849_v9 }
 0xe2a   : > { %v2889_v8 = vpop.f32.mrf.mxu0  ;;  %v2930_v14 = vpop.f32.mrf.mxu1 }
 0xe2b   : > { %4383 = vpow2.f32 %v3968_v3  ;;  %v3969_v15 = vmul.f32 -1.442695, %v2934_v20  ;;  %v3970_v60 = vmul.f32 -1.442695, %v2936_v58 }
 0xe2c   : > { %v2890_v0 = vpop.f32.mrf.mxu0  ;;  %v2931_v27 = vpop.f32.mrf.mxu1 }
 0xe2d   : > { %4385 = vpow2.f32 %v3969_v15 }
 0xe2e   : > { %4387 = vtanh.f32 %v2935_v35 }
 0xe2f   : > { %4389 = vpow2.f32 %v3970_v60 }
 0xe38   : > { %v4384_v61 = vpop.eup %4383 }
 0xe39   : > { %v2940_v21 = vadd.f32 1.0, %v4384_v61 }
 0xe3a   : > { %v4386_v38 = vpop.eup %4385 }
 0xe3b   : > { %4391 = vrcp.f32 %v2940_v21  ;;  %v2946_v39 = vadd.f32 1.0, %v4386_v38  ;;  %v4388_v42 = vpop.eup %4387 }
 0xe3c   : > { %v4390_v47 = vpop.eup %4389 }
 0xe3d   : > { %4393 = vrcp.f32 %v2946_v39  ;;  %v2953_v1 = vadd.f32 1.0, %v4390_v47 }
 0xe3f   : > { %4395 = vrcp.f32 %v2953_v1 }
 0xe48   : > { %v4392_v13 = vpop.eup %4391 }
 0xe49   : > { %v2957_v4 = vmul.f32 %v4392_v13, %v4388_v42 }
 0xe4a   : > { %v4394_v44 = vpop.eup %4393 }
 0xe4b   : > { %v2956_v48 = vmul.f32 %v4394_v44, %v6050_v41 }
 0xe4c   : > { %v4396_v30 = vpop.eup %4395 }
 0xe4d   : > { %v6092_v50 = vadd.f32 %v2957_v4, %v2956_v48 }
 0xe4f   : > { %4397 = vtanh.f32 %v6092_v50 }
 0xe59   : > { %2963 = sbr.rel (%p3956_p0) target bundleno = 3680 (0xe60), region = 168 }
 0xe5c   : > { %v4398_v55 = vpop.eup %4397 }
 0xe5d   : > { %v2960_v56 = vmul.f32 %v4398_v55, %v4396_v30 }
 0xe5f   : > { %2965 = vst [vmem:[#allocation15 + $0x18] sm:$0xff] %v2960_v56 }
 0xe60 PF: > { %2968 = sbr.rel (%p3957_p1) target bundleno = 3688 (0xe68), region = 172 }
 0xe65   : > { %v2969_v24 = vpack.c.bf16 %v2960_v56, %v2960_v56 }
 0xe67   : > { %2971 = vst [vmem:[#allocation3 + $0xc] sm:$0xf] %v2969_v24 }
 0xe68 PF: > { %2980 = vmatprep.subr.bf16.mxu0 %v5746_v49  ;;  %3021 = vmatprep.subr.bf16.mxu1 %v5750_v5  ;;  %v2979_v41 = vpack.c.bf16 %v2960_v56, %v2960_v56  ;;  %v2973_v33 = vld [vmem:[#allocation2 + $0x40] sm:$0xff] }
 0xe69   : > { %2981 = vmatpush1.bf16.msra.mxu0 %v5754_v51  ;;  %3022 = vmatpush1.bf16.msra.mxu1 %v5758_v52  ;;  %v2975_v3 = vunpack.c.l.bf16 %v2973_v33  ;;  %v2976_v20 = vunpack.c.h.bf16 %v2973_v33  ;;  %v2974_v60 = vld [vmem:[#allocation2 + $0x20] sm:$0xff] }
 0xe6a   : > { %2982 = vmatprep.subr.bf16.mxu0 %v5764_v53  ;;  %3023 = vmatprep.subr.bf16.mxu1 %v5768_v54  ;;  %v2978_v38 = vunpack.c.h.bf16 %v2974_v60  ;;  %v2977_v39 = vunpack.c.l.bf16 %v2974_v60 }
 0xe6b   : > { %3012 = vmatprep.mubr.bf16.mxu0 %v4811_v2  ;;  %3053 = vmatprep.mubr.bf16.mxu1 %v4811_v2 }
 0xe6d   : > { %2983 = vmatpush1.bf16.msra.mxu0 %v5774_v28  ;;  %3024 = vmatpush1.bf16.msra.mxu1 %v5778_v29 }
 0xe6e   : > { %2984 = vmatprep.subr.bf16.mxu0 %v5784_v31  ;;  %3025 = vmatprep.subr.bf16.mxu1 %v5788_v57 }
 0xe71   : > { %2985 = vmatpush1.bf16.msra.mxu0 %v5796_v25  ;;  %3026 = vmatpush1.bf16.msra.mxu1 %v5800_v26 }
 0xe72   : > { %2986 = vmatprep.subr.bf16.mxu0 %v5806_v59  ;;  %3027 = vmatprep.subr.bf16.mxu1 %v5810_v62 }
 0xe75   : > { %2987 = vmatpush1.bf16.msra.mxu0 %v5816_v22  ;;  %3028 = vmatpush1.bf16.msra.mxu1 %v5820_v63 }
 0xe76   : > { %2988 = vmatprep.subr.bf16.mxu0 %v5826_v32  ;;  %3029 = vmatprep.subr.bf16.mxu1 %v5830_v16 }
 0xe79   : > { %2989 = vmatpush1.bf16.msra.mxu0 %v5838_v12  ;;  %3030 = vmatpush1.bf16.msra.mxu1 %v5842_v18 }
 0xe7a   : > { %2990 = vmatprep.subr.bf16.mxu0 %v5848_v17  ;;  %3031 = vmatprep.subr.bf16.mxu1 %v5852_v6 }
 0xe7d   : > { %2991 = vmatpush1.bf16.msra.mxu0 %v5858_v19  ;;  %3032 = vmatpush1.bf16.msra.mxu1 %v5862_v10 }
 0xe7e   : > { %2992 = vmatprep.subr.bf16.mxu0 %v5868_v11  ;;  %3033 = vmatprep.subr.bf16.mxu1 %v5872_v34 }
 0xe81   : > { %2993 = vmatpush1.bf16.msra.mxu0 %v5880_v36  ;;  %3034 = vmatpush1.bf16.msra.mxu1 %v5884_v37 }
 0xe82   : > { %2994 = vmatprep.subr.bf16.mxu0 %v5890_v40  ;;  %3035 = vmatprep.subr.bf16.mxu1 %v5894_v43 }
 0xe85   : > { %2995 = vmatpush1.bf16.msra.mxu0 %v5900_v45  ;;  %3036 = vmatpush1.bf16.msra.mxu1 %v5904_v46 }
 0xe88   : > { %3013 = vmatmul.mubr.bf16.vlgmr.msra.gmra.mxu0 %v2979_v41  ;;  %3054 = vmatmul.mubr.bf16.vlgmr.msra.gmra.mxu1 %v2979_v41 }
 0xf48   : > { %v3014_v8 = vpop.f32.mrf.mxu0  ;;  %v3055_v14 = vpop.f32.mrf.mxu1 }
 0xf49   : > { %v3062_v15 = vadd.f32 %v3014_v8, %v2975_v3  ;;  %v3064_v47 = vadd.f32 %v3055_v14, %v2977_v39 }
 0xf4a   : > { %v3016_v23 = vpop.f32.mrf.mxu0  ;;  %v3057_v0 = vpop.f32.mrf.mxu1 }
 0xf4b   : > { %v3973_v27 = vmul.f32 -1.442695, %v3062_v15  ;;  %v3063_v9 = vadd.f32 %v3016_v23, %v2976_v20  ;;  %v3065_v42 = vadd.f32 %v3057_v0, %v2978_v38 }
 0xf4c   : > { %v3018_v7 = vpop.f32.mrf.mxu0  ;;  %v3059_v58 = vpop.f32.mrf.mxu1 }
 0xf4d   : > { %4399 = vpow2.f32 %v3973_v27  ;;  %v3974_v35 = vmul.f32 -1.442695, %v3063_v9  ;;  %v3975_v13 = vmul.f32 -1.442695, %v3065_v42 }
 0xf4e   : > { %v3019_v61 = vpop.f32.mrf.mxu0  ;;  %v3060_v21 = vpop.f32.mrf.mxu1 }
 0xf4f   : > { %4401 = vpow2.f32 %v3974_v35 }
 0xf50   : > { %4403 = vtanh.f32 %v3064_v47 }
 0xf51   : > { %4405 = vpow2.f32 %v3975_v13 }
 0xf5a   : > { %v4400_v44 = vpop.eup %4399 }
 0xf5b   : > { %v3069_v1 = vadd.f32 1.0, %v4400_v44 }
 0xf5c   : > { %v4402_v48 = vpop.eup %4401 }
 0xf5d   : > { %4407 = vrcp.f32 %v3069_v1  ;;  %v3075_v4 = vadd.f32 1.0, %v4402_v48  ;;  %v4404_v30 = vpop.eup %4403 }
 0xf5e   : > { %v4406_v55 = vpop.eup %4405 }
 0xf5f   : > { %4409 = vrcp.f32 %v3075_v4  ;;  %v3082_v41 = vadd.f32 1.0, %v4406_v55 }
 0xf61   : > { %4411 = vrcp.f32 %v3082_v41 }
 0xf6a   : > { %v4408_v56 = vpop.eup %4407 }
 0xf6b   : > { %v3086_v3 = vmul.f32 %v4408_v56, %v4404_v30 }
 0xf6c   : > { %v4410_v24 = vpop.eup %4409 }
 0xf6d   : > { %v3085_v33 = vmul.f32 %v4410_v24, %v6092_v50 }
 0xf6e   : > { %v4412_v8 = vpop.eup %4411 }
 0xf6f   : > { %v6134_v20 = vadd.f32 %v3086_v3, %v3085_v33 }
 0xf71   : > { %4413 = vtanh.f32 %v6134_v20 }
 0xf7b   : > { %3092 = sbr.rel (%p3956_p0) target bundleno = 3970 (0xf82), region = 176 }
 0xf7e   : > { %v4414_v14 = vpop.eup %4413 }
 0xf7f   : > { %v3089_v15 = vmul.f32 %v4414_v14, %v4412_v8 }
 0xf81   : > { %3094 = vst [vmem:[#allocation15 + $0x20] sm:$0xff] %v3089_v15 }
 0xf82 PF: > { %3097 = sbr.rel (%p3957_p1) target bundleno = 3978 (0xf8a), region = 180 }
 0xf87   : > { %v3098_v23 = vpack.c.bf16 %v3089_v15, %v3089_v15 }
 0xf89   : > { %3100 = vst [vmem:[#allocation3 + $0x10] sm:$0xf] %v3098_v23 }
 0xf8a PF: > { %3109 = vmatprep.subr.bf16.mxu0 %v5746_v49  ;;  %3150 = vmatprep.subr.bf16.mxu1 %v5750_v5  ;;  %v3108_v50 = vpack.c.bf16 %v3089_v15, %v3089_v15  ;;  %v3102_v0 = vld [vmem:[#allocation2 + $0x10] sm:$0xff]  ;;  %v3103_v13 = vld [vmem:[#allocation2 + $0x38] sm:$0xff] }
 0xf8b   : > { %3110 = vmatpush1.bf16.msra.mxu0 %v5754_v51  ;;  %3151 = vmatpush1.bf16.msra.mxu1 %v5758_v52  ;;  %v3104_v27 = vunpack.c.l.bf16 %v3102_v0  ;;  %v3105_v9 = vunpack.c.h.bf16 %v3102_v0  ;;  %v3107_v48 = vunpack.c.h.bf16 %v3103_v13  ;;  %v3106_v4 = vunpack.c.l.bf16 %v3103_v13 }
 0xf8c   : > { %3111 = vmatprep.subr.bf16.mxu0 %v5764_v53  ;;  %3152 = vmatprep.subr.bf16.mxu1 %v5768_v54 }
 0xf8d   : > { %3141 = vmatprep.mubr.bf16.mxu0 %v4811_v2  ;;  %3182 = vmatprep.mubr.bf16.mxu1 %v4811_v2 }
 0xf8f   : > { %3112 = vmatpush1.bf16.msra.mxu0 %v5774_v28  ;;  %3153 = vmatpush1.bf16.msra.mxu1 %v5778_v29 }
 0xf90   : > { %3113 = vmatprep.subr.bf16.mxu0 %v5784_v31  ;;  %3154 = vmatprep.subr.bf16.mxu1 %v5788_v57 }
 0xf93   : > { %3114 = vmatpush1.bf16.msra.mxu0 %v5796_v25  ;;  %3155 = vmatpush1.bf16.msra.mxu1 %v5800_v26 }
 0xf94   : > { %3115 = vmatprep.subr.bf16.mxu0 %v5806_v59  ;;  %3156 = vmatprep.subr.bf16.mxu1 %v5810_v62 }
 0xf97   : > { %3116 = vmatpush1.bf16.msra.mxu0 %v5816_v22  ;;  %3157 = vmatpush1.bf16.msra.mxu1 %v5820_v63 }
 0xf98   : > { %3117 = vmatprep.subr.bf16.mxu0 %v5826_v32  ;;  %3158 = vmatprep.subr.bf16.mxu1 %v5830_v16 }
 0xf9b   : > { %3118 = vmatpush1.bf16.msra.mxu0 %v5838_v12  ;;  %3159 = vmatpush1.bf16.msra.mxu1 %v5842_v18 }
 0xf9c   : > { %3119 = vmatprep.subr.bf16.mxu0 %v5848_v17  ;;  %3160 = vmatprep.subr.bf16.mxu1 %v5852_v6 }
 0xf9f   : > { %3120 = vmatpush1.bf16.msra.mxu0 %v5858_v19  ;;  %3161 = vmatpush1.bf16.msra.mxu1 %v5862_v10 }
 0xfa0   : > { %3121 = vmatprep.subr.bf16.mxu0 %v5868_v11  ;;  %3162 = vmatprep.subr.bf16.mxu1 %v5872_v34 }
 0xfa3   : > { %3122 = vmatpush1.bf16.msra.mxu0 %v5880_v36  ;;  %3163 = vmatpush1.bf16.msra.mxu1 %v5884_v37 }
 0xfa4   : > { %3123 = vmatprep.subr.bf16.mxu0 %v5890_v40  ;;  %3164 = vmatprep.subr.bf16.mxu1 %v5894_v43 }
 0xfa7   : > { %3124 = vmatpush1.bf16.msra.mxu0 %v5900_v45  ;;  %3165 = vmatpush1.bf16.msra.mxu1 %v5904_v46 }
 0xfaa   : > { %3142 = vmatmul.mubr.bf16.vlgmr.msra.gmra.mxu0 %v3108_v50  ;;  %3183 = vmatmul.mubr.bf16.vlgmr.msra.gmra.mxu1 %v3108_v50 }
0x106a   : > { %v3143_v7 = vpop.f32.mrf.mxu0  ;;  %v3184_v58 = vpop.f32.mrf.mxu1 }
0x106b   : > { %v3191_v35 = vadd.f32 %v3143_v7, %v3104_v27  ;;  %v3193_v55 = vadd.f32 %v3184_v58, %v3106_v4 }
0x106c   : > { %v3145_v60 = vpop.f32.mrf.mxu0  ;;  %v3186_v61 = vpop.f32.mrf.mxu1 }
0x106d   : > { %v3978_v21 = vmul.f32 -1.442695, %v3191_v35  ;;  %v3192_v38 = vadd.f32 %v3145_v60, %v3105_v9  ;;  %v3194_v30 = vadd.f32 %v3186_v61, %v3107_v48 }
0x106e   : > { %v3147_v39 = vpop.f32.mrf.mxu0  ;;  %v3188_v42 = vpop.f32.mrf.mxu1 }
0x106f   : > { %4415 = vpow2.f32 %v3978_v21  ;;  %v3979_v47 = vmul.f32 -1.442695, %v3192_v38  ;;  %v3980_v56 = vmul.f32 -1.442695, %v3194_v30 }
0x1070   : > { %v3148_v44 = vpop.f32.mrf.mxu0  ;;  %v3189_v1 = vpop.f32.mrf.mxu1 }
0x1071   : > { %4417 = vpow2.f32 %v3979_v47 }
0x1072   : > { %4419 = vtanh.f32 %v3193_v55 }
0x1073   : > { %4421 = vpow2.f32 %v3980_v56 }
0x107c   : > { %v4416_v24 = vpop.eup %4415 }
0x107d   : > { %v3198_v41 = vadd.f32 1.0, %v4416_v24 }
0x107e   : > { %v4418_v33 = vpop.eup %4417 }
0x107f   : > { %4423 = vrcp.f32 %v3198_v41  ;;  %v3204_v3 = vadd.f32 1.0, %v4418_v33  ;;  %v4420_v8 = vpop.eup %4419 }
0x1080   : > { %v4422_v14 = vpop.eup %4421 }
0x1081   : > { %4425 = vrcp.f32 %v3204_v3  ;;  %v3211_v50 = vadd.f32 1.0, %v4422_v14 }
0x1083   : > { %4427 = vrcp.f32 %v3211_v50 }
0x108c   : > { %v4424_v15 = vpop.eup %4423 }
0x108d   : > { %v3215_v27 = vmul.f32 %v4424_v15, %v4420_v8 }
0x108e   : > { %v4426_v23 = vpop.eup %4425 }
0x108f   : > { %v3214_v0 = vmul.f32 %v4426_v23, %v6134_v20 }
0x1090   : > { %v4428_v7 = vpop.eup %4427 }
0x1091   : > { %v6176_v9 = vadd.f32 %v3215_v27, %v3214_v0 }
0x1093   : > { %4429 = vtanh.f32 %v6176_v9 }
0x109d   : > { %3221 = sbr.rel (%p3956_p0) target bundleno = 4260 (0x10a4), region = 184 }
0x10a0   : > { %v4430_v58 = vpop.eup %4429 }
0x10a1   : > { %v3218_v35 = vmul.f32 %v4430_v58, %v4428_v7 }
0x10a3   : > { %3223 = vst [vmem:[#allocation15 + $0x28] sm:$0xff] %v3218_v35 }
0x10a4 PF: > { %3226 = sbr.rel (%p3957_p1) target bundleno = 4268 (0x10ac), region = 188 }
0x10a9   : > { %v3227_v60 = vpack.c.bf16 %v3218_v35, %v3218_v35 }
0x10ab   : > { %3229 = vst [vmem:[#allocation3 + $0x14] sm:$0xf] %v3227_v60 }
0x10ac PF: > { %3238 = vmatprep.subr.bf16.mxu0 %v5746_v49  ;;  %3279 = vmatprep.subr.bf16.mxu1 %v5750_v5  ;;  %v3237_v20 = vpack.c.bf16 %v3218_v35, %v3218_v35  ;;  %v3231_v61 = vld [vmem:[#allocation2 + $0x60] sm:$0xff]  ;;  %v3232_v56 = vld [vmem:[#allocation2 + $0x70] sm:$0xff] }
0x10ad   : > { %3239 = vmatpush1.bf16.msra.mxu0 %v5754_v51  ;;  %3280 = vmatpush1.bf16.msra.mxu1 %v5758_v52  ;;  %v3233_v21 = vunpack.c.l.bf16 %v3231_v61  ;;  %v3234_v38 = vunpack.c.h.bf16 %v3231_v61  ;;  %v3236_v33 = vunpack.c.h.bf16 %v3232_v56  ;;  %v3235_v3 = vunpack.c.l.bf16 %v3232_v56 }
0x10ae   : > { %3240 = vmatprep.subr.bf16.mxu0 %v5764_v53  ;;  %3281 = vmatprep.subr.bf16.mxu1 %v5768_v54 }
0x10af   : > { %3270 = vmatprep.mubr.bf16.mxu0 %v4811_v2  ;;  %3311 = vmatprep.mubr.bf16.mxu1 %v4811_v2 }
0x10b1   : > { %3241 = vmatpush1.bf16.msra.mxu0 %v5774_v28  ;;  %3282 = vmatpush1.bf16.msra.mxu1 %v5778_v29 }
0x10b2   : > { %3242 = vmatprep.subr.bf16.mxu0 %v5784_v31  ;;  %3283 = vmatprep.subr.bf16.mxu1 %v5788_v57 }
0x10b5   : > { %3243 = vmatpush1.bf16.msra.mxu0 %v5796_v25  ;;  %3284 = vmatpush1.bf16.msra.mxu1 %v5800_v26 }
0x10b6   : > { %3244 = vmatprep.subr.bf16.mxu0 %v5806_v59  ;;  %3285 = vmatprep.subr.bf16.mxu1 %v5810_v62 }
0x10b9   : > { %3245 = vmatpush1.bf16.msra.mxu0 %v5816_v22  ;;  %3286 = vmatpush1.bf16.msra.mxu1 %v5820_v63 }
0x10ba   : > { %3246 = vmatprep.subr.bf16.mxu0 %v5826_v32  ;;  %3287 = vmatprep.subr.bf16.mxu1 %v5830_v16 }
0x10bd   : > { %3247 = vmatpush1.bf16.msra.mxu0 %v5838_v12  ;;  %3288 = vmatpush1.bf16.msra.mxu1 %v5842_v18 }
0x10be   : > { %3248 = vmatprep.subr.bf16.mxu0 %v5848_v17  ;;  %3289 = vmatprep.subr.bf16.mxu1 %v5852_v6 }
0x10c1   : > { %3249 = vmatpush1.bf16.msra.mxu0 %v5858_v19  ;;  %3290 = vmatpush1.bf16.msra.mxu1 %v5862_v10 }
0x10c2   : > { %3250 = vmatprep.subr.bf16.mxu0 %v5868_v11  ;;  %3291 = vmatprep.subr.bf16.mxu1 %v5872_v34 }
0x10c5   : > { %3251 = vmatpush1.bf16.msra.mxu0 %v5880_v36  ;;  %3292 = vmatpush1.bf16.msra.mxu1 %v5884_v37 }
0x10c6   : > { %3252 = vmatprep.subr.bf16.mxu0 %v5890_v40  ;;  %3293 = vmatprep.subr.bf16.mxu1 %v5894_v43 }
0x10c9   : > { %3253 = vmatpush1.bf16.msra.mxu0 %v5900_v45  ;;  %3294 = vmatpush1.bf16.msra.mxu1 %v5904_v46 }
0x10cc   : > { %3271 = vmatmul.mubr.bf16.vlgmr.msra.gmra.mxu0 %v3237_v20  ;;  %3312 = vmatmul.mubr.bf16.vlgmr.msra.gmra.mxu1 %v3237_v20 }
0x118c   : > { %v3272_v39 = vpop.f32.mrf.mxu0  ;;  %v3313_v42 = vpop.f32.mrf.mxu1 }
0x118d   : > { %v3320_v47 = vadd.f32 %v3272_v39, %v3233_v21  ;;  %v3322_v14 = vadd.f32 %v3313_v42, %v3235_v3 }
0x118e   : > { %v3274_v13 = vpop.f32.mrf.mxu0  ;;  %v3315_v44 = vpop.f32.mrf.mxu1 }
0x118f   : > { %v3983_v1 = vmul.f32 -1.442695, %v3320_v47  ;;  %v3321_v48 = vadd.f32 %v3274_v13, %v3234_v38  ;;  %v3323_v8 = vadd.f32 %v3315_v44, %v3236_v33 }
0x1190   : > { %v3276_v4 = vpop.f32.mrf.mxu0  ;;  %v3317_v30 = vpop.f32.mrf.mxu1 }
0x1191   : > { %4431 = vpow2.f32 %v3983_v1  ;;  %v3984_v55 = vmul.f32 -1.442695, %v3321_v48  ;;  %v3985_v15 = vmul.f32 -1.442695, %v3323_v8 }
0x1192   : > { %v3277_v24 = vpop.f32.mrf.mxu0  ;;  %v3318_v41 = vpop.f32.mrf.mxu1 }
0x1193   : > { %4433 = vpow2.f32 %v3984_v55 }
0x1194   : > { %4435 = vtanh.f32 %v3322_v14 }
0x1195   : > { %4437 = vpow2.f32 %v3985_v15 }
0x119e   : > { %v4432_v23 = vpop.eup %4431 }
0x119f   : > { %v3327_v50 = vadd.f32 1.0, %v4432_v23 }
0x11a0   : > { %v4434_v0 = vpop.eup %4433 }
0x11a1   : > { %4439 = vrcp.f32 %v3327_v50  ;;  %v3333_v27 = vadd.f32 1.0, %v4434_v0  ;;  %v4436_v7 = vpop.eup %4435 }
0x11a2   : > { %v4438_v58 = vpop.eup %4437 }
0x11a3   : > { %4441 = vrcp.f32 %v3333_v27  ;;  %v3340_v20 = vadd.f32 1.0, %v4438_v58 }
0x11a5   : > { %4443 = vrcp.f32 %v3340_v20 }
0x11ae   : > { %v4440_v35 = vpop.eup %4439 }
0x11af   : > { %v3344_v21 = vmul.f32 %v4440_v35, %v4436_v7 }
0x11b0   : > { %v4442_v60 = vpop.eup %4441 }
0x11b1   : > { %v3343_v61 = vmul.f32 %v4442_v60, %v6176_v9 }
0x11b2   : > { %v4444_v39 = vpop.eup %4443 }
0x11b3   : > { %v6218_v38 = vadd.f32 %v3344_v21, %v3343_v61 }
0x11b5   : > { %4445 = vtanh.f32 %v6218_v38 }
0x11bf   : > { %3350 = sbr.rel (%p3956_p0) target bundleno = 4550 (0x11c6), region = 192 }
0x11c2   : > { %v4446_v42 = vpop.eup %4445 }
0x11c3   : > { %v3347_v47 = vmul.f32 %v4446_v42, %v4444_v39 }
0x11c5   : > { %3352 = vst [vmem:[#allocation15 + $0x30] sm:$0xff] %v3347_v47 }
0x11c6 PF: > { %3355 = sbr.rel (%p3957_p1) target bundleno = 4558 (0x11ce), region = 196 }
0x11cb   : > { %v3356_v13 = vpack.c.bf16 %v3347_v47, %v3347_v47 }
0x11cd   : > { %3358 = vst [vmem:[#allocation3 + $0x18] sm:$0xf] %v3356_v13 }
0x11ce PF: > { %3367 = vmatprep.subr.bf16.mxu0 %v5746_v49  ;;  %3408 = vmatprep.subr.bf16.mxu1 %v5750_v5  ;;  %v3360_v49 = vld [vmem:[#allocation2 + $0x78] sm:$0xff] }
0x11cf   : > { %3368 = vmatpush1.bf16.msra.mxu0 %v5754_v51  ;;  %3409 = vmatpush1.bf16.msra.mxu1 %v5758_v52  ;;  %v3362_v5 = vunpack.c.l.bf16 %v3360_v49  ;;  %v3363_v51 = vunpack.c.h.bf16 %v3360_v49 }
0x11d0   : > { %3369 = vmatprep.subr.bf16.mxu0 %v5764_v53  ;;  %3410 = vmatprep.subr.bf16.mxu1 %v5768_v54 }
0x11d1   : > { %3399 = vmatprep.mubr.bf16.mxu0 %v4811_v2  ;;  %3440 = vmatprep.mubr.bf16.mxu1 %v4811_v2  ;;  %v3366_v2 = vpack.c.bf16 %v3347_v47, %v3347_v47 }
0x11d3   : > { %3370 = vmatpush1.bf16.msra.mxu0 %v5774_v28  ;;  %3411 = vmatpush1.bf16.msra.mxu1 %v5778_v29 }
0x11d4   : > { %3371 = vmatprep.subr.bf16.mxu0 %v5784_v31  ;;  %3412 = vmatprep.subr.bf16.mxu1 %v5788_v57 }
0x11d7   : > { %3372 = vmatpush1.bf16.msra.mxu0 %v5796_v25  ;;  %3413 = vmatpush1.bf16.msra.mxu1 %v5800_v26 }
0x11d8   : > { %3373 = vmatprep.subr.bf16.mxu0 %v5806_v59  ;;  %3414 = vmatprep.subr.bf16.mxu1 %v5810_v62  ;;  %v3361_v62 = vld [vmem:[#allocation2 + $0x28] sm:$0xff] }
0x11db   : > { %3374 = vmatpush1.bf16.msra.mxu0 %v5816_v22  ;;  %3415 = vmatpush1.bf16.msra.mxu1 %v5820_v63 }
0x11dc   : > { %3375 = vmatprep.subr.bf16.mxu0 %v5826_v32  ;;  %3416 = vmatprep.subr.bf16.mxu1 %v5830_v16  ;;  %v3365_v32 = vunpack.c.h.bf16 %v3361_v62  ;;  %v3364_v16 = vunpack.c.l.bf16 %v3361_v62 }
0x11df   : > { %3376 = vmatpush1.bf16.msra.mxu0 %v5838_v12  ;;  %3417 = vmatpush1.bf16.msra.mxu1 %v5842_v18 }
0x11e0   : > { %3377 = vmatprep.subr.bf16.mxu0 %v5848_v17  ;;  %3418 = vmatprep.subr.bf16.mxu1 %v5852_v6 }
0x11e3   : > { %3378 = vmatpush1.bf16.msra.mxu0 %v5858_v19  ;;  %3419 = vmatpush1.bf16.msra.mxu1 %v5862_v10 }
0x11e4   : > { %3379 = vmatprep.subr.bf16.mxu0 %v5868_v11  ;;  %3420 = vmatprep.subr.bf16.mxu1 %v5872_v34 }
0x11e7   : > { %3380 = vmatpush1.bf16.msra.mxu0 %v5880_v36  ;;  %3421 = vmatpush1.bf16.msra.mxu1 %v5884_v37 }
0x11e8   : > { %3381 = vmatprep.subr.bf16.mxu0 %v5890_v40  ;;  %3422 = vmatprep.subr.bf16.mxu1 %v5894_v43 }
0x11eb   : > { %3382 = vmatpush1.bf16.msra.mxu0 %v5900_v45  ;;  %3423 = vmatpush1.bf16.msra.mxu1 %v5904_v46 }
0x11ee   : > { %3400 = vmatmul.mubr.bf16.vlgmr.msra.gmra.mxu0 %v3366_v2  ;;  %3441 = vmatmul.mubr.bf16.vlgmr.msra.gmra.mxu1 %v3366_v2 }
0x12ae   : > { %v3401_v52 = vpop.f32.mrf.mxu0  ;;  %v3442_v53 = vpop.f32.mrf.mxu1 }
0x12af   : > { %v3449_v54 = vadd.f32 %v3401_v52, %v3362_v5  ;;  %v3451_v18 = vadd.f32 %v3442_v53, %v3364_v16 }
0x12b0   : > { %v3403_v28 = vpop.f32.mrf.mxu0  ;;  %v3444_v29 = vpop.f32.mrf.mxu1 }
0x12b1   : > { %v3988_v31 = vmul.f32 -1.442695, %v3449_v54  ;;  %v3450_v57 = vadd.f32 %v3403_v28, %v3363_v51  ;;  %v3452_v12 = vadd.f32 %v3444_v29, %v3365_v32 }
0x12b2   : > { %v3405_v25 = vpop.f32.mrf.mxu0  ;;  %v3446_v26 = vpop.f32.mrf.mxu1 }
0x12b3   : > { %4447 = vpow2.f32 %v3988_v31  ;;  %v3989_v59 = vmul.f32 -1.442695, %v3450_v57  ;;  %v3990_v17 = vmul.f32 -1.442695, %v3452_v12 }
0x12b4   : > { %v3406_v22 = vpop.f32.mrf.mxu0  ;;  %v3447_v63 = vpop.f32.mrf.mxu1 }
0x12b5   : > { %4449 = vpow2.f32 %v3989_v59 }
0x12b6   : > { %4451 = vtanh.f32 %v3451_v18 }
0x12b7   : > { %4453 = vpow2.f32 %v3990_v17 }
0x12c0   : > { %v4448_v6 = vpop.eup %4447 }
0x12c1   : > { %v3456_v19 = vadd.f32 1.0, %v4448_v6 }
0x12c2   : > { %v4450_v10 = vpop.eup %4449 }
0x12c3   : > { %4455 = vrcp.f32 %v3456_v19  ;;  %v3462_v11 = vadd.f32 1.0, %v4450_v10  ;;  %v4452_v34 = vpop.eup %4451 }
0x12c4   : > { %v4454_v36 = vpop.eup %4453 }
0x12c5   : > { %4457 = vrcp.f32 %v3462_v11  ;;  %v3469_v43 = vadd.f32 1.0, %v4454_v36 }
0x12c7   : > { %4459 = vrcp.f32 %v3469_v43 }
0x12d0   : > { %v4456_v37 = vpop.eup %4455 }
0x12d1   : > { %v3473_v46 = vmul.f32 %v4456_v37, %v4452_v34 }
0x12d2   : > { %v4458_v40 = vpop.eup %4457 }
0x12d3   : > { %v3472_v45 = vmul.f32 %v4458_v40, %v6218_v38 }
0x12d4   : > { %v4460_v44 = vpop.eup %4459 }
0x12d5   : > { %v3474_v9 = vadd.f32 %v3473_v46, %v3472_v45 }
0x12d7   : > { %4461 = vtanh.f32 %v3474_v9 }
0x12e1   : > { %3479 = sbr.rel (%p3956_p0) target bundleno = 4840 (0x12e8), region = 200 }
0x12e4   : > { %v4462_v1 = vpop.eup %4461 }
0x12e5   : > { %v3476_v48 = vmul.f32 %v4462_v1, %v4460_v44 }
0x12e7   : > { %3481 = vst [vmem:[#allocation15 + $0x38] sm:$0xff] %v3476_v48 }
0x12e8 PF: > { %3484 = sbr.rel (%p3957_p1) target bundleno = 4848 (0x12f0), region = 204 }
0x12ed   : > { %v3485_v4 = vpack.c.bf16 %v3476_v48, %v3476_v48 }
0x12ef   : > { %3487 = vst [vmem:[#allocation3 + $0x1c] sm:$0xf] %v3485_v4 }
0x12f0 PF: > { %3488 = vst [vmem:[%s5236_s13] sm:$0xff] %v3476_v48  ;;  %3489 = vst [vmem:[%s5239_s2] sm:$0xff] %v3474_v9 }
0x12f1 PF: > { %s3996_s3 = sshll.u32 %s4792_s10, 7  ;;  %s3525_s25 = sshll.u32 %s5236_s13, 4  ;;  %s3526_s25 = int_to_ptr.vmem [resolvable:$true] %s3525_s25 }
0x12f2   : > { %s3523_s19 = scalar_lea.hbm %s6361_s7, %s3996_s3  ;;  %s3491_s15 = scalar_lea.sflag [#allocation17], %s5099_s1 }
0x12f3   : > { %s4629_s18 = scalar_lea.vmem %s3526_s25, 128  ;;  %p6514_p8 = scmp.ne.s32.totalorder %s6449_s30, 0 }
0x12f4   : > { %p4630_p12 = scmp.ne.s32.totalorder %s3526_s25, %s4629_s18  ;;  %s4812_s23 = smov [#allocation16]  }
0x12f5   : > { %s4633_s24 = sshll.u32 %s4812_s23, 4  ;;  %s4634_s24 = int_to_ptr.vmem [resolvable:$false] %s4633_s24 }
0x12f6   : > { %p4631_p9 = pnand %p4630_p12, %p6514_p8  ;;  %s4635_s12 = scalar_lea.vmem %s4634_s24, 256 }
0x12f7   : > { %p4636_p4 = scmp.lt.s32.totalorder %s3526_s25, %s4634_s24  ;;  %p4637_p3 = scmp.lt.s32.totalorder %s4635_s12, %s4629_s18 }
0x12f8   : > { %p4632_p10 = pneg %p4631_p9 }
0x12f9   : > { %p4638_p11 = por %p4637_p3, %p4636_p4 }
0x12fb   : > { %p4639_p5 = pnand %p4638_p11, %p4632_p10 }
0x12fd   : > { %4642 = shalt.err (!%p4639_p5)
}
0x12fe   : > { %s4643_s14 = scalar_lea.hbm %s3523_s19, 128  ;;  %s4647_s6 = scalar_lea.hbm %s6361_s7, 256 }
0x12ff   : > { %p4644_p7 = scmp.ne.s32.totalorder %s3523_s19, %s4643_s14  ;;  %p4648_p13 = scmp.lt.s32.totalorder %s3523_s19, %s6361_s7 }
0x1300   : > { %p4649_p0 = scmp.lt.s32.totalorder %s4647_s6, %s4643_s14 }
0x1301   : > { %p4645_p2 = pnand %p4644_p7, %p6514_p8 }
0x1302   : > { %p4650_p1 = por %p4649_p0, %p4648_p13 }
0x1303   : > { %p4646_p6 = pneg %p4645_p2 }
0x1305   : > { %p4651_p12 = pnand %p4650_p1, %p4646_p6 }
0x1307   : > { %4654 = shalt.err (!%p4651_p12)
}
0x1308   : > { %4036 = dma.vmem_to_hbm [thread:$0]  (%p6514_p8), %s3526_s25, 128, %s3523_s19, %s3491_s15  }
0x1309   : > { %s4813_s21 = smov [#allocation15]   ;;  %s6293_s18 = scalar_lea.hbm %s6362_s8, %s3996_s3 }
0x130a   : > { %s3508_s13 = sshll.u32 %s4813_s21, 4  ;;  %p6515_p10 = scmp.eq.s32.totalorder %s4992_s16, 1  ;;  %s3509_s13 = int_to_ptr.vmem [resolvable:$true] %s3508_s13 }
0x130b   : > { %s4655_s23 = scalar_lea.vmem %s3509_s13, 1024  ;;  %p4662_p11 = scmp.lt.s32.totalorder %s3509_s13, %s3509_s13 }
0x130c   : > { %p4656_p9 = scmp.ne.s32.totalorder %s3509_s13, %s4655_s23  ;;  %p4663_p5 = scmp.lt.s32.totalorder %s4655_s23, %s4655_s23 }
0x130e   : > { %p4657_p4 = pnand %p4656_p9, %p6515_p10  ;;  %p4664_p7 = por %p4663_p5, %p4662_p11 }
0x1310   : > { %p4658_p3 = pneg %p4657_p4 }
0x1312   : > { %p4665_p2 = pnand %p4664_p7, %p4658_p3 }
0x1314   : > { %4668 = shalt.err (!%p4665_p2)
}
0x1315   : > { %s4814_s19 = smov 128   ;;  %s4815_s10 = smov 8  }
0x1316   : > { %p6516_p6 = pmov %p6515_p10  ;;  %s6517_s3 = sld [smem:[#allocation59_spill]] }
0x1317   : > { %s3539_s12 = sshll.u32 %s5239_s2, 4  ;;  %s4816_s27 = smov [#allocation18]   ;;  %s3540_s12 = int_to_ptr.vmem [resolvable:$true] %s3539_s12 }
0x1318   : > { %s4679_s14 = scalar_lea.vmem %s3540_s12, 128  ;;  %s4683_s22 = sshll.u32 %s4816_s27, 4  ;;  %s4684_s22 = int_to_ptr.vmem [resolvable:$false] %s4683_s22 }
0x1319   : > { %p4680_p13 = scmp.ne.s32.totalorder %s3540_s12, %s4679_s14  ;;  %s4685_s6 = scalar_lea.vmem %s4684_s22, 256 }
0x131a   : > { %p4686_p12 = scmp.lt.s32.totalorder %s3540_s12, %s4684_s22  ;;  %p4687_p9 = scmp.lt.s32.totalorder %s4685_s6, %s4679_s14 }
0x131b   : > { %p4681_p0 = pnand %p4680_p13, %p6514_p8 }
0x131c   : > { %4035 = dma.vmem_to_hbm [thread:$0]  (%p6516_p6), %s3509_s13, 1024, %s6517_s3, [#allocation6], %s4814_s19, %s4814_s19, %s4815_s10  }
0x131d   : > { %p4682_p1 = pneg %p4681_p0  ;;  %p4688_p10 = por %p4687_p9, %p4686_p12 }
0x131f   : > { %p4689_p4 = pnand %p4688_p10, %p4682_p1 }
0x1321   : > { %4692 = shalt.err (!%p4689_p4)
}
0x1322   : > { %s4693_s2 = scalar_lea.hbm %s6293_s18, 128  ;;  %s4697_s21 = scalar_lea.hbm %s6362_s8, 256 }
0x1323   : > { %p4694_p3 = scmp.ne.s32.totalorder %s6293_s18, %s4693_s2  ;;  %p4698_p7 = scmp.lt.s32.totalorder %s6293_s18, %s6362_s8 }
0x1324   : > { %p4699_p2 = scmp.lt.s32.totalorder %s4697_s21, %s4693_s2 }
0x1325   : > { %p4695_p11 = pnand %p4694_p3, %p6514_p8 }
0x1326   : > { %p4700_p6 = por %p4699_p2, %p4698_p7 }
0x1327   : > { %p4696_p5 = pneg %p4695_p11 }
0x1329   : > { %p4701_p13 = pnand %p4700_p6, %p4696_p5 }
0x132b   : > { %4704 = shalt.err (!%p4701_p13)
}
0x132c   : > { %4037 = dma.vmem_to_hbm [thread:$0]  (%p6514_p8), %s3540_s12, 128, %s6293_s18, %s3491_s15  }
0x132d   : > { %p6518_p0 = scmp.eq.s32.totalorder %s4992_s16, 1 }
0x132f   : > { %4762 = dma.done.wait (%p6518_p0), [#allocation6], 1024   ;;  %p6519_p1 = pmov %p6518_p0 }
0x1331   : > { %4764 = vsyncadd (%p6519_p1), [#allocation6], 4294966272 }
0x1332 PF: > { %s6520_s20 = sld [smem:[#allocation27_spill]] }
0x1333   : > { %s6522_s19 = sld [smem:[#allocation30_spill]] }
0x1338   : > { %s6521_s23 = sadd.s32 4294967294, %s6520_s20   ;;  %p6524_p9 = scmp.ge.s32.totalorder %s6520_s20, 2 }
0x1339   : > { %s3555_s10 = sand.u32 1, %s6521_s23   ;;  %p6523_p12 = scmp.ne.s32.totalorder %s6522_s19, 0 }
0x133a   : > { %s3556_s30 = scalar_lea.sflag [#allocation17], %s3555_s10 }
0x133b   : > { %p4063_p10 = pnand %p6524_p9, %p6523_p12 }
0x133d   : > { %p4064_p4 = pneg %p4063_p10 }
0x133f   : > { %4766 = dma.done.wait (%p4064_p4), %s3556_s30, 256  }
0x1340   : > { %4768 = vsyncadd (%p4064_p4), %s3556_s30, 4294967040  ;;  %s33_s12 = sadd.s32 1, %s6520_s20   ;;  %s6525_s1 = sld [smem:[#allocation26_spill]] }
0x1341   : > { %p30_p8 = scmp.ge.s32.totalorder %s33_s12, 4   ;;  %s6526_s29 = sld [smem:[#allocation29_spill]] }
0x1342   : > { %s6527_s16 = sld [smem:[#allocation28_spill]]  ;;  %s6528_s27 = smov %s4776_s28 }
0x1343   : > { %s6530_s30 = smov %s4788_s9  ;;  %s6344_s9 = smov 0  }
0x1344   : > { %s6531_s10 = smov %s4796_s11  ;;  %32 = sbr.rel (!%p30_p8) target bundleno = 18 (0x12), region = 346 }
0x1346   : > { %s6529_s28 = smov %s6525_s1 }
0x1348   : > { %s6532_s11 = smov %s6527_s16 }
0x1349   :  { %3570 = vsyncpa [#allocation5], 1 }
0x134a   :  { %3572 = vsyncpa [#allocation5 + $0x1], 1 }
0x134b   :  { %3573 = vsyncpa [#allocation8], 1 }
0x134c   :  { %3575 = vsyncpa [#allocation8 + $0x1], 1 }
0x134d   :  { %3576 = vsyncpa [#allocation11], 1 }
0x134e   :  { %3578 = vsyncpa [#allocation11 + $0x1], 1 }
0x134f   :  { %3579 = vsyncpa [#allocation14], 1 }
0x1350   :  { %3581 = vsyncpa [#allocation14 + $0x1], 1 }
0x1351   :  { %3582 = vsyncpa [#allocation6], 1 }
0x1352   :  { %3584 = vsyncpa [#allocation6 + $0x1], 1 }
0x1353   :  { %3585 = vsyncpa [#allocation17], 1 }
0x1354   :  { %3587 = vsyncpa [#allocation17 + $0x1], 1 }

</bundles_post_ra>
